<compile_context>
chip_gen: v6e
topology: v6e:2x2x1
jax: 0.10.0
libtpu: 0.0.40
codegen_flags: <defaults>
</compile_context>

<pallas_src>
import jax
import jax.numpy as jnp
from jax import lax
from jax.experimental import pallas as pl
from jax.experimental.pallas import tpu as pltpu

EPS = 1e-5
LANE = 128


def _round_up(v, m):
    return (v + m - 1) // m * m


# ---------------------------------------------------------------- fused Pallas kernel
def _make_res_block_kernel(Ho, Wo, TR, s, Cp, Co, has_proj, LPAD, Ws):
    taps = [(dh, dw) for dh in range(3) for dw in range(3)]
    M1 = (TR + 2) * Wo          # conv1 rows per tile (incl. 1-row top/bottom halo)
    M = TR * Wo                 # conv2 / output rows per tile

    def kernel(*refs):
        if has_proj:
            (x_ref, w1_ref, b1_ref, w2_ref, b2_ref, wsc_ref,
             o_ref, scr, lhs1, lhs2) = refs
        else:
            (x_ref, w1_ref, b1_ref, w2_ref, b2_ref,
             o_ref, scr, lhs1, lhs2) = refs

        row0 = pl.program_id(1) * TR          # first output row of this tile

        # ---- conv1 (3x3, stride s) + folded BN1 + ReLU ------------------------
        # Stack the 9 shifted bf16 views along K, then ONE MXU matmul (K = 9*Cp).
        for t, (dh, dw) in enumerate(taps):
            ph = (dh % s) * s + (dw % s)      # stride-phase of the padded input
            oh, ow = dh // s, dw // s         # static offsets inside that phase
            xt = x_ref[ph, pl.ds(row0 + oh, TR + 2), ow:ow + Wo, :]
            lhs1[:, t * Cp:(t + 1) * Cp] = xt.reshape(M1, Cp)
        acc1 = jnp.dot(lhs1[...], w1_ref[...], preferred_element_type=jnp.float32)
        act1 = jnp.maximum(acc1 + b1_ref[...], 0.0)

        # ---- stage act1 into the bf16 VMEM scratch (stays on-chip) ------------
        # Interior is fully overwritten each step; only the narrow W zero strips
        # (conv2's left/right padding) are re-written, not the whole scratch.
        scr[:, 0:LPAD, :] = jnp.zeros((TR + 2, LPAD, Co), jnp.bfloat16)
        scr[:, LPAD + Wo:Ws, :] = jnp.zeros((TR + 2, Ws - LPAD - Wo, Co), jnp.bfloat16)
        scr[:, LPAD:LPAD + Wo, :] = act1.reshape(TR + 2, Wo, Co).astype(jnp.bfloat16)

        # Halo rows that fall outside the image are conv2's zero padding.
        @pl.when(row0 == 0)
        def _():
            scr[0, LPAD:LPAD + Wo, :] = jnp.zeros((Wo, Co), jnp.bfloat16)

        @pl.when(row0 + TR == Ho)
        def _():
            scr[TR + 1, LPAD:LPAD + Wo, :] = jnp.zeros((Wo, Co), jnp.bfloat16)

        # ---- conv2 (3x3, stride 1) + folded BN2 + fused shortcut + ReLU -------
        for t, (dh, dw) in enumerate(taps):
            a = scr[dh:dh + TR, LPAD - 1 + dw:LPAD - 1 + dw + Wo, :]
            lhs2[:, t * Co:(t + 1) * Co] = a.reshape(M, Co)
        acc2 = jnp.dot(lhs2[...], w2_ref[...], preferred_element_type=jnp.float32)

        if has_proj:
            # 1x1-conv (stride s) shortcut: one extra matmul into the same acc.
            phs = (1 % s) * s + (1 % s)
            bh, bw = 1 // s + 1, 1 // s
            xs = x_ref[phs, pl.ds(row0 + bh, TR), bw:bw + Wo, :].reshape(M, Cp)
            acc2 = acc2 + jnp.dot(xs, wsc_ref[...], preferred_element_type=jnp.float32)
        else:
            # identity shortcut: plain add of the (bf16) input tile, no matmul.
            xs = x_ref[0, pl.ds(row0 + 2, TR), 1:1 + Wo, :].reshape(M, Co)
            acc2 = acc2 + xs.astype(jnp.float32)

        y = jnp.maximum(acc2 + b2_ref[...], 0.0)
        o_ref[...] = y.reshape(1, TR, Wo, Co).astype(o_ref.dtype)

    return kernel


# ---------------------------------------------------------------- host-side helpers
def _fold_bn(bn):
    gamma, beta, mean, var = bn
    scale = gamma / jnp.sqrt(var + EPS)
    shift = beta - mean * scale
    return scale, shift


def _prep_conv3x3(w, scale, cin_p, cout_p):
    # (Cout, Cin, 3, 3) -> (9*cin_p, cout_p) bf16, BN scale folded into the columns.
    cout, cin = w.shape[0], w.shape[1]
    wm = jnp.transpose(w, (2, 3, 1, 0)).reshape(9, cin, cout) * scale[None, None, :]
    wm = jnp.pad(wm, ((0, 0), (0, cin_p - cin), (0, cout_p - cout)))
    return wm.reshape(9 * cin_p, cout_p).astype(jnp.bfloat16)


def _pad_shift(shift, co):
    return jnp.pad(shift, (0, co - shift.shape[0])).reshape(1, co).astype(jnp.float32)


def res_block_forward(x_nchw, params, stride=1):
    """ResBlock forward. x_nchw: (N, C_in, H, W) float32. Returns (N, C_out, Ho, Wo)."""
    x = jnp.transpose(x_nchw, (0, 2, 3, 1)).astype(jnp.bfloat16)   # NHWC, bf16
    N, H, W, Cin = x.shape
    Cout = params["w1"].shape[0]
    s = int(stride)
    has_proj = "w_sc" in params

    Ho = (H - 1) // s + 1
    Wo = (W - 1) // s + 1
    Cp = _round_up(Cin, LANE)    # padded input channels
    Co = _round_up(Cout, LANE)   # padded mid/output channels (lane-dense)
    TR = 8 if Ho % 8 == 0 else Ho          # output-row tile (spatial grid axis)
    RT = Ho // TR

    # --- fold BN into weight columns (scale) + a single per-channel shift
    s1, b1 = _fold_bn(params["bn1"])
    s2, b2 = _fold_bn(params["bn2"])
    w1m = _prep_conv3x3(params["w1"], s1, Cp, Co)     # (9*Cp, Co) bf16
    w2m = _prep_conv3x3(params["w2"], s2, Co, Co)     # (9*Co, Co) bf16
    b1v = _pad_shift(b1, Co)
    if has_proj:
        ssc, bsc = _fold_bn(params["bn_sc"])
        wsc = params["w_sc"].reshape(Cout, Cin).T * ssc[None, :]
        wsc = jnp.pad(wsc, ((0, Cp - Cin), (0, Co - Cout))).astype(jnp.bfloat16)
        b2v = _pad_shift(b2 + bsc, Co)               # shortcut BN shift pre-summed
    else:
        assert s == 1 and Cin == Cout, "identity shortcut requires stride=1, Cin==Cout"
        wsc = None
        b2v = _pad_shift(b2, Co)

    # --- spatially padded, channel-padded, stride-phase-decomposed bf16 input.
    # Extra `s` rows of zeros top/bottom give every phase one spare row so the
    # row-tiled kernel always reads a uniform (TR+2)-row halo window.
    off = 2 // s
    xp = jnp.pad(x, ((0, 0), (1 + s, 1 + s), (1, 1), (0, Cp - Cin)))
    Hp = Ho + off + 2
    Wp = _round_up(Wo + off, 8)
    phases = []
    for pr in range(s):
        for pc in range(s):
            phb = xp[:, pr::s, pc::s, :][:, :Hp, :Wp, :]
            phb = jnp.pad(phb, ((0, 0), (0, Hp - phb.shape[1]),
                                (0, Wp - phb.shape[2]), (0, 0)))
            phases.append(phb)
    xph = jnp.stack(phases, axis=1).reshape(N * s * s, Hp, Wp, Cp)

    LPAD = 8                                 # sublane-aligned act1 interior offset
    Ws = _round_up(LPAD + Wo + 1, 8)         # scratch width (left/right zero strips)
    kernel = _make_res_block_kernel(Ho, Wo, TR, s, Cp, Co, has_proj, LPAD, Ws)

    in_specs = [
        # whole (phase-decomposed) image: resident across row tiles, re-DMA'd per n
        pl.BlockSpec((s * s, Hp, Wp, Cp), lambda n, r: (n, 0, 0, 0)),
        pl.BlockSpec((9 * Cp, Co), lambda n, r: (0, 0)),
        pl.BlockSpec((1, Co), lambda n, r: (0, 0)),
        pl.BlockSpec((9 * Co, Co), lambda n, r: (0, 0)),
        pl.BlockSpec((1, Co), lambda n, r: (0, 0)),
    ]
    args = [xph, w1m, b1v, w2m, b2v]
    if has_proj:
        in_specs.append(pl.BlockSpec((Cp, Co), lambda n, r: (0, 0)))
        args.append(wsc)

    out = pl.pallas_call(
        kernel,
        out_shape=jax.ShapeDtypeStruct((N, Ho, Wo, Co), jnp.float32),
        grid=(N, RT),
        in_specs=in_specs,
        out_specs=pl.BlockSpec((1, TR, Wo, Co), lambda n, r: (n, r, 0, 0)),
        scratch_shapes=[
            pltpu.VMEM((TR + 2, Ws, Co), jnp.bfloat16),           # padded act1 tile
            pltpu.VMEM(((TR + 2) * Wo, 9 * Cp), jnp.bfloat16),    # conv1 K-concat LHS
            pltpu.VMEM((TR * Wo, 9 * Co), jnp.bfloat16),          # conv2 K-concat LHS
        ],
        compiler_params=pltpu.CompilerParams(
            dimension_semantics=("parallel", "arbitrary"),
        ),
    )(*args)

    out = out[:, :, :, :Cout]                       # drop channel padding
    return jnp.transpose(out, (0, 3, 1, 2))         # back to NCHW


# ---------------------------------------------------------------- pure-JAX reference
def _ref_forward(x_nchw, params, stride=1):
    x = jnp.transpose(x_nchw, (0, 2, 3, 1)).astype(jnp.float32)

    def conv(inp, w, s, pad):
        return lax.conv_general_dilated(
            inp, jnp.transpose(w, (2, 3, 1, 0)), (s, s), pad,
            dimension_numbers=("NHWC", "HWIO", "NHWC"),
            precision=lax.Precision.HIGHEST)

    def bn(inp, p):
        gamma, beta, mean, var = p
        return (inp - mean) / jnp.sqrt(var + EPS) * gamma + beta

    out = jax.nn.relu(bn(conv(x, params["w1"], stride, [(1, 1), (1, 1)]), params["bn1"]))
    out = bn(conv(out, params["w2"], 1, [(1, 1), (1, 1)]), params["bn2"])
    if "w_sc" in params:
        sc = bn(conv(x, params["w_sc"], stride, [(0, 0), (0, 0)]), params["bn_sc"])
    else:
        sc = x
    out = jax.nn.relu(out + sc)
    return jnp.transpose(out, (0, 3, 1, 2))


# ---------------------------------------------------------------- deterministic params
def make_params(key, c_in, c_out, stride):
    ks = jax.random.split(key, 16)

    def bn_params(k):
        k0, k1, k2, k3 = jax.random.split(k, 4)
        gamma = 1.0 + 0.1 * jax.random.normal(k0, (c_out,), jnp.float32)
        beta = 0.1 * jax.random.normal(k1, (c_out,), jnp.float32)
        mean = 0.1 * jax.random.normal(k2, (c_out,), jnp.float32)
        var = jax.random.uniform(k3, (c_out,), jnp.float32, 0.5, 1.5)
        return (gamma, beta, mean, var)

    params = {
        "w1": 0.1 * jax.random.normal(ks[0], (c_out, c_in, 3, 3), jnp.float32),
        "bn1": bn_params(ks[1]),
        "w2": 0.1 * jax.random.normal(ks[2], (c_out, c_out, 3, 3), jnp.float32),
        "bn2": bn_params(ks[3]),
    }
    if stride != 1 or c_in != c_out:
        params["w_sc"] = 0.1 * jax.random.normal(ks[4], (c_out, c_in, 1, 1), jnp.float32)
        params["bn_sc"] = bn_params(ks[5])
    return params


if __name__ == "__main__":
    key = jax.random.PRNGKey(0)

    configs = [
        # (N, C_in, H, W, C_out, stride)
        (2, 4, 16, 16, 8, 1),     # projection shortcut (C_in != C_out)
        (2, 8, 16, 16, 8, 1),     # identity shortcut
        (2, 8, 16, 16, 16, 2),    # strided projection shortcut
    ]
    for idx, (N, C_in, H, W, C_out, stride) in enumerate(configs):
        k_x, k_p = jax.random.split(jax.random.fold_in(key, idx))
        x = jax.random.normal(k_x, (N, C_in, H, W), jnp.float32)   # NCHW like PyTorch
        params = make_params(k_p, C_in, C_out, stride)

        out = jax.block_until_ready(res_block_forward(x, params, stride=stride))
        ref = jax.block_until_ready(_ref_forward(x, params, stride=stride))

        assert out.shape == ref.shape, (out.shape, ref.shape)
        # bf16 input/operands + f32 accumulation vs f32 HIGHEST reference -> loose tol.
        assert jnp.allclose(out, ref, atol=5e-2, rtol=5e-2), (
            f"config {idx}: max abs err {float(jnp.max(jnp.abs(out - ref)))}")

    print("KERNEL_OK")
</pallas_src>

<mosaic_0001>
module attributes {stable_mosaic.version = 11 : i64} {
  func.func @kernel(%arg0: i32, %arg1: i32, %arg2: memref<1x20x24x128xbf16, #tpu.memory_space<vmem>>, %arg3: memref<1152x128xbf16, #tpu.memory_space<vmem>>, %arg4: memref<1x128xf32, #tpu.memory_space<vmem>>, %arg5: memref<1152x128xbf16, #tpu.memory_space<vmem>>, %arg6: memref<1x128xf32, #tpu.memory_space<vmem>>, %arg7: memref<128x128xbf16, #tpu.memory_space<vmem>>, %arg8: memref<1x8x16x128xf32, #tpu.memory_space<vmem>>, %arg9: memref<10x32x128xbf16, #tpu.memory_space<vmem>>, %arg10: memref<160x1152xbf16, #tpu.memory_space<vmem>>, %arg11: memref<128x1152xbf16, #tpu.memory_space<vmem>>) attributes {dimension_semantics = [#tpu.dimension_semantics<parallel>, #tpu.dimension_semantics<arbitrary>], iteration_bounds = array<i64: 2, 2>, scalar_prefetch = 0 : i64, scratch_operands = 3 : i64, tpu.core_type = #tpu.core_type<tc>, window_params = [{transform_indices = @transform_0, window_bounds = array<i64: 1, 20, 24, 128>}, {pipeline_mode = #tpu.pipeline_mode<synchronous>, transform_indices = @transform_1, window_bounds = array<i64: 1152, 128>}, {pipeline_mode = #tpu.pipeline_mode<synchronous>, transform_indices = @transform_2, window_bounds = array<i64: 1, 128>}, {pipeline_mode = #tpu.pipeline_mode<synchronous>, transform_indices = @transform_3, window_bounds = array<i64: 1152, 128>}, {pipeline_mode = #tpu.pipeline_mode<synchronous>, transform_indices = @transform_4, window_bounds = array<i64: 1, 128>}, {pipeline_mode = #tpu.pipeline_mode<synchronous>, transform_indices = @transform_5, window_bounds = array<i64: 128, 128>}, {transform_indices = @transform_6, window_bounds = array<i64: 1, 8, 16, 128>}]} {
    %c8_i32 = arith.constant 8 : i32
    %0 = arith.muli %arg1, %c8_i32 : i32
    %c0_i32 = arith.constant 0 : i32
    %1 = arith.addi %0, %c0_i32 : i32
    %c0 = arith.constant 0 : index
    %2 = arith.index_cast %1 : i32 to index
    %c0_0 = arith.constant 0 : index
    %c0_1 = arith.constant 0 : index
    %3 = vector.load %arg2[%c0, %2, %c0_0, %c0_1] : memref<1x20x24x128xbf16, #tpu.memory_space<vmem>>, vector<1x10x16x128xbf16>
    %4 = vector.shape_cast %3 : vector<1x10x16x128xbf16> to vector<10x16x128xbf16>
    %5 = vector.shape_cast %4 : vector<10x16x128xbf16> to vector<160x128xbf16>
    %c0_2 = arith.constant 0 : index
    %c0_3 = arith.constant 0 : index
    %6 = vector.load %arg10[%c0_2, %c0_3] : memref<160x1152xbf16, #tpu.memory_space<vmem>>, vector<160x128xbf16>
    tpu.vector_store %arg10[%c0_2, %c0_3], %5 {strides = array<i32>} : memref<160x1152xbf16, #tpu.memory_space<vmem>>, vector<160x128xbf16>,
    %c0_i32_4 = arith.constant 0 : i32
    %7 = arith.addi %0, %c0_i32_4 : i32
    %c0_5 = arith.constant 0 : index
    %8 = arith.index_cast %7 : i32 to index
    %c1 = arith.constant 1 : index
    %c0_6 = arith.constant 0 : index
    %9 = vector.load %arg2[%c0_5, %8, %c1, %c0_6] : memref<1x20x24x128xbf16, #tpu.memory_space<vmem>>, vector<1x10x16x128xbf16>
    %10 = vector.shape_cast %9 : vector<1x10x16x128xbf16> to vector<10x16x128xbf16>
    %11 = vector.shape_cast %10 : vector<10x16x128xbf16> to vector<160x128xbf16>
    %c0_7 = arith.constant 0 : index
    %c128 = arith.constant 128 : index
    %12 = vector.load %arg10[%c0_7, %c128] : memref<160x1152xbf16, #tpu.memory_space<vmem>>, vector<160x128xbf16>
    tpu.vector_store %arg10[%c0_7, %c128], %11 {strides = array<i32>} : memref<160x1152xbf16, #tpu.memory_space<vmem>>, vector<160x128xbf16>,
    %c0_i32_8 = arith.constant 0 : i32
    %13 = arith.addi %0, %c0_i32_8 : i32
    %c0_9 = arith.constant 0 : index
    %14 = arith.index_cast %13 : i32 to index
    %c2 = arith.constant 2 : index
    %c0_10 = arith.constant 0 : index
    %15 = vector.load %arg2[%c0_9, %14, %c2, %c0_10] : memref<1x20x24x128xbf16, #tpu.memory_space<vmem>>, vector<1x10x16x128xbf16>
    %16 = vector.shape_cast %15 : vector<1x10x16x128xbf16> to vector<10x16x128xbf16>
    %17 = vector.shape_cast %16 : vector<10x16x128xbf16> to vector<160x128xbf16>
    %c0_11 = arith.constant 0 : index
    %c256 = arith.constant 256 : index
    %18 = vector.load %arg10[%c0_11, %c256] : memref<160x1152xbf16, #tpu.memory_space<vmem>>, vector<160x128xbf16>
    tpu.vector_store %arg10[%c0_11, %c256], %17 {strides = array<i32>} : memref<160x1152xbf16, #tpu.memory_space<vmem>>, vector<160x128xbf16>,
    %c1_i32 = arith.constant 1 : i32
    %19 = arith.addi %0, %c1_i32 : i32
    %c0_12 = arith.constant 0 : index
    %20 = arith.index_cast %19 : i32 to index
    %c0_13 = arith.constant 0 : index
    %c0_14 = arith.constant 0 : index
    %21 = vector.load %arg2[%c0_12, %20, %c0_13, %c0_14] : memref<1x20x24x128xbf16, #tpu.memory_space<vmem>>, vector<1x10x16x128xbf16>
    %22 = vector.shape_cast %21 : vector<1x10x16x128xbf16> to vector<10x16x128xbf16>
    %23 = vector.shape_cast %22 : vector<10x16x128xbf16> to vector<160x128xbf16>
    %c0_15 = arith.constant 0 : index
    %c384 = arith.constant 384 : index
    %24 = vector.load %arg10[%c0_15, %c384] : memref<160x1152xbf16, #tpu.memory_space<vmem>>, vector<160x128xbf16>
    tpu.vector_store %arg10[%c0_15, %c384], %23 {strides = array<i32>} : memref<160x1152xbf16, #tpu.memory_space<vmem>>, vector<160x128xbf16>,
    %c1_i32_16 = arith.constant 1 : i32
    %25 = arith.addi %0, %c1_i32_16 : i32
    %c0_17 = arith.constant 0 : index
    %26 = arith.index_cast %25 : i32 to index
    %c1_18 = arith.constant 1 : index
    %c0_19 = arith.constant 0 : index
    %27 = vector.load %arg2[%c0_17, %26, %c1_18, %c0_19] : memref<1x20x24x128xbf16, #tpu.memory_space<vmem>>, vector<1x10x16x128xbf16>
    %28 = vector.shape_cast %27 : vector<1x10x16x128xbf16> to vector<10x16x128xbf16>
    %29 = vector.shape_cast %28 : vector<10x16x128xbf16> to vector<160x128xbf16>
    %c0_20 = arith.constant 0 : index
    %c512 = arith.constant 512 : index
    %30 = vector.load %arg10[%c0_20, %c512] : memref<160x1152xbf16, #tpu.memory_space<vmem>>, vector<160x128xbf16>
    tpu.vector_store %arg10[%c0_20, %c512], %29 {strides = array<i32>} : memref<160x1152xbf16, #tpu.memory_space<vmem>>, vector<160x128xbf16>,
    %c1_i32_21 = arith.constant 1 : i32
    %31 = arith.addi %0, %c1_i32_21 : i32
    %c0_22 = arith.constant 0 : index
    %32 = arith.index_cast %31 : i32 to index
    %c2_23 = arith.constant 2 : index
    %c0_24 = arith.constant 0 : index
    %33 = vector.load %arg2[%c0_22, %32, %c2_23, %c0_24] : memref<1x20x24x128xbf16, #tpu.memory_space<vmem>>, vector<1x10x16x128xbf16>
    %34 = vector.shape_cast %33 : vector<1x10x16x128xbf16> to vector<10x16x128xbf16>
    %35 = vector.shape_cast %34 : vector<10x16x128xbf16> to vector<160x128xbf16>
    %c0_25 = arith.constant 0 : index
    %c640 = arith.constant 640 : index
    %36 = vector.load %arg10[%c0_25, %c640] : memref<160x1152xbf16, #tpu.memory_space<vmem>>, vector<160x128xbf16>
    tpu.vector_store %arg10[%c0_25, %c640], %35 {strides = array<i32>} : memref<160x1152xbf16, #tpu.memory_space<vmem>>, vector<160x128xbf16>,
    %c2_i32 = arith.constant 2 : i32
    %37 = arith.addi %0, %c2_i32 : i32
    %c0_26 = arith.constant 0 : index
    %38 = arith.index_cast %37 : i32 to index
    %c0_27 = arith.constant 0 : index
    %c0_28 = arith.constant 0 : index
    %39 = vector.load %arg2[%c0_26, %38, %c0_27, %c0_28] : memref<1x20x24x128xbf16, #tpu.memory_space<vmem>>, vector<1x10x16x128xbf16>
    %40 = vector.shape_cast %39 : vector<1x10x16x128xbf16> to vector<10x16x128xbf16>
    %41 = vector.shape_cast %40 : vector<10x16x128xbf16> to vector<160x128xbf16>
    %c0_29 = arith.constant 0 : index
    %c768 = arith.constant 768 : index
    %42 = vector.load %arg10[%c0_29, %c768] : memref<160x1152xbf16, #tpu.memory_space<vmem>>, vector<160x128xbf16>
    tpu.vector_store %arg10[%c0_29, %c768], %41 {strides = array<i32>} : memref<160x1152xbf16, #tpu.memory_space<vmem>>, vector<160x128xbf16>,
    %c2_i32_30 = arith.constant 2 : i32
    %43 = arith.addi %0, %c2_i32_30 : i32
    %c0_31 = arith.constant 0 : index
    %44 = arith.index_cast %43 : i32 to index
    %c1_32 = arith.constant 1 : index
    %c0_33 = arith.constant 0 : index
    %45 = vector.load %arg2[%c0_31, %44, %c1_32, %c0_33] : memref<1x20x24x128xbf16, #tpu.memory_space<vmem>>, vector<1x10x16x128xbf16>
    %46 = vector.shape_cast %45 : vector<1x10x16x128xbf16> to vector<10x16x128xbf16>
    %47 = vector.shape_cast %46 : vector<10x16x128xbf16> to vector<160x128xbf16>
    %c0_34 = arith.constant 0 : index
    %c896 = arith.constant 896 : index
    %48 = vector.load %arg10[%c0_34, %c896] : memref<160x1152xbf16, #tpu.memory_space<vmem>>, vector<160x128xbf16>
    tpu.vector_store %arg10[%c0_34, %c896], %47 {strides = array<i32>} : memref<160x1152xbf16, #tpu.memory_space<vmem>>, vector<160x128xbf16>,
    %c2_i32_35 = arith.constant 2 : i32
    %49 = arith.addi %0, %c2_i32_35 : i32
    %c0_36 = arith.constant 0 : index
    %50 = arith.index_cast %49 : i32 to index
    %c2_37 = arith.constant 2 : index
    %c0_38 = arith.constant 0 : index
    %51 = vector.load %arg2[%c0_36, %50, %c2_37, %c0_38] : memref<1x20x24x128xbf16, #tpu.memory_space<vmem>>, vector<1x10x16x128xbf16>
    %52 = vector.shape_cast %51 : vector<1x10x16x128xbf16> to vector<10x16x128xbf16>
    %53 = vector.shape_cast %52 : vector<10x16x128xbf16> to vector<160x128xbf16>
    %c0_39 = arith.constant 0 : index
    %c1024 = arith.constant 1024 : index
    %54 = vector.load %arg10[%c0_39, %c1024] : memref<160x1152xbf16, #tpu.memory_space<vmem>>, vector<160x128xbf16>
    tpu.vector_store %arg10[%c0_39, %c1024], %53 {strides = array<i32>} : memref<160x1152xbf16, #tpu.memory_space<vmem>>, vector<160x128xbf16>,
    %c0_40 = arith.constant 0 : index
    %c0_41 = arith.constant 0 : index
    %55 = vector.load %arg10[%c0_40, %c0_41] : memref<160x1152xbf16, #tpu.memory_space<vmem>>, vector<160x1152xbf16>
    %c0_42 = arith.constant 0 : index
    %c0_43 = arith.constant 0 : index
    %56 = vector.load %arg3[%c0_42, %c0_43] : memref<1152x128xbf16, #tpu.memory_space<vmem>>, vector<1152x128xbf16>
    %cst = arith.constant dense<0.000000e+00> : vector<160x128xf32>
    %57 = tpu.matmul %55, %56, %cst {dimension_numbers = #tpu.dot_dimension_numbers<[1], [0], [0], [1], [0, 0, 1, 1], [], []>} : vector<160x1152xbf16>, vector<1152x128xbf16>, vector<160x128xf32> -> vector<160x128xf32>
    %c0_44 = arith.constant 0 : index
    %c0_45 = arith.constant 0 : index
    %58 = vector.load %arg4[%c0_44, %c0_45] : memref<1x128xf32, #tpu.memory_space<vmem>>, vector<1x128xf32>
    %59 = vector.broadcast %58 : vector<1x128xf32> to vector<160x128xf32>
    %60 = arith.addf %57, %59 : vector<160x128xf32>
    %cst_46 = arith.constant 0.000000e+00 : f32
    %61 = vector.broadcast %cst_46 : f32 to vector<160x128xf32>
    %62 = arith.maximumf %60, %61 : vector<160x128xf32>
    %cst_47 = arith.constant 0.000000e+00 : bf16
    %63 = vector.broadcast %cst_47 : bf16 to vector<10x8x128xbf16>
    %c0_48 = arith.constant 0 : index
    %c0_49 = arith.constant 0 : index
    %c0_50 = arith.constant 0 : index
    %64 = vector.load %arg9[%c0_48, %c0_49, %c0_50] : memref<10x32x128xbf16, #tpu.memory_space<vmem>>, vector<10x8x128xbf16>
    tpu.vector_store %arg9[%c0_48, %c0_49, %c0_50], %63 {strides = array<i32>} : memref<10x32x128xbf16, #tpu.memory_space<vmem>>, vector<10x8x128xbf16>,
    %cst_51 = arith.constant 0.000000e+00 : bf16
    %65 = vector.broadcast %cst_51 : bf16 to vector<10x8x128xbf16>
    %c0_52 = arith.constant 0 : index
    %c24 = arith.constant 24 : index
    %c0_53 = arith.constant 0 : index
    %66 = vector.load %arg9[%c0_52, %c24, %c0_53] : memref<10x32x128xbf16, #tpu.memory_space<vmem>>, vector<10x8x128xbf16>
    tpu.vector_store %arg9[%c0_52, %c24, %c0_53], %65 {strides = array<i32>} : memref<10x32x128xbf16, #tpu.memory_space<vmem>>, vector<10x8x128xbf16>,
    %67 = vector.shape_cast %62 : vector<160x128xf32> to vector<10x16x128xf32>
    %68 = arith.truncf %67 : vector<10x16x128xf32> to vector<10x16x128xbf16>
    %c0_54 = arith.constant 0 : index
    %c8 = arith.constant 8 : index
    %c0_55 = arith.constant 0 : index
    %69 = vector.load %arg9[%c0_54, %c8, %c0_55] : memref<10x32x128xbf16, #tpu.memory_space<vmem>>, vector<10x16x128xbf16>
    tpu.vector_store %arg9[%c0_54, %c8, %c0_55], %68 {strides = array<i32>} : memref<10x32x128xbf16, #tpu.memory_space<vmem>>, vector<10x16x128xbf16>,
    %c0_i32_56 = arith.constant 0 : i32
    %70 = arith.cmpi eq, %0, %c0_i32_56 : i32
    %71 = arith.extui %70 : i1 to i32
    %c0_i32_57 = arith.constant 0 : i32
    %72 = arith.cmpi ne, %71, %c0_i32_57 : i32
    scf.if %72 {
      %cst_122 = arith.constant 0.000000e+00 : bf16
      %122 = vector.broadcast %cst_122 : bf16 to vector<16x128xbf16>
      %c0_123 = arith.constant 0 : index
      %c8_124 = arith.constant 8 : index
      %c0_125 = arith.constant 0 : index
      %123 = vector.load %arg9[%c0_123, %c8_124, %c0_125] : memref<10x32x128xbf16, #tpu.memory_space<vmem>>, vector<1x16x128xbf16>
      %124 = vector.shape_cast %123 : vector<1x16x128xbf16> to vector<16x128xbf16>
      %125 = vector.shape_cast %122 : vector<16x128xbf16> to vector<1x16x128xbf16>
      tpu.vector_store %arg9[%c0_123, %c8_124, %c0_125], %125 {strides = array<i32>} : memref<10x32x128xbf16, #tpu.memory_space<vmem>>, vector<1x16x128xbf16>,
    } else {
    }
    %c8_i32_58 = arith.constant 8 : i32
    %73 = arith.addi %0, %c8_i32_58 : i32
    %c16_i32 = arith.constant 16 : i32
    %74 = arith.cmpi eq, %73, %c16_i32 : i32
    %75 = arith.extui %74 : i1 to i32
    %c0_i32_59 = arith.constant 0 : i32
    %76 = arith.cmpi ne, %75, %c0_i32_59 : i32
    scf.if %76 {
      %cst_122 = arith.constant 0.000000e+00 : bf16
      %122 = vector.broadcast %cst_122 : bf16 to vector<16x128xbf16>
      %c9_123 = arith.constant 9 : index
      %c8_124 = arith.constant 8 : index
      %c0_125 = arith.constant 0 : index
      %123 = vector.load %arg9[%c9_123, %c8_124, %c0_125] : memref<10x32x128xbf16, #tpu.memory_space<vmem>>, vector<1x16x128xbf16>
      %124 = vector.shape_cast %123 : vector<1x16x128xbf16> to vector<16x128xbf16>
      %125 = vector.shape_cast %122 : vector<16x128xbf16> to vector<1x16x128xbf16>
      tpu.vector_store %arg9[%c9_123, %c8_124, %c0_125], %125 {strides = array<i32>} : memref<10x32x128xbf16, #tpu.memory_space<vmem>>, vector<1x16x128xbf16>,
    } else {
    }
    %c0_60 = arith.constant 0 : index
    %c7 = arith.constant 7 : index
    %c0_61 = arith.constant 0 : index
    %77 = vector.load %arg9[%c0_60, %c7, %c0_61] : memref<10x32x128xbf16, #tpu.memory_space<vmem>>, vector<8x16x128xbf16>
    %78 = vector.shape_cast %77 : vector<8x16x128xbf16> to vector<128x128xbf16>
    %c0_62 = arith.constant 0 : index
    %c0_63 = arith.constant 0 : index
    %79 = vector.load %arg11[%c0_62, %c0_63] : memref<128x1152xbf16, #tpu.memory_space<vmem>>, vector<128x128xbf16>
    tpu.vector_store %arg11[%c0_62, %c0_63], %78 {strides = array<i32>} : memref<128x1152xbf16, #tpu.memory_space<vmem>>, vector<128x128xbf16>,
    %c0_64 = arith.constant 0 : index
    %c8_65 = arith.constant 8 : index
    %c0_66 = arith.constant 0 : index
    %80 = vector.load %arg9[%c0_64, %c8_65, %c0_66] : memref<10x32x128xbf16, #tpu.memory_space<vmem>>, vector<8x16x128xbf16>
    %81 = vector.shape_cast %80 : vector<8x16x128xbf16> to vector<128x128xbf16>
    %c0_67 = arith.constant 0 : index
    %c128_68 = arith.constant 128 : index
    %82 = vector.load %arg11[%c0_67, %c128_68] : memref<128x1152xbf16, #tpu.memory_space<vmem>>, vector<128x128xbf16>
    tpu.vector_store %arg11[%c0_67, %c128_68], %81 {strides = array<i32>} : memref<128x1152xbf16, #tpu.memory_space<vmem>>, vector<128x128xbf16>,
    %c0_69 = arith.constant 0 : index
    %c9 = arith.constant 9 : index
    %c0_70 = arith.constant 0 : index
    %83 = vector.load %arg9[%c0_69, %c9, %c0_70] : memref<10x32x128xbf16, #tpu.memory_space<vmem>>, vector<8x16x128xbf16>
    %84 = vector.shape_cast %83 : vector<8x16x128xbf16> to vector<128x128xbf16>
    %c0_71 = arith.constant 0 : index
    %c256_72 = arith.constant 256 : index
    %85 = vector.load %arg11[%c0_71, %c256_72] : memref<128x1152xbf16, #tpu.memory_space<vmem>>, vector<128x128xbf16>
    tpu.vector_store %arg11[%c0_71, %c256_72], %84 {strides = array<i32>} : memref<128x1152xbf16, #tpu.memory_space<vmem>>, vector<128x128xbf16>,
    %c1_73 = arith.constant 1 : index
    %c7_74 = arith.constant 7 : index
    %c0_75 = arith.constant 0 : index
    %86 = vector.load %arg9[%c1_73, %c7_74, %c0_75] : memref<10x32x128xbf16, #tpu.memory_space<vmem>>, vector<8x16x128xbf16>
    %87 = vector.shape_cast %86 : vector<8x16x128xbf16> to vector<128x128xbf16>
    %c0_76 = arith.constant 0 : index
    %c384_77 = arith.constant 384 : index
    %88 = vector.load %arg11[%c0_76, %c384_77] : memref<128x1152xbf16, #tpu.memory_space<vmem>>, vector<128x128xbf16>
    tpu.vector_store %arg11[%c0_76, %c384_77], %87 {strides = array<i32>} : memref<128x1152xbf16, #tpu.memory_space<vmem>>, vector<128x128xbf16>,
    %c1_78 = arith.constant 1 : index
    %c8_79 = arith.constant 8 : index
    %c0_80 = arith.constant 0 : index
    %89 = vector.load %arg9[%c1_78, %c8_79, %c0_80] : memref<10x32x128xbf16, #tpu.memory_space<vmem>>, vector<8x16x128xbf16>
    %90 = vector.shape_cast %89 : vector<8x16x128xbf16> to vector<128x128xbf16>
    %c0_81 = arith.constant 0 : index
    %c512_82 = arith.constant 512 : index
    %91 = vector.load %arg11[%c0_81, %c512_82] : memref<128x1152xbf16, #tpu.memory_space<vmem>>, vector<128x128xbf16>
    tpu.vector_store %arg11[%c0_81, %c512_82], %90 {strides = array<i32>} : memref<128x1152xbf16, #tpu.memory_space<vmem>>, vector<128x128xbf16>,
    %c1_83 = arith.constant 1 : index
    %c9_84 = arith.constant 9 : index
    %c0_85 = arith.constant 0 : index
    %92 = vector.load %arg9[%c1_83, %c9_84, %c0_85] : memref<10x32x128xbf16, #tpu.memory_space<vmem>>, vector<8x16x128xbf16>
    %93 = vector.shape_cast %92 : vector<8x16x128xbf16> to vector<128x128xbf16>
    %c0_86 = arith.constant 0 : index
    %c640_87 = arith.constant 640 : index
    %94 = vector.load %arg11[%c0_86, %c640_87] : memref<128x1152xbf16, #tpu.memory_space<vmem>>, vector<128x128xbf16>
    tpu.vector_store %arg11[%c0_86, %c640_87], %93 {strides = array<i32>} : memref<128x1152xbf16, #tpu.memory_space<vmem>>, vector<128x128xbf16>,
    %c2_88 = arith.constant 2 : index
    %c7_89 = arith.constant 7 : index
    %c0_90 = arith.constant 0 : index
    %95 = vector.load %arg9[%c2_88, %c7_89, %c0_90] : memref<10x32x128xbf16, #tpu.memory_space<vmem>>, vector<8x16x128xbf16>
    %96 = vector.shape_cast %95 : vector<8x16x128xbf16> to vector<128x128xbf16>
    %c0_91 = arith.constant 0 : index
    %c768_92 = arith.constant 768 : index
    %97 = vector.load %arg11[%c0_91, %c768_92] : memref<128x1152xbf16, #tpu.memory_space<vmem>>, vector<128x128xbf16>
    tpu.vector_store %arg11[%c0_91, %c768_92], %96 {strides = array<i32>} : memref<128x1152xbf16, #tpu.memory_space<vmem>>, vector<128x128xbf16>,
    %c2_93 = arith.constant 2 : index
    %c8_94 = arith.constant 8 : index
    %c0_95 = arith.constant 0 : index
    %98 = vector.load %arg9[%c2_93, %c8_94, %c0_95] : memref<10x32x128xbf16, #tpu.memory_space<vmem>>, vector<8x16x128xbf16>
    %99 = vector.shape_cast %98 : vector<8x16x128xbf16> to vector<128x128xbf16>
    %c0_96 = arith.constant 0 : index
    %c896_97 = arith.constant 896 : index
    %100 = vector.load %arg11[%c0_96, %c896_97] : memref<128x1152xbf16, #tpu.memory_space<vmem>>, vector<128x128xbf16>
    tpu.vector_store %arg11[%c0_96, %c896_97], %99 {strides = array<i32>} : memref<128x1152xbf16, #tpu.memory_space<vmem>>, vector<128x128xbf16>,
    %c2_98 = arith.constant 2 : index
    %c9_99 = arith.constant 9 : index
    %c0_100 = arith.constant 0 : index
    %101 = vector.load %arg9[%c2_98, %c9_99, %c0_100] : memref<10x32x128xbf16, #tpu.memory_space<vmem>>, vector<8x16x128xbf16>
    %102 = vector.shape_cast %101 : vector<8x16x128xbf16> to vector<128x128xbf16>
    %c0_101 = arith.constant 0 : index
    %c1024_102 = arith.constant 1024 : index
    %103 = vector.load %arg11[%c0_101, %c1024_102] : memref<128x1152xbf16, #tpu.memory_space<vmem>>, vector<128x128xbf16>
    tpu.vector_store %arg11[%c0_101, %c1024_102], %102 {strides = array<i32>} : memref<128x1152xbf16, #tpu.memory_space<vmem>>, vector<128x128xbf16>,
    %c0_103 = arith.constant 0 : index
    %c0_104 = arith.constant 0 : index
    %104 = vector.load %arg11[%c0_103, %c0_104] : memref<128x1152xbf16, #tpu.memory_space<vmem>>, vector<128x1152xbf16>
    %c0_105 = arith.constant 0 : index
    %c0_106 = arith.constant 0 : index
    %105 = vector.load %arg5[%c0_105, %c0_106] : memref<1152x128xbf16, #tpu.memory_space<vmem>>, vector<1152x128xbf16>
    %cst_107 = arith.constant dense<0.000000e+00> : vector<128x128xf32>
    %106 = tpu.matmul %104, %105, %cst_107 {dimension_numbers = #tpu.dot_dimension_numbers<[1], [0], [0], [1], [0, 0, 1, 1], [], []>} : vector<128x1152xbf16>, vector<1152x128xbf16>, vector<128x128xf32> -> vector<128x128xf32>
    %c2_i32_108 = arith.constant 2 : i32
    %107 = arith.addi %0, %c2_i32_108 : i32
    %c0_109 = arith.constant 0 : index
    %108 = arith.index_cast %107 : i32 to index
    %c1_110 = arith.constant 1 : index
    %c0_111 = arith.constant 0 : index
    %109 = vector.load %arg2[%c0_109, %108, %c1_110, %c0_111] : memref<1x20x24x128xbf16, #tpu.memory_space<vmem>>, vector<1x8x16x128xbf16>
    %110 = vector.shape_cast %109 : vector<1x8x16x128xbf16> to vector<8x16x128xbf16>
    %111 = vector.shape_cast %110 : vector<8x16x128xbf16> to vector<128x128xbf16>
    %c0_112 = arith.constant 0 : index
    %c0_113 = arith.constant 0 : index
    %112 = vector.load %arg7[%c0_112, %c0_113] : memref<128x128xbf16, #tpu.memory_space<vmem>>, vector<128x128xbf16>
    %cst_114 = arith.constant dense<0.000000e+00> : vector<128x128xf32>
    %113 = tpu.matmul %111, %112, %cst_114 {dimension_numbers = #tpu.dot_dimension_numbers<[1], [0], [0], [1], [0, 0, 1, 1], [], []>} : vector<128x128xbf16>, vector<128x128xbf16>, vector<128x128xf32> -> vector<128x128xf32>
    %114 = arith.addf %106, %113 : vector<128x128xf32>
    %c0_115 = arith.constant 0 : index
    %c0_116 = arith.constant 0 : index
    %115 = vector.load %arg6[%c0_115, %c0_116] : memref<1x128xf32, #tpu.memory_space<vmem>>, vector<1x128xf32>
    %116 = vector.broadcast %115 : vector<1x128xf32> to vector<128x128xf32>
    %117 = arith.addf %114, %116 : vector<128x128xf32>
    %cst_117 = arith.constant 0.000000e+00 : f32
    %118 = vector.broadcast %cst_117 : f32 to vector<128x128xf32>
    %119 = arith.maximumf %117, %118 : vector<128x128xf32>
    %120 = vector.shape_cast %119 : vector<128x128xf32> to vector<1x8x16x128xf32>
    %c0_118 = arith.constant 0 : index
    %c0_119 = arith.constant 0 : index
    %c0_120 = arith.constant 0 : index
    %c0_121 = arith.constant 0 : index
    %121 = vector.load %arg8[%c0_118, %c0_119, %c0_120, %c0_121] : memref<1x8x16x128xf32, #tpu.memory_space<vmem>>, vector<1x8x16x128xf32>
    tpu.vector_store %arg8[%c0_118, %c0_119, %c0_120, %c0_121], %120 {strides = array<i32>} : memref<1x8x16x128xf32, #tpu.memory_space<vmem>>, vector<1x8x16x128xf32>,
    return
  }
  func.func @transform_0(%arg0: i32, %arg1: i32) -> (i32, i32, i32, i32) {
    %c0_i32 = arith.constant 0 : i32
    %c0_i32_0 = arith.constant 0 : i32
    %c0_i32_1 = arith.constant 0 : i32
    %c0_i32_2 = arith.constant 0 : i32
    return %arg0, %c0_i32, %c0_i32_0, %c0_i32_1 : i32, i32, i32, i32
  }
  func.func @transform_1(%arg0: i32, %arg1: i32) -> (i32, i32) {
    %c0_i32 = arith.constant 0 : i32
    %c0_i32_0 = arith.constant 0 : i32
    %c0_i32_1 = arith.constant 0 : i32
    return %c0_i32, %c0_i32_0 : i32, i32
  }
  func.func @transform_2(%arg0: i32, %arg1: i32) -> (i32, i32) {
    %c0_i32 = arith.constant 0 : i32
    %c0_i32_0 = arith.constant 0 : i32
    %c0_i32_1 = arith.constant 0 : i32
    return %c0_i32, %c0_i32_0 : i32, i32
  }
  func.func @transform_3(%arg0: i32, %arg1: i32) -> (i32, i32) {
    %c0_i32 = arith.constant 0 : i32
    %c0_i32_0 = arith.constant 0 : i32
    %c0_i32_1 = arith.constant 0 : i32
    return %c0_i32, %c0_i32_0 : i32, i32
  }
  func.func @transform_4(%arg0: i32, %arg1: i32) -> (i32, i32) {
    %c0_i32 = arith.constant 0 : i32
    %c0_i32_0 = arith.constant 0 : i32
    %c0_i32_1 = arith.constant 0 : i32
    return %c0_i32, %c0_i32_0 : i32, i32
  }
  func.func @transform_5(%arg0: i32, %arg1: i32) -> (i32, i32) {
    %c0_i32 = arith.constant 0 : i32
    %c0_i32_0 = arith.constant 0 : i32
    %c0_i32_1 = arith.constant 0 : i32
    return %c0_i32, %c0_i32_0 : i32, i32
  }
  func.func @transform_6(%arg0: i32, %arg1: i32) -> (i32, i32, i32, i32) {
    %c0_i32 = arith.constant 0 : i32
    %c0_i32_0 = arith.constant 0 : i32
    %c0_i32_1 = arith.constant 0 : i32
    return %arg0, %arg1, %c0_i32, %c0_i32_0 : i32, i32, i32, i32
  }
}

</mosaic_0001>

<bundles_post_ra>
// kernel: tpu_custom_call.1
= control target key start
LH: loop header
LB: loop body
LE: loop exit
PB: predicated region body
PF: predicated region fallthrough
CT: control target
= control target key end

     0   :  { %s11222_s0 = inlined_call_operand.hbm [shape: bf16[2,20,24,128], index: 0, kind: input, shape index: {}]   ;;  %s11223_s1 = inlined_call_operand.hbm [shape: bf16[1152,128], index: 1, kind: input, shape index: {}]   ;;  %s11224_s2 = inlined_call_operand.vmem [shape: f32[1,128], index: 2, kind: input, shape index: {}]   ;;  %s11225_s3 = inlined_call_operand.hbm [shape: bf16[1152,128], index: 3, kind: input, shape index: {}]   ;;  %s11226_s4 = inlined_call_operand.vmem [shape: f32[1,128], index: 4, kind: input, shape index: {}]   ;;  %s11227_s5 = inlined_call_operand.hbm [shape: bf16[128,128], index: 5, kind: input, shape index: {}]   ;;  %s11228_s6 = inlined_call_operand.hbm [shape: f32[2,16,16,128], index: 6, kind: output, shape index: {}]  }
   0x1   :  { %11242 = sst [smem:[#allocation52_spill]] %s11223_s1 }
   0x2   :  { %11243 = sst [smem:[#allocation53_spill]] %s11225_s3 }
   0x3   :  { %11244 = sst [smem:[#allocation54_spill]] %s11227_s5 }
   0x4   :  { %11245 = sst [smem:[#allocation55_spill]] %s11228_s6 }
   0x5   :  { %11 = vsyncpa [#allocation6], 0 }
   0x6   :  { %13 = vsyncpa [#allocation6 + $0x1], 0 }
   0x7   :  { %14 = vsyncpa [#allocation9], 0 }
   0x8   :  { %15 = vsyncpa [#allocation12], 0 }
   0x9   :  { %16 = vsyncpa [#allocation7], 0 }
   0xa   :  { %18 = vsyncpa [#allocation7 + $0x1], 0  ;;  %s9599_s21 = smov 0   ;;  %s9601_s22 = smov 0  }
   0xb   :  { %s9603_s23 = smov 0   ;;  %s9605_s24 = smov 0  }
   0xc   :  { %s9607_s25 = smov 0   ;;  %s9609_s26 = smov 0  }
   0xd   :  { %s9611_s27 = smov 0   ;;  %s9613_s28 = smov 0  }
   0xe   :  { %s9615_s29 = smov 0   ;;  %s9617_s30 = smov 0  }
   0xf   :  { %s9619_s7 = smov 0  }
  0x10 LB: > { %11246 = sst [smem:[#allocation18_spill]] %s9510_s21  ;;  %s7427_s8 = sadd.s32 4294967295, %s9550_s7   ;;  %s9550_s7 = sphi %s9619_s7, %s24_s7   ;;  %s9546_s30 = sphi %s9617_s30, %s11345_s30   ;;  %s9542_s29 = sphi %s9615_s29, %s11336_s29   ;;  %s9538_s28 = sphi %s9613_s28, %s11344_s28   ;;  %s9534_s27 = sphi %s9611_s27, %s11335_s27   ;;  %s9530_s26 = sphi %s9609_s26, %s11343_s26   ;;  %s9526_s25 = sphi %s9607_s25, %s11342_s25   ;;  %s9522_s24 = sphi %s9605_s24, %s11341_s24   ;;  %s9518_s23 = sphi %s9603_s23, %s11340_s23   ;;  %s9514_s22 = sphi %s9601_s22, %s11339_s22   ;;  %s9510_s21 = sphi %s9599_s21, %s11338_s21  }
  0x11   : > { %11247 = sst [smem:[#allocation19_spill]] %s9542_s29  ;;  %s7428_s9 = sadd.s32 4294967294, %s9550_s7  }
  0x12   : > { %p56_p0 = scmp.ne.s32.totalorder %s9526_s25, %s9522_s24  ;;  %p9655_p1 = scmp.eq.s32.totalorder %s7427_s8, 0 }
  0x13   : > { %p186_p2 = scmp.ne.s32.totalorder %s9518_s23, %s9514_s22  ;;  %p187_p4 = scmp.eq.s32.totalorder %s7427_s8, 3 }
  0x14   : > { %p9664_p3 = por %p9655_p1, %p56_p0  ;;  %p192_p5 = scmp.ne.s32.totalorder %s9514_s22, %s9510_s21 }
  0x15   : > { %p193_p6 = scmp.eq.s32.totalorder %s7428_s9, 3  ;;  %p9670_p7 = por %p187_p4, %p186_p2 }
  0x16   : > { %p7429_p8 = scmp.ge.s32.totalorder %s9550_s7, 1  ;;  %p200_p10 = scmp.lt.s32.totalorder %s9550_s7, 5 }
  0x17   : > { %s11250_s13 = scalar_select %p9670_p7, 1, 0 }
  0x18   : > { %p9675_p9 = por %p193_p6, %p192_p5  ;;  %p9680_p11 = pnand %p7429_p8, %p200_p10 }
  0x19   : > { %11251 = sst [smem:[#allocation20_spill]] %s11250_s13  ;;  %s9552_s16 = smov [#allocation8]  }
  0x1a   : > { %s11252_s14 = scalar_select %p9675_p9, 1, 0 }
  0x1b   : > { %s212_s17 = sshll.u32 %s9552_s16, 4  ;;  %p8805_p12 = pneg %p9680_p11  ;;  %s213_s17 = int_to_ptr.vmem [resolvable:$true] %s212_s17 }
  0x1c   : > { %11253 = sst [smem:[#allocation21_spill]] %s11252_s14  ;;  %s9553_s19 = smov [#allocation10]  }
  0x1d   : > { %p9688_p13 = pnand %p8805_p12, %p9655_p1  ;;  %s228_s20 = sshll.u32 %s9553_s19, 4  ;;  %s229_s20 = int_to_ptr.vmem [resolvable:$true] %s228_s20 }
  0x1e   : > { %s9554_s24 = smov [#allocation11]   ;;  %s9327_s9 = scalar_lea.vmem %s213_s17, 9216 }
  0x1f   : > { %s244_s8 = sshll.u32 %s9554_s24, 4  ;;  %p9318_p0 = pneg %p9688_p13  ;;  %s245_s8 = int_to_ptr.vmem [resolvable:$true] %s244_s8 }
  0x20   : > { %p9328_p2 = scmp.ne.s32.totalorder %s213_s17, %s9327_s9  ;;  %p9335_p6 = scmp.lt.s32.totalorder %s213_s17, %s213_s17 }
  0x21   : > { %p9336_p8 = scmp.lt.s32.totalorder %s9327_s9, %s9327_s9 }
  0x22   : > { %p9330_p4 = pnand %p9328_p2, %p9318_p0 }
  0x23   : > { %p9337_p10 = por %p9336_p8, %p9335_p6 }
  0x24   : > { %p9331_p5 = pneg %p9330_p4 }
  0x26   : > { %p9338_p12 = pnand %p9337_p10, %p9331_p5 }
  0x28   : > { %9341 = shalt.err (!%p9338_p12)
}
  0x29   : > { %s11231_s16 = smov 64   ;;  %s11232_s19 = smov 4  }
  0x2a   : > { %s11256_s1 = sld [smem:[#allocation52_spill]]  ;;  %s9353_s14 = scalar_lea.vmem %s229_s20, 9216 }
  0x2b   : > { %p9354_p2 = scmp.ne.s32.totalorder %s229_s20, %s9353_s14  ;;  %p9361_p5 = scmp.lt.s32.totalorder %s229_s20, %s229_s20 }
  0x2c   : > { %p9362_p8 = scmp.lt.s32.totalorder %s9353_s14, %s9353_s14 }
  0x2d   : > { %p9356_p4 = pnand %p9354_p2, %p9318_p0 }
  0x2e   : > { %p9363_p10 = por %p9362_p8, %p9361_p5 }
  0x2f   : > { %p9357_p6 = pneg %p9356_p4 }
  0x30   : > { %8808 = dma.hbm_to_vmem [thread:$0]  (!%p9688_p13), %s11256_s1, 9216, %s213_s17, [#allocation9], %s11231_s16, %s11231_s16, %s11232_s19  }
  0x31   : > { %p9364_p12 = pnand %p9363_p10, %p9357_p6 }
  0x33   : > { %9367 = shalt.err (!%p9364_p12)
}
  0x34   : > { %s11257_s3 = sld [smem:[#allocation53_spill]]  ;;  %s9379_s11 = scalar_lea.vmem %s245_s8, 1024 }
  0x35   : > { %p9380_p9 = scmp.ne.s32.totalorder %s245_s8, %s9379_s11  ;;  %p9387_p5 = scmp.lt.s32.totalorder %s245_s8, %s245_s8 }
  0x36   : > { %p9388_p6 = scmp.lt.s32.totalorder %s9379_s11, %s9379_s11 }
  0x37   : > { %p9382_p2 = pnand %p9380_p9, %p9318_p0 }
  0x38   : > { %p9389_p8 = por %p9388_p6, %p9387_p5 }
  0x39   : > { %p9383_p4 = pneg %p9382_p2 }
  0x3a   : > { %8811 = dma.hbm_to_vmem [thread:$0]  (!%p9688_p13), %s11257_s3, 9216, %s229_s20, [#allocation9], %s11231_s16, %s11231_s16, %s11232_s19  }
  0x3b   : > { %p9390_p10 = pnand %p9389_p8, %p9383_p4 }
  0x3d   : > { %9393 = shalt.err (!%p9390_p10)
}
  0x3e   : > { %s11258_s5 = sld [smem:[#allocation54_spill]]  ;;  %s33_s17 = sadd.s32 1, %s9542_s29 }
  0x3f   : > { %p34_p9 = scmp.ge.s32.totalorder %s33_s17, 2  ;;  %s36_s18 = sadd.s32 1, %s9546_s30 }
  0x40   : > { %s43_s20 = sadd.s32 1, %s9530_s26  ;;  %p50_p0 = scmp.ne.s32.totalorder %s9530_s26, %s9526_s25 }
  0x41   : > { %s11347_s17 = smov (%p34_p9, %s33_s17), 0  ;;  %s11349_s18 = smov (!%p34_p9, %s36_s18), %s9546_s30 }
  0x42   : > { %11259 = sst [smem:[#allocation22_spill]] %s11347_s17  ;;  %p51_p12 = scmp.eq.s32.totalorder %s9550_s7, 0 }
  0x43   : > { %s172_s24 = ssub.s32 %s9542_s29, %s11347_s17  ;;  %p38_p2 = scmp.ge.s32.totalorder %s11349_s18, 2 }
  0x44   : > { %8814 = dma.hbm_to_vmem [thread:$0]  (!%p9688_p13), %s11258_s5, 1024, %s245_s8, [#allocation12], %s11231_s16, %s11231_s16, %s11232_s19  }
  0x45   : > { %p8826_p4 = scmp.lt.s32.totalorder %s9550_s7, 4  ;;  %p9739_p13 = por %p51_p12, %p50_p0 }
  0x46   : > { %s258_s9 = sand.u32 1, %s9530_s26   ;;  %s11351_s18 = smov (%p38_p2, %s11349_s18), 0 }
  0x47   : > { %11261 = sst [smem:[#allocation23_spill]] %s11351_s18  ;;  %s8786_s11 = smul.u32 240, %s258_s9 }
  0x48   : > { %s40_s21 = ssub.s32 %s9546_s30, %s11351_s18  ;;  %s8787_s14 = smul.u32 3840, %s9546_s30 }
  0x49   : > { %p41_p5 = scmp.eq.s32.totalorder %s40_s21, 0  ;;  %s173_s16 = sor.u32 %s172_s24, %s40_s21 }
  0x4a   : > { %p174_p6 = scmp.eq.s32.totalorder %s173_s16, 0  ;;  %s11262_s1 = sadd.s32 1, %s9518_s23 }
  0x4b   : > { %s9750_s19 = scalar_select %p41_p5, %s9530_s26, %s43_s20  }
  0x4c   : > { %s9755_s3 = scalar_select %p174_p6, %s9518_s23, %s11262_s1  }
  0x4d   : > { %s268_s29 = scalar_lea.hbm %s11222_s0, %s8787_s14  ;;  %s262_s6 = scalar_lea.vmem [#allocation5], %s8786_s11 }
  0x4e   : > { %s269_s13 = sshll.u32 %s262_s6, 4  ;;  %p9764_p8 = pnand %p8826_p4, %p9739_p13  ;;  %s270_s13 = int_to_ptr.vmem [resolvable:$true] %s269_s13 }
  0x4f   : > { %s259_s16 = scalar_lea.sflag [#allocation6], %s258_s9  ;;  %s9407_s20 = scalar_lea.vmem %s270_s13, 3840 }
  0x50   : > { %p9396_p10 = pneg %p9764_p8  ;;  %p9408_p9 = scmp.ne.s32.totalorder %s270_s13, %s9407_s20 }
  0x51   : > { %s9557_s1 = smov [#allocation5]  }
  0x52   : > { %p9410_p0 = pnand %p9408_p9, %p9396_p10  ;;  %s9412_s5 = sshll.u32 %s9557_s1, 4  ;;  %s9413_s5 = int_to_ptr.vmem [resolvable:$false] %s9412_s5 }
  0x53   : > { %s9414_s17 = scalar_lea.vmem %s9413_s5, 7680  ;;  %p9415_p2 = scmp.lt.s32.totalorder %s270_s13, %s9413_s5 }
  0x54   : > { %p9411_p12 = pneg %p9410_p0  ;;  %p9416_p5 = scmp.lt.s32.totalorder %s9414_s17, %s9407_s20 }
  0x56   : > { %p9417_p6 = por %p9416_p5, %p9415_p2 }
  0x58   : > { %p9418_p7 = pnand %p9417_p6, %p9411_p12 }
  0x5a   : > { %9421 = shalt.err (!%p9418_p7)
}
  0x5b   : > { %s11264_s6 = smov 4   ;;  %s11265_s24 = smov 64  }
  0x5c   : > { %8818 = dma.hbm_to_vmem [thread:$0]  (!%p9764_p8), %s268_s29, 3840, %s270_s13, %s259_s16, %s11265_s24, %s11265_s24, %s11264_s6  }
  0x5d   : > { %281 = sbr.rel (%p9680_p11) target bundleno = 1134 (0x46e), region = 44 }
  0x62   : > { %s283_s8 = sand.u32 1, %s9526_s25  }
  0x63   : > { %s9778_s9 = smul.u32 240, %s283_s8  ;;  %s284_s11 = scalar_lea.sflag [#allocation6], %s283_s8 }
  0x65   : > { %s287_s21 = scalar_lea.vmem [#allocation5], %s9778_s9 }
  0x66   : > { %9493 = dma.done.wait (%p9664_p3), %s284_s11, 3840  }
  0x67   : > { %9495 = vsyncadd (%p9664_p3), %s284_s11, 4294963456 }
  0x68   : > { %9497 = dma.done.wait (%p9655_p1), [#allocation9], 18432  }
  0x69   : > { %9499 = vsyncadd (%p9655_p1), [#allocation9], 4294948864 }
  0x6a   : > { %9501 = dma.done.wait (%p9655_p1), [#allocation12], 1024  }
  0x6b   : > { %9503 = vsyncadd (%p9655_p1), [#allocation12], 4294966272  ;;  %s325_s29 = sand.u32 1, %s9514_s22   ;;  %s7440_s13 = sshll.u32 %s9534_s27, 3  ;;  %v9558_v0 = vmov 0   ;;  %v8929_v1 = vld [vmem:[#allocation8 + $0x78] sm:$0xff]  }
  0x6c   : > { %3636 = vst [vmem:[#allocation2] sm:$0xf] %v9558_v0  ;;  %3637 = vst [vmem:[#allocation2 + $0x10] sm:$0xf] %v9558_v0  ;;  %s9797_s10 = sshll.u32 %s325_s29, 7  ;;  %v8930_v2 = vld [vmem:[#allocation8 + $0x38] sm:$0xff]   ;;  %8060 = vmatprep.subr.bf16.mxu0 %v8929_v1 }
  0x6d   : > { %3638 = vst [vmem:[#allocation2 + $0x20] sm:$0xf] %v9558_v0  ;;  %3639 = vst [vmem:[#allocation2 + $0x30] sm:$0xf] %v9558_v0  ;;  %v8931_v3 = vld [vmem:[#allocation8 + $0xf8] sm:$0xff]   ;;  %8061 = vmatpush3.bf16.msra.mxu0 %v8930_v2  ;;  %v8933_v5 = vld [vmem:[#allocation8 + $0x70] sm:$0xff]  }
  0x6e   : > { %3640 = vst [vmem:[#allocation2 + $0x40] sm:$0xf] %v9558_v0  ;;  %3641 = vst [vmem:[#allocation2 + $0x50] sm:$0xf] %v9558_v0  ;;  %v8932_v4 = vld [vmem:[#allocation8 + $0xb8] sm:$0xff]   ;;  %8136 = vmatprep.subr.bf16.mxu1 %v8931_v3  ;;  %v8934_v6 = vld [vmem:[#allocation8 + $0x30] sm:$0xff]   ;;  %8062 = vmatprep.subr.bf16.mxu0 %v8933_v5 }
  0x6f   : > { %3642 = vst [vmem:[#allocation2 + $0x60] sm:$0xf] %v9558_v0  ;;  %3643 = vst [vmem:[#allocation2 + $0x70] sm:$0xf] %v9558_v0  ;;  %8137 = vmatpush3.bf16.msra.mxu1 %v8932_v4  ;;  %v8935_v7 = vld [vmem:[#allocation8 + $0xf0] sm:$0xff]   ;;  %v8937_v9 = vld [vmem:[#allocation8 + $0x68] sm:$0xff]  }
  0x70   : > { %3644 = vst [vmem:[#allocation2 + $0x80] sm:$0xf] %v9558_v0  ;;  %3645 = vst [vmem:[#allocation2 + $0x90] sm:$0xf] %v9558_v0  ;;  %v8936_v8 = vld [vmem:[#allocation8 + $0xb0] sm:$0xff]   ;;  %8138 = vmatprep.subr.bf16.mxu1 %v8935_v7  ;;  %v8938_v10 = vld [vmem:[#allocation8 + $0x28] sm:$0xff]  }
  0x71   : > { %3646 = vst [vmem:[#allocation2 + $0xc] sm:$0xf] %v9558_v0  ;;  %3647 = vst [vmem:[#allocation2 + $0x1c] sm:$0xf] %v9558_v0  ;;  %8063 = vmatpush3.bf16.msra.mxu0 %v8934_v6  ;;  %v8939_v11 = vld [vmem:[#allocation8 + $0xe8] sm:$0xff]   ;;  %v8941_v13 = vld [vmem:[#allocation8 + $0x60] sm:$0xff]  }
  0x72   : > { %3648 = vst [vmem:[#allocation2 + $0x2c] sm:$0xf] %v9558_v0  ;;  %3649 = vst [vmem:[#allocation2 + $0x3c] sm:$0xf] %v9558_v0  ;;  %8064 = vmatprep.subr.bf16.mxu0 %v8937_v9  ;;  %v8940_v12 = vld [vmem:[#allocation8 + $0xa8] sm:$0xff]   ;;  %v8942_v14 = vld [vmem:[#allocation8 + $0x20] sm:$0xff]  }
  0x73   : > { %3650 = vst [vmem:[#allocation2 + $0x4c] sm:$0xf] %v9558_v0  ;;  %3651 = vst [vmem:[#allocation2 + $0x5c] sm:$0xf] %v9558_v0  ;;  %8139 = vmatpush3.bf16.msra.mxu1 %v8936_v8  ;;  %v8943_v15 = vld [vmem:[#allocation8 + $0xe0] sm:$0xff]   ;;  %v8945_v17 = vld [vmem:[#allocation8 + $0x58] sm:$0xff]  }
  0x74   : > { %3652 = vst [vmem:[#allocation2 + $0x6c] sm:$0xf] %v9558_v0  ;;  %3653 = vst [vmem:[#allocation2 + $0x7c] sm:$0xf] %v9558_v0  ;;  %8140 = vmatprep.subr.bf16.mxu1 %v8939_v11  ;;  %v8944_v16 = vld [vmem:[#allocation8 + $0xa0] sm:$0xff]   ;;  %v8946_v18 = vld [vmem:[#allocation8 + $0x18] sm:$0xff]  }
  0x75   : > { %3654 = vst [vmem:[#allocation2 + $0x8c] sm:$0xf] %v9558_v0  ;;  %3655 = vst [vmem:[#allocation2 + $0x9c] sm:$0xf] %v9558_v0  ;;  %8065 = vmatpush3.bf16.msra.mxu0 %v8938_v10  ;;  %v8947_v19 = vld [vmem:[#allocation8 + $0xd8] sm:$0xff]   ;;  %v8949_v21 = vld [vmem:[#allocation8 + $0x50] sm:$0xff]  }
  0x76   : > { %8066 = vmatprep.subr.bf16.mxu0 %v8941_v13  ;;  %v8948_v20 = vld [vmem:[#allocation8 + $0x98] sm:$0xff]   ;;  %v8950_v22 = vld [vmem:[#allocation8 + $0x10] sm:$0xff]   ;;  %v8953_v25 = vld [vmem:[#allocation8 + $0x48] sm:$0xff]   ;;  %s8038_s12 = smul.u32 96, %s9534_s27  ;;  %vm404_vm0 = vsmask.f32 3328 }
  0x77   : > { %8141 = vmatpush3.bf16.msra.mxu1 %v8940_v12  ;;  %v8951_v23 = vld [vmem:[#allocation8 + $0xd0] sm:$0xff]   ;;  %v8954_v26 = vld [vmem:[#allocation8 + $0x8] sm:$0xff]   ;;  %vm405_vm1 = vsmask.f32 7440  ;;  %v8957_v29 = vld [vmem:[#allocation8 + $0x40] sm:$0xff]   ;;  %vm747_vm2 = vcmask 1042432  }
  0x78   : > { %8142 = vmatprep.subr.bf16.mxu1 %v8943_v15  ;;  %v8952_v24 = vld [vmem:[#allocation8 + $0x90] sm:$0xff]   ;;  %v8955_v27 = vld [vmem:[#allocation8 + $0xc8] sm:$0xff]   ;;  %s9802_s15 = scalar_lea.vmem %s287_s21, %s8038_s12 [#allocation5]  ;;  %v8958_v30 = vld [vmem:[#allocation8] sm:$0xff]   ;;  %vm748_vm3 = vcmask 1046532   ;;  %v11268_v54 = vmov 0  ;;  %s10602_s16 = scalar_lea.vmem [#allocation13], %s9797_s10 }
  0x79   : > { %8067 = vmatpush3.bf16.msra.mxu0 %v8942_v14  ;;  %v8956_v28 = vld [vmem:[#allocation8 + $0x88] sm:$0xff]   ;;  %v8959_v31 = vld [vmem:[#allocation8 + $0xc0] sm:$0xff]   ;;  %v334_v32 = vld [vmem:[%s9802_s15] sm:$0xf]  ;;  %p7820_p1 = scmp.ne.s32.totalorder %s7440_s13, 0 }
  0x7a   : > { %8068 = vmatprep.subr.bf16.mxu0 %v8945_v17  ;;  %v335_v33 = vld [vmem:[%s9802_s15 + $0x4] sm:$0xf]  ;;  %v374_v34 = vld [vmem:[%s9802_s15] sm:$0xf]  ;;  %354 = vst [vmem:[#allocation3] sm:$0xf] %v334_v32  ;;  %vm9811_vm4 = vmor %vm747_vm2, %vm748_vm3 }
  0x7b   : > { %8143 = vmatpush3.bf16.msra.mxu1 %v8944_v16  ;;  %355 = vst [vmem:[#allocation3 + $0x24] sm:$0xf] %v335_v33  ;;  %v375_v35 = vld [vmem:[%s9802_s15 + $0x4] sm:$0xf]  ;;  %v376_v36 = vld [vmem:[%s9802_s15 + $0x8] sm:$0x1]  ;;  %vm9820_vm5 = vmor %vm404_vm0, %vm405_vm1 }
  0x7c   : > { %8144 = vmatprep.subr.bf16.mxu1 %v8947_v19  ;;  %v408_v37 = vshrl.u32 %v374_v34, 16  ;;  %v411_v38 = vshll.u32 %v374_v34, 16  ;;  %v417_v39 = vshll.u32 %v375_v35, 16  ;;  %v421_v40 = vshrl.u32 %v375_v35, 16  ;;  %v8963_v42 = vld [vmem:[#allocation8 + $0x80] sm:$0xff]   ;;  %v8964_v48 = vld [vmem:[#allocation8 + $0x178] sm:$0xff]  }
  0x7d   : > { %8069 = vmatpush3.bf16.msra.mxu0 %v8946_v18  ;;  %v427_v41 = vshll.u32 %v376_v36, 16  ;;  %v687_v51 = vld [vmem:[%s9802_s15] sm:$0xe]  ;;  %v688_v52 = vld [vmem:[%s9802_s15 + $0x4] sm:$0xf]  ;;  %v11269_v54 = vsel %vm9820_vm5, 4294967295, %v11268_v54 }
  0x7e   : > { %8070 = vmatprep.subr.bf16.mxu0 %v8949_v21  ;;  %v410_v43 = vrot.slane %v408_v37, 4  ;;  %v413_v44 = vrot.slane %v411_v38, 5  ;;  %v419_v45 = vrot.slane %v417_v39, 5  ;;  %v423_v46 = vrot.slane %v421_v40, 4  ;;  %v689_v53 = vld [vmem:[%s9802_s15 + $0x8] sm:$0x1] }
  0x7f   : > { %8145 = vmatpush3.bf16.msra.mxu1 %v8948_v20  ;;  %v429_v47 = vrot.slane %v427_v41, 5  ;;  %11270 = vst [vmem:[#allocation24_spill] sm:$0xff] %v11269_v54  ;;  %v7443_v56 = vrot.slane %v687_v51, 9  ;;  %v752_v57 = vrot.slane %v688_v52, 5  ;;  %v755_v58 = vrot.slane %v689_v53, 5  ;;  %v8975_v37 = vld [vmem:[#allocation8 + $0x170] sm:$0xff]  }
  0x80   : > { %8146 = vmatprep.subr.bf16.mxu1 %v8951_v23  ;;  %v414_v50 = vor.u32 %v413_v44, %v410_v43  ;;  %v424_v55 = vor.u32 %v423_v46, %v419_v45  ;;  %v7455_v59 = vld [vmem:[%s9802_s15 + $0xc] sm:$0xf]  ;;  %v7456_v61 = vld [vmem:[%s9802_s15 + $0x10] sm:$0xf]  ;;  %v379_v8 = vld [vmem:[%s9802_s15 + $0x14] sm:$0x1] }
  0x81   : > { %8071 = vmatpush3.bf16.msra.mxu0 %v8950_v22  ;;  %884 = vst [vmem:[#allocation3 + $0xc] sm:$0xf] %v7455_v59  ;;  %v753_v63 = vsel %vm9811_vm4, %v7443_v56, %v752_v57  ;;  %v754_v0 = vrot.slane %v752_v57, 4  ;;  %885 = vst [vmem:[#allocation3 + $0x30] sm:$0xf] %v7456_v61  ;;  %v451_v14 = vshll.u32 %v379_v8, 16 }
  0x82   : > { %8072 = vmatprep.subr.bf16.mxu0 %v8953_v25  ;;  %v415_v60 = vrot.slane %v414_v50, 4  ;;  %v425_v62 = vrot.slane %v424_v55, 4  ;;  %v336_v1 = vld [vmem:[%s9802_s15 + $0xc] sm:$0xf]  ;;  %840 = vst [vmem:[#allocation3 + $0x8] sm:$0xf] %v753_v63 }
  0x83   : > { %8147 = vmatpush3.bf16.msra.mxu1 %v8952_v24  ;;  %v337_v3 = vld [vmem:[%s9802_s15 + $0x10] sm:$0xf]  ;;  %356 = vst [vmem:[#allocation3 + $0x48] sm:$0xf] %v336_v1  ;;  %v377_v4 = vld [vmem:[%s9802_s15 + $0xc] sm:$0xf]  ;;  %v756_v7 = vsel %vm9811_vm4, %v754_v0, %v755_v58 }
  0x84   : > { %8148 = vmatprep.subr.bf16.mxu1 %v8955_v27  ;;  %v420_v2 = vsel %vm9820_vm5, %v415_v60, %v419_v45  ;;  %v378_v5 = vld [vmem:[%s9802_s15 + $0x10] sm:$0xf]  ;;  %v430_v6 = vsel %vm9820_vm5, %v425_v62, %v429_v47  ;;  %357 = vst [vmem:[#allocation3 + $0x6c] sm:$0xf] %v337_v3  ;;  %v432_v9 = vshrl.u32 %v377_v4, 16  ;;  %v435_v10 = vshll.u32 %v377_v4, 16 }
  0x85   : > { %8073 = vmatpush3.bf16.msra.mxu0 %v8954_v26  ;;  %667 = vst [vmem:[#allocation3 + $0x4] sm:$0xf] %v420_v2  ;;  %v690_v11 = vld [vmem:[%s9802_s15 + $0xc] sm:$0xe]  ;;  %668 = vst [vmem:[#allocation3 + $0x28] sm:$0xf] %v430_v6 }
  0x86   : > { %8074 = vmatprep.subr.bf16.mxu0 %v8957_v29  ;;  %841 = vst [vmem:[#allocation3 + $0x2c] sm:$0xf] %v756_v7  ;;  %v441_v12 = vshll.u32 %v378_v5, 16  ;;  %v445_v13 = vshrl.u32 %v378_v5, 16  ;;  %v691_v15 = vld [vmem:[%s9802_s15 + $0x10] sm:$0xf] }
  0x87   : > { %8149 = vmatpush3.bf16.msra.mxu1 %v8956_v28  ;;  %v7444_v16 = vrot.slane %v690_v11, 9  ;;  %v434_v17 = vrot.slane %v432_v9, 4  ;;  %v437_v18 = vrot.slane %v435_v10, 5  ;;  %v692_v19 = vld [vmem:[%s9802_s15 + $0x14] sm:$0x1]  ;;  %v759_v20 = vrot.slane %v691_v15, 5 }
  0x88   : > { %8150 = vmatprep.subr.bf16.mxu1 %v8959_v31  ;;  %v443_v21 = vrot.slane %v441_v12, 5  ;;  %v447_v22 = vrot.slane %v445_v13, 4  ;;  %v762_v23 = vrot.slane %v692_v19, 5  ;;  %v7457_v24 = vld [vmem:[%s9802_s15 + $0x18] sm:$0xf]  ;;  %v453_v26 = vrot.slane %v451_v14, 5 }
  0x89   : > { %8075 = vmatpush3.bf16.msra.mxu0 %v8958_v30  ;;  %v438_v25 = vor.u32 %v437_v18, %v434_v17  ;;  %v760_v27 = vsel %vm9811_vm4, %v7444_v16, %v759_v20  ;;  %v761_v28 = vrot.slane %v759_v20, 4  ;;  %v7458_v29 = vld [vmem:[%s9802_s15 + $0x1c] sm:$0xf]  ;;  %886 = vst [vmem:[#allocation3 + $0x54] sm:$0xf] %v7457_v24  ;;  %v8968_v31 = vld [vmem:[#allocation8 + $0x138] sm:$0xff]  }
  0x8a   : > { %8212 = vmatprep.subr.bf16.mxu0 %v8964_v48  ;;  %v448_v30 = vor.u32 %v447_v22, %v443_v21  ;;  %842 = vst [vmem:[#allocation3 + $0x50] sm:$0xf] %v760_v27  ;;  %887 = vst [vmem:[#allocation3 + $0x78] sm:$0xf] %v7458_v29  ;;  %v338_v34 = vld [vmem:[%s9802_s15 + $0x18] sm:$0xf] }
  0x8b   : > { %8151 = vmatpush3.bf16.msra.mxu1 %v8963_v42  ;;  %v439_v32 = vrot.slane %v438_v25, 4  ;;  %v763_v33 = vsel %vm9811_vm4, %v761_v28, %v762_v23  ;;  %v339_v35 = vld [vmem:[%s9802_s15 + $0x1c] sm:$0xf]  ;;  %358 = vst [vmem:[#allocation3 + $0x90] sm:$0xf] %v338_v34  ;;  %v8976_v48 = vld [vmem:[#allocation8 + $0x130] sm:$0xff]  }
  0x8c   : > { %v449_v36 = vrot.slane %v448_v30, 4  ;;  %843 = vst [vmem:[#allocation3 + $0x74] sm:$0xf] %v763_v33  ;;  %359 = vst [vmem:[#allocation3 + $0xb4] sm:$0xf] %v339_v35  ;;  %v8983_v3 = vld [vmem:[#allocation8 + $0x168] sm:$0xff]  }
  0x8d   : > { %v380_v38 = vld [vmem:[%s9802_s15 + $0x18] sm:$0xf]  ;;  %v381_v39 = vld [vmem:[%s9802_s15 + $0x1c] sm:$0xf]  ;;  %v8960_v40 = vld [vmem:[#allocation3] ss:$36 sps:$4 sm:$0xff]   ;;  %v444_v42 = vsel %vm9820_vm5, %v439_v32, %v443_v21 }
  0x8e   : > { %v8962_v41 = vld [vmem:[#allocation3 + $0x4] ss:$36 sps:$4 sm:$0xff]   ;;  %v456_v43 = vshrl.u32 %v380_v38, 16  ;;  %v8967_v45 = vld [vmem:[#allocation3 + $0xc] ss:$36 sps:$4 sm:$0xff]   ;;  %v454_v46 = vsel %vm9820_vm5, %v449_v36, %v453_v26  ;;  %v459_v47 = vshll.u32 %v380_v38, 16 }
  0x8f   : > { %v8965_v44 = vld [vmem:[#allocation3 + $0x8] ss:$36 sps:$4 sm:$0xff]   ;;  %669 = vst [vmem:[#allocation3 + $0x4c] sm:$0xf] %v444_v42  ;;  %3083 = vmatprep.mubr.bf16.mxu0 %v8962_v41  ;;  %670 = vst [vmem:[#allocation3 + $0x70] sm:$0xf] %v454_v46  ;;  %3196 = vmatprep.mubr.bf16.mxu1 %v8967_v45 }
  0x90   : > { %v382_v50 = vld [vmem:[%s9802_s15 + $0x20] sm:$0x1]  ;;  %v458_v51 = vrot.slane %v456_v43, 4  ;;  %v465_v52 = vshll.u32 %v381_v39, 16  ;;  %v469_v53 = vshrl.u32 %v381_v39, 16  ;;  %3084 = vmatmul.mubr.bf16.vlgmr.msra.gmra.mxu0 %v8960_v40  ;;  %v461_v55 = vrot.slane %v459_v47, 5  ;;  %3197 = vmatmul.mubr.bf16.vlgmr.msra.gmra.mxu1 %v8965_v44 }
  0x91   : > { %v475_v56 = vshll.u32 %v382_v50, 16  ;;  %v693_v57 = vld [vmem:[%s9802_s15 + $0x18] sm:$0xe]  ;;  %v694_v58 = vld [vmem:[%s9802_s15 + $0x1c] sm:$0xf]  ;;  %8213 = vmatpush3.bf16.msra.mxu0 %v8968_v31  ;;  %v8991_v14 = vld [vmem:[#allocation8 + $0x160] sm:$0xff]  }
  0x92   : > { %v467_v59 = vrot.slane %v465_v52, 5  ;;  %v471_v60 = vrot.slane %v469_v53, 4  ;;  %v695_v61 = vld [vmem:[%s9802_s15 + $0x20] sm:$0x1]  ;;  %v7445_v62 = vrot.slane %v693_v57, 9  ;;  %8214 = vmatprep.subr.bf16.mxu0 %v8975_v37  ;;  %v462_v63 = vor.u32 %v461_v55, %v458_v51  ;;  %v8984_v12 = vld [vmem:[#allocation8 + $0x128] sm:$0xff]  }
  0x93   : > { %v766_v0 = vrot.slane %v694_v58, 5  ;;  %v769_v1 = vrot.slane %v695_v61, 5  ;;  %v7459_v2 = vld [vmem:[%s9802_s15 + $0x24] sm:$0xf]  ;;  %v8972_v4 = vld [vmem:[#allocation3 + $0x54] ss:$36 sps:$4 sm:$0xff]  }
  0x94   : > { %v8974_v5 = vld [vmem:[#allocation3 + $0x50] ss:$36 sps:$4 sm:$0xff]   ;;  %v472_v6 = vor.u32 %v471_v60, %v467_v59  ;;  %v477_v7 = vrot.slane %v475_v56, 5  ;;  %888 = vst [vmem:[#allocation3 + $0x9c] sm:$0xf] %v7459_v2  ;;  %v463_v8 = vrot.slane %v462_v63, 4  ;;  %3204 = vmatprep.mubr.bf16.mxu1 %v8972_v4 }
  0x95   : > { %v767_v9 = vsel %vm9811_vm4, %v7445_v62, %v766_v0  ;;  %v768_v10 = vrot.slane %v766_v0, 4  ;;  %v7460_v11 = vld [vmem:[%s9802_s15 + $0x28] sm:$0xf]  ;;  %8215 = vmatpush3.bf16.msra.mxu0 %v8976_v48  ;;  %v340_v20 = vld [vmem:[%s9802_s15 + $0x24] sm:$0xf]  ;;  %v8994_v58 = vld [vmem:[#allocation8 + $0x120] sm:$0xff]  }
  0x96   : > { %v473_v13 = vrot.slane %v472_v6, 4  ;;  %844 = vst [vmem:[#allocation3 + $0x98] sm:$0xf] %v767_v9  ;;  %889 = vst [vmem:[#allocation3 + $0xc0] sm:$0xf] %v7460_v11  ;;  %v468_v17 = vsel %vm9820_vm5, %v463_v8, %v467_v59  ;;  %8216 = vmatprep.subr.bf16.mxu0 %v8983_v3  ;;  %v8999_v3 = vld [vmem:[#allocation8 + $0x1f8] sm:$0xff]  }
  0x97   : > { %v8969_v15 = vld [vmem:[#allocation3 + $0x4c] ss:$36 sps:$4 sm:$0xff]   ;;  %v770_v18 = vsel %vm9811_vm4, %v768_v10, %v769_v1  ;;  %671 = vst [vmem:[#allocation3 + $0x94] sm:$0xf] %v468_v17  ;;  %v341_v21 = vld [vmem:[%s9802_s15 + $0x28] sm:$0xf]  ;;  %8288 = vmatprep.subr.bf16.mxu1 %v8999_v3 }
  0x98   : > { %v8971_v16 = vld [vmem:[#allocation3 + $0x48] ss:$36 sps:$4 sm:$0xff]   ;;  %v478_v19 = vsel %vm9820_vm5, %v473_v13, %v477_v7  ;;  %845 = vst [vmem:[#allocation3 + $0xbc] sm:$0xf] %v770_v18  ;;  %3091 = vmatprep.mubr.bf16.mxu0 %v8969_v15  ;;  %360 = vst [vmem:[#allocation3 + $0xd8] sm:$0xf] %v340_v20  ;;  %3205 = vmatmul.mubr.bf16.gmra.mxu1 %v8974_v5 }
  0x99   : > { %672 = vst [vmem:[#allocation3 + $0xb8] sm:$0xf] %v478_v19  ;;  %361 = vst [vmem:[#allocation3 + $0xfc] sm:$0xf] %v341_v21  ;;  %v383_v22 = vld [vmem:[%s9802_s15 + $0x24] sm:$0xf]  ;;  %3092 = vmatmul.mubr.bf16.gmra.mxu0 %v8971_v16 }
  0x9a   : > { %v384_v23 = vld [vmem:[%s9802_s15 + $0x28] sm:$0xf]  ;;  %v385_v24 = vld [vmem:[%s9802_s15 + $0x2c] sm:$0x1]  ;;  %v480_v25 = vshrl.u32 %v383_v22, 16  ;;  %v483_v26 = vshll.u32 %v383_v22, 16  ;;  %8217 = vmatpush3.bf16.msra.mxu0 %v8984_v12 }
  0x9b   : > { %v489_v27 = vshll.u32 %v384_v23, 16  ;;  %v493_v28 = vshrl.u32 %v384_v23, 16  ;;  %v696_v29 = vld [vmem:[%s9802_s15 + $0x24] sm:$0xe]  ;;  %v499_v30 = vshll.u32 %v385_v24, 16  ;;  %8218 = vmatprep.subr.bf16.mxu0 %v8991_v14  ;;  %v9000_v16 = vld [vmem:[#allocation8 + $0x1b8] sm:$0xff]  }
  0x9c   : > { %v697_v31 = vld [vmem:[%s9802_s15 + $0x28] sm:$0xf]  ;;  %v698_v32 = vld [vmem:[%s9802_s15 + $0x2c] sm:$0x1]  ;;  %v7446_v33 = vrot.slane %v696_v29, 9  ;;  %v482_v34 = vrot.slane %v480_v25, 4  ;;  %8289 = vmatpush3.bf16.msra.mxu1 %v9000_v16 }
  0x9d   : > { %v485_v35 = vrot.slane %v483_v26, 5  ;;  %v491_v36 = vrot.slane %v489_v27, 5  ;;  %v495_v37 = vrot.slane %v493_v28, 4  ;;  %v7461_v38 = vld [vmem:[%s9802_s15 + $0x30] sm:$0xf]  ;;  %v773_v39 = vrot.slane %v697_v31, 5 }
  0x9e   : > { %v776_v40 = vrot.slane %v698_v32, 5  ;;  %v7462_v41 = vld [vmem:[%s9802_s15 + $0x34] sm:$0xf]  ;;  %890 = vst [vmem:[#allocation3 + $0xe4] sm:$0xf] %v7461_v38  ;;  %v501_v46 = vrot.slane %v499_v30, 5  ;;  %8219 = vmatpush3.bf16.msra.mxu0 %v8994_v58 }
  0x9f   : > { %v486_v42 = vor.u32 %v485_v35, %v482_v34  ;;  %v496_v43 = vor.u32 %v495_v37, %v491_v36  ;;  %891 = vst [vmem:[#allocation3 + $0x108] sm:$0xf] %v7462_v41  ;;  %v342_v44 = vld [vmem:[%s9802_s15 + $0x30] sm:$0xf]  ;;  %v8980_v45 = vld [vmem:[#allocation3 + $0x9c] ss:$36 sps:$4 sm:$0xff]   ;;  %v774_v47 = vsel %vm9811_vm4, %v7446_v33, %v773_v39 }
  0xa0   : > { %v775_v48 = vrot.slane %v773_v39, 4  ;;  %362 = vst [vmem:[#allocation3 + $0x120] sm:$0xf] %v342_v44  ;;  %v8977_v50 = vld [vmem:[#allocation3 + $0x94] ss:$36 sps:$4 sm:$0xff]   ;;  %3212 = vmatprep.mubr.bf16.mxu1 %v8980_v45  ;;  %v9004_v24 = vld [vmem:[#allocation8 + $0x158] sm:$0xff]  }
  0xa1   : > { %v8979_v51 = vld [vmem:[#allocation3 + $0x90] ss:$36 sps:$4 sm:$0xff]   ;;  %v487_v52 = vrot.slane %v486_v42, 4  ;;  %846 = vst [vmem:[#allocation3 + $0xe0] sm:$0xf] %v774_v47  ;;  %v497_v55 = vrot.slane %v496_v43, 4  ;;  %3099 = vmatprep.mubr.bf16.mxu0 %v8977_v50  ;;  %8220 = vmatprep.subr.bf16.mxu0 %v9004_v24 }
  0xa2   : > { %v8982_v53 = vld [vmem:[#allocation3 + $0x98] ss:$36 sps:$4 sm:$0xff]   ;;  %v777_v56 = vsel %vm9811_vm4, %v775_v48, %v776_v40  ;;  %v343_v57 = vld [vmem:[%s9802_s15 + $0x34] sm:$0xf]  ;;  %v386_v60 = vld [vmem:[%s9802_s15 + $0x30] sm:$0xf]  ;;  %3100 = vmatmul.mubr.bf16.gmra.mxu0 %v8979_v51 }
  0xa3   : > { %v492_v59 = vsel %vm9820_vm5, %v487_v52, %v491_v36  ;;  %847 = vst [vmem:[#allocation3 + $0x104] sm:$0xf] %v777_v56  ;;  %363 = vst [vmem:[#allocation3 + $0x144] sm:$0xf] %v343_v57  ;;  %v387_v61 = vld [vmem:[%s9802_s15 + $0x34] sm:$0xf]  ;;  %3213 = vmatmul.mubr.bf16.gmra.mxu1 %v8982_v53  ;;  %v502_v63 = vsel %vm9820_vm5, %v497_v55, %v501_v46 }
  0xa4   : > { %v388_v62 = vld [vmem:[%s9802_s15 + $0x38] sm:$0x1]  ;;  %673 = vst [vmem:[#allocation3 + $0xdc] sm:$0xf] %v492_v59  ;;  %v504_v0 = vshrl.u32 %v386_v60, 16  ;;  %v507_v1 = vshll.u32 %v386_v60, 16 }
  0xa5   : > { %v513_v2 = vshll.u32 %v387_v61, 16  ;;  %674 = vst [vmem:[#allocation3 + $0x100] sm:$0xf] %v502_v63  ;;  %v517_v4 = vshrl.u32 %v387_v61, 16  ;;  %v523_v5 = vshll.u32 %v388_v62, 16  ;;  %v9007_v44 = vld [vmem:[#allocation8 + $0x118] sm:$0xff]  }
  0xa6   : > { %v699_v6 = vld [vmem:[%s9802_s15 + $0x30] sm:$0xe]  ;;  %v506_v7 = vrot.slane %v504_v0, 4  ;;  %v509_v8 = vrot.slane %v507_v1, 5  ;;  %v700_v10 = vld [vmem:[%s9802_s15 + $0x34] sm:$0xf]  ;;  %8221 = vmatpush3.bf16.msra.mxu0 %v9007_v44 }
  0xa7   : > { %v515_v9 = vrot.slane %v513_v2, 5  ;;  %v7447_v11 = vrot.slane %v699_v6, 9  ;;  %v519_v12 = vrot.slane %v517_v4, 4  ;;  %v525_v13 = vrot.slane %v523_v5, 5  ;;  %v701_v14 = vld [vmem:[%s9802_s15 + $0x38] sm:$0x1] }
  0xa8   : > { %v780_v15 = vrot.slane %v700_v10, 5  ;;  %v510_v17 = vor.u32 %v509_v8, %v506_v7  ;;  %v783_v18 = vrot.slane %v701_v14, 5  ;;  %v7463_v19 = vld [vmem:[%s9802_s15 + $0x3c] sm:$0xf]  ;;  %v7464_v20 = vld [vmem:[%s9802_s15 + $0x40] sm:$0xf] }
  0xa9   : > { %v520_v21 = vor.u32 %v519_v12, %v515_v9  ;;  %892 = vst [vmem:[#allocation3 + $0x12c] sm:$0xf] %v7463_v19  ;;  %893 = vst [vmem:[#allocation3 + $0x150] sm:$0xf] %v7464_v20  ;;  %v8988_v25 = vld [vmem:[#allocation3 + $0xe4] ss:$36 sps:$4 sm:$0xff]  }
  0xaa   : > { %v781_v22 = vsel %vm9811_vm4, %v7447_v11, %v780_v15  ;;  %v782_v23 = vrot.slane %v780_v15, 4  ;;  %v8990_v26 = vld [vmem:[#allocation3 + $0xe0] ss:$36 sps:$4 sm:$0xff]   ;;  %v511_v27 = vrot.slane %v510_v17, 4  ;;  %v8987_v31 = vld [vmem:[#allocation3 + $0xd8] ss:$36 sps:$4 sm:$0xff]   ;;  %3220 = vmatprep.mubr.bf16.mxu1 %v8988_v25 }
  0xab   : > { %848 = vst [vmem:[#allocation3 + $0x128] sm:$0xf] %v781_v22  ;;  %v521_v28 = vrot.slane %v520_v21, 4  ;;  %3221 = vmatmul.mubr.bf16.gmra.mxu1 %v8990_v26  ;;  %v344_v34 = vld [vmem:[%s9802_s15 + $0x3c] sm:$0xf]  ;;  %v9009_v3 = vld [vmem:[#allocation8 + $0x1f0] sm:$0xff]  }
  0xac   : > { %v784_v29 = vsel %vm9811_vm4, %v782_v23, %v783_v18  ;;  %v8985_v30 = vld [vmem:[#allocation3 + $0xdc] ss:$36 sps:$4 sm:$0xff]   ;;  %v516_v32 = vsel %vm9820_vm5, %v511_v27, %v515_v9  ;;  %364 = vst [vmem:[#allocation3 + $0x168] sm:$0xf] %v344_v34  ;;  %v391_v38 = vld [vmem:[%s9802_s15 + $0x44] sm:$0x1]  ;;  %8290 = vmatprep.subr.bf16.mxu1 %v9009_v3 }
  0xad   : > { %849 = vst [vmem:[#allocation3 + $0x14c] sm:$0xf] %v784_v29  ;;  %v526_v33 = vsel %vm9820_vm5, %v521_v28, %v525_v13  ;;  %675 = vst [vmem:[#allocation3 + $0x124] sm:$0xf] %v516_v32  ;;  %v345_v35 = vld [vmem:[%s9802_s15 + $0x40] sm:$0xf]  ;;  %3107 = vmatprep.mubr.bf16.mxu0 %v8985_v30 }
  0xae   : > { %v389_v36 = vld [vmem:[%s9802_s15 + $0x3c] sm:$0xf]  ;;  %676 = vst [vmem:[#allocation3 + $0x148] sm:$0xf] %v526_v33  ;;  %365 = vst [vmem:[#allocation3 + $0x18c] sm:$0xf] %v345_v35  ;;  %3108 = vmatmul.mubr.bf16.gmra.mxu0 %v8987_v31 }
  0xaf   : > { %v390_v37 = vld [vmem:[%s9802_s15 + $0x40] sm:$0xf]  ;;  %v528_v39 = vshrl.u32 %v389_v36, 16  ;;  %v531_v40 = vshll.u32 %v389_v36, 16  ;;  %v547_v43 = vshll.u32 %v391_v38, 16 }
  0xb0   : > { %v537_v41 = vshll.u32 %v390_v37, 16  ;;  %v541_v42 = vshrl.u32 %v390_v37, 16  ;;  %v702_v47 = vld [vmem:[%s9802_s15 + $0x3c] sm:$0xe]  ;;  %v703_v52 = vld [vmem:[%s9802_s15 + $0x40] sm:$0xf] }
  0xb1   : > { %v530_v45 = vrot.slane %v528_v39, 4  ;;  %v533_v46 = vrot.slane %v531_v40, 5  ;;  %v549_v51 = vrot.slane %v547_v43, 5  ;;  %v704_v55 = vld [vmem:[%s9802_s15 + $0x44] sm:$0x1]  ;;  %v7448_v56 = vrot.slane %v702_v47, 9 }
  0xb2   : > { %v539_v48 = vrot.slane %v537_v41, 5  ;;  %v543_v50 = vrot.slane %v541_v42, 4  ;;  %v787_v57 = vrot.slane %v703_v52, 5  ;;  %v7465_v58 = vld [vmem:[%s9802_s15 + $0x48] sm:$0xf]  ;;  %v790_v62 = vrot.slane %v704_v55, 5 }
  0xb3   : > { %v534_v53 = vor.u32 %v533_v46, %v530_v45  ;;  %v8996_v59 = vld [vmem:[#allocation3 + $0x12c] ss:$36 sps:$4 sm:$0xff]   ;;  %894 = vst [vmem:[#allocation3 + $0x174] sm:$0xf] %v7465_v58  ;;  %v8995_v5 = vld [vmem:[#allocation3 + $0x120] ss:$36 sps:$4 sm:$0xff]  }
  0xb4   : > { %v8998_v60 = vld [vmem:[#allocation3 + $0x128] ss:$36 sps:$4 sm:$0xff]   ;;  %v544_v61 = vor.u32 %v543_v50, %v539_v48  ;;  %v788_v0 = vsel %vm9811_vm4, %v7448_v56, %v787_v57  ;;  %v789_v1 = vrot.slane %v787_v57, 4  ;;  %3228 = vmatprep.mubr.bf16.mxu1 %v8996_v59  ;;  %v394_v14 = vld [vmem:[%s9802_s15 + $0x50] sm:$0x1]  ;;  %v9012_v20 = vld [vmem:[#allocation8 + $0x1b0] sm:$0xff]  }
  0xb5   : > { %v535_v63 = vrot.slane %v534_v53, 4  ;;  %v7466_v2 = vld [vmem:[%s9802_s15 + $0x4c] sm:$0xf]  ;;  %v8992_v4 = vld [vmem:[#allocation3 + $0x124] ss:$36 sps:$4 sm:$0xff]   ;;  %3229 = vmatmul.mubr.bf16.gmra.mxu1 %v8998_v60  ;;  %v571_v19 = vshll.u32 %v394_v14, 16 }
  0xb6   : > { %v545_v6 = vrot.slane %v544_v61, 4  ;;  %850 = vst [vmem:[#allocation3 + $0x170] sm:$0xf] %v788_v0  ;;  %895 = vst [vmem:[#allocation3 + $0x198] sm:$0xf] %v7466_v2  ;;  %v791_v8 = vsel %vm9811_vm4, %v789_v1, %v790_v62  ;;  %3115 = vmatprep.mubr.bf16.mxu0 %v8992_v4  ;;  %8291 = vmatpush3.bf16.msra.mxu1 %v9012_v20  ;;  %v9017_v35 = vld [vmem:[#allocation8 + $0x150] sm:$0xff]  }
  0xb7   : > { %v540_v7 = vsel %vm9820_vm5, %v535_v63, %v539_v48  ;;  %851 = vst [vmem:[#allocation3 + $0x194] sm:$0xf] %v791_v8  ;;  %v346_v10 = vld [vmem:[%s9802_s15 + $0x48] sm:$0xf]  ;;  %v347_v11 = vld [vmem:[%s9802_s15 + $0x4c] sm:$0xf]  ;;  %3116 = vmatmul.mubr.bf16.gmra.mxu0 %v8995_v5  ;;  %8222 = vmatprep.subr.bf16.mxu0 %v9017_v35 }
  0xb8   : > { %v550_v9 = vsel %vm9820_vm5, %v545_v6, %v549_v51  ;;  %677 = vst [vmem:[#allocation3 + $0x16c] sm:$0xf] %v540_v7  ;;  %366 = vst [vmem:[#allocation3 + $0x1b0] sm:$0xf] %v346_v10  ;;  %v392_v12 = vld [vmem:[%s9802_s15 + $0x48] sm:$0xf] }
  0xb9   : > { %678 = vst [vmem:[#allocation3 + $0x190] sm:$0xf] %v550_v9  ;;  %367 = vst [vmem:[#allocation3 + $0x1d4] sm:$0xf] %v347_v11  ;;  %v393_v13 = vld [vmem:[%s9802_s15 + $0x4c] sm:$0xf] }
  0xba   : > { %v552_v15 = vshrl.u32 %v392_v12, 16  ;;  %v555_v16 = vshll.u32 %v392_v12, 16  ;;  %v561_v17 = vshll.u32 %v393_v13, 16  ;;  %v565_v18 = vshrl.u32 %v393_v13, 16  ;;  %v705_v21 = vld [vmem:[%s9802_s15 + $0x48] sm:$0xe] }
  0xbb   : > { %v706_v26 = vld [vmem:[%s9802_s15 + $0x4c] sm:$0xf]  ;;  %v707_v27 = vld [vmem:[%s9802_s15 + $0x50] sm:$0x1]  ;;  %v7449_v28 = vrot.slane %v705_v21, 9  ;;  %v573_v37 = vrot.slane %v571_v19, 5 }
  0xbc   : > { %v554_v22 = vrot.slane %v552_v15, 4  ;;  %v557_v23 = vrot.slane %v555_v16, 5  ;;  %v563_v24 = vrot.slane %v561_v17, 5  ;;  %v567_v25 = vrot.slane %v565_v18, 4  ;;  %v7467_v33 = vld [vmem:[%s9802_s15 + $0x54] sm:$0xf] }
  0xbd   : > { %v794_v29 = vrot.slane %v706_v26, 5  ;;  %v797_v32 = vrot.slane %v707_v27, 5  ;;  %v7468_v34 = vld [vmem:[%s9802_s15 + $0x58] sm:$0xf]  ;;  %896 = vst [vmem:[#allocation3 + $0x1bc] sm:$0xf] %v7467_v33 }
  0xbe   : > { %v558_v30 = vor.u32 %v557_v23, %v554_v22  ;;  %v568_v31 = vor.u32 %v567_v25, %v563_v24  ;;  %v9005_v36 = vld [vmem:[#allocation3 + $0x174] ss:$36 sps:$4 sm:$0xff]   ;;  %897 = vst [vmem:[#allocation3 + $0x1e0] sm:$0xf] %v7468_v34  ;;  %v9003_v41 = vld [vmem:[#allocation3 + $0x168] ss:$36 sps:$4 sm:$0xff]  }
  0xbf   : > { %v795_v38 = vsel %vm9811_vm4, %v7449_v28, %v794_v29  ;;  %v796_v39 = vrot.slane %v794_v29, 4  ;;  %3236 = vmatprep.mubr.bf16.mxu1 %v9005_v36  ;;  %v9008_v43 = vld [vmem:[#allocation3 + $0x170] ss:$36 sps:$4 sm:$0xff]   ;;  %v9018_v46 = vld [vmem:[#allocation8 + $0x110] sm:$0xff]   ;;  %v349_v51 = vld [vmem:[%s9802_s15 + $0x58] sm:$0xf] }
  0xc0   : > { %v9001_v40 = vld [vmem:[#allocation3 + $0x16c] ss:$36 sps:$4 sm:$0xff]   ;;  %v559_v42 = vrot.slane %v558_v30, 4  ;;  %852 = vst [vmem:[#allocation3 + $0x1b8] sm:$0xf] %v795_v38  ;;  %v569_v44 = vrot.slane %v568_v31, 4  ;;  %3237 = vmatmul.mubr.bf16.gmra.mxu1 %v9008_v43  ;;  %8223 = vmatpush3.bf16.msra.mxu0 %v9018_v46 }
  0xc1   : > { %v798_v45 = vsel %vm9811_vm4, %v796_v39, %v797_v32  ;;  %3123 = vmatprep.mubr.bf16.mxu0 %v9001_v40  ;;  %v348_v50 = vld [vmem:[%s9802_s15 + $0x54] sm:$0xf]  ;;  %369 = vst [vmem:[#allocation3 + $0x21c] sm:$0xf] %v349_v51  ;;  %v396_v53 = vld [vmem:[%s9802_s15 + $0x58] sm:$0xf] }
  0xc2   : > { %v564_v47 = vsel %vm9820_vm5, %v559_v42, %v563_v24  ;;  %853 = vst [vmem:[#allocation3 + $0x1dc] sm:$0xf] %v798_v45  ;;  %3124 = vmatmul.mubr.bf16.gmra.mxu0 %v9003_v41  ;;  %v574_v48 = vsel %vm9820_vm5, %v569_v44, %v573_v37  ;;  %v395_v52 = vld [vmem:[%s9802_s15 + $0x54] sm:$0xf]  ;;  %368 = vst [vmem:[#allocation3 + $0x1f8] sm:$0xf] %v348_v50 }
  0xc3   : > { %679 = vst [vmem:[#allocation3 + $0x1b4] sm:$0xf] %v564_v47  ;;  %680 = vst [vmem:[#allocation3 + $0x1d8] sm:$0xf] %v574_v48  ;;  %v397_v55 = vld [vmem:[%s9802_s15 + $0x5c] sm:$0x1] }
  0xc4   : > { %v576_v56 = vshrl.u32 %v395_v52, 16  ;;  %v579_v57 = vshll.u32 %v395_v52, 16  ;;  %v585_v58 = vshll.u32 %v396_v53, 16  ;;  %v589_v59 = vshrl.u32 %v396_v53, 16  ;;  %v9022_v61 = vld [vmem:[#allocation8 + $0x1e8] sm:$0xff]   ;;  %v9029_v27 = vld [vmem:[#allocation8 + $0x1e0] sm:$0xff]  }
  0xc5   : > { %v595_v60 = vshll.u32 %v397_v55, 16  ;;  %v708_v0 = vld [vmem:[%s9802_s15 + $0x54] sm:$0xe]  ;;  %8292 = vmatprep.subr.bf16.mxu1 %v9022_v61  ;;  %v709_v4 = vld [vmem:[%s9802_s15 + $0x58] sm:$0xf]  ;;  %v9037_v43 = vld [vmem:[#allocation8 + $0x1d8] sm:$0xff]  }
  0xc6   : > { %v578_v62 = vrot.slane %v576_v56, 4  ;;  %v581_v63 = vrot.slane %v579_v57, 5  ;;  %v587_v1 = vrot.slane %v585_v58, 5  ;;  %v591_v2 = vrot.slane %v589_v59, 4  ;;  %v710_v6 = vld [vmem:[%s9802_s15 + $0x5c] sm:$0x1] }
  0xc7   : > { %v597_v3 = vrot.slane %v595_v60, 5  ;;  %v7450_v7 = vrot.slane %v708_v0, 9  ;;  %v801_v8 = vrot.slane %v709_v4, 5  ;;  %v7469_v9 = vld [vmem:[%s9802_s15 + $0x60] sm:$0xf]  ;;  %v804_v13 = vrot.slane %v710_v6, 5 }
  0xc8   : > { %v582_v5 = vor.u32 %v581_v63, %v578_v62  ;;  %v9014_v10 = vld [vmem:[#allocation3 + $0x1bc] ss:$36 sps:$4 sm:$0xff]   ;;  %v592_v12 = vor.u32 %v591_v2, %v587_v1  ;;  %898 = vst [vmem:[#allocation3 + $0x204] sm:$0xf] %v7469_v9  ;;  %v7470_v17 = vld [vmem:[%s9802_s15 + $0x64] sm:$0xf] }
  0xc9   : > { %v9016_v11 = vld [vmem:[#allocation3 + $0x1b8] ss:$36 sps:$4 sm:$0xff]   ;;  %v802_v15 = vsel %vm9811_vm4, %v7450_v7, %v801_v8  ;;  %v803_v16 = vrot.slane %v801_v8, 4  ;;  %v9013_v20 = vld [vmem:[#allocation3 + $0x1b0] ss:$36 sps:$4 sm:$0xff]   ;;  %3244 = vmatprep.mubr.bf16.mxu1 %v9014_v10  ;;  %v9038_v63 = vld [vmem:[#allocation8 + $0x198] sm:$0xff]  }
  0xca   : > { %v583_v14 = vrot.slane %v582_v5, 4  ;;  %v9025_v18 = vld [vmem:[#allocation8 + $0x1a8] sm:$0xff]   ;;  %v593_v21 = vrot.slane %v592_v12, 4  ;;  %854 = vst [vmem:[#allocation3 + $0x200] sm:$0xf] %v802_v15  ;;  %3245 = vmatmul.mubr.bf16.gmra.mxu1 %v9016_v11  ;;  %v9032_v42 = vld [vmem:[#allocation8 + $0x1a0] sm:$0xff]  }
  0xcb   : > { %v9010_v19 = vld [vmem:[#allocation3 + $0x1b4] ss:$36 sps:$4 sm:$0xff]   ;;  %899 = vst [vmem:[#allocation3 + $0x228] sm:$0xf] %v7470_v17  ;;  %v805_v23 = vsel %vm9811_vm4, %v803_v16, %v804_v13  ;;  %8293 = vmatpush3.bf16.msra.mxu1 %v9025_v18  ;;  %v350_v28 = vld [vmem:[%s9802_s15 + $0x60] sm:$0xf] }
  0xcc   : > { %v588_v22 = vsel %vm9820_vm5, %v583_v14, %v587_v1  ;;  %3131 = vmatprep.mubr.bf16.mxu0 %v9010_v19  ;;  %v598_v24 = vsel %vm9820_vm5, %v593_v21, %v597_v3  ;;  %855 = vst [vmem:[#allocation3 + $0x224] sm:$0xf] %v805_v23  ;;  %v9027_v25 = vld [vmem:[#allocation8 + $0x148] sm:$0xff]   ;;  %v351_v29 = vld [vmem:[%s9802_s15 + $0x64] sm:$0xf]  ;;  %8294 = vmatprep.subr.bf16.mxu1 %v9029_v27  ;;  %v9039_v4 = vld [vmem:[#allocation8 + $0x140] sm:$0xff]  }
  0xcd   : > { %681 = vst [vmem:[#allocation3 + $0x1fc] sm:$0xf] %v588_v22  ;;  %3132 = vmatmul.mubr.bf16.gmra.mxu0 %v9013_v20  ;;  %682 = vst [vmem:[#allocation3 + $0x220] sm:$0xf] %v598_v24  ;;  %v9028_v26 = vld [vmem:[#allocation8 + $0x108] sm:$0xff]   ;;  %8224 = vmatprep.subr.bf16.mxu0 %v9027_v25  ;;  %v9040_v6 = vld [vmem:[#allocation8 + $0x1d0] sm:$0xff]  }
  0xce   : > { %8225 = vmatpush3.bf16.msra.mxu0 %v9028_v26  ;;  %370 = vst [vmem:[#allocation3 + $0x240] sm:$0xf] %v350_v28  ;;  %v398_v30 = vld [vmem:[%s9802_s15 + $0x60] sm:$0xf]  ;;  %v399_v31 = vld [vmem:[%s9802_s15 + $0x64] sm:$0xf] }
  0xcf   : > { %371 = vst [vmem:[#allocation3 + $0x264] sm:$0xf] %v351_v29  ;;  %v400_v32 = vld [vmem:[%s9802_s15 + $0x68] sm:$0x1]  ;;  %v600_v33 = vshrl.u32 %v398_v30, 16  ;;  %v603_v34 = vshll.u32 %v398_v30, 16  ;;  %8295 = vmatpush3.bf16.msra.mxu1 %v9032_v42  ;;  %8226 = vmatprep.subr.bf16.mxu0 %v9039_v4 }
  0xd0   : > { %v609_v35 = vshll.u32 %v399_v31, 16  ;;  %v613_v36 = vshrl.u32 %v399_v31, 16  ;;  %v619_v37 = vshll.u32 %v400_v32, 16  ;;  %v9021_v46 = vld [vmem:[#allocation3 + $0x1f8] ss:$36 sps:$4 sm:$0xff]   ;;  %8296 = vmatprep.subr.bf16.mxu1 %v9037_v43  ;;  %v9043_v17 = vld [vmem:[#allocation8 + $0x100] sm:$0xff]  }
  0xd1   : > { %v602_v38 = vrot.slane %v600_v33, 4  ;;  %v605_v39 = vrot.slane %v603_v34, 5  ;;  %v711_v52 = vld [vmem:[%s9802_s15 + $0x60] sm:$0xe]  ;;  %v712_v53 = vld [vmem:[%s9802_s15 + $0x64] sm:$0xf] }
  0xd2   : > { %v611_v40 = vrot.slane %v609_v35, 5  ;;  %v615_v41 = vrot.slane %v613_v36, 4  ;;  %v9023_v44 = vld [vmem:[#allocation3 + $0x204] ss:$36 sps:$4 sm:$0xff]   ;;  %v621_v50 = vrot.slane %v619_v37, 5  ;;  %v7451_v58 = vrot.slane %v711_v52, 9  ;;  %8227 = vmatpush3.bf16.msra.mxu0 %v9043_v17 }
  0xd3   : > { %v606_v47 = vor.u32 %v605_v39, %v602_v38  ;;  %3252 = vmatprep.mubr.bf16.mxu1 %v9023_v44  ;;  %v9026_v51 = vld [vmem:[#allocation3 + $0x200] ss:$36 sps:$4 sm:$0xff]   ;;  %v713_v57 = vld [vmem:[%s9802_s15 + $0x68] sm:$0x1]  ;;  %v808_v59 = vrot.slane %v712_v53, 5  ;;  %8297 = vmatpush3.bf16.msra.mxu1 %v9038_v63  ;;  %v9049_v42 = vld [vmem:[#allocation8 + $0x1c8] sm:$0xff]  }
  0xd4   : > { %v9019_v45 = vld [vmem:[#allocation3 + $0x1fc] ss:$36 sps:$4 sm:$0xff]   ;;  %v616_v48 = vor.u32 %v615_v41, %v611_v40  ;;  %3253 = vmatmul.mubr.bf16.gmra.mxu1 %v9026_v51  ;;  %v811_v60 = vrot.slane %v713_v57, 5  ;;  %v7471_v61 = vld [vmem:[%s9802_s15 + $0x6c] sm:$0xf]  ;;  %8298 = vmatprep.subr.bf16.mxu1 %v9040_v6 }
  0xd5   : > { %3139 = vmatprep.mubr.bf16.mxu0 %v9019_v45  ;;  %v607_v55 = vrot.slane %v606_v47, 4  ;;  %v7472_v62 = vld [vmem:[%s9802_s15 + $0x70] sm:$0xf]  ;;  %v809_v2 = vsel %vm9811_vm4, %v7451_v58, %v808_v59  ;;  %v810_v3 = vrot.slane %v808_v59, 4  ;;  %900 = vst [vmem:[#allocation3 + $0x24c] sm:$0xf] %v7471_v61 }
  0xd6   : > { %v617_v56 = vrot.slane %v616_v48, 4  ;;  %3140 = vmatmul.mubr.bf16.gmra.mxu0 %v9021_v46  ;;  %901 = vst [vmem:[#allocation3 + $0x270] sm:$0xf] %v7472_v62  ;;  %856 = vst [vmem:[#allocation3 + $0x248] sm:$0xf] %v809_v2  ;;  %v9044_v27 = vld [vmem:[#allocation8 + $0x190] sm:$0xff]  }
  0xd7   : > { %v612_v0 = vsel %vm9820_vm5, %v607_v55, %v611_v40  ;;  %v812_v5 = vsel %vm9811_vm4, %v810_v3, %v811_v60  ;;  %v352_v7 = vld [vmem:[%s9802_s15 + $0x6c] sm:$0xf]  ;;  %v353_v8 = vld [vmem:[%s9802_s15 + $0x70] sm:$0xf]  ;;  %v403_v11 = vld [vmem:[%s9802_s15 + $0x74] sm:$0x1]  ;;  %8299 = vmatpush3.bf16.msra.mxu1 %v9044_v27 }
  0xd8   : > { %v622_v1 = vsel %vm9820_vm5, %v617_v56, %v621_v50  ;;  %683 = vst [vmem:[#allocation3 + $0x244] sm:$0xf] %v612_v0  ;;  %857 = vst [vmem:[#allocation3 + $0x26c] sm:$0xf] %v812_v5  ;;  %v401_v9 = vld [vmem:[%s9802_s15 + $0x6c] sm:$0xf]  ;;  %8300 = vmatprep.subr.bf16.mxu1 %v9049_v42 }
  0xd9   : > { %684 = vst [vmem:[#allocation3 + $0x268] sm:$0xf] %v622_v1  ;;  %372 = vst [vmem:[#allocation3 + $0x288] sm:$0xf] %v352_v7  ;;  %v402_v10 = vld [vmem:[%s9802_s15 + $0x70] sm:$0xf] }
  0xda   : > { %373 = vst [vmem:[#allocation3 + $0x2ac] sm:$0xf] %v353_v8  ;;  %v624_v12 = vshrl.u32 %v401_v9, 16  ;;  %v627_v13 = vshll.u32 %v401_v9, 16  ;;  %v633_v14 = vshll.u32 %v402_v10, 16  ;;  %v637_v15 = vshrl.u32 %v402_v10, 16 }
  0xdb   : > { %v643_v16 = vshll.u32 %v403_v11, 16  ;;  %v9033_v23 = vld [vmem:[#allocation3 + $0x240] ss:$36 sps:$4 sm:$0xff]   ;;  %v714_v32 = vld [vmem:[%s9802_s15 + $0x6c] sm:$0xe]  ;;  %v9050_v45 = vld [vmem:[#allocation8 + $0x188] sm:$0xff]  }
  0xdc   : > { %v626_v18 = vrot.slane %v624_v12, 4  ;;  %v629_v19 = vrot.slane %v627_v13, 5  ;;  %v635_v20 = vrot.slane %v633_v14, 5  ;;  %v639_v21 = vrot.slane %v637_v15, 4  ;;  %v715_v33 = vld [vmem:[%s9802_s15 + $0x70] sm:$0xf]  ;;  %8301 = vmatpush3.bf16.msra.mxu1 %v9050_v45 }
  0xdd   : > { %v645_v26 = vrot.slane %v643_v16, 5  ;;  %v9034_v28 = vld [vmem:[#allocation3 + $0x24c] ss:$36 sps:$4 sm:$0xff]   ;;  %v716_v34 = vld [vmem:[%s9802_s15 + $0x74] sm:$0x1]  ;;  %v7452_v35 = vrot.slane %v714_v32, 9 }
  0xde   : > { %v630_v24 = vor.u32 %v629_v19, %v626_v18  ;;  %v640_v25 = vor.u32 %v639_v21, %v635_v20  ;;  %3260 = vmatprep.mubr.bf16.mxu1 %v9034_v28  ;;  %v815_v36 = vrot.slane %v715_v33, 5  ;;  %v7473_v37 = vld [vmem:[%s9802_s15 + $0x78] sm:$0xf]  ;;  %v818_v40 = vrot.slane %v716_v34, 5  ;;  %v7474_v41 = vld [vmem:[%s9802_s15 + $0x7c] sm:$0xf] }
  0xdf   : > { %v9036_v29 = vld [vmem:[#allocation3 + $0x248] ss:$36 sps:$4 sm:$0xff]   ;;  %902 = vst [vmem:[#allocation3 + $0x294] sm:$0xf] %v7473_v37  ;;  %903 = vst [vmem:[#allocation3 + $0x2b8] sm:$0xf] %v7474_v41 }
  0xe0   : > { %v9030_v22 = vld [vmem:[#allocation3 + $0x244] ss:$36 sps:$4 sm:$0xff]   ;;  %v631_v30 = vrot.slane %v630_v24, 4  ;;  %v641_v31 = vrot.slane %v640_v25, 4  ;;  %3261 = vmatmul.mubr.bf16.gmra.mxu1 %v9036_v29  ;;  %v816_v43 = vsel %vm9811_vm4, %v7452_v35, %v815_v36  ;;  %v817_v44 = vrot.slane %v815_v36, 4  ;;  %v9051_v47 = vld [vmem:[#allocation8 + $0x1c0] sm:$0xff]  }
  0xe1   : > { %3147 = vmatprep.mubr.bf16.mxu0 %v9030_v22  ;;  %858 = vst [vmem:[#allocation3 + $0x290] sm:$0xf] %v816_v43  ;;  %v7475_v48 = vld [vmem:[%s9802_s15 + $0xc] sm:$0xf]  ;;  %v7476_v50 = vld [vmem:[%s9802_s15 + $0x10] sm:$0xf]  ;;  %8302 = vmatprep.subr.bf16.mxu1 %v9051_v47 }
  0xe2   : > { %3148 = vmatmul.mubr.bf16.gmra.mxu0 %v9033_v23  ;;  %v636_v38 = vsel %vm9820_vm5, %v631_v30, %v635_v20  ;;  %v646_v39 = vsel %vm9820_vm5, %v641_v31, %v645_v26  ;;  %v819_v46 = vsel %vm9811_vm4, %v817_v44, %v818_v40  ;;  %v7477_v51 = vld [vmem:[%s9802_s15 + $0x14] sm:$0x1]  ;;  %v935_v52 = vshrl.u32 %v7475_v48, 16  ;;  %v7505_v58 = vld [vmem:[%s9802_s15 + $0xc] sm:$0xe] }
  0xe3   : > { %685 = vst [vmem:[#allocation3 + $0x28c] sm:$0xf] %v636_v38  ;;  %686 = vst [vmem:[#allocation3 + $0x2b0] sm:$0xf] %v646_v39  ;;  %v938_v53 = vshll.u32 %v7475_v48, 16  ;;  %v944_v55 = vshll.u32 %v7476_v50, 16 }
  0xe4   : > { %859 = vst [vmem:[#allocation3 + $0x2b4] sm:$0xf] %v819_v46  ;;  %v948_v56 = vshrl.u32 %v7476_v50, 16  ;;  %v954_v57 = vshll.u32 %v7477_v51, 16  ;;  %v7506_v59 = vld [vmem:[%s9802_s15 + $0x10] sm:$0xf] }
  0xe5   : > { %v9055_v60 = vld [vmem:[#allocation8 + $0x180] sm:$0xff]   ;;  %v937_v61 = vrot.slane %v935_v52, 4  ;;  %v940_v62 = vrot.slane %v938_v53, 5  ;;  %v946_v63 = vrot.slane %v944_v55, 5  ;;  %v7535_v2 = vrot.slane %v7505_v58, 9  ;;  %v10010_v19 = vld [vmem:[#allocation8 + $0x238] sm:$0xff]  }
  0xe6   : > { %v950_v0 = vrot.slane %v948_v56, 4  ;;  %v7507_v1 = vld [vmem:[%s9802_s15 + $0x14] sm:$0x1]  ;;  %v1276_v3 = vrot.slane %v7506_v59, 5  ;;  %8303 = vmatpush3.bf16.msra.mxu1 %v9055_v60  ;;  %v956_v8 = vrot.slane %v954_v57, 5  ;;  %8670 = vmatprep.subr.bf16.mxu0 %v10010_v19 }
  0xe7   : > { %v1279_v4 = vrot.slane %v7507_v1, 5  ;;  %v941_v6 = vor.u32 %v940_v62, %v937_v61  ;;  %v9045_v9 = vld [vmem:[#allocation3 + $0x288] ss:$36 sps:$4 sm:$0xff]   ;;  %v9046_v14 = vld [vmem:[#allocation3 + $0x294] ss:$36 sps:$4 sm:$0xff]  }
  0xe8   : > { %v951_v7 = vor.u32 %v950_v0, %v946_v63  ;;  %v1277_v10 = vsel %vm9811_vm4, %v7535_v2, %v1276_v3  ;;  %v1278_v11 = vrot.slane %v1276_v3, 4  ;;  %v7547_v20 = vld [vmem:[%s9802_s15 + $0x18] sm:$0xf]  ;;  %v7548_v21 = vld [vmem:[%s9802_s15 + $0x1c] sm:$0xf]  ;;  %3268 = vmatprep.mubr.bf16.mxu1 %v9046_v14 }
  0xe9   : > { %v942_v12 = vrot.slane %v941_v6, 4  ;;  %1364 = vst [vmem:[#allocation3 + $0x14] sm:$0xf] %v1277_v10  ;;  %1408 = vst [vmem:[#allocation3 + $0x18] sm:$0xf] %v7547_v20 }
  0xea   : > { %v9041_v5 = vld [vmem:[#allocation3 + $0x28c] ss:$36 sps:$4 sm:$0xff]   ;;  %v952_v13 = vrot.slane %v951_v7, 4  ;;  %v1280_v16 = vsel %vm9811_vm4, %v1278_v11, %v1279_v4  ;;  %1409 = vst [vmem:[#allocation3 + $0x3c] sm:$0xf] %v7548_v21 }
  0xeb   : > { %3155 = vmatprep.mubr.bf16.mxu0 %v9041_v5  ;;  %v9048_v15 = vld [vmem:[#allocation3 + $0x290] ss:$36 sps:$4 sm:$0xff]   ;;  %v947_v17 = vsel %vm9820_vm5, %v942_v12, %v946_v63  ;;  %1365 = vst [vmem:[#allocation3 + $0x38] sm:$0xf] %v1280_v16  ;;  %v7567_v22 = vld [vmem:[%s9802_s15 + $0x18] sm:$0xf] }
  0xec   : > { %3156 = vmatmul.mubr.bf16.gmra.mxu0 %v9045_v9  ;;  %v957_v18 = vsel %vm9820_vm5, %v952_v13, %v956_v8  ;;  %1194 = vst [vmem:[#allocation3 + $0x10] sm:$0xf] %v947_v17  ;;  %v7568_v23 = vld [vmem:[%s9802_s15 + $0x1c] sm:$0xf]  ;;  %v7569_v24 = vld [vmem:[%s9802_s15 + $0x20] sm:$0x1]  ;;  %3269 = vmatmul.mubr.bf16.gmra.mxu1 %v9048_v15 }
  0xed   : > { %1195 = vst [vmem:[#allocation3 + $0x34] sm:$0xf] %v957_v18  ;;  %v1459_v25 = vshrl.u32 %v7567_v22, 16  ;;  %v1462_v26 = vshll.u32 %v7567_v22, 16  ;;  %v1468_v27 = vshll.u32 %v7568_v23, 16  ;;  %v1472_v28 = vshrl.u32 %v7568_v23, 16 }
  0xee   : > { %v7478_v29 = vld [vmem:[%s9802_s15 + $0x18] sm:$0xf]  ;;  %v1478_v30 = vshll.u32 %v7569_v24, 16  ;;  %v7479_v31 = vld [vmem:[%s9802_s15 + $0x1c] sm:$0xf]  ;;  %v9066_v12 = vld [vmem:[#allocation8 + $0x230] sm:$0xff]  }
  0xef   : > { %v7480_v32 = vld [vmem:[%s9802_s15 + $0x20] sm:$0x1]  ;;  %v959_v33 = vshrl.u32 %v7478_v29, 16  ;;  %v1461_v34 = vrot.slane %v1459_v25, 4  ;;  %v1464_v35 = vrot.slane %v1462_v26, 5  ;;  %v1470_v36 = vrot.slane %v1468_v27, 5 }
  0xf0   : > { %v1474_v37 = vrot.slane %v1472_v28, 4  ;;  %v7508_v38 = vld [vmem:[%s9802_s15 + $0x18] sm:$0xe]  ;;  %v1480_v39 = vrot.slane %v1478_v30, 5  ;;  %v962_v41 = vshll.u32 %v7478_v29, 16  ;;  %v968_v42 = vshll.u32 %v7479_v31, 16 }
  0xf1   : > { %v961_v40 = vrot.slane %v959_v33, 4  ;;  %v7509_v43 = vld [vmem:[%s9802_s15 + $0x1c] sm:$0xf]  ;;  %v1465_v44 = vor.u32 %v1464_v35, %v1461_v34  ;;  %v972_v46 = vshrl.u32 %v7479_v31, 16  ;;  %v978_v47 = vshll.u32 %v7480_v32, 16 }
  0xf2   : > { %v1475_v45 = vor.u32 %v1474_v37, %v1470_v36  ;;  %v7510_v48 = vld [vmem:[%s9802_s15 + $0x20] sm:$0x1]  ;;  %v7549_v50 = vld [vmem:[%s9802_s15 + $0x24] sm:$0xf]  ;;  %v964_v51 = vrot.slane %v962_v41, 5  ;;  %v970_v52 = vrot.slane %v968_v42, 5 }
  0xf3   : > { %v7536_v53 = vrot.slane %v7508_v38, 9  ;;  %v1283_v55 = vrot.slane %v7509_v43, 5  ;;  %v7550_v56 = vld [vmem:[%s9802_s15 + $0x28] sm:$0xf]  ;;  %1410 = vst [vmem:[#allocation3 + $0x60] sm:$0xf] %v7549_v50 }
  0xf4   : > { %v9052_v57 = vld [vmem:[#allocation3 + $0x10] ss:$36 sps:$4 sm:$0xff]   ;;  %v1466_v58 = vrot.slane %v1465_v44, 4  ;;  %v1476_v59 = vrot.slane %v1475_v45, 4  ;;  %1411 = vst [vmem:[#allocation3 + $0x84] sm:$0xf] %v7550_v56  ;;  %v965_v61 = vor.u32 %v964_v51, %v961_v40 }
  0xf5   : > { %v9054_v60 = vld [vmem:[#allocation3 + $0x14] ss:$36 sps:$4 sm:$0xff]   ;;  %v974_v62 = vrot.slane %v972_v46, 4  ;;  %v980_v63 = vrot.slane %v978_v47, 5  ;;  %v1284_v0 = vsel %vm9811_vm4, %v7536_v53, %v1283_v55  ;;  %v7570_v1 = vld [vmem:[%s9802_s15 + $0x24] sm:$0xf] }
  0xf6   : > { %v1471_v2 = vsel %vm9820_vm5, %v1466_v58, %v1470_v36  ;;  %v1481_v3 = vsel %vm9820_vm5, %v1476_v59, %v1480_v39  ;;  %v1285_v4 = vrot.slane %v1283_v55, 4  ;;  %v1286_v5 = vrot.slane %v7510_v48, 5  ;;  %1366 = vst [vmem:[#allocation3 + $0x5c] sm:$0xf] %v1284_v0  ;;  %v7571_v6 = vld [vmem:[%s9802_s15 + $0x28] sm:$0xf]  ;;  %3309 = vmatprep.mubr.bf16.mxu0 %v9054_v60 }
  0xf7   : > { %v7572_v7 = vld [vmem:[%s9802_s15 + $0x2c] sm:$0x1]  ;;  %1718 = vst [vmem:[#allocation3 + $0x1c] sm:$0xf] %v1471_v2  ;;  %1719 = vst [vmem:[#allocation3 + $0x40] sm:$0xf] %v1481_v3  ;;  %v975_v9 = vor.u32 %v974_v62, %v970_v52  ;;  %3310 = vmatmul.mubr.bf16.vlgmr.msra.gmra.mxu0 %v9052_v57 }
  0xf8   : > { %v966_v8 = vrot.slane %v965_v61, 4  ;;  %v1483_v10 = vshrl.u32 %v7570_v1, 16  ;;  %v1486_v11 = vshll.u32 %v7570_v1, 16  ;;  %v1287_v13 = vsel %vm9811_vm4, %v1285_v4, %v1286_v5  ;;  %8671 = vmatpush3.bf16.msra.mxu0 %v10010_v19  ;;  %v7481_v22 = vld [vmem:[%s9802_s15 + $0x24] sm:$0xf]  ;;  %v9073_v23 = vld [vmem:[#allocation8 + $0x228] sm:$0xff]  }
  0xf9   : > { %v1492_v14 = vshll.u32 %v7571_v6, 16  ;;  %v1496_v15 = vshrl.u32 %v7571_v6, 16  ;;  %v1502_v16 = vshll.u32 %v7572_v7, 16  ;;  %v976_v18 = vrot.slane %v975_v9, 4  ;;  %1367 = vst [vmem:[#allocation3 + $0x80] sm:$0xf] %v1287_v13  ;;  %8672 = vmatprep.subr.bf16.mxu0 %v9066_v12 }
  0xfa   : > { %v971_v17 = vsel %vm9820_vm5, %v966_v8, %v970_v52  ;;  %v1485_v20 = vrot.slane %v1483_v10, 4  ;;  %v1488_v21 = vrot.slane %v1486_v11, 5  ;;  %v7482_v27 = vld [vmem:[%s9802_s15 + $0x28] sm:$0xf]  ;;  %v983_v28 = vshrl.u32 %v7481_v22, 16  ;;  %v9080_v39 = vld [vmem:[#allocation8 + $0x220] sm:$0xff]  }
  0xfb   : > { %1196 = vst [vmem:[#allocation3 + $0x58] sm:$0xf] %v971_v17  ;;  %v1494_v24 = vrot.slane %v1492_v14, 5  ;;  %v1498_v25 = vrot.slane %v1496_v15, 4  ;;  %v1504_v26 = vrot.slane %v1502_v16, 5  ;;  %v981_v19 = vsel %vm9820_vm5, %v976_v18, %v980_v63  ;;  %v9090_v61 = vld [vmem:[#allocation8 + $0x218] sm:$0xff]  }
  0xfc   : > { %v1489_v29 = vor.u32 %v1488_v21, %v1485_v20  ;;  %v7483_v30 = vld [vmem:[%s9802_s15 + $0x2c] sm:$0x1]  ;;  %v986_v31 = vshll.u32 %v7481_v22, 16  ;;  %v992_v32 = vshll.u32 %v7482_v27, 16  ;;  %v7511_v33 = vld [vmem:[%s9802_s15 + $0x24] sm:$0xe]  ;;  %8673 = vmatpush3.bf16.msra.mxu0 %v9066_v12 }
  0xfd   : > { %1197 = vst [vmem:[#allocation3 + $0x7c] sm:$0xf] %v981_v19  ;;  %v1499_v34 = vor.u32 %v1498_v25, %v1494_v24  ;;  %v985_v35 = vrot.slane %v983_v28, 4  ;;  %v996_v36 = vshrl.u32 %v7482_v27, 16  ;;  %v1002_v37 = vshll.u32 %v7483_v30, 16  ;;  %8674 = vmatprep.subr.bf16.mxu0 %v9073_v23  ;;  %v9100_v20 = vld [vmem:[#allocation8 + $0x210] sm:$0xff]  }
  0xfe   : > { %v7512_v38 = vld [vmem:[%s9802_s15 + $0x28] sm:$0xf]  ;;  %v1490_v40 = vrot.slane %v1489_v29, 4  ;;  %v988_v41 = vrot.slane %v986_v31, 5  ;;  %v994_v42 = vrot.slane %v992_v32, 5  ;;  %v7537_v44 = vrot.slane %v7511_v33, 9 }
  0xff   : > { %v7513_v43 = vld [vmem:[%s9802_s15 + $0x2c] sm:$0x1]  ;;  %v9057_v45 = vld [vmem:[#allocation3 + $0x18] ss:$36 sps:$4 sm:$0xff]   ;;  %v1500_v46 = vrot.slane %v1499_v34, 4  ;;  %v998_v47 = vrot.slane %v996_v36, 4 }
 0x100   : > { %v9059_v48 = vld [vmem:[#allocation3 + $0x1c] ss:$36 sps:$4 sm:$0xff]   ;;  %v1495_v50 = vsel %vm9820_vm5, %v1490_v40, %v1494_v24  ;;  %v989_v51 = vor.u32 %v988_v41, %v985_v35  ;;  %v1290_v52 = vrot.slane %v7512_v38, 5  ;;  %v7551_v53 = vld [vmem:[%s9802_s15 + $0x30] sm:$0xf]  ;;  %v1004_v57 = vrot.slane %v1002_v37, 5  ;;  %8675 = vmatpush3.bf16.msra.mxu0 %v9073_v23 }
 0x101   : > { %v1505_v55 = vsel %vm9820_vm5, %v1500_v46, %v1504_v26  ;;  %1720 = vst [vmem:[#allocation3 + $0x64] sm:$0xf] %v1495_v50  ;;  %v999_v56 = vor.u32 %v998_v47, %v994_v42  ;;  %v1293_v58 = vrot.slane %v7513_v43, 5  ;;  %v7552_v59 = vld [vmem:[%s9802_s15 + $0x34] sm:$0xf]  ;;  %3422 = vmatprep.mubr.bf16.mxu1 %v9059_v48  ;;  %8676 = vmatprep.subr.bf16.mxu0 %v9080_v39  ;;  %v9107_v33 = vld [vmem:[#allocation8 + $0x208] sm:$0xff]  }
 0x102   : > { %1412 = vst [vmem:[#allocation3 + $0xa8] sm:$0xf] %v7551_v53  ;;  %v7573_v60 = vld [vmem:[%s9802_s15 + $0x30] sm:$0xf]  ;;  %1721 = vst [vmem:[#allocation3 + $0x88] sm:$0xf] %v1505_v55  ;;  %v1291_v63 = vsel %vm9811_vm4, %v7537_v44, %v1290_v52  ;;  %3423 = vmatmul.mubr.bf16.vlgmr.msra.gmra.mxu1 %v9057_v45 }
 0x103   : > { %v990_v62 = vrot.slane %v989_v51, 4  ;;  %v1292_v0 = vrot.slane %v1290_v52, 4  ;;  %1413 = vst [vmem:[#allocation3 + $0xcc] sm:$0xf] %v7552_v59  ;;  %v7574_v1 = vld [vmem:[%s9802_s15 + $0x34] sm:$0xf] }
 0x104   : > { %v1507_v2 = vshrl.u32 %v7573_v60, 16  ;;  %v1000_v3 = vrot.slane %v999_v56, 4  ;;  %1368 = vst [vmem:[#allocation3 + $0xa4] sm:$0xf] %v1291_v63  ;;  %v7575_v4 = vld [vmem:[%s9802_s15 + $0x38] sm:$0x1]  ;;  %8677 = vmatpush3.bf16.msra.mxu0 %v9080_v39 }
 0x105   : > { %v1510_v5 = vshll.u32 %v7573_v60, 16  ;;  %v1516_v6 = vshll.u32 %v7574_v1, 16  ;;  %v1520_v7 = vshrl.u32 %v7574_v1, 16  ;;  %v9060_v8 = vld [vmem:[#allocation3 + $0x5c] ss:$36 sps:$4 sm:$0xff]   ;;  %v995_v10 = vsel %vm9820_vm5, %v990_v62, %v994_v42  ;;  %8678 = vmatprep.subr.bf16.mxu0 %v9090_v61  ;;  %v9114_v55 = vld [vmem:[#allocation8 + $0x200] sm:$0xff]  }
 0x106   : > { %v9062_v9 = vld [vmem:[#allocation3 + $0x58] ss:$36 sps:$4 sm:$0xff]   ;;  %v1294_v11 = vsel %vm9811_vm4, %v1292_v0, %v1293_v58  ;;  %v1509_v12 = vrot.slane %v1507_v2, 4  ;;  %v1005_v13 = vsel %vm9820_vm5, %v1000_v3, %v1004_v57  ;;  %1198 = vst [vmem:[#allocation3 + $0xa0] sm:$0xf] %v995_v10  ;;  %3317 = vmatprep.mubr.bf16.mxu0 %v9060_v8  ;;  %v1526_v17 = vshll.u32 %v7575_v4, 16 }
 0x107   : > { %1369 = vst [vmem:[#allocation3 + $0xc8] sm:$0xf] %v1294_v11  ;;  %v1512_v14 = vrot.slane %v1510_v5, 5  ;;  %v1518_v15 = vrot.slane %v1516_v6, 5  ;;  %v1522_v16 = vrot.slane %v1520_v7, 4  ;;  %3318 = vmatmul.mubr.bf16.gmra.mxu0 %v9062_v9 }
 0x108   : > { %1199 = vst [vmem:[#allocation3 + $0xc4] sm:$0xf] %v1005_v13  ;;  %v7484_v18 = vld [vmem:[%s9802_s15 + $0x30] sm:$0xf]  ;;  %v7485_v23 = vld [vmem:[%s9802_s15 + $0x34] sm:$0xf]  ;;  %8679 = vmatpush3.bf16.msra.mxu0 %v9090_v61 }
 0x109   : > { %v1513_v21 = vor.u32 %v1512_v14, %v1509_v12  ;;  %v1523_v22 = vor.u32 %v1522_v16, %v1518_v15  ;;  %v7486_v24 = vld [vmem:[%s9802_s15 + $0x38] sm:$0x1]  ;;  %v1007_v25 = vshrl.u32 %v7484_v18, 16  ;;  %v1010_v26 = vshll.u32 %v7484_v18, 16  ;;  %v9063_v30 = vld [vmem:[#allocation3 + $0x64] ss:$36 sps:$4 sm:$0xff]   ;;  %8680 = vmatprep.subr.bf16.mxu0 %v9100_v20 }
 0x10a   : > { %v1528_v27 = vrot.slane %v1526_v17, 5  ;;  %v1016_v28 = vshll.u32 %v7485_v23, 16  ;;  %v1020_v19 = vshrl.u32 %v7485_v23, 16  ;;  %v1026_v29 = vshll.u32 %v7486_v24, 16  ;;  %v9065_v31 = vld [vmem:[#allocation3 + $0x60] ss:$36 sps:$4 sm:$0xff]   ;;  %3430 = vmatprep.mubr.bf16.mxu1 %v9063_v30 }
 0x10b   : > { %v1514_v32 = vrot.slane %v1513_v21, 4  ;;  %v1524_v34 = vrot.slane %v1523_v22, 4  ;;  %v1009_v35 = vrot.slane %v1007_v25, 4  ;;  %v1012_v36 = vrot.slane %v1010_v26, 5  ;;  %v7514_v38 = vld [vmem:[%s9802_s15 + $0x30] sm:$0xe]  ;;  %3431 = vmatmul.mubr.bf16.gmra.mxu1 %v9065_v31 }
 0x10c   : > { %v1018_v37 = vrot.slane %v1016_v28, 5  ;;  %v1022_v40 = vrot.slane %v1020_v19, 4  ;;  %v1028_v41 = vrot.slane %v1026_v29, 5  ;;  %v7515_v42 = vld [vmem:[%s9802_s15 + $0x34] sm:$0xf]  ;;  %v7538_v46 = vrot.slane %v7514_v38, 9  ;;  %8681 = vmatpush3.bf16.msra.mxu0 %v9100_v20 }
 0x10d   : > { %v1519_v39 = vsel %vm9820_vm5, %v1514_v32, %v1518_v15  ;;  %v7516_v43 = vld [vmem:[%s9802_s15 + $0x38] sm:$0x1]  ;;  %v1529_v44 = vsel %vm9820_vm5, %v1524_v34, %v1528_v27  ;;  %v1013_v45 = vor.u32 %v1012_v36, %v1009_v35  ;;  %v1297_v47 = vrot.slane %v7515_v42, 5  ;;  %v7553_v48 = vld [vmem:[%s9802_s15 + $0x3c] sm:$0xf]  ;;  %8682 = vmatprep.subr.bf16.mxu0 %v9107_v33 }
 0x10e   : > { %1722 = vst [vmem:[#allocation3 + $0xac] sm:$0xf] %v1519_v39  ;;  %v9067_v50 = vld [vmem:[#allocation3 + $0xa4] ss:$36 sps:$4 sm:$0xff]   ;;  %1723 = vst [vmem:[#allocation3 + $0xd0] sm:$0xf] %v1529_v44  ;;  %v1023_v52 = vor.u32 %v1022_v40, %v1018_v37 }
 0x10f   : > { %v9069_v51 = vld [vmem:[#allocation3 + $0xa0] ss:$36 sps:$4 sm:$0xff]   ;;  %v1300_v53 = vrot.slane %v7516_v43, 5  ;;  %1414 = vst [vmem:[#allocation3 + $0xf0] sm:$0xf] %v7553_v48  ;;  %v1014_v56 = vrot.slane %v1013_v45, 4  ;;  %v1298_v57 = vsel %vm9811_vm4, %v7538_v46, %v1297_v47  ;;  %3325 = vmatprep.mubr.bf16.mxu0 %v9067_v50 }
 0x110   : > { %v1299_v58 = vrot.slane %v1297_v47, 4  ;;  %v7554_v59 = vld [vmem:[%s9802_s15 + $0x40] sm:$0xf]  ;;  %v7576_v60 = vld [vmem:[%s9802_s15 + $0x3c] sm:$0xf]  ;;  %v1024_v61 = vrot.slane %v1023_v52, 4  ;;  %3326 = vmatmul.mubr.bf16.gmra.mxu0 %v9069_v51 }
 0x111   : > { %1370 = vst [vmem:[#allocation3 + $0xec] sm:$0xf] %v1298_v57  ;;  %1415 = vst [vmem:[#allocation3 + $0x114] sm:$0xf] %v7554_v59  ;;  %v7577_v62 = vld [vmem:[%s9802_s15 + $0x40] sm:$0xf]  ;;  %v1019_v1 = vsel %vm9820_vm5, %v1014_v56, %v1018_v37  ;;  %8683 = vmatpush3.bf16.msra.mxu0 %v9107_v33 }
 0x112   : > { %v7578_v63 = vld [vmem:[%s9802_s15 + $0x44] sm:$0x1]  ;;  %v1531_v0 = vshrl.u32 %v7576_v60, 16  ;;  %v1301_v2 = vsel %vm9811_vm4, %v1299_v58, %v1300_v53  ;;  %v1534_v3 = vshll.u32 %v7576_v60, 16  ;;  %v1540_v4 = vshll.u32 %v7577_v62, 16  ;;  %8684 = vmatprep.subr.bf16.mxu0 %v9114_v55 }
 0x113   : > { %v1029_v5 = vsel %vm9820_vm5, %v1024_v61, %v1028_v41  ;;  %1200 = vst [vmem:[#allocation3 + $0xe8] sm:$0xf] %v1019_v1  ;;  %1371 = vst [vmem:[#allocation3 + $0x110] sm:$0xf] %v1301_v2  ;;  %v1544_v7 = vshrl.u32 %v7577_v62, 16  ;;  %v1550_v8 = vshll.u32 %v7578_v63, 16 }
 0x114   : > { %v1533_v6 = vrot.slane %v1531_v0, 4  ;;  %v7487_v9 = vld [vmem:[%s9802_s15 + $0x3c] sm:$0xf]  ;;  %1201 = vst [vmem:[#allocation3 + $0x10c] sm:$0xf] %v1029_v5  ;;  %v1536_v10 = vrot.slane %v1534_v3, 5 }
 0x115   : > { %v1542_v11 = vrot.slane %v1540_v4, 5  ;;  %v7488_v12 = vld [vmem:[%s9802_s15 + $0x40] sm:$0xf]  ;;  %v7489_v13 = vld [vmem:[%s9802_s15 + $0x44] sm:$0x1]  ;;  %v1546_v14 = vrot.slane %v1544_v7, 4  ;;  %8685 = vmatpush3.bf16.msra.mxu0 %v9114_v55 }
 0x116   : > { %v1552_v15 = vrot.slane %v1550_v8, 5  ;;  %v1031_v16 = vshrl.u32 %v7487_v9, 16  ;;  %v1034_v17 = vshll.u32 %v7487_v9, 16  ;;  %v9070_v18 = vld [vmem:[#allocation3 + $0xac] ss:$36 sps:$4 sm:$0xff]   ;;  %v1537_v21 = vor.u32 %v1536_v10, %v1533_v6 }
 0x117   : > { %v9072_v20 = vld [vmem:[#allocation3 + $0xa8] ss:$36 sps:$4 sm:$0xff]   ;;  %v1040_v22 = vshll.u32 %v7488_v12, 16  ;;  %v1547_v23 = vor.u32 %v1546_v14, %v1542_v11  ;;  %v1044_v26 = vshrl.u32 %v7488_v12, 16  ;;  %v7517_v27 = vld [vmem:[%s9802_s15 + $0x3c] sm:$0xe]  ;;  %3438 = vmatprep.mubr.bf16.mxu1 %v9070_v18 }
 0x118   : > { %v1033_v24 = vrot.slane %v1031_v16, 4  ;;  %v1036_v25 = vrot.slane %v1034_v17, 5  ;;  %v1538_v28 = vrot.slane %v1537_v21, 4  ;;  %v1050_v29 = vshll.u32 %v7489_v13, 16  ;;  %v7518_v30 = vld [vmem:[%s9802_s15 + $0x40] sm:$0xf]  ;;  %3439 = vmatmul.mubr.bf16.gmra.mxu1 %v9072_v20 }
 0x119   : > { %v1042_v19 = vrot.slane %v1040_v22, 5  ;;  %v7539_v31 = vrot.slane %v7517_v27, 9  ;;  %v1548_v32 = vrot.slane %v1547_v23, 4  ;;  %v1046_v34 = vrot.slane %v1044_v26, 4  ;;  %v7519_v35 = vld [vmem:[%s9802_s15 + $0x44] sm:$0x1] }
 0x11a   : > { %v1037_v33 = vor.u32 %v1036_v25, %v1033_v24  ;;  %v1304_v36 = vrot.slane %v7518_v30, 5  ;;  %v1543_v37 = vsel %vm9820_vm5, %v1538_v28, %v1542_v11  ;;  %v1052_v38 = vrot.slane %v1050_v29, 5  ;;  %v7555_v40 = vld [vmem:[%s9802_s15 + $0x48] sm:$0xf]  ;;  %v9074_v41 = vld [vmem:[#allocation3 + $0xec] ss:$36 sps:$4 sm:$0xff]  }
 0x11b   : > { %v1307_v39 = vrot.slane %v7519_v35, 5  ;;  %v9076_v42 = vld [vmem:[#allocation3 + $0xe8] ss:$36 sps:$4 sm:$0xff]   ;;  %v1553_v43 = vsel %vm9820_vm5, %v1548_v32, %v1552_v15  ;;  %1724 = vst [vmem:[#allocation3 + $0xf4] sm:$0xf] %v1543_v37  ;;  %v1047_v45 = vor.u32 %v1046_v34, %v1042_v19  ;;  %3333 = vmatprep.mubr.bf16.mxu0 %v9074_v41 }
 0x11c   : > { %v1038_v44 = vrot.slane %v1037_v33, 4  ;;  %v1305_v46 = vsel %vm9811_vm4, %v7539_v31, %v1304_v36  ;;  %1416 = vst [vmem:[#allocation3 + $0x138] sm:$0xf] %v7555_v40  ;;  %1725 = vst [vmem:[#allocation3 + $0x118] sm:$0xf] %v1553_v43  ;;  %v1306_v47 = vrot.slane %v1304_v36, 4  ;;  %3334 = vmatmul.mubr.bf16.gmra.mxu0 %v9076_v42 }
 0x11d   : > { %1372 = vst [vmem:[#allocation3 + $0x134] sm:$0xf] %v1305_v46  ;;  %v7556_v48 = vld [vmem:[%s9802_s15 + $0x4c] sm:$0xf]  ;;  %v7579_v50 = vld [vmem:[%s9802_s15 + $0x48] sm:$0xf] }
 0x11e   : > { %v1043_v51 = vsel %vm9820_vm5, %v1038_v44, %v1042_v19  ;;  %v1048_v52 = vrot.slane %v1047_v45, 4  ;;  %1417 = vst [vmem:[#allocation3 + $0x15c] sm:$0xf] %v7556_v48  ;;  %v7580_v53 = vld [vmem:[%s9802_s15 + $0x4c] sm:$0xf]  ;;  %v1555_v56 = vshrl.u32 %v7579_v50, 16  ;;  %v1308_v57 = vsel %vm9811_vm4, %v1306_v47, %v1307_v39 }
 0x11f   : > { %v7581_v55 = vld [vmem:[%s9802_s15 + $0x50] sm:$0x1]  ;;  %1202 = vst [vmem:[#allocation3 + $0x130] sm:$0xf] %v1043_v51  ;;  %v1558_v58 = vshll.u32 %v7579_v50, 16  ;;  %v1564_v59 = vshll.u32 %v7580_v53, 16 }
 0x120   : > { %v1568_v60 = vshrl.u32 %v7580_v53, 16  ;;  %v7490_v61 = vld [vmem:[%s9802_s15 + $0x48] sm:$0xf]  ;;  %v1053_v62 = vsel %vm9820_vm5, %v1048_v52, %v1052_v38  ;;  %1373 = vst [vmem:[#allocation3 + $0x158] sm:$0xf] %v1308_v57  ;;  %v1557_v63 = vrot.slane %v1555_v56, 4 }
 0x121   : > { %v1574_v0 = vshll.u32 %v7581_v55, 16  ;;  %v7491_v1 = vld [vmem:[%s9802_s15 + $0x4c] sm:$0xf]  ;;  %v7492_v2 = vld [vmem:[%s9802_s15 + $0x50] sm:$0x1]  ;;  %v1560_v3 = vrot.slane %v1558_v58, 5 }
 0x122   : > { %1203 = vst [vmem:[#allocation3 + $0x154] sm:$0xf] %v1053_v62  ;;  %v1566_v4 = vrot.slane %v1564_v59, 5  ;;  %v1570_v5 = vrot.slane %v1568_v60, 4  ;;  %v1055_v6 = vshrl.u32 %v7490_v61, 16  ;;  %v1058_v9 = vshll.u32 %v7490_v61, 16 }
 0x123   : > { %v7520_v7 = vld [vmem:[%s9802_s15 + $0x48] sm:$0xe]  ;;  %v1576_v8 = vrot.slane %v1574_v0, 5  ;;  %v1064_v10 = vshll.u32 %v7491_v1, 16  ;;  %v1068_v11 = vshrl.u32 %v7491_v1, 16  ;;  %v1561_v13 = vor.u32 %v1560_v3, %v1557_v63 }
 0x124   : > { %v7521_v12 = vld [vmem:[%s9802_s15 + $0x4c] sm:$0xf]  ;;  %v1571_v14 = vor.u32 %v1570_v5, %v1566_v4  ;;  %v1057_v15 = vrot.slane %v1055_v6, 4  ;;  %v1074_v16 = vshll.u32 %v7492_v2, 16  ;;  %v7522_v17 = vld [vmem:[%s9802_s15 + $0x50] sm:$0x1] }
 0x125   : > { %v9077_v18 = vld [vmem:[#allocation3 + $0xf4] ss:$36 sps:$4 sm:$0xff]   ;;  %v1060_v21 = vrot.slane %v1058_v9, 5  ;;  %v1562_v22 = vrot.slane %v1561_v13, 4  ;;  %v1066_v24 = vrot.slane %v1064_v10, 5  ;;  %v1070_v25 = vrot.slane %v1068_v11, 4 }
 0x126   : > { %v9079_v20 = vld [vmem:[#allocation3 + $0xf0] ss:$36 sps:$4 sm:$0xff]   ;;  %v1572_v23 = vrot.slane %v1571_v14, 4  ;;  %3446 = vmatprep.mubr.bf16.mxu1 %v9077_v18  ;;  %v1076_v27 = vrot.slane %v1074_v16, 5  ;;  %v7540_v28 = vrot.slane %v7520_v7, 9  ;;  %v1311_v19 = vrot.slane %v7521_v12, 5 }
 0x127   : > { %v1061_v26 = vor.u32 %v1060_v21, %v1057_v15  ;;  %3447 = vmatmul.mubr.bf16.gmra.mxu1 %v9079_v20  ;;  %v1567_v29 = vsel %vm9820_vm5, %v1562_v22, %v1566_v4  ;;  %v1071_v31 = vor.u32 %v1070_v25, %v1066_v24  ;;  %v1314_v32 = vrot.slane %v7522_v17, 5  ;;  %v7557_v33 = vld [vmem:[%s9802_s15 + $0x54] sm:$0xf]  ;;  %v7558_v34 = vld [vmem:[%s9802_s15 + $0x58] sm:$0xf] }
 0x128   : > { %v1577_v30 = vsel %vm9820_vm5, %v1572_v23, %v1576_v8  ;;  %v9081_v35 = vld [vmem:[#allocation3 + $0x134] ss:$36 sps:$4 sm:$0xff]   ;;  %1726 = vst [vmem:[#allocation3 + $0x13c] sm:$0xf] %v1567_v29  ;;  %v1312_v38 = vsel %vm9811_vm4, %v7540_v28, %v1311_v19  ;;  %1418 = vst [vmem:[#allocation3 + $0x180] sm:$0xf] %v7557_v33 }
 0x129   : > { %v9083_v36 = vld [vmem:[#allocation3 + $0x130] ss:$36 sps:$4 sm:$0xff]   ;;  %1727 = vst [vmem:[#allocation3 + $0x160] sm:$0xf] %v1577_v30  ;;  %v1062_v37 = vrot.slane %v1061_v26, 4  ;;  %v1072_v39 = vrot.slane %v1071_v31, 4  ;;  %3341 = vmatprep.mubr.bf16.mxu0 %v9081_v35 }
 0x12a   : > { %1419 = vst [vmem:[#allocation3 + $0x1a4] sm:$0xf] %v7558_v34  ;;  %v1313_v40 = vrot.slane %v1311_v19, 4  ;;  %1374 = vst [vmem:[#allocation3 + $0x17c] sm:$0xf] %v1312_v38  ;;  %3342 = vmatmul.mubr.bf16.gmra.mxu0 %v9083_v36 }
 0x12b   : > { %v7582_v41 = vld [vmem:[%s9802_s15 + $0x54] sm:$0xf]  ;;  %v7583_v42 = vld [vmem:[%s9802_s15 + $0x58] sm:$0xf]  ;;  %v1067_v43 = vsel %vm9820_vm5, %v1062_v37, %v1066_v24  ;;  %v7584_v44 = vld [vmem:[%s9802_s15 + $0x5c] sm:$0x1]  ;;  %v1077_v48 = vsel %vm9820_vm5, %v1072_v39, %v1076_v27 }
 0x12c   : > { %v1579_v45 = vshrl.u32 %v7582_v41, 16  ;;  %v1582_v46 = vshll.u32 %v7582_v41, 16  ;;  %v1588_v47 = vshll.u32 %v7583_v42, 16  ;;  %1204 = vst [vmem:[#allocation3 + $0x178] sm:$0xf] %v1067_v43  ;;  %v1315_v50 = vsel %vm9811_vm4, %v1313_v40, %v1314_v32 }
 0x12d   : > { %v1592_v51 = vshrl.u32 %v7583_v42, 16  ;;  %v1598_v52 = vshll.u32 %v7584_v44, 16  ;;  %v7493_v53 = vld [vmem:[%s9802_s15 + $0x54] sm:$0xf]  ;;  %v7494_v55 = vld [vmem:[%s9802_s15 + $0x58] sm:$0xf] }
 0x12e   : > { %1205 = vst [vmem:[#allocation3 + $0x19c] sm:$0xf] %v1077_v48  ;;  %1375 = vst [vmem:[#allocation3 + $0x1a0] sm:$0xf] %v1315_v50  ;;  %v1581_v56 = vrot.slane %v1579_v45, 4  ;;  %v1584_v57 = vrot.slane %v1582_v46, 5 }
 0x12f   : > { %v1590_v58 = vrot.slane %v1588_v47, 5  ;;  %v7495_v59 = vld [vmem:[%s9802_s15 + $0x5c] sm:$0x1]  ;;  %v1079_v60 = vshrl.u32 %v7493_v53, 16  ;;  %v1594_v61 = vrot.slane %v1592_v51, 4  ;;  %v1600_v62 = vrot.slane %v1598_v52, 5 }
 0x130   : > { %v1082_v63 = vshll.u32 %v7493_v53, 16  ;;  %v1088_v0 = vshll.u32 %v7494_v55, 16  ;;  %v7523_v1 = vld [vmem:[%s9802_s15 + $0x54] sm:$0xe]  ;;  %v1585_v2 = vor.u32 %v1584_v57, %v1581_v56  ;;  %v1092_v4 = vshrl.u32 %v7494_v55, 16 }
 0x131   : > { %v1081_v3 = vrot.slane %v1079_v60, 4  ;;  %v1098_v5 = vshll.u32 %v7495_v59, 16  ;;  %v7524_v6 = vld [vmem:[%s9802_s15 + $0x58] sm:$0xf]  ;;  %v9084_v7 = vld [vmem:[#allocation3 + $0x13c] ss:$36 sps:$4 sm:$0xff]   ;;  %v1595_v8 = vor.u32 %v1594_v61, %v1590_v58 }
 0x132   : > { %v1084_v9 = vrot.slane %v1082_v63, 5  ;;  %v1090_v10 = vrot.slane %v1088_v0, 5  ;;  %v9086_v11 = vld [vmem:[#allocation3 + $0x138] ss:$36 sps:$4 sm:$0xff]   ;;  %v1586_v12 = vrot.slane %v1585_v2, 4  ;;  %v1094_v13 = vrot.slane %v1092_v4, 4  ;;  %3454 = vmatprep.mubr.bf16.mxu1 %v9084_v7 }
 0x133   : > { %v1100_v14 = vrot.slane %v1098_v5, 5  ;;  %v7541_v15 = vrot.slane %v7523_v1, 9  ;;  %v1596_v16 = vrot.slane %v1595_v8, 4  ;;  %v7525_v18 = vld [vmem:[%s9802_s15 + $0x5c] sm:$0x1]  ;;  %v1318_v20 = vrot.slane %v7524_v6, 5  ;;  %3455 = vmatmul.mubr.bf16.gmra.mxu1 %v9086_v11 }
 0x134   : > { %v1085_v17 = vor.u32 %v1084_v9, %v1081_v3  ;;  %v7559_v21 = vld [vmem:[%s9802_s15 + $0x60] sm:$0xf]  ;;  %v1591_v22 = vsel %vm9820_vm5, %v1586_v12, %v1590_v58  ;;  %v1095_v23 = vor.u32 %v1094_v13, %v1090_v10  ;;  %v1321_v24 = vrot.slane %v7525_v18, 5  ;;  %v7560_v25 = vld [vmem:[%s9802_s15 + $0x64] sm:$0xf] }
 0x135   : > { %1420 = vst [vmem:[#allocation3 + $0x1c8] sm:$0xf] %v7559_v21  ;;  %v7585_v26 = vld [vmem:[%s9802_s15 + $0x60] sm:$0xf]  ;;  %v9089_v28 = vld [vmem:[#allocation3 + $0x178] ss:$36 sps:$4 sm:$0xff]   ;;  %v1601_v19 = vsel %vm9820_vm5, %v1596_v16, %v1600_v62  ;;  %v1319_v30 = vsel %vm9811_vm4, %v7541_v15, %v1318_v20 }
 0x136   : > { %v9087_v27 = vld [vmem:[#allocation3 + $0x17c] ss:$36 sps:$4 sm:$0xff]   ;;  %1728 = vst [vmem:[#allocation3 + $0x184] sm:$0xf] %v1591_v22  ;;  %v1086_v29 = vrot.slane %v1085_v17, 4  ;;  %v1096_v31 = vrot.slane %v1095_v23, 4 }
 0x137   : > { %1421 = vst [vmem:[#allocation3 + $0x1ec] sm:$0xf] %v7560_v25  ;;  %1729 = vst [vmem:[#allocation3 + $0x1a8] sm:$0xf] %v1601_v19  ;;  %v1320_v32 = vrot.slane %v1318_v20, 4  ;;  %3349 = vmatprep.mubr.bf16.mxu0 %v9087_v27  ;;  %v1603_v36 = vshrl.u32 %v7585_v26, 16 }
 0x138   : > { %1376 = vst [vmem:[#allocation3 + $0x1c4] sm:$0xf] %v1319_v30  ;;  %v7586_v33 = vld [vmem:[%s9802_s15 + $0x64] sm:$0xf]  ;;  %v7587_v34 = vld [vmem:[%s9802_s15 + $0x68] sm:$0x1]  ;;  %v1091_v35 = vsel %vm9820_vm5, %v1086_v29, %v1090_v10  ;;  %3350 = vmatmul.mubr.bf16.gmra.mxu0 %v9089_v28  ;;  %v1101_v39 = vsel %vm9820_vm5, %v1096_v31, %v1100_v14 }
 0x139   : > { %v1606_v37 = vshll.u32 %v7585_v26, 16  ;;  %v1612_v38 = vshll.u32 %v7586_v33, 16  ;;  %1206 = vst [vmem:[#allocation3 + $0x1c0] sm:$0xf] %v1091_v35  ;;  %v1322_v40 = vsel %vm9811_vm4, %v1320_v32, %v1321_v24  ;;  %v1616_v41 = vshrl.u32 %v7586_v33, 16 }
 0x13a   : > { %v1622_v42 = vshll.u32 %v7587_v34, 16  ;;  %v7496_v43 = vld [vmem:[%s9802_s15 + $0x60] sm:$0xf]  ;;  %1207 = vst [vmem:[#allocation3 + $0x1e4] sm:$0xf] %v1101_v39  ;;  %v1605_v44 = vrot.slane %v1603_v36, 4 }
 0x13b   : > { %1377 = vst [vmem:[#allocation3 + $0x1e8] sm:$0xf] %v1322_v40  ;;  %v1608_v45 = vrot.slane %v1606_v37, 5  ;;  %v1614_v46 = vrot.slane %v1612_v38, 5  ;;  %v7497_v47 = vld [vmem:[%s9802_s15 + $0x64] sm:$0xf] }
 0x13c   : > { %v1103_v48 = vshrl.u32 %v7496_v43, 16  ;;  %v1618_v50 = vrot.slane %v1616_v41, 4  ;;  %v1624_v51 = vrot.slane %v1622_v42, 5  ;;  %v7498_v52 = vld [vmem:[%s9802_s15 + $0x68] sm:$0x1]  ;;  %v1106_v53 = vshll.u32 %v7496_v43, 16 }
 0x13d   : > { %v1112_v55 = vshll.u32 %v7497_v47, 16  ;;  %v1609_v56 = vor.u32 %v1608_v45, %v1605_v44  ;;  %v1116_v58 = vshrl.u32 %v7497_v47, 16  ;;  %v1122_v59 = vshll.u32 %v7498_v52, 16  ;;  %v7526_v60 = vld [vmem:[%s9802_s15 + $0x60] sm:$0xe] }
 0x13e   : > { %v1105_v57 = vrot.slane %v1103_v48, 4  ;;  %v1619_v61 = vor.u32 %v1618_v50, %v1614_v46  ;;  %v1108_v62 = vrot.slane %v1106_v53, 5  ;;  %v7527_v0 = vld [vmem:[%s9802_s15 + $0x64] sm:$0xf]  ;;  %v7542_v1 = vrot.slane %v7526_v60, 9 }
 0x13f   : > { %v1114_v63 = vrot.slane %v1112_v55, 5  ;;  %v9091_v2 = vld [vmem:[#allocation3 + $0x184] ss:$36 sps:$4 sm:$0xff]   ;;  %v1610_v4 = vrot.slane %v1609_v56, 4  ;;  %v1118_v7 = vrot.slane %v1116_v58, 4  ;;  %v1124_v10 = vrot.slane %v1122_v59, 5 }
 0x140   : > { %v9093_v3 = vld [vmem:[#allocation3 + $0x180] ss:$36 sps:$4 sm:$0xff]   ;;  %v1620_v5 = vrot.slane %v1619_v61, 4  ;;  %v1109_v6 = vor.u32 %v1108_v62, %v1105_v57  ;;  %v7528_v8 = vld [vmem:[%s9802_s15 + $0x68] sm:$0x1]  ;;  %3462 = vmatprep.mubr.bf16.mxu1 %v9091_v2  ;;  %v1325_v11 = vrot.slane %v7527_v0, 5 }
 0x141   : > { %v1615_v9 = vsel %vm9820_vm5, %v1610_v4, %v1614_v46  ;;  %v1328_v12 = vrot.slane %v7528_v8, 5  ;;  %v7561_v13 = vld [vmem:[%s9802_s15 + $0x6c] sm:$0xf]  ;;  %3463 = vmatmul.mubr.bf16.gmra.mxu1 %v9093_v3  ;;  %v9096_v15 = vld [vmem:[#allocation3 + $0x1c0] ss:$36 sps:$4 sm:$0xff]   ;;  %v1119_v18 = vor.u32 %v1118_v7, %v1114_v63 }
 0x142   : > { %v9094_v14 = vld [vmem:[#allocation3 + $0x1c4] ss:$36 sps:$4 sm:$0xff]   ;;  %v1625_v16 = vsel %vm9820_vm5, %v1620_v5, %v1624_v51  ;;  %1730 = vst [vmem:[#allocation3 + $0x1cc] sm:$0xf] %v1615_v9  ;;  %v1110_v17 = vrot.slane %v1109_v6, 4  ;;  %v1326_v20 = vsel %vm9811_vm4, %v7542_v1, %v1325_v11  ;;  %v1327_v21 = vrot.slane %v1325_v11, 4 }
 0x143   : > { %1422 = vst [vmem:[#allocation3 + $0x210] sm:$0xf] %v7561_v13  ;;  %1731 = vst [vmem:[#allocation3 + $0x1f0] sm:$0xf] %v1625_v16  ;;  %v7562_v22 = vld [vmem:[%s9802_s15 + $0x70] sm:$0xf]  ;;  %3357 = vmatprep.mubr.bf16.mxu0 %v9094_v14 }
 0x144   : > { %v7588_v23 = vld [vmem:[%s9802_s15 + $0x6c] sm:$0xf]  ;;  %v1115_v24 = vsel %vm9820_vm5, %v1110_v17, %v1114_v63  ;;  %v1120_v25 = vrot.slane %v1119_v18, 4  ;;  %1378 = vst [vmem:[#allocation3 + $0x20c] sm:$0xf] %v1326_v20  ;;  %3358 = vmatmul.mubr.bf16.gmra.mxu0 %v9096_v15  ;;  %v1329_v19 = vsel %vm9811_vm4, %v1327_v21, %v1328_v12 }
 0x145   : > { %1423 = vst [vmem:[#allocation3 + $0x234] sm:$0xf] %v7562_v22  ;;  %v7589_v26 = vld [vmem:[%s9802_s15 + $0x70] sm:$0xf]  ;;  %v7590_v27 = vld [vmem:[%s9802_s15 + $0x74] sm:$0x1] }
 0x146   : > { %v1627_v28 = vshrl.u32 %v7588_v23, 16  ;;  %1208 = vst [vmem:[#allocation3 + $0x208] sm:$0xf] %v1115_v24  ;;  %v1630_v29 = vshll.u32 %v7588_v23, 16  ;;  %v1636_v30 = vshll.u32 %v7589_v26, 16  ;;  %v1640_v31 = vshrl.u32 %v7589_v26, 16 }
 0x147   : > { %v1125_v32 = vsel %vm9820_vm5, %v1120_v25, %v1124_v10  ;;  %1379 = vst [vmem:[#allocation3 + $0x230] sm:$0xf] %v1329_v19  ;;  %v1646_v34 = vshll.u32 %v7590_v27, 16  ;;  %v7499_v35 = vld [vmem:[%s9802_s15 + $0x6c] sm:$0xf] }
 0x148   : > { %v1629_v33 = vrot.slane %v1627_v28, 4  ;;  %1209 = vst [vmem:[#allocation3 + $0x22c] sm:$0xf] %v1125_v32  ;;  %v1632_v36 = vrot.slane %v1630_v29, 5  ;;  %v1638_v37 = vrot.slane %v1636_v30, 5  ;;  %v1642_v38 = vrot.slane %v1640_v31, 4 }
 0x149   : > { %v7500_v39 = vld [vmem:[%s9802_s15 + $0x70] sm:$0xf]  ;;  %v1127_v40 = vshrl.u32 %v7499_v35, 16  ;;  %v1648_v41 = vrot.slane %v1646_v34, 5  ;;  %v7501_v42 = vld [vmem:[%s9802_s15 + $0x74] sm:$0x1] }
 0x14a   : > { %v1130_v43 = vshll.u32 %v7499_v35, 16  ;;  %v1136_v44 = vshll.u32 %v7500_v39, 16  ;;  %v1140_v45 = vshrl.u32 %v7500_v39, 16  ;;  %v1633_v46 = vor.u32 %v1632_v36, %v1629_v33  ;;  %v7529_v51 = vld [vmem:[%s9802_s15 + $0x6c] sm:$0xe] }
 0x14b   : > { %v1643_v47 = vor.u32 %v1642_v38, %v1638_v37  ;;  %v1129_v48 = vrot.slane %v1127_v40, 4  ;;  %v1146_v50 = vshll.u32 %v7501_v42, 16  ;;  %v9097_v52 = vld [vmem:[#allocation3 + $0x1cc] ss:$36 sps:$4 sm:$0xff]   ;;  %v7531_v63 = vld [vmem:[%s9802_s15 + $0x74] sm:$0x1] }
 0x14c   : > { %v9099_v53 = vld [vmem:[#allocation3 + $0x1c8] ss:$36 sps:$4 sm:$0xff]   ;;  %v1132_v55 = vrot.slane %v1130_v43, 5  ;;  %v1634_v56 = vrot.slane %v1633_v46, 4  ;;  %v1138_v58 = vrot.slane %v1136_v44, 5  ;;  %v1142_v59 = vrot.slane %v1140_v45, 4  ;;  %3470 = vmatprep.mubr.bf16.mxu1 %v9097_v52 }
 0x14d   : > { %v1644_v57 = vrot.slane %v1643_v47, 4  ;;  %v7530_v60 = vld [vmem:[%s9802_s15 + $0x70] sm:$0xf]  ;;  %v1148_v62 = vrot.slane %v1146_v50, 5  ;;  %v7543_v0 = vrot.slane %v7529_v51, 9  ;;  %3471 = vmatmul.mubr.bf16.gmra.mxu1 %v9099_v53  ;;  %v1335_v5 = vrot.slane %v7531_v63, 5 }
 0x14e   : > { %v1133_v61 = vor.u32 %v1132_v55, %v1129_v48  ;;  %v1332_v1 = vrot.slane %v7530_v60, 5  ;;  %v1639_v2 = vsel %vm9820_vm5, %v1634_v56, %v1638_v37  ;;  %v1143_v4 = vor.u32 %v1142_v59, %v1138_v58  ;;  %v7563_v6 = vld [vmem:[%s9802_s15 + $0x78] sm:$0xf]  ;;  %v7564_v7 = vld [vmem:[%s9802_s15 + $0x7c] sm:$0xf] }
 0x14f   : > { %v1649_v3 = vsel %vm9820_vm5, %v1644_v57, %v1648_v41  ;;  %v9101_v8 = vld [vmem:[#allocation3 + $0x20c] ss:$36 sps:$4 sm:$0xff]   ;;  %1732 = vst [vmem:[#allocation3 + $0x214] sm:$0xf] %v1639_v2  ;;  %1424 = vst [vmem:[#allocation3 + $0x258] sm:$0xf] %v7563_v6 }
 0x150   : > { %v9103_v9 = vld [vmem:[#allocation3 + $0x208] ss:$36 sps:$4 sm:$0xff]   ;;  %1733 = vst [vmem:[#allocation3 + $0x238] sm:$0xf] %v1649_v3  ;;  %v1134_v10 = vrot.slane %v1133_v61, 4  ;;  %v1333_v11 = vsel %vm9811_vm4, %v7543_v0, %v1332_v1  ;;  %v1144_v12 = vrot.slane %v1143_v4, 4  ;;  %3365 = vmatprep.mubr.bf16.mxu0 %v9101_v8  ;;  %v8076_v42 = vpop.f32.mrf.mxu0  ;;  %v8152_v48 = vpop.f32.mrf.mxu1 }
 0x151   : > { %1425 = vst [vmem:[#allocation3 + $0x27c] sm:$0xf] %v7564_v7  ;;  %v1334_v13 = vrot.slane %v1332_v1, 4  ;;  %1380 = vst [vmem:[#allocation3 + $0x254] sm:$0xf] %v1333_v11  ;;  %3366 = vmatmul.mubr.bf16.gmra.mxu0 %v9103_v9 }
 0x152   : > { %v7591_v14 = vld [vmem:[%s9802_s15 + $0x78] sm:$0xf]  ;;  %v7592_v15 = vld [vmem:[%s9802_s15 + $0x7c] sm:$0xf]  ;;  %v1139_v16 = vsel %vm9820_vm5, %v1134_v10, %v1138_v58  ;;  %v7593_v17 = vld [vmem:[%s9802_s15 + $0x80] sm:$0x1]  ;;  %v1149_v22 = vsel %vm9820_vm5, %v1144_v12, %v1148_v62  ;;  %v8077_v56 = vpop.f32.mrf.mxu0  ;;  %v8153_v63 = vpop.f32.mrf.mxu1 }
 0x153   : > { %v1651_v18 = vshrl.u32 %v7591_v14, 16  ;;  %v1654_v20 = vshll.u32 %v7591_v14, 16  ;;  %v1660_v21 = vshll.u32 %v7592_v15, 16  ;;  %1210 = vst [vmem:[#allocation3 + $0x250] sm:$0xf] %v1139_v16  ;;  %v1336_v23 = vsel %vm9811_vm4, %v1334_v13, %v1335_v5 }
 0x154   : > { %v1664_v24 = vshrl.u32 %v7592_v15, 16  ;;  %v1670_v25 = vshll.u32 %v7593_v17, 16  ;;  %1211 = vst [vmem:[#allocation3 + $0x274] sm:$0xf] %v1149_v22  ;;  %1381 = vst [vmem:[#allocation3 + $0x278] sm:$0xf] %v1336_v23  ;;  %v10212_v62 = vadd.f32 %v8077_v56, %v8076_v42  ;;  %v8079_v5 = vpop.f32.mrf.mxu0  ;;  %v10216_v6 = vadd.f32 %v8153_v63, %v8152_v48  ;;  %v8155_v12 = vpop.f32.mrf.mxu1 }
 0x155   : > { %v1653_v26 = vrot.slane %v1651_v18, 4  ;;  %v1656_v27 = vrot.slane %v1654_v20, 5  ;;  %v1662_v28 = vrot.slane %v1660_v21, 5  ;;  %v7502_v19 = vld [vmem:[%s9802_s15 + $0x78] sm:$0xf] }
 0x156   : > { %v1666_v29 = vrot.slane %v1664_v24, 4  ;;  %v1672_v30 = vrot.slane %v1670_v25, 5  ;;  %v7503_v31 = vld [vmem:[%s9802_s15 + $0x7c] sm:$0xf]  ;;  %v7504_v32 = vld [vmem:[%s9802_s15 + $0x80] sm:$0x1]  ;;  %v8080_v17 = vpop.f32.mrf.mxu0  ;;  %v8156_v25 = vpop.f32.mrf.mxu1 }
 0x157   : > { %v1657_v33 = vor.u32 %v1656_v27, %v1653_v26  ;;  %v1151_v34 = vshrl.u32 %v7502_v19, 16  ;;  %v1154_v35 = vshll.u32 %v7502_v19, 16  ;;  %v1160_v36 = vshll.u32 %v7503_v31, 16  ;;  %v7532_v37 = vld [vmem:[%s9802_s15 + $0x78] sm:$0xe] }
 0x158   : > { %v9104_v38 = vld [vmem:[#allocation3 + $0x214] ss:$36 sps:$4 sm:$0xff]   ;;  %v1667_v39 = vor.u32 %v1666_v29, %v1662_v28  ;;  %v1164_v40 = vshrl.u32 %v7503_v31, 16  ;;  %v1170_v41 = vshll.u32 %v7504_v32, 16  ;;  %v7533_v53 = vld [vmem:[%s9802_s15 + $0x7c] sm:$0xf]  ;;  %v10240_v56 = vadd.f32 %v8156_v25, %v8155_v12 }
 0x159   : > { %v9106_v43 = vld [vmem:[#allocation3 + $0x210] ss:$36 sps:$4 sm:$0xff]   ;;  %v1658_v44 = vrot.slane %v1657_v33, 4  ;;  %v1153_v45 = vrot.slane %v1151_v34, 4  ;;  %v1156_v46 = vrot.slane %v1154_v35, 5  ;;  %v1162_v47 = vrot.slane %v1160_v36, 5  ;;  %3478 = vmatprep.mubr.bf16.mxu1 %v9104_v38  ;;  %v8082_v35 = vpop.f32.mrf.mxu0  ;;  %v8158_v36 = vpop.f32.mrf.mxu1 }
 0x15a   : > { %v1668_v50 = vrot.slane %v1667_v39, 4  ;;  %v1166_v51 = vrot.slane %v1164_v40, 4  ;;  %v1172_v52 = vrot.slane %v1170_v41, 5  ;;  %v7544_v55 = vrot.slane %v7532_v37, 9  ;;  %3479 = vmatmul.mubr.bf16.gmra.mxu1 %v9106_v43  ;;  %v7534_v59 = vld [vmem:[%s9802_s15 + $0x80] sm:$0x1] }
 0x15b   : > { %v1663_v57 = vsel %vm9820_vm5, %v1658_v44, %v1662_v28  ;;  %v1157_v58 = vor.u32 %v1156_v46, %v1153_v45  ;;  %v1339_v60 = vrot.slane %v7533_v53, 5  ;;  %v7565_v61 = vld [vmem:[%s9802_s15 + $0x84] sm:$0xf]  ;;  %v9108_v0 = vld [vmem:[#allocation3 + $0x254] ss:$36 sps:$4 sm:$0xff]   ;;  %v1342_v4 = vrot.slane %v7534_v59, 5  ;;  %v8159_v48 = vpop.f32.mrf.mxu1 }
 0x15c   : > { %v9110_v1 = vld [vmem:[#allocation3 + $0x250] ss:$36 sps:$4 sm:$0xff]   ;;  %v1673_v2 = vsel %vm9820_vm5, %v1668_v50, %v1672_v30  ;;  %1734 = vst [vmem:[#allocation3 + $0x25c] sm:$0xf] %v1663_v57  ;;  %v1167_v3 = vor.u32 %v1166_v51, %v1162_v47  ;;  %1426 = vst [vmem:[#allocation3 + $0x2a0] sm:$0xf] %v7565_v61  ;;  %3373 = vmatprep.mubr.bf16.mxu0 %v9108_v0 }
 0x15d   : > { %1735 = vst [vmem:[#allocation3 + $0x280] sm:$0xf] %v1673_v2  ;;  %v1158_v7 = vrot.slane %v1157_v58, 4  ;;  %v1340_v8 = vsel %vm9811_vm4, %v7544_v55, %v1339_v60  ;;  %v1341_v9 = vrot.slane %v1339_v60, 4  ;;  %v7566_v10 = vld [vmem:[%s9802_s15 + $0x88] sm:$0xf]  ;;  %3374 = vmatmul.mubr.bf16.gmra.mxu0 %v9110_v1  ;;  %v10238_v55 = vadd.f32 %v8080_v17, %v8079_v5  ;;  %v8161_v1 = vpop.f32.mrf.mxu1 }
 0x15e   : > { %v7594_v11 = vld [vmem:[%s9802_s15 + $0x84] sm:$0xf]  ;;  %v1168_v13 = vrot.slane %v1167_v3, 4  ;;  %1382 = vst [vmem:[#allocation3 + $0x29c] sm:$0xf] %v1340_v8 }
 0x15f   : > { %1427 = vst [vmem:[#allocation3 + $0x2c4] sm:$0xf] %v7566_v10  ;;  %v7595_v14 = vld [vmem:[%s9802_s15 + $0x88] sm:$0xf]  ;;  %v7596_v15 = vld [vmem:[%s9802_s15 + $0x8c] sm:$0x1]  ;;  %v1163_v18 = vsel %vm9820_vm5, %v1158_v7, %v1162_v47  ;;  %v1343_v20 = vsel %vm9811_vm4, %v1341_v9, %v1342_v4  ;;  %v8083_v47 = vpop.f32.mrf.mxu0 }
 0x160   : > { %v1675_v16 = vshrl.u32 %v7594_v11, 16  ;;  %v1678_v21 = vshll.u32 %v7594_v11, 16  ;;  %v1684_v22 = vshll.u32 %v7595_v14, 16  ;;  %v7597_v23 = vld [vmem:[%s9802_s15 + $0x18] sm:$0xe]  ;;  %v1173_v26 = vsel %vm9820_vm5, %v1168_v13, %v1172_v52 }
 0x161   : > { %v7598_v24 = vld [vmem:[%s9802_s15 + $0x1c] sm:$0xf]  ;;  %1212 = vst [vmem:[#allocation3 + $0x298] sm:$0xf] %v1163_v18  ;;  %1383 = vst [vmem:[#allocation3 + $0x2c0] sm:$0xf] %v1343_v20  ;;  %v8085_v0 = vpop.f32.mrf.mxu0  ;;  %v10249_v7 = vadd.f32 %v8083_v47, %v8082_v35  ;;  %v10257_v13 = vadd.f32 %v8159_v48, %v8158_v36 }
 0x162   : > { %v1677_v27 = vrot.slane %v1675_v16, 4  ;;  %v1688_v28 = vshrl.u32 %v7595_v14, 16  ;;  %v1694_v19 = vshll.u32 %v7596_v15, 16  ;;  %v7599_v29 = vld [vmem:[%s9802_s15 + $0x20] sm:$0x1]  ;;  %v1680_v30 = vrot.slane %v1678_v21, 5  ;;  %v8162_v15 = vpop.f32.mrf.mxu1 }
 0x163   : > { %1213 = vst [vmem:[#allocation3 + $0x2bc] sm:$0xf] %v1173_v26  ;;  %v1686_v31 = vrot.slane %v1684_v22, 5  ;;  %v7627_v32 = vrot.slane %v7597_v23, 9  ;;  %v1800_v33 = vrot.slane %v7598_v24, 5  ;;  %v1803_v39 = vrot.slane %v7599_v29, 5  ;;  %v8086_v14 = vpop.f32.mrf.mxu0 }
 0x164   : > { %v7600_v34 = vld [vmem:[%s9802_s15 + $0x24] sm:$0xe]  ;;  %v1690_v37 = vrot.slane %v1688_v28, 4  ;;  %v1696_v38 = vrot.slane %v1694_v19, 5  ;;  %v7601_v40 = vld [vmem:[%s9802_s15 + $0x28] sm:$0xf]  ;;  %v1681_v42 = vor.u32 %v1680_v30, %v1677_v27  ;;  %v10263_v22 = vadd.f32 %v8086_v14, %v8085_v0 }
 0x165   : > { %v7628_v41 = vrot.slane %v7600_v34, 9  ;;  %v1801_v43 = vsel %vm9811_vm4, %v7627_v32, %v1800_v33  ;;  %v1802_v44 = vrot.slane %v1800_v33, 4  ;;  %v7602_v45 = vld [vmem:[%s9802_s15 + $0x2c] sm:$0x1]  ;;  %v1807_v46 = vrot.slane %v7601_v40, 5  ;;  %v8088_v32 = vpop.f32.mrf.mxu0  ;;  %v8164_v33 = vpop.f32.mrf.mxu1 }
 0x166   : > { %v9111_v50 = vld [vmem:[#allocation3 + $0x25c] ss:$36 sps:$4 sm:$0xff]   ;;  %v1691_v52 = vor.u32 %v1690_v37, %v1686_v31  ;;  %1888 = vst [vmem:[#allocation3 + $0x20] sm:$0xf] %v1801_v43  ;;  %v1810_v53 = vrot.slane %v7602_v45, 5  ;;  %v1682_v57 = vrot.slane %v1681_v42, 4  ;;  %v10267_v27 = vadd.f32 %v8162_v15, %v8161_v1 }
 0x167   : > { %v9113_v51 = vld [vmem:[#allocation3 + $0x258] ss:$36 sps:$4 sm:$0xff]   ;;  %v1804_v58 = vsel %vm9811_vm4, %v1802_v44, %v1803_v39  ;;  %v1808_v59 = vsel %vm9811_vm4, %v7628_v41, %v1807_v46  ;;  %v1809_v60 = vrot.slane %v1807_v46, 4  ;;  %v7603_v61 = vld [vmem:[%s9802_s15 + $0x30] sm:$0xe]  ;;  %3486 = vmatprep.mubr.bf16.mxu1 %v9111_v50  ;;  %v8089_v41 = vpop.f32.mrf.mxu0  ;;  %v8165_v42 = vpop.f32.mrf.mxu1 }
 0x168   : > { %v7604_v63 = vld [vmem:[%s9802_s15 + $0x34] sm:$0xf]  ;;  %v1692_v2 = vrot.slane %v1691_v52, 4  ;;  %1889 = vst [vmem:[#allocation3 + $0x44] sm:$0xf] %v1804_v58  ;;  %v7629_v4 = vrot.slane %v7603_v61, 9  ;;  %3487 = vmatmul.mubr.bf16.gmra.mxu1 %v9113_v51  ;;  %v1687_v8 = vsel %vm9820_vm5, %v1682_v57, %v1686_v31  ;;  %v10282_v46 = vadd.f32 %v8089_v41, %v8088_v32 }
 0x169   : > { %1890 = vst [vmem:[#allocation3 + $0x68] sm:$0xf] %v1808_v59  ;;  %v7605_v3 = vld [vmem:[%s9802_s15 + $0x38] sm:$0x1]  ;;  %v1814_v5 = vrot.slane %v7604_v63, 5  ;;  %v1811_v9 = vsel %vm9811_vm4, %v1809_v60, %v1810_v53  ;;  %v10284_v47 = vadd.f32 %v8165_v42, %v8164_v33  ;;  %v8091_v57 = vpop.f32.mrf.mxu0  ;;  %v8167_v58 = vpop.f32.mrf.mxu1 }
 0x16a   : > { %v1817_v10 = vrot.slane %v7605_v3, 5  ;;  %v7606_v11 = vld [vmem:[%s9802_s15 + $0x3c] sm:$0xe]  ;;  %v7607_v12 = vld [vmem:[%s9802_s15 + $0x40] sm:$0xf]  ;;  %v1697_v18 = vsel %vm9820_vm5, %v1692_v2, %v1696_v38 }
 0x16b   : > { %v9115_v16 = vld [vmem:[#allocation3 + $0x29c] ss:$36 sps:$4 sm:$0xff]   ;;  %1736 = vst [vmem:[#allocation3 + $0x2a4] sm:$0xf] %v1687_v8  ;;  %1891 = vst [vmem:[#allocation3 + $0x8c] sm:$0xf] %v1811_v9  ;;  %v1815_v20 = vsel %vm9811_vm4, %v7629_v4, %v1814_v5  ;;  %v8092_v3 = vpop.f32.mrf.mxu0  ;;  %v8168_v4 = vpop.f32.mrf.mxu1 }
 0x16c   : > { %v9117_v17 = vld [vmem:[#allocation3 + $0x298] ss:$36 sps:$4 sm:$0xff]   ;;  %v1816_v21 = vrot.slane %v1814_v5, 4  ;;  %1737 = vst [vmem:[#allocation3 + $0x2c8] sm:$0xf] %v1697_v18  ;;  %v7630_v24 = vrot.slane %v7606_v11, 9  ;;  %3381 = vmatprep.mubr.bf16.mxu0 %v9115_v16  ;;  %v10293_v9 = vadd.f32 %v8092_v3, %v8091_v57 }
 0x16d   : > { %1892 = vst [vmem:[#allocation3 + $0xb0] sm:$0xf] %v1815_v20  ;;  %v7608_v23 = vld [vmem:[%s9802_s15 + $0x44] sm:$0x1]  ;;  %v1821_v25 = vrot.slane %v7607_v12, 5  ;;  %3382 = vmatmul.mubr.bf16.gmra.mxu0 %v9117_v17  ;;  %v8170_v18 = vpop.f32.mrf.mxu1 }
 0x16e   : > { %v7609_v26 = vld [vmem:[%s9802_s15 + $0x48] sm:$0xe]  ;;  %v1818_v28 = vsel %vm9811_vm4, %v1816_v21, %v1817_v10  ;;  %v1824_v19 = vrot.slane %v7608_v23, 5  ;;  %v7610_v29 = vld [vmem:[%s9802_s15 + $0x4c] sm:$0xf]  ;;  %v10295_v10 = vadd.f32 %v8168_v4, %v8167_v58 }
 0x16f   : > { %v7611_v30 = vld [vmem:[%s9802_s15 + $0x50] sm:$0x1]  ;;  %v7631_v31 = vrot.slane %v7609_v26, 9  ;;  %1893 = vst [vmem:[#allocation3 + $0xd4] sm:$0xf] %v1818_v28  ;;  %v1822_v34 = vsel %vm9811_vm4, %v7630_v24, %v1821_v25  ;;  %v1823_v35 = vrot.slane %v1821_v25, 4  ;;  %v8094_v28 = vpop.f32.mrf.mxu0 }
 0x170   : > { %v1828_v36 = vrot.slane %v7610_v29, 5  ;;  %v1831_v37 = vrot.slane %v7611_v30, 5  ;;  %1894 = vst [vmem:[#allocation3 + $0xf8] sm:$0xf] %v1822_v34  ;;  %v7612_v38 = vld [vmem:[%s9802_s15 + $0x54] sm:$0xe] }
 0x171   : > { %v7613_v39 = vld [vmem:[%s9802_s15 + $0x58] sm:$0xf]  ;;  %v7614_v40 = vld [vmem:[%s9802_s15 + $0x5c] sm:$0x1]  ;;  %v9121_v43 = vld [vmem:[#allocation3 + $0x20] ss:$36 sps:$4 sm:$0xff]   ;;  %v1825_v44 = vsel %vm9811_vm4, %v1823_v35, %v1824_v19  ;;  %v8171_v19 = vpop.f32.mrf.mxu1 }
 0x172   : > { %v1829_v45 = vsel %vm9811_vm4, %v7631_v31, %v1828_v36  ;;  %1895 = vst [vmem:[#allocation3 + $0x11c] sm:$0xf] %v1825_v44  ;;  %v1830_v48 = vrot.slane %v1828_v36, 4  ;;  %v7632_v50 = vrot.slane %v7612_v38, 9  ;;  %v1835_v51 = vrot.slane %v7613_v39, 5  ;;  %8686 = vmatprep.mubr.bf16.mxu0 %v9121_v43  ;;  %v8095_v39 = vpop.f32.mrf.mxu0 }
 0x173   : > { %1896 = vst [vmem:[#allocation3 + $0x140] sm:$0xf] %v1829_v45  ;;  %v1838_v52 = vrot.slane %v7614_v40, 5  ;;  %v7615_v53 = vld [vmem:[%s9802_s15 + $0x60] sm:$0xe]  ;;  %v8172_v40 = vadd.f32 %v8171_v19, %v8170_v18  ;;  %v8173_v41 = vpop.f32.mrf.mxu1  ;;  %v8096_v44 = vadd.f32 %v8095_v39, %v8094_v28 }
 0x174   : > { %v9122_v59 = vld [vmem:[#allocation3 + $0x68] ss:$36 sps:$4 sm:$0xff]   ;;  %v7633_v60 = vrot.slane %v7615_v53, 9  ;;  %v9120_v63 = vld [vmem:[#allocation3 + $0x2a0] ss:$36 sps:$4 sm:$0xff]   ;;  %v1832_v0 = vsel %vm9811_vm4, %v1830_v48, %v1831_v37  ;;  %v1836_v1 = vsel %vm9811_vm4, %v7632_v50, %v1835_v51  ;;  %v1837_v2 = vrot.slane %v1835_v51, 4  ;;  %v8097_v53 = vpop.f32.mrf.mxu0 }
 0x175   : > { %v9118_v61 = vld [vmem:[#allocation3 + $0x2a4] ss:$36 sps:$4 sm:$0xff]   ;;  %1897 = vst [vmem:[#allocation3 + $0x164] sm:$0xf] %v1832_v0  ;;  %1898 = vst [vmem:[#allocation3 + $0x188] sm:$0xf] %v1836_v1  ;;  %8687 = vmatmul.mubr.bf16.vlgmr.msra.gmra.mxu0 %v9122_v59  ;;  %v8174_v57 = vpop.f32.mrf.mxu1 }
 0x176   : > { %v7616_v5 = vld [vmem:[%s9802_s15 + $0x64] sm:$0xf]  ;;  %v7617_v8 = vld [vmem:[%s9802_s15 + $0x68] sm:$0x1]  ;;  %3494 = vmatprep.mubr.bf16.mxu1 %v9118_v61  ;;  %v9123_v11 = vld [vmem:[#allocation3 + $0xb0] ss:$36 sps:$4 sm:$0xff]   ;;  %v1839_v12 = vsel %vm9811_vm4, %v1837_v2, %v1838_v52  ;;  %v8098_v1 = vpop.f32.mrf.mxu0 }
 0x177   : > { %v1842_v14 = vrot.slane %v7616_v5, 5  ;;  %v1845_v15 = vrot.slane %v7617_v8, 5  ;;  %3495 = vmatmul.mubr.bf16.gmra.mxu1 %v9120_v63  ;;  %1899 = vst [vmem:[#allocation3 + $0x1ac] sm:$0xf] %v1839_v12  ;;  %v7618_v16 = vld [vmem:[%s9802_s15 + $0x6c] sm:$0xe]  ;;  %8690 = vmatprep.mubr.bf16.mxu0 %v9123_v11  ;;  %v8176_v8 = vpop.f32.mrf.mxu1 }
 0x178   : > { %v7619_v17 = vld [vmem:[%s9802_s15 + $0x70] sm:$0xf]  ;;  %v7620_v23 = vld [vmem:[%s9802_s15 + $0x74] sm:$0x1]  ;;  %v7634_v24 = vrot.slane %v7618_v16, 9 }
 0x179   : > { %v1843_v20 = vsel %vm9811_vm4, %v7633_v60, %v1842_v14  ;;  %v1844_v21 = vrot.slane %v1842_v14, 4  ;;  %v1849_v25 = vrot.slane %v7619_v17, 5  ;;  %v9124_v26 = vld [vmem:[#allocation3 + $0xf8] ss:$36 sps:$4 sm:$0xff]   ;;  %v1852_v32 = vrot.slane %v7620_v23, 5  ;;  %v8100_v17 = vpop.f32.mrf.mxu0  ;;  %v8177_v18 = vpop.f32.mrf.mxu1 }
 0x17a   : > { %1900 = vst [vmem:[#allocation3 + $0x1d0] sm:$0xf] %v1843_v20  ;;  %v7621_v33 = vld [vmem:[%s9802_s15 + $0x78] sm:$0xe]  ;;  %v7622_v34 = vld [vmem:[%s9802_s15 + $0x7c] sm:$0xf]  ;;  %v8175_v60 = vadd.f32 %v8174_v57, %v8173_v41 }
 0x17b   : > { %v1846_v29 = vsel %vm9811_vm4, %v1844_v21, %v1845_v15  ;;  %v1850_v30 = vsel %vm9811_vm4, %v7634_v24, %v1849_v25  ;;  %v1851_v31 = vrot.slane %v1849_v25, 4  ;;  %v7623_v35 = vld [vmem:[%s9802_s15 + $0x80] sm:$0x1]  ;;  %v7635_v36 = vrot.slane %v7621_v33, 9  ;;  %v7624_v38 = vld [vmem:[%s9802_s15 + $0x84] sm:$0xe]  ;;  %v8101_v23 = vpop.f32.mrf.mxu0  ;;  %v8179_v25 = vpop.f32.mrf.mxu1 }
 0x17c   : > { %1901 = vst [vmem:[#allocation3 + $0x1f4] sm:$0xf] %v1846_v29  ;;  %1902 = vst [vmem:[#allocation3 + $0x218] sm:$0xf] %v1850_v30  ;;  %v1856_v37 = vrot.slane %v7622_v34, 5  ;;  %v1859_v50 = vrot.slane %v7623_v35, 5  ;;  %v8099_v21 = vadd.f32 %v8098_v1, %v8097_v53  ;;  %v8178_v24 = vadd.f32 %v8177_v18, %v8176_v8 }
 0x17d   : > { %v9125_v42 = vld [vmem:[#allocation3 + $0x140] ss:$36 sps:$4 sm:$0xff]   ;;  %v1853_v43 = vsel %vm9811_vm4, %v1851_v31, %v1852_v32  ;;  %v7625_v51 = vld [vmem:[%s9802_s15 + $0x88] sm:$0xf]  ;;  %v7626_v52 = vld [vmem:[%s9802_s15 + $0x8c] sm:$0x1]  ;;  %8691 = vmatmul.mubr.bf16.gmra.mxu0 %v9124_v26  ;;  %v8102_v26 = vadd.f32 %v8101_v23, %v8100_v17  ;;  %v8103_v28 = vpop.f32.mrf.mxu0  ;;  %v8180_v19 = vpop.f32.mrf.mxu1 }
 0x17e   : > { %1903 = vst [vmem:[#allocation3 + $0x23c] sm:$0xf] %v1853_v43  ;;  %v1857_v45 = vsel %vm9811_vm4, %v7635_v36, %v1856_v37  ;;  %v1858_v48 = vrot.slane %v1856_v37, 4  ;;  %v7636_v58 = vrot.slane %v7624_v38, 9  ;;  %v1863_v59 = vrot.slane %v7625_v51, 5  ;;  %8694 = vmatprep.mubr.bf16.mxu0 %v9125_v42 }
 0x17f   : > { %1904 = vst [vmem:[#allocation3 + $0x260] sm:$0xf] %v1857_v45  ;;  %v1866_v63 = vrot.slane %v7626_v52, 5  ;;  %v10323_v0 = vld [vmem:[%s11224_s2] ss:$0 sm:$0xff] }
 0x180   : > { %v1860_v61 = vsel %vm9811_vm4, %v1858_v48, %v1859_v50  ;;  %v1864_v2 = vsel %vm9811_vm4, %v7636_v58, %v1863_v59  ;;  %v1865_v3 = vrot.slane %v1863_v59, 4  ;;  %v3086_v4 = vadd.f32 %v10212_v62, %v10323_v0  ;;  %v8182_v36 = vpop.f32.mrf.mxu1 }
 0x181   : > { %1905 = vst [vmem:[#allocation3 + $0x284] sm:$0xf] %v1860_v61  ;;  %v3089_v5 = vadd.f32 %v10238_v55, %v10323_v0  ;;  %1906 = vst [vmem:[#allocation3 + $0x2a8] sm:$0xf] %v1864_v2  ;;  %v3094_v11 = vadd.f32 %v10249_v7, %v10323_v0  ;;  %v3097_v12 = vadd.f32 %v10263_v22, %v10323_v0  ;;  %v9126_v22 = vld [vmem:[#allocation3 + $0x188] ss:$36 sps:$4 sm:$0xff]  }
 0x182   : > { %v3102_v14 = vadd.f32 %v10282_v46, %v10323_v0  ;;  %v3105_v15 = vadd.f32 %v10293_v9, %v10323_v0  ;;  %v1867_v62 = vsel %vm9811_vm4, %v1865_v3, %v1866_v63  ;;  %v10342_v16 = vadd.f32 %v10216_v6, %v3086_v4  ;;  %v8183_v39 = vpop.f32.mrf.mxu1 }
 0x183   : > { %v10345_v55 = vadd.f32 %v10240_v56, %v3089_v5  ;;  %v3110_v7 = vadd.f32 %v8096_v44, %v10323_v0  ;;  %1907 = vst [vmem:[#allocation3 + $0x2cc] sm:$0xf] %v1867_v62  ;;  %v10349_v46 = vadd.f32 %v10257_v13, %v3094_v11  ;;  %v10352_v9 = vadd.f32 %v10267_v27, %v3097_v12  ;;  %v9127_v56 = vld [vmem:[#allocation3 + $0x1d0] ss:$36 sps:$4 sm:$0xff]  }
 0x184   : > { %v10355_v49 = vadd.f32 %v10284_v47, %v3102_v14  ;;  %v10358_v6 = vadd.f32 %v10295_v10, %v3105_v15  ;;  %v3113_v13 = vadd.f32 %v8099_v21, %v10323_v0  ;;  %v3118_v27 = vadd.f32 %v8102_v26, %v10323_v0  ;;  %v8104_v10 = vpop.f32.mrf.mxu0  ;;  %v8185_v43 = vpop.f32.mrf.mxu1 }
 0x185   : > { %v10360_v20 = vadd.f32 %v8172_v40, %v3110_v7  ;;  %8695 = vmatmul.mubr.bf16.gmra.mxu0 %v9126_v22  ;;  %v8181_v47 = vadd.f32 %v8180_v19, %v8179_v25  ;;  %v8105_v31 = vadd.f32 %v8104_v10, %v8103_v28  ;;  %v9128_v32 = vld [vmem:[#allocation3 + $0x218] ss:$36 sps:$4 sm:$0xff]   ;;  %v8184_v41 = vadd.f32 %v8183_v39, %v8182_v36 }
 0x186   : > { %8698 = vmatprep.mubr.bf16.mxu0 %v9127_v56  ;;  %v10364_v29 = vadd.f32 %v8175_v60, %v3113_v13  ;;  %v10366_v30 = vadd.f32 %v8178_v24, %v3118_v27  ;;  %v8106_v35 = vpop.f32.mrf.mxu0  ;;  %v8186_v48 = vpop.f32.mrf.mxu1 }
 0x187   : > { %v3121_v33 = vadd.f32 %v8105_v31, %v10323_v0  ;;  %v8187_v53 = vadd.f32 %v8186_v48, %v8185_v43 }
 0x188   : > { %v9129_v34 = vld [vmem:[#allocation3 + $0x260] ss:$36 sps:$4 sm:$0xff]   ;;  %v8107_v38 = vpop.f32.mrf.mxu0 }
 0x189   : > { %v10369_v37 = vadd.f32 %v8181_v47, %v3121_v33  ;;  %v8108_v40 = vadd.f32 %v8107_v38, %v8106_v35 }
 0x18a   : > { %v8109_v42 = vpop.f32.mrf.mxu0  ;;  %v9130_v50 = vld [vmem:[#allocation3 + $0x2a8] ss:$36 sps:$4 sm:$0xff]   ;;  %v8188_v58 = vpop.f32.mrf.mxu1 }
 0x18b   : > { %v3126_v44 = vadd.f32 %v8108_v40, %v10323_v0 }
 0x18c   : > { %v8110_v45 = vpop.f32.mrf.mxu0  ;;  %v8189_v61 = vpop.f32.mrf.mxu1 }
 0x18d   : > { %8699 = vmatmul.mubr.bf16.gmra.mxu0 %v9128_v32  ;;  %v10372_v51 = vadd.f32 %v8184_v41, %v3126_v44  ;;  %v8111_v52 = vadd.f32 %v8110_v45, %v8109_v42  ;;  %v8190_v63 = vadd.f32 %v8189_v61, %v8188_v58 }
 0x18e   : > { %8702 = vmatprep.mubr.bf16.mxu0 %v9129_v34  ;;  %v8112_v59 = vpop.f32.mrf.mxu0  ;;  %v8191_v2 = vpop.f32.mrf.mxu1 }
 0x18f   : > { %v3129_v57 = vadd.f32 %v8111_v52, %v10323_v0 }
 0x190   : > { %v8113_v1 = vpop.f32.mrf.mxu0  ;;  %v8192_v5 = vpop.f32.mrf.mxu1 }
 0x191   : > { %v10375_v60 = vadd.f32 %v8187_v53, %v3129_v57  ;;  %v8114_v3 = vadd.f32 %v8113_v1, %v8112_v59  ;;  %v8193_v11 = vadd.f32 %v8192_v5, %v8191_v2 }
 0x192   : > { %v8115_v4 = vpop.f32.mrf.mxu0 }
 0x193   : > { %v3134_v8 = vadd.f32 %v8114_v3, %v10323_v0 }
 0x194   : > { %v8116_v12 = vpop.f32.mrf.mxu0  ;;  %v8194_v17 = vpop.f32.mrf.mxu1 }
 0x195   : > { %8703 = vmatmul.mubr.bf16.gmra.mxu0 %v9130_v50  ;;  %v10378_v14 = vadd.f32 %v8190_v63, %v3134_v8  ;;  %v8117_v15 = vadd.f32 %v8116_v12, %v8115_v4 }
 0x196   : > { %v8118_v7 = vpop.f32.mrf.mxu0  ;;  %v8195_v56 = vpop.f32.mrf.mxu1 }
 0x197   : > { %11271 = vst [vmem:[#allocation25_spill] sm:$0xff] %v10378_v14  ;;  %v3137_v62 = vadd.f32 %v8117_v15, %v10323_v0  ;;  %v8196_v23 = vadd.f32 %v8195_v56, %v8194_v17 }
 0x198   : > { %v8119_v22 = vpop.f32.mrf.mxu0  ;;  %v8197_v25 = vpop.f32.mrf.mxu1 }
 0x199   : > { %v10381_v18 = vadd.f32 %v8193_v11, %v3137_v62  ;;  %v8120_v21 = vadd.f32 %v8119_v22, %v8118_v7 }
 0x19a   : > { %v8121_v24 = vpop.f32.mrf.mxu0  ;;  %v8198_v28 = vpop.f32.mrf.mxu1 }
 0x19b   : > { %11272 = vst [vmem:[#allocation26_spill] sm:$0xff] %v10381_v18  ;;  %v3142_v26 = vadd.f32 %v8120_v21, %v10323_v0  ;;  %v8199_v47 = vadd.f32 %v8198_v28, %v8197_v25 }
 0x19c   : > { %v8122_v13 = vpop.f32.mrf.mxu0 }
 0x19d   : > { %v10384_v19 = vadd.f32 %v8196_v23, %v3142_v26  ;;  %v8123_v27 = vadd.f32 %v8122_v13, %v8121_v24 }
 0x19f   : > { %v3145_v10 = vadd.f32 %v8123_v27, %v10323_v0 }
 0x1a0   : > { %v8200_v34 = vpop.f32.mrf.mxu1 }
 0x1a1   : > { %v10387_v31 = vadd.f32 %v8199_v47, %v3145_v10 }
 0x1a2   : > { %v8124_v32 = vpop.f32.mrf.mxu0  ;;  %v8201_v38 = vpop.f32.mrf.mxu1 }
 0x1a3   : > { %11273 = vst [vmem:[#allocation27_spill] sm:$0xff] %v10387_v31  ;;  %v8202_v40 = vadd.f32 %v8201_v38, %v8200_v34 }
 0x1a4   : > { %v8125_v33 = vpop.f32.mrf.mxu0  ;;  %v8203_v42 = vpop.f32.mrf.mxu1 }
 0x1a5   : > { %v8126_v35 = vadd.f32 %v8125_v33, %v8124_v32 }
 0x1a6   : > { %v8127_v36 = vpop.f32.mrf.mxu0  ;;  %v8204_v45 = vpop.f32.mrf.mxu1 }
 0x1a7   : > { %v3150_v39 = vadd.f32 %v8126_v35, %v10323_v0  ;;  %v8205_v50 = vadd.f32 %v8204_v45, %v8203_v42 }
 0x1a8   : > { %v8128_v41 = vpop.f32.mrf.mxu0 }
 0x1a9   : > { %v10390_v43 = vadd.f32 %v8202_v40, %v3150_v39  ;;  %v8129_v44 = vadd.f32 %v8128_v41, %v8127_v36 }
 0x1ab   : > { %11274 = vst [vmem:[#allocation28_spill] sm:$0xff] %v10390_v43  ;;  %v3153_v48 = vadd.f32 %v8129_v44, %v10323_v0 }
 0x1ac   : > { %v8130_v53 = vpop.f32.mrf.mxu0  ;;  %v8206_v59 = vpop.f32.mrf.mxu1 }
 0x1ad   : > { %v10393_v52 = vadd.f32 %v8205_v50, %v3153_v48 }
 0x1ae   : > { %v8131_v57 = vpop.f32.mrf.mxu0  ;;  %v8207_v1 = vpop.f32.mrf.mxu1 }
 0x1af   : > { %11275 = vst [vmem:[#allocation29_spill] sm:$0xff] %v10393_v52  ;;  %v8132_v58 = vadd.f32 %v8131_v57, %v8130_v53  ;;  %v8208_v2 = vadd.f32 %v8207_v1, %v8206_v59 }
 0x1b0   : > { %v8133_v61 = vpop.f32.mrf.mxu0  ;;  %v8209_v5 = vpop.f32.mrf.mxu1 }
 0x1b1   : > { %v3158_v63 = vadd.f32 %v8132_v58, %v10323_v0 }
 0x1b2   : > { %v8134_v3 = vpop.f32.mrf.mxu0  ;;  %v8210_v12 = vpop.f32.mrf.mxu1 }
 0x1b3   : > { %v8135_v4 = vadd.f32 %v8134_v3, %v8133_v61  ;;  %v10396_v8 = vadd.f32 %v8208_v2, %v3158_v63  ;;  %v8211_v15 = vadd.f32 %v8210_v12, %v8209_v5 }
 0x1b5   : > { %11276 = vst [vmem:[#allocation30_spill] sm:$0xff] %v10396_v8  ;;  %v3161_v11 = vadd.f32 %v8135_v4, %v10323_v0 }
 0x1b7   : > { %v10399_v62 = vadd.f32 %v8211_v15, %v3161_v11  ;;  %v8228_v7 = vpop.f32.mrf.mxu0 }
 0x1b9   : > { %11277 = vst [vmem:[#allocation31_spill] sm:$0xff] %v10399_v62  ;;  %v8229_v17 = vpop.f32.mrf.mxu0 }
 0x1ba   : > { %v8230_v22 = vadd.f32 %v8229_v17, %v8228_v7 }
 0x1bb   : > { %v8231_v56 = vpop.f32.mrf.mxu0 }
 0x1bc   : > { %v10402_v21 = vadd.f32 %v8230_v22, %v10342_v16 }
 0x1bd   : > { %v8232_v23 = vpop.f32.mrf.mxu0 }
 0x1be   : > { %v8233_v24 = vadd.f32 %v8232_v23, %v8231_v56 }
 0x1c0   : > { %v10405_v25 = vadd.f32 %v8233_v24, %v10345_v55 }
 0x1c2   : > { %v10407_v26 = vpop.f32.mrf.mxu1 }
 0x1c4   : > { %v10409_v13 = vpop.f32.mrf.mxu1 }
 0x1c6   : > { %v10411_v0 = vpop.f32.mrf.mxu1 }
 0x1c7   : > { %v8234_v28 = vpop.f32.mrf.mxu0 }
 0x1c8   : > { %v10413_v27 = vpop.f32.mrf.mxu1 }
 0x1c9   : > { %v8235_v47 = vpop.f32.mrf.mxu0 }
 0x1ca   : > { %v8236_v10 = vadd.f32 %v8235_v47, %v8234_v28 }
 0x1cb   : > { %v8237_v32 = vpop.f32.mrf.mxu0  ;;  %v10418_v33 = vpop.f32.mrf.mxu1 }
 0x1cc   : > { %v10416_v16 = vadd.f32 %v8236_v10, %v10349_v46 }
 0x1cd   : > { %v8238_v34 = vpop.f32.mrf.mxu0  ;;  %v8311_v55 = vpop.f32.mrf.mxu1 }
 0x1ce   : > { %v8239_v35 = vadd.f32 %v8238_v34, %v8237_v32 }
 0x1cf   : > { %v10423_v38 = vpop.f32.mrf.mxu1 }
 0x1d0   : > { %v10421_v36 = vadd.f32 %v8239_v35, %v10352_v9  ;;  %v8240_v39 = vpop.f32.mrf.mxu0 }
 0x1d1   : > { %v8314_v41 = vpop.f32.mrf.mxu1 }
 0x1d2   : > { %v8241_v40 = vpop.f32.mrf.mxu0 }
 0x1d3   : > { %v8242_v42 = vadd.f32 %v8241_v40, %v8240_v39 }
 0x1d4   : > { %v8243_v44 = vpop.f32.mrf.mxu0 }
 0x1d5   : > { %v10426_v45 = vadd.f32 %v8242_v42, %v10355_v49 }
 0x1d6   : > { %v8244_v46 = vpop.f32.mrf.mxu0 }
 0x1d7   : > { %v8245_v50 = vadd.f32 %v8244_v46, %v8243_v44 }
 0x1d8   : > { %v10428_v48 = vpop.f32.mrf.mxu1 }
 0x1d9   : > { %v10433_v57 = vadd.f32 %v8245_v50, %v10358_v6 }
 0x1da   : > { %v10430_v53 = vpop.f32.mrf.mxu1 }
 0x1dc   : > { %v10435_v9 = vpop.f32.mrf.mxu1  ;;  %v8246_v58 = vpop.f32.mrf.mxu0 }
 0x1de   : > { %v8247_v59 = vpop.f32.mrf.mxu0  ;;  %v10437_v61 = vpop.f32.mrf.mxu1 }
 0x1e0   : > { %v8249_v63 = vpop.f32.mrf.mxu0 }
 0x1e2   : > { %v8250_v2 = vpop.f32.mrf.mxu0 }
 0x1e7   : > { %v8322_v1 = vpop.f32.mrf.mxu1 }
 0x1e9   : > { %v8323_v49 = vpop.f32.mrf.mxu1 }
 0x1ea   : > { %v10441_v4 = vpop.f32.mrf.mxu0 }
 0x1eb   : > { %v10439_v3 = vpop.f32.mrf.mxu1 }
 0x1ec   : > { %v10443_v5 = vpop.f32.mrf.mxu0 }
 0x1ed   : > { %v10445_v11 = vpop.f32.mrf.mxu1 }
 0x1ee   : > { %v10447_v6 = vpop.f32.mrf.mxu0 }
 0x1f0   : > { %v10451_v15 = vpop.f32.mrf.mxu0 }
 0x1f3   : > { %v10449_v12 = vpop.f32.mrf.mxu1 }
 0x1f5   : > { %v10453_v7 = vpop.f32.mrf.mxu1 }
 0x1f7   : > { %v10455_v17 = vpop.f32.mrf.mxu1 }
 0x1f8   : > { %v8258_v22 = vpop.f32.mrf.mxu0 }
 0x1f9   : > { %v10457_v23 = vpop.f32.mrf.mxu1 }
 0x1fa   : > { %v8259_v56 = vpop.f32.mrf.mxu0 }
 0x1fc   : > { %v10459_v24 = vpop.f32.mrf.mxu0 }
 0x1fe   : > { %v10461_v28 = vpop.f32.mrf.mxu0 }
 0x201   : > { %v10463_v47 = vpop.f32.mrf.mxu1 }
 0x203   : > { %v10465_v10 = vpop.f32.mrf.mxu1 }
 0x204   : > { %v10467_v32 = vpop.f32.mrf.mxu0 }
 0x205   : > { %v10471_v35 = vpop.f32.mrf.mxu1 }
 0x206   : > { %v10469_v34 = vpop.f32.mrf.mxu0 }
 0x207   : > { %v10475_v40 = vpop.f32.mrf.mxu1 }
 0x208   : > { %v10473_v39 = vpop.f32.mrf.mxu0 }
 0x209   : > { %11278 = vst [vmem:[#allocation32_spill] sm:$0xff] %v10473_v39 }
 0x20a   : > { %v10477_v42 = vpop.f32.mrf.mxu0 }
 0x20b   : > { %11279 = vst [vmem:[#allocation33_spill] sm:$0xff] %v10477_v42 }
 0x20d   : > { %v10479_v44 = vpop.f32.mrf.mxu1 }
 0x20e   : > { %11280 = vst [vmem:[#allocation34_spill] sm:$0xff] %v10479_v44 }
 0x20f   : > { %v10485_v54 = vpop.f32.mrf.mxu1 }
 0x210   : > { %11281 = vst [vmem:[#allocation35_spill] sm:$0xff] %v10485_v54 }
 0x211   : > { %v10481_v46 = vpop.f32.mrf.mxu0  ;;  %v10489_v62 = vpop.f32.mrf.mxu1 }
 0x212   : > { %11283 = vst [vmem:[#allocation37_spill] sm:$0xff] %v10489_v62 }
 0x213   : > { %v10483_v50 = vpop.f32.mrf.mxu0  ;;  %v10493_v8 = vpop.f32.mrf.mxu1 }
 0x214   : > { %11285 = vst [vmem:[#allocation39_spill] sm:$0xff] %v10493_v8  ;;  %v8312_v8 = vadd.f32 %v8311_v55, %v10418_v33  ;;  %v8309_v33 = vadd.f32 %v10413_v27, %v10411_v0 }
 0x215   : > { %v10487_v52 = vpop.f32.mrf.mxu0 }
 0x216   : > { %11282 = vst [vmem:[#allocation36_spill] sm:$0xff] %v10487_v52 }
 0x217   : > { %v10491_v43 = vpop.f32.mrf.mxu0 }
 0x218   : > { %11284 = vst [vmem:[#allocation38_spill] sm:$0xff] %v10491_v43 }
 0x21a   : > { %v10499_v42 = vpop.f32.mrf.mxu1 }
 0x21b   : > { %11288 = vst [vmem:[#allocation42_spill] sm:$0xff] %v10499_v42 }
 0x21c   : > { %v10503_v44 = vpop.f32.mrf.mxu1 }
 0x21d   : > { %v10495_v18 = vpop.f32.mrf.mxu0  ;;  %11290 = vst [vmem:[#allocation44_spill] sm:$0xff] %v10503_v44 }
 0x21e   : > { %11286 = vst [vmem:[#allocation40_spill] sm:$0xff] %v10495_v18  ;;  %v10507_v54 = vpop.f32.mrf.mxu1 }
 0x21f   : > { %v10497_v31 = vpop.f32.mrf.mxu0  ;;  %11292 = vst [vmem:[#allocation46_spill] sm:$0xff] %v10507_v54  ;;  %v3433_v54 = vadd.f32 %v8312_v8, %v10416_v16  ;;  %v8318_v8 = vadd.f32 %v10430_v53, %v10428_v48  ;;  %v8254_v53 = vadd.f32 %v10443_v5, %v10441_v4  ;;  %v8263_v4 = vadd.f32 %v10461_v28, %v10459_v24 }
 0x220   : > { %11287 = vst [vmem:[#allocation41_spill] sm:$0xff] %v10497_v31  ;;  %v10514_v43 = vpop.f32.mrf.mxu1  ;;  %v8306_v31 = vadd.f32 %v10409_v13, %v10407_v26  ;;  %v8251_v26 = vadd.f32 %v8250_v2, %v8249_v63 }
 0x221   : > { %v10501_v39 = vpop.f32.mrf.mxu0  ;;  %11295 = vst [vmem:[#allocation49_spill] sm:$0xff] %v10514_v43 }
 0x222   : > { %11289 = vst [vmem:[#allocation43_spill] sm:$0xff] %v10501_v39  ;;  %v8248_v39 = vadd.f32 %v8247_v59, %v8246_v58  ;;  %v3425_v43 = vadd.f32 %v8306_v31, %v10402_v21  ;;  %v3428_v31 = vadd.f32 %v8309_v33, %v10405_v25  ;;  %v3441_v25 = vadd.f32 %v8318_v8, %v10426_v45 }
 0x223   : > { %v10505_v14 = vpop.f32.mrf.mxu0  ;;  %v3355_v33 = vadd.f32 %v8263_v4, %v10375_v60 }
 0x224   : > { %11291 = vst [vmem:[#allocation45_spill] sm:$0xff] %v10505_v14  ;;  %v8315_v14 = vadd.f32 %v8314_v41, %v10423_v38 }
 0x226   : > { %v3436_v38 = vadd.f32 %v8315_v14, %v10421_v36 }
 0x228   : > { %v10524_v44 = vpop.f32.mrf.mxu1 }
 0x229   : > { %11297 = vst [vmem:[#allocation51_spill] sm:$0xff] %v10524_v44 }
 0x22a   : > { %v10533_v16 = vpop.f32.mrf.mxu1 }
 0x22c   : > { %v10541_v63 = vpop.f32.mrf.mxu1 }
 0x22d   : > { %v10509_v52 = vpop.f32.mrf.mxu0 }
 0x22e   : > { %11293 = vst [vmem:[#allocation47_spill] sm:$0xff] %v10509_v52 }
 0x22f   : > { %v10511_v62 = vpop.f32.mrf.mxu0 }
 0x230   : > { %11294 = vst [vmem:[#allocation48_spill] sm:$0xff] %v10511_v62  ;;  %v8324_v62 = vadd.f32 %v8323_v49, %v8322_v1 }
 0x231   : > { %v10516_v18 = vpop.f32.mrf.mxu0 }
 0x232   : > { %11296 = vst [vmem:[#allocation50_spill] sm:$0xff] %v10516_v18  ;;  %v3336_v18 = vadd.f32 %v8248_v39, %v10360_v20  ;;  %v3339_v20 = vadd.f32 %v8251_v26, %v10364_v29  ;;  %v8321_v29 = vadd.f32 %v10437_v61, %v10435_v9  ;;  %v3344_v9 = vadd.f32 %v8254_v53, %v10366_v30  ;;  %v10556_v39 = vpop.f32.mrf.mxu1 }
 0x233   : > { %v10520_v42 = vpop.f32.mrf.mxu0  ;;  %v8330_v61 = vadd.f32 %v10453_v7, %v10449_v12  ;;  %v8272_v30 = vadd.f32 %v10483_v50, %v10481_v46  ;;  %v8339_v12 = vadd.f32 %v10475_v40, %v10471_v35  ;;  %v8333_v46 = vadd.f32 %v10457_v23, %v10455_v17  ;;  %v11298_v40 = vld [vmem:[#allocation42_spill] sm:$0xff] }
 0x234   : > { %v3449_v27 = vadd.f32 %v8324_v62, %v3336_v18  ;;  %v11303_v23 = vld [vmem:[#allocation34_spill] sm:$0xff] }
 0x235   : > { %v8688_v52 = vpop.f32.mrf.mxu0  ;;  %v3457_v60 = vadd.f32 %v8330_v61, %v3344_v9  ;;  %v3368_v35 = vadd.f32 %v8272_v30, %v10384_v19 }
 0x236   : > { %v3546_v55 = vadd.f32 %v8688_v52, %v3433_v54  ;;  %v8260_v52 = vadd.f32 %v8259_v56, %v8258_v22 }
 0x237   : > { %v3537_v13 = vpop.f32.mrf.mxu0  ;;  %v11309_v4 = vld [vmem:[#allocation48_spill] sm:$0xff] }
 0x238   : > { %v3618_v58 = vmax.f32 %v3546_v55, 0.0  ;;  %v3538_v59 = vadd.f32 %v3537_v13, %v3425_v43  ;;  %v8327_v43 = vadd.f32 %v10445_v11, %v10439_v3  ;;  %v3352_v49 = vadd.f32 %v8260_v52, %v10372_v51 }
 0x239   : > { %v8689_v41 = vpop.f32.mrf.mxu0  ;;  %v8336_v3 = vadd.f32 %v10465_v10, %v10463_v47  ;;  %v8257_v51 = vadd.f32 %v10451_v15, %v10447_v6 }
 0x23a   : > { %v8041_v44 = vpack.c.bf16 %v3618_v58, %v3618_v58  ;;  %v3616_v0 = vmax.f32 %v3538_v59, 0.0  ;;  %v3549_v54 = vadd.f32 %v8689_v41, %v3436_v38  ;;  %v3452_v56 = vadd.f32 %v8327_v43, %v3339_v20  ;;  %v11299_v41 = vld [vmem:[#allocation44_spill] sm:$0xff]  ;;  %v11304_v43 = vld [vmem:[#allocation35_spill] sm:$0xff] }
 0x23b   : > { %v3540_v21 = vpop.f32.mrf.mxu0  ;;  %v3465_v26 = vadd.f32 %v8336_v3, %v3352_v49  ;;  %v3347_v13 = vadd.f32 %v8257_v51, %v10369_v37  ;;  %v8266_v58 = vadd.f32 %v10469_v34, %v10467_v32  ;;  %v11301_v37 = vld [vmem:[#allocation38_spill] sm:$0xff]  ;;  %v11308_v3 = vld [vmem:[#allocation47_spill] sm:$0xff] }
 0x23c   : > { %3738 = vst [vmem:[#allocation2 + $0x14] sm:$0xf] %v8041_v44  ;;  %v8039_v14 = vpack.c.bf16 %v3616_v0, %v3616_v0  ;;  %v3619_v36 = vmax.f32 %v3549_v54, 0.0  ;;  %v3541_v48 = vadd.f32 %v3540_v21, %v3428_v31  ;;  %v3444_v44 = vadd.f32 %v8321_v29, %v10433_v57  ;;  %v8358_v57 = vpop.f32.mrf.mxu1  ;;  %v11300_v54 = vld [vmem:[#allocation36_spill] sm:$0xff] }
 0x23d   : > { %v8692_v1 = vpop.f32.mrf.mxu0  ;;  %v8348_v0 = vadd.f32 %v11299_v41, %v11298_v40  ;;  %v8275_v31 = vadd.f32 %v11301_v37, %v11300_v54  ;;  %v3468_v21 = vadd.f32 %v8339_v12, %v3355_v33  ;;  %v11315_v12 = vld [vmem:[#allocation37_spill] sm:$0xff]  ;;  %v11319_v54 = vld [vmem:[#allocation28_spill] sm:$0xff] }
 0x23e   : > { %3736 = vst [vmem:[#allocation2 + $0x4] sm:$0xf] %v8039_v14  ;;  %v8042_v18 = vpack.c.bf16 %v3619_v36, %v3619_v36  ;;  %v3617_v62 = vmax.f32 %v3541_v48, 0.0  ;;  %v3562_v2 = vadd.f32 %v8692_v1, %v3449_v27  ;;  %v11302_v27 = vld [vmem:[#allocation25_spill] sm:$0xff]  ;;  %v8342_v14 = vadd.f32 %v11304_v43, %v11303_v23  ;;  %v11305_v36 = vld [vmem:[#allocation32_spill] sm:$0xff]  ;;  %v8359_v53 = vpop.f32.mrf.mxu1  ;;  %v11323_v43 = vld [vmem:[#allocation31_spill] sm:$0xff] }
 0x23f   : > { %v3553_v5 = vpop.f32.mrf.mxu0  ;;  %v3360_v17 = vadd.f32 %v8266_v58, %v11302_v27  ;;  %v11306_v48 = vld [vmem:[#allocation33_spill] sm:$0xff] }
 0x240   : > { %3739 = vst [vmem:[#allocation2 + $0x18] sm:$0xf] %v8042_v18  ;;  %v8040_v11 = vpack.c.bf16 %v3617_v62, %v3617_v62  ;;  %v3622_v22 = vmax.f32 %v3562_v2, 0.0  ;;  %v3554_v45 = vadd.f32 %v3553_v5, %v3441_v25  ;;  %v8269_v19 = vadd.f32 %v11306_v48, %v11305_v36  ;;  %v11307_v2 = vld [vmem:[#allocation27_spill] sm:$0xff]  ;;  %v8361_v30 = vpop.f32.mrf.mxu1 }
 0x241   : > { %v8693_v47 = vpop.f32.mrf.mxu0  ;;  %v3460_v62 = vadd.f32 %v8333_v46, %v3347_v13  ;;  %v3371_v49 = vadd.f32 %v8275_v31, %v11307_v2  ;;  %v8284_v5 = vadd.f32 %v11309_v4, %v11308_v3  ;;  %v8360_v46 = vadd.f32 %v8359_v53, %v8358_v57  ;;  %v11320_v31 = vld [vmem:[#allocation51_spill] sm:$0xff] }
 0x242   : > { %3737 = vst [vmem:[#allocation2 + $0x8] sm:$0xf] %v8040_v11  ;;  %v8045_v10 = vpack.c.bf16 %v3622_v22, %v3622_v22  ;;  %v3620_v24 = vmax.f32 %v3554_v45, 0.0  ;;  %v3565_v28 = vadd.f32 %v8693_v47, %v3452_v56  ;;  %v3481_v22 = vadd.f32 %v8348_v0, %v3368_v35  ;;  %v11310_v45 = vld [vmem:[#allocation46_spill] sm:$0xff]  ;;  %v11311_v56 = vld [vmem:[#allocation49_spill] sm:$0xff] }
 0x243   : > { %v3556_v55 = vpop.f32.mrf.mxu0  ;;  %v8351_v9 = vadd.f32 %v11311_v56, %v11310_v45  ;;  %v8357_v2 = vadd.f32 %v10556_v39, %v10541_v63 }
 0x244   : > { %3742 = vst [vmem:[#allocation2 + $0x34] sm:$0xf] %v8045_v10  ;;  %v8043_v6 = vpack.c.bf16 %v3620_v24, %v3620_v24  ;;  %v3623_v15 = vmax.f32 %v3565_v28, 0.0  ;;  %v3557_v7 = vadd.f32 %v3556_v55, %v3444_v44  ;;  %v11312_v10 = vld [vmem:[#allocation26_spill] sm:$0xff]  ;;  %v11313_v28 = vld [vmem:[#allocation40_spill] sm:$0xff]  ;;  %v11314_v44 = vld [vmem:[#allocation41_spill] sm:$0xff] }
 0x245   : > { %v8696_v59 = vpop.f32.mrf.mxu0  ;;  %v3363_v24 = vadd.f32 %v8269_v19, %v11312_v10  ;;  %v8278_v33 = vadd.f32 %v11314_v44, %v11313_v28  ;;  %v3484_v0 = vadd.f32 %v8351_v9, %v3371_v49 }
 0x246   : > { %3740 = vst [vmem:[#allocation2 + $0x24] sm:$0xf] %v8043_v6  ;;  %v8046_v50 = vpack.c.bf16 %v3623_v15, %v3623_v15  ;;  %v3621_v38 = vmax.f32 %v3557_v7, 0.0  ;;  %v3578_v8 = vadd.f32 %v8696_v59, %v3465_v26  ;;  %v3473_v26 = vadd.f32 %v8342_v14, %v3360_v17  ;;  %v11316_v6 = vld [vmem:[#allocation39_spill] sm:$0xff]  ;;  %v11317_v59 = vld [vmem:[#allocation30_spill] sm:$0xff] }
 0x247   : > { %v3569_v20 = vpop.f32.mrf.mxu0  ;;  %v8345_v15 = vadd.f32 %v11316_v6, %v11315_v12  ;;  %v3376_v37 = vadd.f32 %v8278_v33, %v11319_v54 }
 0x248   : > { %3743 = vst [vmem:[#allocation2 + $0x38] sm:$0xf] %v8046_v50  ;;  %v8044_v32 = vpack.c.bf16 %v3621_v38, %v3621_v38  ;;  %v3626_v34 = vmax.f32 %v3578_v8, 0.0  ;;  %v3570_v52 = vadd.f32 %v3569_v20, %v3457_v60  ;;  %v3384_v60 = vadd.f32 %v8284_v5, %v11317_v59  ;;  %v11318_v50 = vld [vmem:[#allocation50_spill] sm:$0xff] }
 0x249   : > { %v8697_v1 = vpop.f32.mrf.mxu0  ;;  %v8287_v38 = vadd.f32 %v10520_v42, %v11318_v50  ;;  %v8354_v20 = vadd.f32 %v10533_v16, %v11320_v31  ;;  %v3476_v23 = vadd.f32 %v8345_v15, %v3363_v24  ;;  %v11324_v16 = vld [vmem:[#allocation29_spill] sm:$0xff] }
 0x24a   : > { %3741 = vst [vmem:[#allocation2 + $0x28] sm:$0xf] %v8044_v32  ;;  %v8049_v25 = vpack.c.bf16 %v3626_v34, %v3626_v34  ;;  %v3624_v29 = vmax.f32 %v3570_v52, 0.0  ;;  %v3581_v18 = vadd.f32 %v8697_v1, %v3468_v21  ;;  %v11321_v32 = vld [vmem:[#allocation43_spill] sm:$0xff]  ;;  %v11322_v34 = vld [vmem:[#allocation45_spill] sm:$0xff]  ;;  %v8362_v21 = vpop.f32.mrf.mxu1  ;;  %v3497_v48 = vadd.f32 %v8360_v46, %v3384_v60 }
 0x24b   : > { %v3572_v11 = vpop.f32.mrf.mxu0  ;;  %v8281_v52 = vadd.f32 %v11322_v34, %v11321_v32  ;;  %v3387_v14 = vadd.f32 %v8287_v38, %v11323_v43  ;;  %v8363_v19 = vadd.f32 %v8362_v21, %v8361_v30 }
 0x24c   : > { %3746 = vst [vmem:[#allocation2 + $0x54] sm:$0xf] %v8049_v25  ;;  %v8047_v61 = vpack.c.bf16 %v3624_v29, %v3624_v29  ;;  %v3627_v51 = vmax.f32 %v3581_v18, 0.0  ;;  %v3573_v47 = vadd.f32 %v3572_v11, %v3460_v62  ;;  %v3489_v62 = vadd.f32 %v8354_v20, %v3376_v37 }
 0x24d   : > { %v8700_v55 = vpop.f32.mrf.mxu0  ;;  %v3379_v29 = vadd.f32 %v8281_v52, %v11324_v16  ;;  %v3500_v56 = vadd.f32 %v8363_v19, %v3387_v14 }
 0x24e   : > { %3744 = vst [vmem:[#allocation2 + $0x44] sm:$0xf] %v8047_v61  ;;  %v8050_v7 = vpack.c.bf16 %v3627_v51, %v3627_v51  ;;  %v3625_v13 = vmax.f32 %v3573_v47, 0.0  ;;  %v3594_v58 = vadd.f32 %v8700_v55, %v3481_v22 }
 0x24f   : > { %v3585_v8 = vpop.f32.mrf.mxu0  ;;  %v3492_v10 = vadd.f32 %v8357_v2, %v3379_v29 }
 0x250   : > { %3747 = vst [vmem:[#allocation2 + $0x58] sm:$0xf] %v8050_v7  ;;  %v8048_v35 = vpack.c.bf16 %v3625_v13, %v3625_v13  ;;  %v3630_v40 = vmax.f32 %v3594_v58, 0.0  ;;  %v3586_v41 = vadd.f32 %v3585_v8, %v3473_v26 }
 0x251   : > { %v8701_v27 = vpop.f32.mrf.mxu0 }
 0x252   : > { %3745 = vst [vmem:[#allocation2 + $0x48] sm:$0xf] %v8048_v35  ;;  %v8053_v57 = vpack.c.bf16 %v3630_v40, %v3630_v40  ;;  %v3628_v17 = vmax.f32 %v3586_v41, 0.0  ;;  %v3597_v42 = vadd.f32 %v8701_v27, %v3484_v0 }
 0x253   : > { %v3588_v36 = vpop.f32.mrf.mxu0 }
 0x254   : > { %3750 = vst [vmem:[#allocation2 + $0x74] sm:$0xf] %v8053_v57  ;;  %v8051_v53 = vpack.c.bf16 %v3628_v17, %v3628_v17  ;;  %v3631_v1 = vmax.f32 %v3597_v42, 0.0  ;;  %v3589_v25 = vadd.f32 %v3588_v36, %v3476_v23 }
 0x255   : > { %v8704_v18 = vpop.f32.mrf.mxu0 }
 0x256   : > { %3748 = vst [vmem:[#allocation2 + $0x64] sm:$0xf] %v8051_v53  ;;  %v8054_v49 = vpack.c.bf16 %v3631_v1, %v3631_v1  ;;  %v3629_v3 = vmax.f32 %v3589_v25, 0.0  ;;  %v3610_v4 = vadd.f32 %v8704_v18, %v3497_v48 }
 0x257   : > { %v3601_v5 = vpop.f32.mrf.mxu0 }
 0x258   : > { %3751 = vst [vmem:[#allocation2 + $0x78] sm:$0xf] %v8054_v49  ;;  %v8052_v11 = vpack.c.bf16 %v3629_v3, %v3629_v3  ;;  %v3634_v22 = vmax.f32 %v3610_v4, 0.0  ;;  %v3602_v45 = vadd.f32 %v3601_v5, %v3489_v62 }
 0x259   : > { %v8705_v9 = vpop.f32.mrf.mxu0 }
 0x25a   : > { %3749 = vst [vmem:[#allocation2 + $0x68] sm:$0xf] %v8052_v11  ;;  %v8057_v61 = vpack.c.bf16 %v3634_v22, %v3634_v22  ;;  %v3632_v51 = vmax.f32 %v3602_v45, 0.0  ;;  %v3613_v47 = vadd.f32 %v8705_v9, %v3500_v56 }
 0x25b   : > { %v3604_v24 = vpop.f32.mrf.mxu0 }
 0x25c   : > { %3754 = vst [vmem:[#allocation2 + $0x94] sm:$0xf] %v8057_v61  ;;  %v8055_v63 = vpack.c.bf16 %v3632_v51, %v3632_v51  ;;  %v3635_v39 = vmax.f32 %v3613_v47, 0.0  ;;  %v3605_v28 = vadd.f32 %v3604_v24, %v3492_v10 }
 0x25e   : > { %3752 = vst [vmem:[#allocation2 + $0x84] sm:$0xf] %v8055_v63  ;;  %v8058_v44 = vpack.c.bf16 %v3635_v39, %v3635_v39  ;;  %v3633_v33 = vmax.f32 %v3605_v28, 0.0  ;;  %3759 = sbr.rel (%p7820_p1) target bundleno = 613 (0x265), region = 64 }
 0x260   : > { %3755 = vst [vmem:[#allocation2 + $0x98] sm:$0xf] %v8058_v44  ;;  %v8056_v30 = vpack.c.bf16 %v3633_v33, %v3633_v33 }
 0x262   : > { %3753 = vst [vmem:[#allocation2 + $0x88] sm:$0xf] %v8056_v30 }
 0x263   : > { %v9559_v55 = vmov 0  }
 0x264   : > { %3760 = vst [vmem:[#allocation2 + $0x4] sm:$0xf] %v9559_v55  ;;  %3761 = vst [vmem:[#allocation2 + $0x8] sm:$0xf] %v9559_v55 }
 0x265 PF: > { %s3762_s20 = sadd.s32 8, %s7440_s13 }
 0x266   : > { %p7821_p3 = scmp.ne.s32.totalorder %s3762_s20, 16 }
 0x268   : > { %3766 = sbr.rel (%p7821_p3) target bundleno = 623 (0x26f), region = 68 }
 0x26d   : > { %v9560_v26 = vmov 0  }
 0x26e   : > { %3768 = vst [vmem:[#allocation2 + $0x94] sm:$0xf] %v9560_v26  ;;  %3769 = vst [vmem:[#allocation2 + $0x98] sm:$0xf] %v9560_v26 }
 0x26f PF: > { %v9131_v12 = vld [vmem:[#allocation11 + $0x38] sm:$0xff]   ;;  %v9134_v7 = vld [vmem:[#allocation11 + $0x30] sm:$0xff]   ;;  %v9137_v59 = vld [vmem:[#allocation11 + $0x28] sm:$0xff]   ;;  %vm3794_vm6 = vsmask.f32 256  ;;  %s8059_s17 = sshll.u32 %s9534_s27, 4 }
 0x270   : > { %v9132_v6 = vld [vmem:[#allocation10 + $0xf8] sm:$0xff]   ;;  %8706 = vmatprep.subr.bf16.mxu1 %v9131_v12  ;;  %v9135_v13 = vld [vmem:[#allocation10 + $0xf0] sm:$0xff]   ;;  %v9138_v60 = vld [vmem:[#allocation10 + $0xe8] sm:$0xff]   ;;  %vm3795_vm7 = vsmask.f32 4368  ;;  %s8034_s6 = sshll.u32 %s9538_s28, 5 }
 0x271   : > { %v9133_v15 = vld [vmem:[#allocation10 + $0xb8] sm:$0xff]   ;;  %8462 = vmatprep.subr.bf16.mxu0 %v9132_v6  ;;  %8707 = vmatpush3.bf16.msra.mxu1 %v9131_v12  ;;  %v9136_v58 = vld [vmem:[#allocation10 + $0xb0] sm:$0xff]   ;;  %v9139_v46 = vld [vmem:[#allocation10 + $0xa8] sm:$0xff]   ;;  %s7298_s24 = sadd.s32 %s8059_s17, %s8034_s6  ;;  %s11328_s27 = sld [smem:[#allocation20_spill]] }
 0x272   : > { %8463 = vmatpush3.bf16.msra.mxu0 %v9133_v15  ;;  %8708 = vmatprep.subr.bf16.mxu1 %v9134_v7  ;;  %v9140_v50 = vld [vmem:[#allocation11 + $0x20] sm:$0xff]   ;;  %v9143_v35 = vld [vmem:[#allocation11 + $0x18] sm:$0xff]   ;;  %v9146_v0 = vld [vmem:[#allocation11 + $0x10] sm:$0xff]   ;;  %s7301_s28 = sshll.u32 %s10602_s16, 4  ;;  %s8035_s8 = sshll.u32 %s7298_s24, 7  ;;  %s11151_s28 = int_to_ptr.vmem [resolvable:$true] %s7301_s28 }
 0x273   : > { %8464 = vmatprep.subr.bf16.mxu0 %v9135_v13  ;;  %v9141_v38 = vld [vmem:[#allocation10 + $0xe0] sm:$0xff]   ;;  %v9144_v40 = vld [vmem:[#allocation10 + $0xd8] sm:$0xff]   ;;  %v9147_v54 = vld [vmem:[#allocation10 + $0xd0] sm:$0xff]   ;;  %s11329_s21 = sld [smem:[#allocation55_spill]]  ;;  %s11162_s12 = scalar_lea.sflag [#allocation7], %s325_s29 }
 0x274   : > { %v9142_v8 = vld [vmem:[#allocation10 + $0xa0] sm:$0xff]   ;;  %v9145_v41 = vld [vmem:[#allocation10 + $0x98] sm:$0xff]   ;;  %v9148_v37 = vld [vmem:[#allocation10 + $0x90] sm:$0xff]   ;;  %s9561_s18 = smov [#allocation13]  }
 0x275   : > { %8709 = vmatpush3.bf16.msra.mxu1 %v9134_v7  ;;  %v9149_v31 = vld [vmem:[#allocation11 + $0x8] sm:$0xff]   ;;  %v9152_v34 = vld [vmem:[#allocation11] sm:$0xff]   ;;  %v7848_v57 = vld [vmem:[%s9802_s15 + $0x20] sm:$0x1]  ;;  %s9426_s14 = sshll.u32 %s9561_s18, 4  ;;  %s9427_s14 = int_to_ptr.vmem [resolvable:$false] %s9426_s14 }
 0x276   : > { %8465 = vmatpush3.bf16.msra.mxu0 %v9136_v58  ;;  %8710 = vmatprep.subr.bf16.mxu1 %v9137_v59  ;;  %v9150_v20 = vld [vmem:[#allocation10 + $0xc8] sm:$0xff]   ;;  %v9153_v52 = vld [vmem:[#allocation10 + $0xc0] sm:$0xff]   ;;  %v4037_v14 = vld [vmem:[#allocation2 + $0x4] sm:$0xf]  ;;  %v5579_v48 = vshll.u32 %v7848_v57, 16  ;;  %s9428_s20 = scalar_lea.vmem %s9427_s14, 4096  ;;  %p9429_p8 = scmp.lt.s32.totalorder %s11151_s28, %s9427_s14 }
 0x277   : > { %8466 = vmatprep.subr.bf16.mxu0 %v9138_v60  ;;  %v9151_v32 = vld [vmem:[#allocation10 + $0x88] sm:$0xff]   ;;  %v9154_v36 = vld [vmem:[#allocation10 + $0x80] sm:$0xff]   ;;  %v4062_v19 = vshrl.u32 %v4037_v14, 16  ;;  %v4038_v29 = vld [vmem:[#allocation2 + $0x8] sm:$0xf]  ;;  %v4065_v49 = vshll.u32 %v4037_v14, 16 }
 0x278   : > { %v7846_v21 = vld [vmem:[%s9802_s15 + $0x18] sm:$0xf]  ;;  %v7847_v27 = vld [vmem:[%s9802_s15 + $0x1c] sm:$0xf]  ;;  %v5581_v18 = vrot.slane %v5579_v48, 5  ;;  %v4071_v3 = vshll.u32 %v4038_v29, 16  ;;  %vm10619_vm8 = vmor %vm3794_vm6, %vm3795_vm7 }
 0x279   : > { %8711 = vmatpush3.bf16.msra.mxu1 %v9137_v59  ;;  %v5560_v17 = vshrl.u32 %v7846_v21, 16  ;;  %v5563_v42 = vshll.u32 %v7846_v21, 16  ;;  %v5569_v23 = vshll.u32 %v7847_v27, 16  ;;  %v5573_v43 = vshrl.u32 %v7847_v27, 16  ;;  %v4039_v62 = vld [vmem:[#allocation2 + $0xc] sm:$0x1]  ;;  %s11330_s13 = smov %s11329_s21  ;;  %s11157_s10 = scalar_lea.hbm %s11329_s21, %s8035_s8 }
 0x27a   : > { %8467 = vmatpush3.bf16.msra.mxu0 %v9139_v46  ;;  %8712 = vmatprep.subr.bf16.mxu1 %v9140_v50  ;;  %v4064_v2 = vrot.slane %v4062_v19, 4  ;;  %v4075_v11 = vshrl.u32 %v4038_v29, 16  ;;  %v4081_v22 = vshll.u32 %v4039_v62, 16  ;;  %v4286_v45 = vld [vmem:[#allocation2 + $0x10] sm:$0x8]  ;;  %v4067_v9 = vrot.slane %v4065_v49, 5 }
 0x27b   : > { %8468 = vmatprep.subr.bf16.mxu0 %v9141_v38  ;;  %v5562_v53 = vrot.slane %v5560_v17, 4  ;;  %v5565_v1 = vrot.slane %v5563_v42, 5  ;;  %v5571_v25 = vrot.slane %v5569_v23, 5  ;;  %v5575_v16 = vrot.slane %v5573_v43, 4  ;;  %v4287_v56 = vld [vmem:[#allocation2 + $0x14] sm:$0xf] }
 0x27c   : > { %v4073_v61 = vrot.slane %v4071_v3, 5  ;;  %v4288_v51 = vld [vmem:[#allocation2 + $0x18] sm:$0xf]  ;;  %v4311_v47 = vshrl.u32 %v4286_v45, 16  ;;  %v4316_v10 = vshrl.u32 %v4287_v56, 16  ;;  %v4077_v39 = vrot.slane %v4075_v11, 4 }
 0x27d   : > { %8713 = vmatpush3.bf16.msra.mxu1 %v9140_v50  ;;  %v5566_v4 = vor.u32 %v5565_v1, %v5562_v53  ;;  %v5576_v5 = vor.u32 %v5575_v16, %v5571_v25  ;;  %v4083_v28 = vrot.slane %v4081_v22, 5  ;;  %v7849_v44 = vld [vmem:[%s9802_s15 + $0x24] sm:$0xf]  ;;  %v4068_v33 = vor.u32 %v4067_v9, %v4064_v2  ;;  %v7850_v12 = vld [vmem:[%s9802_s15 + $0x28] sm:$0xf]  ;;  %p11331_p11 = scmp.ne.s32.totalorder %s11328_s27, 0 }
 0x27e   : > { %8469 = vmatpush3.bf16.msra.mxu0 %v9142_v8  ;;  %8714 = vmatprep.subr.bf16.mxu1 %v9143_v35  ;;  %v7830_v30 = vrot.slane %v4311_v47, 11  ;;  %v4318_v55 = vrot.slane %v4316_v10, 7  ;;  %v4319_v26 = vshll.u32 %v4287_v56, 16  ;;  %v9158_v6 = vld [vmem:[#allocation10 + $0x78] sm:$0xff]   ;;  %v4078_v59 = vor.u32 %v4077_v39, %v4073_v61  ;;  %v7852_v14 = vld [vmem:[%s9802_s15 + $0x30] sm:$0xf] }
 0x27f   : > { %8470 = vmatprep.subr.bf16.mxu0 %v9144_v40  ;;  %v5567_v24 = vrot.slane %v5566_v4, 4  ;;  %v5577_v63 = vrot.slane %v5576_v5, 4  ;;  %v4325_v60 = vshrl.u32 %v4288_v51, 16  ;;  %v7851_v46 = vld [vmem:[%s9802_s15 + $0x2c] sm:$0x1]  ;;  %v4069_v38 = vrot.slane %v4068_v33, 4 }
 0x280   : > { %v4321_v8 = vor.u32 %v4319_v26, %v4318_v55  ;;  %v4079_v40 = vrot.slane %v4078_v59, 4  ;;  %v5597_v27 = vshrl.u32 %v7850_v12, 16  ;;  %v5603_v42 = vshll.u32 %v7851_v46, 16  ;;  %v7854_v53 = vld [vmem:[%s9802_s15 + $0x38] sm:$0x1]  ;;  %v9159_v47 = vld [vmem:[#allocation10 + $0x38] sm:$0xff]  }
 0x281   : > { %8715 = vmatpush3.bf16.msra.mxu1 %v9143_v35  ;;  %v5572_v7 = vsel %vm9820_vm5, %v5567_v24, %v5571_v25  ;;  %v5582_v13 = vsel %vm9820_vm5, %v5577_v63, %v5581_v18  ;;  %v4323_v35 = vrot.slane %v4318_v55, 4  ;;  %v5608_v1 = vshrl.u32 %v7852_v14, 16  ;;  %v4040_v2 = vld [vmem:[#allocation2 + $0x14] sm:$0xf]  ;;  %v4041_v5 = vld [vmem:[#allocation2 + $0x18] sm:$0xf] }
 0x282   : > { %8471 = vmatpush3.bf16.msra.mxu0 %v9145_v41  ;;  %8716 = vmatprep.subr.bf16.mxu1 %v9146_v0  ;;  %v7870_v50 = vcombine.low %v5572_v7, %v5582_v13  ;;  %v4327_v41 = vrot.slane %v4325_v60, 7  ;;  %v5599_v43 = vrot.slane %v5597_v27, 4  ;;  %v5605_v19 = vrot.slane %v5603_v42, 5  ;;  %v4290_v55 = vld [vmem:[#allocation2 + $0x24] sm:$0xf] }
 0x283   : > { %8472 = vmatprep.subr.bf16.mxu0 %v9147_v54  ;;  %v5584_v54 = vshrl.u32 %v7849_v44, 16  ;;  %v5611_v25 = vshll.u32 %v7852_v14, 16  ;;  %v5627_v62 = vshll.u32 %v7854_v53, 16  ;;  %v5610_v3 = vrot.slane %v5608_v1, 4  ;;  %v4291_v59 = vld [vmem:[#allocation2 + $0x28] sm:$0xf] }
 0x284   : > { %8722 = vmatprep.mubr.bf16.mxu1 %v7870_v50  ;;  %v4086_v11 = vshrl.u32 %v4040_v2, 16  ;;  %v4089_v63 = vshll.u32 %v4040_v2, 16  ;;  %v4099_v33 = vshrl.u32 %v4041_v5, 16  ;;  %v9161_v50 = vld [vmem:[#allocation10 + $0x30] sm:$0xff]   ;;  %v4350_v14 = vshll.u32 %v4291_v59, 16 }
 0x285   : > { %8717 = vmatpush3.bf16.msra.mxu1 %v9146_v0  ;;  %v4328_v0 = vshll.u32 %v4288_v51, 16  ;;  %v5586_v21 = vrot.slane %v5584_v54, 4  ;;  %v5613_v4 = vrot.slane %v5611_v25, 5  ;;  %v5629_v9 = vrot.slane %v5627_v62, 5  ;;  %v7856_v54 = vld [vmem:[%s9802_s15 + $0x40] sm:$0xf] }
 0x286   : > { %8473 = vmatpush3.bf16.msra.mxu0 %v9148_v37  ;;  %8718 = vmatprep.subr.bf16.mxu1 %v9149_v31  ;;  %v4074_v37 = vsel %vm9820_vm5, %v4069_v38, %v4073_v61  ;;  %v4042_v61 = vld [vmem:[#allocation2 + $0x1c] sm:$0x1]  ;;  %v4088_v24 = vrot.slane %v4086_v11, 4  ;;  %v4091_v7 = vrot.slane %v4089_v63, 5 }
 0x287   : > { %8474 = vmatprep.subr.bf16.mxu0 %v9150_v20  ;;  %v5587_v20 = vshll.u32 %v7849_v44, 16  ;;  %4269 = vst [vmem:[#allocation4 + $0x8] sm:$0xf] %v4074_v37  ;;  %v5614_v10 = vor.u32 %v5613_v4, %v5610_v3  ;;  %v4095_v44 = vshll.u32 %v4041_v5, 16  ;;  %v4105_v13 = vshll.u32 %v4042_v61, 16  ;;  %v9167_v4 = vld [vmem:[#allocation10 + $0x60] sm:$0xff]  }
 0x288   : > { %v5645_v3 = vshrl.u32 %v7856_v54, 16 }
 0x289   : > { %8719 = vmatpush3.bf16.msra.mxu1 %v9149_v31  ;;  %v4322_v31 = vsel %vm10619_vm8, %v7830_v30, %v4321_v8  ;;  %v5589_v57 = vrot.slane %v5587_v20, 5  ;;  %v4289_v30 = vld [vmem:[#allocation2 + $0x20] sm:$0x8] }
 0x28a   : > { %8475 = vmatpush3.bf16.msra.mxu0 %v9151_v32  ;;  %8720 = vmatprep.subr.bf16.mxu1 %v9152_v34  ;;  %v5593_v32 = vshll.u32 %v7850_v12, 16  ;;  %4502 = vst [vmem:[#allocation4 + $0xc] sm:$0xf] %v4322_v31  ;;  %v9160_v12 = vld [vmem:[#allocation10 + $0x70] sm:$0xff]   ;;  %v4107_v31 = vrot.slane %v4105_v13, 5  ;;  %v4333_v20 = vshrl.u32 %v4289_v30, 16 }
 0x28b   : > { %8476 = vmatprep.subr.bf16.mxu0 %v9153_v52  ;;  %v4330_v52 = vor.u32 %v4328_v0, %v4327_v41  ;;  %v5590_v48 = vor.u32 %v5589_v57, %v5586_v21  ;;  %v4101_v41 = vrot.slane %v4099_v33, 4  ;;  %v7855_v0 = vld [vmem:[%s9802_s15 + $0x3c] sm:$0xf]  ;;  %v4341_v57 = vshll.u32 %v4290_v55, 16  ;;  %v4043_v33 = vld [vmem:[#allocation2 + $0x24] sm:$0xf] }
 0x28c   : > { %v5595_v17 = vrot.slane %v5593_v32, 5  ;;  %v4338_v32 = vshrl.u32 %v4290_v55, 16  ;;  %v7831_v42 = vrot.slane %v4333_v20, 11  ;;  %v5635_v53 = vshll.u32 %v7855_v0, 16  ;;  %v4292_v20 = vld [vmem:[#allocation2 + $0x30] sm:$0x8] }
 0x28d   : > { %8721 = vmatpush3.bf16.msra.mxu1 %v9152_v34  ;;  %v4084_v34 = vsel %vm9820_vm5, %v4079_v40, %v4083_v28  ;;  %v4331_v23 = vsel %vm10619_vm8, %v4323_v35, %v4330_v52  ;;  %v5591_v49 = vrot.slane %v5590_v48, 4  ;;  %v4092_v35 = vor.u32 %v4091_v7, %v4088_v24  ;;  %v9171_v7 = vld [vmem:[#allocation10 + $0x58] sm:$0xff]  }
 0x28e   : > { %8477 = vmatpush3.bf16.msra.mxu0 %v9154_v36  ;;  %8398 = vmatprep.subr.bf16.mxu1 %v9158_v6  ;;  %4270 = vst [vmem:[#allocation4 + $0x2c] sm:$0xf] %v4084_v34  ;;  %v7853_v36 = vld [vmem:[%s9802_s15 + $0x34] sm:$0xf]  ;;  %4503 = vst [vmem:[#allocation4 + $0x30] sm:$0xf] %v4331_v23  ;;  %v5600_v16 = vor.u32 %v5599_v43, %v5595_v17 }
 0x28f   : > { %v5617_v29 = vshll.u32 %v7853_v36, 16  ;;  %v5621_v18 = vshrl.u32 %v7853_v36, 16  ;;  %v5596_v51 = vsel %vm9820_vm5, %v5591_v49, %v5595_v17  ;;  %v5615_v6 = vrot.slane %v5614_v10, 4  ;;  %v9164_v34 = vld [vmem:[#allocation10 + $0x68] sm:$0xff]   ;;  %v7857_v17 = vld [vmem:[%s9802_s15 + $0x44] sm:$0x1] }
 0x290   : > { %v5601_v22 = vrot.slane %v5600_v16, 4  ;;  %v4097_v40 = vrot.slane %v4095_v44, 5  ;;  %v4093_v21 = vrot.slane %v4092_v35, 4  ;;  %v4340_v23 = vrot.slane %v4338_v32, 7  ;;  %v4045_v35 = vld [vmem:[#allocation2 + $0x2c] sm:$0x1] }
 0x291   : > { %v5619_v45 = vrot.slane %v5617_v29, 5  ;;  %v5623_v56 = vrot.slane %v5621_v18, 4  ;;  %v4347_v43 = vshrl.u32 %v4291_v59, 16  ;;  %v5641_v29 = vshll.u32 %v7856_v54, 16  ;;  %v9166_v18 = vld [vmem:[#allocation10 + $0x28] sm:$0xff]   ;;  %v9174_v32 = vld [vmem:[#allocation10 + $0x50] sm:$0xff]  }
 0x292   : > { %v5606_v39 = vsel %vm9820_vm5, %v5601_v22, %v5605_v19  ;;  %v4102_v27 = vor.u32 %v4101_v41, %v4097_v40  ;;  %v4098_v36 = vsel %vm9820_vm5, %v4093_v21, %v4097_v40  ;;  %v5632_v19 = vshrl.u32 %v7855_v0, 16  ;;  %v9173_v41 = vld [vmem:[#allocation10 + $0x18] sm:$0xff]  }
 0x293   : > { %v5624_v28 = vor.u32 %v5623_v56, %v5619_v45  ;;  %v7871_v26 = vcombine.low %v5596_v51, %v5606_v39  ;;  %v5620_v8 = vsel %vm9820_vm5, %v5615_v6, %v5619_v45  ;;  %4271 = vst [vmem:[#allocation4 + $0x50] sm:$0xf] %v4098_v36  ;;  %v4343_v1 = vor.u32 %v4341_v57, %v4340_v23  ;;  %v7858_v56 = vld [vmem:[%s9802_s15 + $0x48] sm:$0xf]  ;;  %v7859_v51 = vld [vmem:[%s9802_s15 + $0x4c] sm:$0xf] }
 0x294   : > { %v4103_v48 = vrot.slane %v4102_v27, 4  ;;  %v4345_v25 = vrot.slane %v4340_v23, 4  ;;  %v4349_v16 = vrot.slane %v4347_v43, 7  ;;  %v5634_v2 = vrot.slane %v5632_v19, 4  ;;  %v9168_v39 = vld [vmem:[#allocation10 + $0x20] sm:$0xff]  }
 0x295   : > { %v9155_v60 = vld [vmem:[#allocation4 + $0x8] ss:$36 sps:$4 sm:$0xff]   ;;  %v5625_v38 = vrot.slane %v5624_v28, 4  ;;  %8723 = vmatmul.mubr.bf16.vlgmr.msra.gmra.mxu1 %v7871_v26  ;;  %v5637_v49 = vrot.slane %v5635_v53, 5  ;;  %v4344_v5 = vsel %vm10619_vm8, %v7831_v42, %v4343_v1  ;;  %v5643_v22 = vrot.slane %v5641_v29, 5  ;;  %v9175_v29 = vld [vmem:[#allocation10 + $0x10] sm:$0xff]  }
 0x296   : > { %v9157_v46 = vld [vmem:[#allocation4 + $0xc] ss:$36 sps:$4 sm:$0xff]   ;;  %8399 = vmatpush3.bf16.msra.mxu1 %v9159_v47  ;;  %v4108_v62 = vsel %vm9820_vm5, %v4103_v48, %v4107_v31  ;;  %v4352_v11 = vor.u32 %v4350_v14, %v4349_v16  ;;  %v5651_v45 = vshll.u32 %v7857_v17, 16  ;;  %4504 = vst [vmem:[#allocation4 + $0x54] sm:$0xf] %v4344_v5  ;;  %v5647_v61 = vrot.slane %v5645_v3, 4 }
 0x297   : > { %6873 = vmatprep.mubr.bf16.mxu0 %v9157_v46  ;;  %v5630_v37 = vsel %vm9820_vm5, %v5625_v38, %v5629_v9  ;;  %8400 = vmatprep.subr.bf16.mxu1 %v9160_v12  ;;  %4272 = vst [vmem:[#allocation4 + $0x74] sm:$0xf] %v4108_v62  ;;  %v5638_v9 = vor.u32 %v5637_v49, %v5634_v2  ;;  %v7860_v47 = vld [vmem:[%s9802_s15 + $0x50] sm:$0x1]  ;;  %v5656_v10 = vshrl.u32 %v7858_v56, 16  ;;  %v5659_v28 = vshll.u32 %v7858_v56, 16 }
 0x298   : > { %6874 = vmatmul.mubr.bf16.vlgmr.msra.gmra.mxu0 %v9155_v60  ;;  %v7872_v52 = vcombine.low %v5620_v8, %v5630_v37  ;;  %v4353_v24 = vsel %vm10619_vm8, %v4345_v25, %v4352_v11  ;;  %v5653_v63 = vrot.slane %v5651_v45, 5  ;;  %v5665_v44 = vshll.u32 %v7859_v51, 16  ;;  %v4044_v6 = vld [vmem:[#allocation2 + $0x28] sm:$0xf]  ;;  %v4293_v17 = vld [vmem:[#allocation2 + $0x34] sm:$0xf] }
 0x299   : > { %4505 = vst [vmem:[#allocation4 + $0x78] sm:$0xf] %v4353_v24  ;;  %v5639_v30 = vrot.slane %v5638_v9, 4  ;;  %v5648_v55 = vor.u32 %v5647_v61, %v5643_v22  ;;  %v5658_v26 = vrot.slane %v5656_v10, 4  ;;  %v5669_v12 = vshrl.u32 %v7859_v51, 16 }
 0x29a   : > { %8726 = vmatprep.mubr.bf16.mxu1 %v7872_v52  ;;  %8401 = vmatpush3.bf16.msra.mxu1 %v9161_v50  ;;  %v5661_v13 = vrot.slane %v5659_v28, 5  ;;  %v5667_v59 = vrot.slane %v5665_v44, 5  ;;  %v5675_v60 = vshll.u32 %v7860_v47, 16  ;;  %v4110_v46 = vshrl.u32 %v4043_v33, 16  ;;  %v4294_v42 = vld [vmem:[#allocation2 + $0x38] sm:$0xf] }
 0x29b   : > { %8402 = vmatprep.subr.bf16.mxu1 %v9164_v34  ;;  %v5644_v50 = vsel %vm9820_vm5, %v5639_v30, %v5643_v22  ;;  %v5649_v38 = vrot.slane %v5648_v55, 4  ;;  %v5671_v8 = vrot.slane %v5669_v12, 4  ;;  %v4113_v40 = vshll.u32 %v4043_v33, 16  ;;  %v9190_v34 = vld [vmem:[#allocation10 + $0x1f8] sm:$0xff]   ;;  %v7861_v48 = vld [vmem:[%s9802_s15 + $0x54] sm:$0xf] }
 0x29c   : > { %v5662_v0 = vor.u32 %v5661_v13, %v5658_v26  ;;  %v5677_v54 = vrot.slane %v5675_v60, 5  ;;  %v4112_v37 = vrot.slane %v4110_v46, 4  ;;  %v4119_v31 = vshll.u32 %v4044_v6, 16  ;;  %8590 = vmatprep.subr.bf16.mxu0 %v9190_v34  ;;  %v7862_v16 = vld [vmem:[%s9802_s15 + $0x58] sm:$0xf]  ;;  %v9192_v47 = vld [vmem:[#allocation10 + $0x1b8] sm:$0xff]  }
 0x29d   : > { %v5654_v52 = vsel %vm9820_vm5, %v5649_v38, %v5653_v63  ;;  %v5672_v21 = vor.u32 %v5671_v8, %v5667_v59  ;;  %v4115_v27 = vrot.slane %v4113_v40, 5  ;;  %v4123_v57 = vshrl.u32 %v4044_v6, 16  ;;  %v7863_v3 = vld [vmem:[%s9802_s15 + $0x5c] sm:$0x1]  ;;  %v9193_v44 = vld [vmem:[#allocation10 + $0x1f0] sm:$0xff]   ;;  %v9181_v12 = vld [vmem:[#allocation10 + $0x40] sm:$0xff]   ;;  %8591 = vmatpush3.bf16.msra.mxu0 %v9192_v47 }
 0x29e   : > { %8403 = vmatpush3.bf16.msra.mxu1 %v9166_v18  ;;  %v7873_v23 = vcombine.low %v5644_v50, %v5654_v52  ;;  %v5663_v43 = vrot.slane %v5662_v0, 4  ;;  %v4121_v14 = vrot.slane %v4119_v31, 5  ;;  %v4129_v36 = vshll.u32 %v4045_v35, 16  ;;  %v9165_v62 = vld [vmem:[#allocation4 + $0x50] ss:$36 sps:$4 sm:$0xff]   ;;  %v9180_v28 = vld [vmem:[#allocation10 + $0x8] sm:$0xff]   ;;  %8592 = vmatprep.subr.bf16.mxu0 %v9193_v44 }
 0x29f   : > { %8404 = vmatprep.subr.bf16.mxu1 %v9167_v4  ;;  %v5673_v19 = vrot.slane %v5672_v21, 4  ;;  %v4116_v53 = vor.u32 %v4115_v27, %v4112_v37  ;;  %v4125_v1 = vrot.slane %v4123_v57, 4  ;;  %v4355_v25 = vshrl.u32 %v4292_v20, 16  ;;  %v9178_v4 = vld [vmem:[#allocation10 + $0x48] sm:$0xff]   ;;  %v9194_v60 = vld [vmem:[#allocation10 + $0x1b0] sm:$0xff]  }
 0x2a0   : > { %v9162_v18 = vld [vmem:[#allocation4 + $0x54] ss:$36 sps:$4 sm:$0xff]   ;;  %8727 = vmatmul.mubr.bf16.gmra.mxu1 %v7873_v23  ;;  %v5668_v2 = vsel %vm9820_vm5, %v5663_v43, %v5667_v59  ;;  %v4131_v49 = vrot.slane %v4129_v36, 5  ;;  %v4360_v9 = vshrl.u32 %v4293_v17, 16  ;;  %v4363_v61 = vshll.u32 %v4293_v17, 16  ;;  %v9202_v21 = vld [vmem:[#allocation10 + $0x1e8] sm:$0xff]  }
 0x2a1   : > { %v5678_v5 = vsel %vm9820_vm5, %v5673_v19, %v5677_v54  ;;  %v4117_v11 = vrot.slane %v4116_v53, 4  ;;  %v4126_v22 = vor.u32 %v4125_v1, %v4121_v14  ;;  %v7832_v45 = vrot.slane %v4355_v25, 11  ;;  %6881 = vmatprep.mubr.bf16.mxu0 %v9162_v18  ;;  %v7864_v0 = vld [vmem:[%s9802_s15 + $0x60] sm:$0xf]  ;;  %v9182_v54 = vld [vmem:[#allocation10] sm:$0xff]   ;;  %8593 = vmatpush3.bf16.msra.mxu0 %v9194_v60  ;;  %v9189_v43 = vld [vmem:[#allocation10 + $0x178] sm:$0xff]  }
 0x2a2   : > { %8405 = vmatpush3.bf16.msra.mxu1 %v9168_v39  ;;  %v7874_v56 = vcombine.low %v5668_v2, %v5678_v5  ;;  %v4369_v51 = vshrl.u32 %v4294_v42, 16  ;;  %6882 = vmatmul.mubr.bf16.gmra.mxu0 %v9165_v62  ;;  %v4372_v63 = vshll.u32 %v4294_v42, 16  ;;  %v5680_v39 = vshrl.u32 %v7861_v48, 16  ;;  %v7866_v34 = vld [vmem:[%s9802_s15 + $0x68] sm:$0x1]  ;;  %v9204_v5 = vld [vmem:[#allocation10 + $0x1a8] sm:$0xff]  }
 0x2a3   : > { %8406 = vmatprep.subr.bf16.mxu1 %v9171_v7  ;;  %v4122_v10 = vsel %vm9820_vm5, %v4117_v11, %v4121_v14  ;;  %v4127_v24 = vrot.slane %v4126_v22, 4  ;;  %v4362_v33 = vrot.slane %v4360_v9, 7  ;;  %v5683_v55 = vshll.u32 %v7861_v48, 16  ;;  %v4046_v23 = vld [vmem:[#allocation2 + $0x34] sm:$0xf]  ;;  %8594 = vmatprep.subr.bf16.mxu0 %v9202_v21 }
 0x2a4   : > { %8730 = vmatprep.mubr.bf16.mxu1 %v7874_v56  ;;  %4273 = vst [vmem:[#allocation4 + $0x98] sm:$0xf] %v4122_v10  ;;  %v4371_v30 = vrot.slane %v4369_v51, 7  ;;  %v5689_v26 = vshll.u32 %v7862_v16, 16  ;;  %v5682_v7 = vrot.slane %v5680_v39, 4  ;;  %v5693_v13 = vshrl.u32 %v7862_v16, 16 }
 0x2a5   : > { %v4132_v6 = vsel %vm9820_vm5, %v4127_v24, %v4131_v49  ;;  %v5699_v59 = vshll.u32 %v7863_v3, 16  ;;  %v4365_v46 = vor.u32 %v4363_v61, %v4362_v33  ;;  %v4367_v50 = vrot.slane %v4362_v33, 4  ;;  %v4047_v19 = vld [vmem:[#allocation2 + $0x38] sm:$0xf]  ;;  %v4048_v18 = vld [vmem:[#allocation2 + $0x3c] sm:$0x1]  ;;  %8595 = vmatpush3.bf16.msra.mxu0 %v9204_v5 }
 0x2a6   : > { %8407 = vmatpush3.bf16.msra.mxu1 %v9173_v41  ;;  %4274 = vst [vmem:[#allocation4 + $0xbc] sm:$0xf] %v4132_v6  ;;  %v4374_v38 = vor.u32 %v4372_v63, %v4371_v30  ;;  %v5685_v8 = vrot.slane %v5683_v55, 5  ;;  %v5691_v35 = vrot.slane %v5689_v26, 5  ;;  %v5695_v40 = vrot.slane %v5693_v13, 4  ;;  %v9205_v61 = vld [vmem:[#allocation10 + $0x1e0] sm:$0xff]  }
 0x2a7   : > { %8408 = vmatprep.subr.bf16.mxu1 %v9174_v32  ;;  %v5701_v41 = vrot.slane %v5699_v59, 5  ;;  %v4366_v37 = vsel %vm10619_vm8, %v7832_v45, %v4365_v46  ;;  %v7865_v32 = vld [vmem:[%s9802_s15 + $0x64] sm:$0xf]  ;;  %v5704_v52 = vshrl.u32 %v7864_v0, 16  ;;  %v5707_v57 = vshll.u32 %v7864_v0, 16  ;;  %v9206_v39 = vld [vmem:[#allocation10 + $0x1a0] sm:$0xff]   ;;  %8596 = vmatprep.subr.bf16.mxu0 %v9205_v61 }
 0x2a8   : > { %v4375_v31 = vsel %vm10619_vm8, %v4367_v50, %v4374_v38  ;;  %v5686_v20 = vor.u32 %v5685_v8, %v5682_v7  ;;  %4506 = vst [vmem:[#allocation4 + $0x9c] sm:$0xf] %v4366_v37  ;;  %v5696_v27 = vor.u32 %v5695_v40, %v5691_v35  ;;  %v5713_v17 = vshll.u32 %v7865_v32, 16  ;;  %v4296_v9 = vld [vmem:[#allocation2 + $0x44] sm:$0xf] }
 0x2a9   : > { %4507 = vst [vmem:[#allocation4 + $0xc0] sm:$0xf] %v4375_v31  ;;  %v5717_v42 = vshrl.u32 %v7865_v32, 16  ;;  %v5706_v36 = vrot.slane %v5704_v52, 4  ;;  %v5723_v48 = vshll.u32 %v7866_v34, 16  ;;  %v4134_v53 = vshrl.u32 %v4046_v23, 16  ;;  %8597 = vmatpush3.bf16.msra.mxu0 %v9206_v39 }
 0x2aa   : > { %8409 = vmatpush3.bf16.msra.mxu1 %v9175_v29  ;;  %v5687_v14 = vrot.slane %v5686_v20, 4  ;;  %v5697_v1 = vrot.slane %v5696_v27, 4  ;;  %v5709_v25 = vrot.slane %v5707_v57, 5  ;;  %v5715_v16 = vrot.slane %v5713_v17, 5  ;;  %v4297_v63 = vld [vmem:[#allocation2 + $0x48] sm:$0xf] }
 0x2ab   : > { %8410 = vmatprep.subr.bf16.mxu1 %v9178_v4  ;;  %v5719_v29 = vrot.slane %v5717_v42, 4  ;;  %v5725_v2 = vrot.slane %v5723_v48, 5  ;;  %v4136_v49 = vrot.slane %v4134_v53, 4  ;;  %v4137_v3 = vshll.u32 %v4046_v23, 16  ;;  %v4295_v4 = vld [vmem:[#allocation2 + $0x40] sm:$0x8] }
 0x2ac   : > { %v5692_v62 = vsel %vm9820_vm5, %v5687_v14, %v5691_v35  ;;  %v5702_v11 = vsel %vm9820_vm5, %v5697_v1, %v5701_v41  ;;  %v5710_v22 = vor.u32 %v5709_v25, %v5706_v36  ;;  %v4143_v56 = vshll.u32 %v4047_v19, 16  ;;  %v7867_v55 = vld [vmem:[%s9802_s15 + $0x6c] sm:$0xf]  ;;  %v7868_v38 = vld [vmem:[%s9802_s15 + $0x70] sm:$0xf]  ;;  %v9226_v39 = vld [vmem:[#allocation10 + $0x1c8] sm:$0xff]  }
 0x2ad   : > { %v5720_v45 = vor.u32 %v5719_v29, %v5715_v16  ;;  %v7875_v51 = vcombine.low %v5692_v62, %v5702_v11  ;;  %v4139_v47 = vrot.slane %v4137_v3, 5  ;;  %v4147_v10 = vshrl.u32 %v4047_v19, 16  ;;  %v9172_v13 = vld [vmem:[#allocation4 + $0x98] ss:$36 sps:$4 sm:$0xff]   ;;  %v7869_v0 = vld [vmem:[%s9802_s15 + $0x74] sm:$0x1] }
 0x2ae   : > { %8411 = vmatpush3.bf16.msra.mxu1 %v9180_v28  ;;  %v4153_v24 = vshll.u32 %v4048_v18, 16  ;;  %v5711_v28 = vrot.slane %v5710_v22, 4  ;;  %v4145_v33 = vrot.slane %v4143_v56, 5  ;;  %v4377_v30 = vshrl.u32 %v4295_v4, 16  ;;  %v9214_v23 = vld [vmem:[#allocation10 + $0x1d8] sm:$0xff]   ;;  %v9218_v22 = vld [vmem:[#allocation10 + $0x190] sm:$0xff]  }
 0x2af   : > { %8412 = vmatprep.subr.bf16.mxu1 %v9181_v12  ;;  %v5721_v44 = vrot.slane %v5720_v45, 4  ;;  %8731 = vmatmul.mubr.bf16.gmra.mxu1 %v7875_v51  ;;  %v4140_v12 = vor.u32 %v4139_v47, %v4136_v49  ;;  %v4149_v6 = vrot.slane %v4147_v10, 4  ;;  %v4382_v50 = vshrl.u32 %v4296_v9, 16  ;;  %v9216_v25 = vld [vmem:[#allocation10 + $0x198] sm:$0xff]   ;;  %v3770_v18 = vld [vmem:[#allocation2] sm:$0x8] }
 0x2b0   : > { %v9169_v26 = vld [vmem:[#allocation4 + $0x9c] ss:$36 sps:$4 sm:$0xff]   ;;  %v4155_v7 = vrot.slane %v4153_v24, 5  ;;  %v5716_v59 = vsel %vm9820_vm5, %v5711_v28, %v5715_v16  ;;  %v7833_v46 = vrot.slane %v4377_v30, 11  ;;  %v4385_v41 = vshll.u32 %v4296_v9, 16  ;;  %8598 = vmatprep.subr.bf16.mxu0 %v9214_v23  ;;  %s9422_s15 = scalar_lea.vmem %s11151_s28, 2048 }
 0x2b1   : > { %v5726_v60 = vsel %vm9820_vm5, %v5721_v44, %v5725_v2  ;;  %6889 = vmatprep.mubr.bf16.mxu0 %v9169_v26  ;;  %v4141_v35 = vrot.slane %v4140_v12, 4  ;;  %v4150_v40 = vor.u32 %v4149_v6, %v4145_v33  ;;  %v4391_v37 = vshrl.u32 %v4297_v63, 16  ;;  %v3771_v62 = vld [vmem:[#allocation2 + $0x4] sm:$0xf]  ;;  %v3772_v4 = vld [vmem:[#allocation2 + $0x8] sm:$0xf]  ;;  %8599 = vmatpush3.bf16.msra.mxu0 %v9216_v25  ;;  %p9423_p7 = scmp.ne.s32.totalorder %s11151_s28, %s9422_s15  ;;  %p9430_p10 = scmp.lt.s32.totalorder %s9428_s20, %s9422_s15 }
 0x2b2   : > { %8413 = vmatpush3.bf16.msra.mxu1 %v9182_v54  ;;  %v7876_v8 = vcombine.low %v5716_v59, %v5726_v60  ;;  %6890 = vmatmul.mubr.bf16.gmra.mxu0 %v9172_v13  ;;  %v4384_v54 = vrot.slane %v4382_v50, 7  ;;  %v4394_v31 = vshll.u32 %v4297_v63, 16  ;;  %v5728_v20 = vshrl.u32 %v7867_v55, 16  ;;  %v9217_v2 = vld [vmem:[#allocation10 + $0x1d0] sm:$0xff]   ;;  %v4006_v63 = vld [vmem:[#allocation2 + $0x8] sm:$0xf] }
 0x2b3   : > { %8526 = vmatprep.subr.bf16.mxu1 %v9189_v43  ;;  %v4146_v32 = vsel %vm9820_vm5, %v4141_v35, %v4145_v33  ;;  %v4151_v34 = vrot.slane %v4150_v40, 4  ;;  %v5731_v52 = vshll.u32 %v7867_v55, 16  ;;  %v5737_v21 = vshll.u32 %v7868_v38, 16  ;;  %v4005_v51 = vld [vmem:[#allocation2 + $0x4] sm:$0xf]  ;;  %8600 = vmatprep.subr.bf16.mxu0 %v9217_v2  ;;  %p9424_p4 = pnand %p9423_p7, %p11331_p11  ;;  %p9431_p9 = por %p9430_p10, %p9429_p8 }
 0x2b4   : > { %8734 = vmatprep.mubr.bf16.mxu1 %v7876_v8  ;;  %4275 = vst [vmem:[#allocation4 + $0xe0] sm:$0xf] %v4146_v32  ;;  %v4387_v27 = vor.u32 %v4385_v41, %v4384_v54  ;;  %v4389_v57 = vrot.slane %v4384_v54, 4  ;;  %v4393_v17 = vrot.slane %v4391_v37, 7  ;;  %v5730_v42 = vrot.slane %v5728_v20, 4  ;;  %v9228_v37 = vld [vmem:[#allocation10 + $0x188] sm:$0xff]  }
 0x2b5   : > { %v4156_v43 = vsel %vm9820_vm5, %v4151_v34, %v4155_v7  ;;  %v5733_v14 = vrot.slane %v5731_v52, 5  ;;  %v5739_v36 = vrot.slane %v5737_v21, 5  ;;  %v5741_v48 = vshrl.u32 %v7868_v38, 16  ;;  %4021 = vst [vmem:[#allocation4 + $0x4] sm:$0xf] %v4005_v51  ;;  %8601 = vmatpush3.bf16.msra.mxu0 %v9218_v22  ;;  %v9229_v52 = vld [vmem:[#allocation10 + $0x1c0] sm:$0xff]   ;;  %p9425_p13 = pneg %p9424_p4 }
 0x2b6   : > { %4276 = vst [vmem:[#allocation4 + $0x104] sm:$0xf] %v4156_v43  ;;  %v4388_v19 = vsel %vm10619_vm8, %v7833_v46, %v4387_v27  ;;  %v4396_v53 = vor.u32 %v4394_v31, %v4393_v17  ;;  %v5747_v1 = vshll.u32 %v7869_v0, 16  ;;  %v3798_v5 = vshrl.u32 %v3770_v18, 16  ;;  %4022 = vst [vmem:[#allocation4 + $0x28] sm:$0xf] %v4006_v63  ;;  %8602 = vmatprep.subr.bf16.mxu0 %v9226_v39 }
 0x2b7   : > { %4508 = vst [vmem:[#allocation4 + $0xe4] sm:$0xf] %v4388_v19  ;;  %v5734_v16 = vor.u32 %v5733_v14, %v5730_v42  ;;  %v5743_v29 = vrot.slane %v5741_v48, 4  ;;  %v3803_v11 = vshrl.u32 %v3771_v62, 16  ;;  %v3806_v9 = vshll.u32 %v3771_v62, 16  ;;  %v9203_v63 = vld [vmem:[#allocation10 + $0x130] sm:$0xff]   ;;  %p9432_p0 = pnand %p9431_p9, %p9425_p13 }
 0x2b8   : > { %v4397_v49 = vsel %vm10619_vm8, %v4389_v57, %v4396_v53  ;;  %v5749_v3 = vrot.slane %v5747_v1, 5  ;;  %v3812_v61 = vshrl.u32 %v3772_v4, 16  ;;  %v7822_v47 = vrot.slane %v3798_v5, 11  ;;  %v4049_v30 = vld [vmem:[#allocation2 + $0x44] sm:$0xf] }
 0x2b9   : > { %4509 = vst [vmem:[#allocation4 + $0x108] sm:$0xf] %v4397_v49  ;;  %v5735_v45 = vrot.slane %v5734_v16, 4  ;;  %v5744_v56 = vor.u32 %v5743_v29, %v5739_v36  ;;  %v3805_v10 = vrot.slane %v3803_v11, 7  ;;  %v3815_v24 = vshll.u32 %v3772_v4, 16  ;;  %8603 = vmatpush3.bf16.msra.mxu0 %v9228_v37  ;;  %v9201_v5 = vld [vmem:[#allocation10 + $0x170] sm:$0xff]  }
 0x2ba   : > { %v3814_v33 = vrot.slane %v3812_v61, 7  ;;  %v4050_v55 = vld [vmem:[#allocation2 + $0x48] sm:$0xf]  ;;  %v4051_v6 = vld [vmem:[#allocation2 + $0x4c] sm:$0x1]  ;;  %v4158_v7 = vshrl.u32 %v4049_v30, 16  ;;  %8604 = vmatprep.subr.bf16.mxu0 %v9229_v52 }
 0x2bb   : > { %v5740_v28 = vsel %vm9820_vm5, %v5735_v45, %v5739_v36  ;;  %v5745_v44 = vrot.slane %v5744_v56, 4  ;;  %v3808_v26 = vor.u32 %v3806_v9, %v3805_v10  ;;  %v3810_v12 = vrot.slane %v3805_v10, 4  ;;  %v4298_v38 = vld [vmem:[#allocation2 + $0x50] sm:$0x8]  ;;  %v4299_v8 = vld [vmem:[#allocation2 + $0x54] sm:$0xf] }
 0x2bc   : > { %v4161_v13 = vshll.u32 %v4049_v30, 16  ;;  %v3817_v60 = vor.u32 %v3815_v24, %v3814_v33  ;;  %v4167_v46 = vshll.u32 %v4050_v55, 16  ;;  %v4171_v50 = vshrl.u32 %v4050_v55, 16  ;;  %v4300_v54 = vld [vmem:[#allocation2 + $0x58] sm:$0xf]  ;;  %v9230_v36 = vld [vmem:[#allocation10 + $0x180] sm:$0xff]  }
 0x2bd   : > { %v5750_v59 = vsel %vm9820_vm5, %v5745_v44, %v5749_v3  ;;  %v3809_v40 = vsel %vm10619_vm8, %v7822_v47, %v3808_v26  ;;  %v4160_v41 = vrot.slane %v4158_v7, 4  ;;  %v4177_v34 = vshll.u32 %v4051_v6, 16  ;;  %v9179_v27 = vld [vmem:[#allocation4 + $0xe0] ss:$36 sps:$4 sm:$0xff]   ;;  %8605 = vmatpush3.bf16.msra.mxu0 %v9230_v36  ;;  %v9191_v3 = vld [vmem:[#allocation10 + $0x138] sm:$0xff]   ;;  %v9213_v30 = vld [vmem:[#allocation10 + $0x168] sm:$0xff]  }
 0x2be   : > { %v7877_v35 = vcombine.low %v5740_v28, %v5750_v59  ;;  %v4163_v0 = vrot.slane %v4161_v13, 5  ;;  %v3818_v31 = vsel %vm10619_vm8, %v3810_v12, %v3817_v60  ;;  %3989 = vst [vmem:[#allocation4] sm:$0xf] %v3809_v40  ;;  %v4169_v20 = vrot.slane %v4167_v46, 5  ;;  %v9185_v22 = vld [vmem:[#allocation4 + $0x4] ss:$36 sps:$4 sm:$0xff]  }
 0x2bf   : > { %v4173_v32 = vrot.slane %v4171_v50, 4  ;;  %3990 = vst [vmem:[#allocation4 + $0x24] sm:$0xf] %v3818_v31  ;;  %v4399_v17 = vshrl.u32 %v4298_v38, 16  ;;  %v4179_v23 = vrot.slane %v4177_v34, 5  ;;  %v4404_v43 = vshrl.u32 %v4299_v8, 16 }
 0x2c0   : > { %v9176_v21 = vld [vmem:[#allocation4 + $0xe4] ss:$36 sps:$4 sm:$0xff]   ;;  %8735 = vmatmul.mubr.bf16.gmra.mxu1 %v7877_v35  ;;  %v4164_v57 = vor.u32 %v4163_v0, %v4160_v41  ;;  %v4407_v14 = vshll.u32 %v4299_v8, 16  ;;  %v4413_v53 = vshrl.u32 %v4300_v54, 16  ;;  %v4416_v1 = vshll.u32 %v4300_v54, 16 }
 0x2c1   : > { %v4174_v42 = vor.u32 %v4173_v32, %v4169_v20  ;;  %6897 = vmatprep.mubr.bf16.mxu0 %v9176_v21  ;;  %v7834_v19 = vrot.slane %v4399_v17, 11  ;;  %v4406_v16 = vrot.slane %v4404_v43, 7  ;;  %v3773_v9 = vld [vmem:[#allocation2 + $0x10] sm:$0x8]  ;;  %v3774_v61 = vld [vmem:[#allocation2 + $0x14] sm:$0xf]  ;;  %6776 = vmatprep.mubr.bf16.mxu1 %v9185_v22 }
 0x2c2   : > { %v4165_v48 = vrot.slane %v4164_v57, 4  ;;  %6898 = vmatmul.mubr.bf16.gmra.mxu0 %v9179_v27  ;;  %v4415_v18 = vrot.slane %v4413_v53, 7  ;;  %v3775_v51 = vld [vmem:[#allocation2 + $0x18] sm:$0xf]  ;;  %v3820_v47 = vshrl.u32 %v3773_v9, 16  ;;  %v3825_v10 = vshrl.u32 %v3774_v61, 16 }
 0x2c3   : > { %v4175_v25 = vrot.slane %v4174_v42, 4  ;;  %v4409_v2 = vor.u32 %v4407_v14, %v4406_v16  ;;  %v4411_v49 = vrot.slane %v4406_v16, 4  ;;  %v3828_v24 = vshll.u32 %v3774_v61, 16  ;;  %v4007_v44 = vld [vmem:[#allocation2 + $0x14] sm:$0xf] }
 0x2c4   : > { %v4170_v29 = vsel %vm9820_vm5, %v4165_v48, %v4169_v20  ;;  %v4418_v4 = vor.u32 %v4416_v1, %v4415_v18  ;;  %v3834_v39 = vshrl.u32 %v3775_v51, 16  ;;  %v3837_v28 = vshll.u32 %v3775_v51, 16  ;;  %v4008_v33 = vld [vmem:[#allocation2 + $0x18] sm:$0xf]  ;;  %4023 = vst [vmem:[#allocation4 + $0x4c] sm:$0xf] %v4007_v44 }
 0x2c5   : > { %v4180_v62 = vsel %vm9820_vm5, %v4175_v25, %v4179_v23  ;;  %4277 = vst [vmem:[#allocation4 + $0x128] sm:$0xf] %v4170_v29  ;;  %v4410_v45 = vsel %vm10619_vm8, %v7834_v19, %v4409_v2  ;;  %v7823_v55 = vrot.slane %v3820_v47, 11  ;;  %v3827_v26 = vrot.slane %v3825_v10, 7  ;;  %4024 = vst [vmem:[#allocation4 + $0x70] sm:$0xf] %v4008_v33 }
 0x2c6   : > { %4278 = vst [vmem:[#allocation4 + $0x14c] sm:$0xf] %v4180_v62  ;;  %v9183_v11 = vld [vmem:[#allocation4] ss:$36 sps:$4 sm:$0xff]   ;;  %v4419_v56 = vsel %vm10619_vm8, %v4411_v49, %v4418_v4  ;;  %4510 = vst [vmem:[#allocation4 + $0x12c] sm:$0xf] %v4410_v45 }
 0x2c7   : > { %4511 = vst [vmem:[#allocation4 + $0x150] sm:$0xf] %v4419_v56  ;;  %v4052_v12 = vld [vmem:[#allocation2 + $0x54] sm:$0xf]  ;;  %v4053_v6 = vld [vmem:[#allocation2 + $0x58] sm:$0xf]  ;;  %v3830_v50 = vor.u32 %v3828_v24, %v3827_v26 }
 0x2c8   : > { %6777 = vmatmul.mubr.bf16.vlgmr.msra.gmra.mxu1 %v9183_v11  ;;  %v3836_v7 = vrot.slane %v3834_v39, 7  ;;  %v4054_v13 = vld [vmem:[#allocation2 + $0x5c] sm:$0x1]  ;;  %v4182_v59 = vshrl.u32 %v4052_v12, 16  ;;  %v4185_v60 = vshll.u32 %v4052_v12, 16  ;;  %v4191_v46 = vshll.u32 %v4053_v6, 16 }
 0x2c9   : > { %8527 = vmatpush3.bf16.msra.mxu1 %v9191_v3  ;;  %v3832_v38 = vrot.slane %v3827_v26, 4  ;;  %v4195_v8 = vshrl.u32 %v4053_v6, 16  ;;  %v4201_v35 = vshll.u32 %v4054_v13, 16  ;;  %v4301_v40 = vld [vmem:[#allocation2 + $0x60] sm:$0x8]  ;;  %v9215_v20 = vld [vmem:[#allocation10 + $0x128] sm:$0xff]   ;;  %v3831_v32 = vsel %vm10619_vm8, %v7823_v55, %v3830_v50 }
 0x2ca   : > { %8528 = vmatprep.subr.bf16.mxu1 %v9201_v5  ;;  %v3839_v41 = vor.u32 %v3837_v28, %v3836_v7  ;;  %v4184_v0 = vrot.slane %v4182_v59, 4  ;;  %v4187_v54 = vrot.slane %v4185_v60, 5  ;;  %v4193_v37 = vrot.slane %v4191_v46, 5  ;;  %v4302_v31 = vld [vmem:[#allocation2 + $0x64] sm:$0xf]  ;;  %v9225_v27 = vld [vmem:[#allocation10 + $0x160] sm:$0xff]  }
 0x2cb   : > { %v4197_v34 = vrot.slane %v4195_v8, 4  ;;  %v4303_v52 = vld [vmem:[#allocation2 + $0x68] sm:$0xf]  ;;  %v4421_v21 = vshrl.u32 %v4301_v40, 16  ;;  %3991 = vst [vmem:[#allocation4 + $0x48] sm:$0xf] %v3831_v32 }
 0x2cc   : > { %v3840_v42 = vsel %vm10619_vm8, %v3832_v38, %v3839_v41  ;;  %v4188_v23 = vor.u32 %v4187_v54, %v4184_v0  ;;  %v4426_v43 = vshrl.u32 %v4302_v31, 16  ;;  %v4203_v36 = vrot.slane %v4201_v35, 5  ;;  %v9227_v53 = vld [vmem:[#allocation10 + $0x120] sm:$0xff]   ;;  %v9237_v4 = vld [vmem:[#allocation10 + $0x158] sm:$0xff]   ;;  %v3776_v9 = vld [vmem:[#allocation2 + $0x20] sm:$0x8] }
 0x2cd   : > { %8529 = vmatpush3.bf16.msra.mxu1 %v9203_v63  ;;  %v9188_v17 = vld [vmem:[#allocation4 + $0x128] ss:$36 sps:$4 sm:$0xff]   ;;  %3992 = vst [vmem:[#allocation4 + $0x6c] sm:$0xf] %v3840_v42  ;;  %v4198_v14 = vor.u32 %v4197_v34, %v4193_v37  ;;  %v4429_v48 = vshll.u32 %v4302_v31, 16  ;;  %v4435_v19 = vshrl.u32 %v4303_v52, 16 }
 0x2ce   : > { %v9186_v57 = vld [vmem:[#allocation4 + $0x12c] ss:$36 sps:$4 sm:$0xff]   ;;  %8530 = vmatprep.subr.bf16.mxu1 %v9213_v30  ;;  %v4189_v1 = vrot.slane %v4188_v23, 4  ;;  %v7835_v25 = vrot.slane %v4421_v21, 11  ;;  %v4428_v16 = vrot.slane %v4426_v43, 7  ;;  %v4438_v29 = vshll.u32 %v4303_v52, 16 }
 0x2cf   : > { %6905 = vmatprep.mubr.bf16.mxu0 %v9186_v57  ;;  %v4199_v18 = vrot.slane %v4198_v14, 4  ;;  %v4437_v62 = vrot.slane %v4435_v19, 7  ;;  %v9238_v45 = vld [vmem:[#allocation10 + $0x118] sm:$0xff]   ;;  %v3777_v61 = vld [vmem:[#allocation2 + $0x24] sm:$0xf]  ;;  %v3842_v24 = vshrl.u32 %v3776_v9, 16 }
 0x2d0   : > { %6906 = vmatmul.mubr.bf16.gmra.mxu0 %v9188_v17  ;;  %v4194_v2 = vsel %vm9820_vm5, %v4189_v1, %v4193_v37  ;;  %v4431_v49 = vor.u32 %v4429_v48, %v4428_v16  ;;  %v4433_v3 = vrot.slane %v4428_v16, 4  ;;  %v9244_v51 = vld [vmem:[#allocation10 + $0x150] sm:$0xff]   ;;  %v3778_v63 = vld [vmem:[#allocation2 + $0x28] sm:$0xf]  ;;  %v3847_v39 = vshrl.u32 %v3777_v61, 16  ;;  %v9252_v37 = vld [vmem:[#allocation10 + $0x148] sm:$0xff]  }
 0x2d1   : > { %8531 = vmatpush3.bf16.msra.mxu1 %v9215_v20  ;;  %v4204_v5 = vsel %vm9820_vm5, %v4199_v18, %v4203_v36  ;;  %4279 = vst [vmem:[#allocation4 + $0x170] sm:$0xf] %v4194_v2  ;;  %v4440_v11 = vor.u32 %v4438_v29, %v4437_v62  ;;  %v9195_v47 = vld [vmem:[#allocation4 + $0x4c] ss:$36 sps:$4 sm:$0xff]   ;;  %v3850_v28 = vshll.u32 %v3777_v61, 16  ;;  %v3856_v33 = vshrl.u32 %v3778_v63, 16 }
 0x2d2   : > { %8532 = vmatprep.subr.bf16.mxu1 %v9225_v27  ;;  %4280 = vst [vmem:[#allocation4 + $0x194] sm:$0xf] %v4204_v5  ;;  %v4432_v22 = vsel %vm10619_vm8, %v7835_v25, %v4431_v49  ;;  %v4009_v44 = vld [vmem:[#allocation2 + $0x24] sm:$0xf]  ;;  %6784 = vmatprep.mubr.bf16.mxu1 %v9195_v47  ;;  %v3859_v30 = vshll.u32 %v3778_v63, 16  ;;  %v10726_v12 = vld [vmem:[#allocation10 + $0x238] sm:$0xff]  }
 0x2d3   : > { %v4441_v56 = vsel %vm10619_vm8, %v4433_v3, %v4440_v11  ;;  %4512 = vst [vmem:[#allocation4 + $0x174] sm:$0xf] %v4432_v22  ;;  %v4010_v55 = vld [vmem:[#allocation2 + $0x28] sm:$0xf]  ;;  %4025 = vst [vmem:[#allocation4 + $0x94] sm:$0xf] %v4009_v44  ;;  %8738 = vmatprep.subr.bf16.mxu0 %v10726_v12 }
 0x2d4   : > { %4513 = vst [vmem:[#allocation4 + $0x198] sm:$0xf] %v4441_v56  ;;  %v9199_v10 = vld [vmem:[#allocation4 + $0x48] ss:$36 sps:$4 sm:$0xff]   ;;  %v9246_v26 = vld [vmem:[#allocation10 + $0x110] sm:$0xff]   ;;  %v7824_v6 = vrot.slane %v3842_v24, 11 }
 0x2d5   : > { %8533 = vmatpush3.bf16.msra.mxu1 %v9227_v53  ;;  %v3849_v7 = vrot.slane %v3847_v39, 7  ;;  %4026 = vst [vmem:[#allocation4 + $0xb8] sm:$0xf] %v4010_v55  ;;  %v4055_v13 = vld [vmem:[#allocation2 + $0x64] sm:$0xf]  ;;  %v3858_v60 = vrot.slane %v3856_v33, 7 }
 0x2d6   : > { %8534 = vmatprep.subr.bf16.mxu1 %v9237_v4  ;;  %6785 = vmatmul.mubr.bf16.gmra.mxu1 %v9199_v10  ;;  %v4056_v59 = vld [vmem:[#allocation2 + $0x68] sm:$0xf]  ;;  %v4057_v46 = vld [vmem:[#allocation2 + $0x6c] sm:$0x1]  ;;  %v4206_v50 = vshrl.u32 %v4055_v13, 16  ;;  %v4209_v38 = vshll.u32 %v4055_v13, 16 }
 0x2d7   : > { %v4215_v8 = vshll.u32 %v4056_v59, 16  ;;  %v3852_v35 = vor.u32 %v3850_v28, %v3849_v7  ;;  %v3854_v40 = vrot.slane %v3849_v7, 4  ;;  %v4219_v41 = vshrl.u32 %v4056_v59, 16  ;;  %v4304_v54 = vld [vmem:[#allocation2 + $0x70] sm:$0x8]  ;;  %v9254_v21 = vld [vmem:[#allocation10 + $0x108] sm:$0xff]  }
 0x2d8   : > { %v4225_v0 = vshll.u32 %v4057_v46, 16  ;;  %v3861_v31 = vor.u32 %v3859_v30, %v3858_v60  ;;  %v4208_v20 = vrot.slane %v4206_v50, 4  ;;  %v4211_v32 = vrot.slane %v4209_v38, 5  ;;  %v4305_v52 = vld [vmem:[#allocation2 + $0x74] sm:$0xf] }
 0x2d9   : > { %8535 = vmatpush3.bf16.msra.mxu1 %v9238_v45  ;;  %v4217_v34 = vrot.slane %v4215_v8, 5  ;;  %v9200_v57 = vld [vmem:[#allocation4 + $0x170] ss:$36 sps:$4 sm:$0xff]   ;;  %v3853_v17 = vsel %vm10619_vm8, %v7824_v6, %v3852_v35  ;;  %v4221_v42 = vrot.slane %v4219_v41, 4  ;;  %v4306_v36 = vld [vmem:[#allocation2 + $0x78] sm:$0xf] }
 0x2da   : > { %8536 = vmatprep.subr.bf16.mxu1 %v9244_v51  ;;  %v3862_v23 = vsel %vm10619_vm8, %v3854_v40, %v3861_v31  ;;  %3993 = vst [vmem:[#allocation4 + $0x90] sm:$0xf] %v3853_v17  ;;  %v4212_v43 = vor.u32 %v4211_v32, %v4208_v20  ;;  %v4227_v14 = vrot.slane %v4225_v0, 5  ;;  %v4443_v48 = vshrl.u32 %v4304_v54, 16  ;;  %v9260_v16 = vld [vmem:[#allocation10 + $0x140] sm:$0xff]  }
 0x2db   : > { %v9197_v27 = vld [vmem:[#allocation4 + $0x174] ss:$36 sps:$4 sm:$0xff]   ;;  %3994 = vst [vmem:[#allocation4 + $0xb4] sm:$0xf] %v3862_v23  ;;  %v4222_v19 = vor.u32 %v4221_v42, %v4217_v34  ;;  %v4448_v53 = vshrl.u32 %v4305_v52, 16  ;;  %v4451_v1 = vshll.u32 %v4305_v52, 16 }
 0x2dc   : > { %6913 = vmatprep.mubr.bf16.mxu0 %v9197_v27  ;;  %v4457_v25 = vshrl.u32 %v4306_v36, 16  ;;  %v4213_v29 = vrot.slane %v4212_v43, 4  ;;  %v4460_v18 = vshll.u32 %v4306_v36, 16  ;;  %v9262_v62 = vld [vmem:[#allocation10 + $0x100] sm:$0xff]   ;;  %v7836_v49 = vrot.slane %v4443_v48, 11 }
 0x2dd   : > { %8537 = vmatpush3.bf16.msra.mxu1 %v9246_v26  ;;  %6914 = vmatmul.mubr.bf16.gmra.mxu0 %v9200_v57  ;;  %v4223_v2 = vrot.slane %v4222_v19, 4  ;;  %v4450_v3 = vrot.slane %v4448_v53, 7  ;;  %v3779_v51 = vld [vmem:[#allocation2 + $0x30] sm:$0x8]  ;;  %v3780_v47 = vld [vmem:[#allocation2 + $0x34] sm:$0xf] }
 0x2de   : > { %8538 = vmatprep.subr.bf16.mxu1 %v9252_v37  ;;  %v4459_v4 = vrot.slane %v4457_v25, 7  ;;  %v4218_v5 = vsel %vm9820_vm5, %v4213_v29, %v4217_v34  ;;  %v9207_v10 = vld [vmem:[#allocation4 + $0x94] ss:$36 sps:$4 sm:$0xff]   ;;  %v3864_v63 = vshrl.u32 %v3779_v51, 16  ;;  %v3781_v39 = vld [vmem:[#allocation2 + $0x38] sm:$0xf] }
 0x2df   : > { %v4228_v11 = vsel %vm9820_vm5, %v4223_v2, %v4227_v14  ;;  %4281 = vst [vmem:[#allocation4 + $0x1b8] sm:$0xf] %v4218_v5  ;;  %v4453_v22 = vor.u32 %v4451_v1, %v4450_v3  ;;  %v4455_v45 = vrot.slane %v4450_v3, 4  ;;  %v3869_v28 = vshrl.u32 %v3780_v47, 16  ;;  %v4011_v33 = vld [vmem:[#allocation2 + $0x34] sm:$0xf]  ;;  %6792 = vmatprep.mubr.bf16.mxu1 %v9207_v10 }
 0x2e0   : > { %v4462_v56 = vor.u32 %v4460_v18, %v4459_v4  ;;  %4282 = vst [vmem:[#allocation4 + $0x1dc] sm:$0xf] %v4228_v11  ;;  %v3872_v44 = vshll.u32 %v3780_v47, 16  ;;  %v3878_v30 = vshrl.u32 %v3781_v39, 16  ;;  %v3881_v55 = vshll.u32 %v3781_v39, 16 }
 0x2e1   : > { %8539 = vmatpush3.bf16.msra.mxu1 %v9254_v21  ;;  %v4454_v9 = vsel %vm10619_vm8, %v7836_v49, %v4453_v22  ;;  %v4012_v26 = vld [vmem:[#allocation2 + $0x38] sm:$0xf]  ;;  %4027 = vst [vmem:[#allocation4 + $0xdc] sm:$0xf] %v4011_v33  ;;  %v7825_v6 = vrot.slane %v3864_v63, 11  ;;  %v3871_v7 = vrot.slane %v3869_v28, 7 }
 0x2e2   : > { %8540 = vmatprep.subr.bf16.mxu1 %v9260_v16  ;;  %v4463_v61 = vsel %vm10619_vm8, %v4455_v45, %v4462_v56  ;;  %4514 = vst [vmem:[#allocation4 + $0x1bc] sm:$0xf] %v4454_v9  ;;  %v9211_v24 = vld [vmem:[#allocation4 + $0x90] ss:$36 sps:$4 sm:$0xff]   ;;  %4028 = vst [vmem:[#allocation4 + $0x100] sm:$0xf] %v4012_v26 }
 0x2e3   : > { %4515 = vst [vmem:[#allocation4 + $0x1e0] sm:$0xf] %v4463_v61  ;;  %6793 = vmatmul.mubr.bf16.gmra.mxu1 %v9211_v24  ;;  %v4058_v13 = vld [vmem:[#allocation2 + $0x74] sm:$0xf]  ;;  %v4059_v59 = vld [vmem:[#allocation2 + $0x78] sm:$0xf]  ;;  %v3874_v35 = vor.u32 %v3872_v44, %v3871_v7 }
 0x2e4   : > { %v3880_v60 = vrot.slane %v3878_v30, 7  ;;  %v4060_v46 = vld [vmem:[#allocation2 + $0x7c] sm:$0x1]  ;;  %v4230_v50 = vshrl.u32 %v4058_v13, 16  ;;  %v4233_v38 = vshll.u32 %v4058_v13, 16  ;;  %v4239_v8 = vshll.u32 %v4059_v59, 16 }
 0x2e5   : > { %8541 = vmatpush3.bf16.msra.mxu1 %v9262_v62  ;;  %v3876_v40 = vrot.slane %v3871_v7, 4  ;;  %v4243_v41 = vshrl.u32 %v4059_v59, 16  ;;  %v4249_v0 = vshll.u32 %v4060_v46, 16  ;;  %v4307_v54 = vld [vmem:[#allocation2 + $0x80] sm:$0x8]  ;;  %v3875_v21 = vsel %vm10619_vm8, %v7825_v6, %v3874_v35 }
 0x2e6   : > { %8770 = vmatprep.subr.bf16.mxu1 %v10726_v12  ;;  %v3883_v37 = vor.u32 %v3881_v55, %v3880_v60  ;;  %v4232_v31 = vrot.slane %v4230_v50, 4  ;;  %v4235_v20 = vrot.slane %v4233_v38, 5  ;;  %v4241_v32 = vrot.slane %v4239_v8, 5  ;;  %v4308_v34 = vld [vmem:[#allocation2 + $0x84] sm:$0xf] }
 0x2e7   : > { %v4245_v27 = vrot.slane %v4243_v41, 4  ;;  %v4251_v57 = vrot.slane %v4249_v0, 5  ;;  %v9212_v17 = vld [vmem:[#allocation4 + $0x1b8] ss:$36 sps:$4 sm:$0xff]   ;;  %3995 = vst [vmem:[#allocation4 + $0xd8] sm:$0xf] %v3875_v21 }
 0x2e8   : > { %v3884_v42 = vsel %vm10619_vm8, %v3876_v40, %v3883_v37  ;;  %v4236_v23 = vor.u32 %v4235_v20, %v4232_v31  ;;  %v4309_v43 = vld [vmem:[#allocation2 + $0x88] sm:$0xf]  ;;  %v4465_v14 = vshrl.u32 %v4307_v54, 16  ;;  %v4470_v36 = vshrl.u32 %v4308_v34, 16  ;;  %v3782_v45 = vld [vmem:[#allocation2 + $0x40] sm:$0x8] }
 0x2e9   : > { %3996 = vst [vmem:[#allocation4 + $0xfc] sm:$0xf] %v3884_v42  ;;  %v4246_v48 = vor.u32 %v4245_v27, %v4241_v32  ;;  %v4473_v19 = vshll.u32 %v4308_v34, 16  ;;  %v4479_v53 = vshrl.u32 %v4309_v43, 16  ;;  %v4482_v1 = vshll.u32 %v4309_v43, 16 }
 0x2ea   : > { %v9209_v52 = vld [vmem:[#allocation4 + $0x1bc] ss:$36 sps:$4 sm:$0xff]   ;;  %v4237_v25 = vrot.slane %v4236_v23, 4  ;;  %v7837_v16 = vrot.slane %v4465_v14, 11  ;;  %v4472_v29 = vrot.slane %v4470_v36, 7  ;;  %v3886_v51 = vshrl.u32 %v3782_v45, 16 }
 0x2eb   : > { %6921 = vmatprep.mubr.bf16.mxu0 %v9209_v52  ;;  %v4247_v18 = vrot.slane %v4246_v48, 4  ;;  %v4481_v62 = vrot.slane %v4479_v53, 7  ;;  %v3783_v56 = vld [vmem:[#allocation2 + $0x44] sm:$0xf]  ;;  %v9219_v9 = vld [vmem:[#allocation4 + $0xdc] ss:$36 sps:$4 sm:$0xff]  }
 0x2ec   : > { %6922 = vmatmul.mubr.bf16.gmra.mxu0 %v9212_v17  ;;  %v4242_v2 = vsel %vm9820_vm5, %v4237_v25, %v4241_v32  ;;  %v4475_v49 = vor.u32 %v4473_v19, %v4472_v29  ;;  %v4477_v3 = vrot.slane %v4472_v29, 4  ;;  %v3784_v47 = vld [vmem:[#allocation2 + $0x48] sm:$0xf]  ;;  %v3891_v10 = vshrl.u32 %v3783_v56, 16  ;;  %v4013_v63 = vld [vmem:[#allocation2 + $0x44] sm:$0xf]  ;;  %6800 = vmatprep.mubr.bf16.mxu1 %v9219_v9 }
 0x2ed   : > { %v4252_v4 = vsel %vm9820_vm5, %v4247_v18, %v4251_v57  ;;  %4283 = vst [vmem:[#allocation4 + $0x200] sm:$0xf] %v4242_v2  ;;  %v4484_v5 = vor.u32 %v4482_v1, %v4481_v62  ;;  %v3894_v24 = vshll.u32 %v3783_v56, 16  ;;  %v3900_v39 = vshrl.u32 %v3784_v47, 16  ;;  %v4014_v44 = vld [vmem:[#allocation2 + $0x48] sm:$0xf] }
 0x2ee   : > { %4284 = vst [vmem:[#allocation4 + $0x224] sm:$0xf] %v4252_v4  ;;  %v4476_v11 = vsel %vm10619_vm8, %v7837_v16, %v4475_v49  ;;  %v3903_v28 = vshll.u32 %v3784_v47, 16  ;;  %4029 = vst [vmem:[#allocation4 + $0x124] sm:$0xf] %v4013_v63  ;;  %v7826_v33 = vrot.slane %v3886_v51, 11 }
 0x2ef   : > { %v4485_v22 = vsel %vm10619_vm8, %v4477_v3, %v4484_v5  ;;  %4516 = vst [vmem:[#allocation4 + $0x204] sm:$0xf] %v4476_v11  ;;  %v3893_v30 = vrot.slane %v3891_v10, 7  ;;  %4030 = vst [vmem:[#allocation4 + $0x148] sm:$0xf] %v4014_v44  ;;  %v3902_v6 = vrot.slane %v3900_v39, 7 }
 0x2f0   : > { %4517 = vst [vmem:[#allocation4 + $0x228] sm:$0xf] %v4485_v22  ;;  %v9223_v61 = vld [vmem:[#allocation4 + $0xd8] ss:$36 sps:$4 sm:$0xff]   ;;  %v4799_v55 = vld [vmem:[#allocation2 + $0x20] sm:$0x8] }
 0x2f1   : > { %6801 = vmatmul.mubr.bf16.gmra.mxu1 %v9223_v61  ;;  %v4800_v26 = vld [vmem:[#allocation2 + $0x24] sm:$0xf]  ;;  %v4801_v7 = vld [vmem:[#allocation2 + $0x28] sm:$0xf]  ;;  %v4824_v13 = vshrl.u32 %v4799_v55, 16  ;;  %v3896_v46 = vor.u32 %v3894_v24, %v3893_v30  ;;  %v3898_v50 = vrot.slane %v3893_v30, 4  ;;  %v3905_v40 = vor.u32 %v3903_v28, %v3902_v6 }
 0x2f2   : > { %v4829_v59 = vshrl.u32 %v4800_v26, 16  ;;  %v4832_v60 = vshll.u32 %v4800_v26, 16  ;;  %v4838_v38 = vshrl.u32 %v4801_v7, 16  ;;  %v4841_v8 = vshll.u32 %v4801_v7, 16  ;;  %v5031_v35 = vld [vmem:[#allocation2 + $0x24] sm:$0xf] }
 0x2f3   : > { %v7838_v41 = vrot.slane %v4824_v13, 11  ;;  %v5032_v54 = vld [vmem:[#allocation2 + $0x28] sm:$0xf]  ;;  %5047 = vst [vmem:[#allocation4 + $0x1c] sm:$0xf] %v5031_v35  ;;  %v3897_v20 = vsel %vm10619_vm8, %v7826_v33, %v3896_v46  ;;  %v3906_v34 = vsel %vm10619_vm8, %v3898_v50, %v3905_v40  ;;  %v10766_v33 = vld [vmem:[#allocation10 + $0x230] sm:$0xff]  }
 0x2f4   : > { %v4831_v0 = vrot.slane %v4829_v59, 7  ;;  %v4840_v32 = vrot.slane %v4838_v38, 7  ;;  %5048 = vst [vmem:[#allocation4 + $0x40] sm:$0xf] %v5032_v54  ;;  %3997 = vst [vmem:[#allocation4 + $0x120] sm:$0xf] %v3897_v20 }
 0x2f5   : > { %v9224_v31 = vld [vmem:[#allocation4 + $0x200] ss:$36 sps:$4 sm:$0xff]   ;;  %3998 = vst [vmem:[#allocation4 + $0x144] sm:$0xf] %v3906_v34  ;;  %v3787_v23 = vld [vmem:[#allocation2 + $0x58] sm:$0xf] }
 0x2f6   : > { %v4834_v52 = vor.u32 %v4832_v60, %v4831_v0  ;;  %v4836_v21 = vrot.slane %v4831_v0, 4  ;;  %v4843_v27 = vor.u32 %v4841_v8, %v4840_v32  ;;  %v3785_v57 = vld [vmem:[#allocation2 + $0x50] sm:$0x8]  ;;  %v3786_v42 = vld [vmem:[#allocation2 + $0x54] sm:$0xf]  ;;  %v3922_v19 = vshrl.u32 %v3787_v23, 16 }
 0x2f7   : > { %v9221_v37 = vld [vmem:[#allocation4 + $0x204] ss:$36 sps:$4 sm:$0xff]   ;;  %v3908_v43 = vshrl.u32 %v3785_v57, 16  ;;  %v3913_v36 = vshrl.u32 %v3786_v42, 16  ;;  %v3916_v48 = vshll.u32 %v3786_v42, 16  ;;  %v3925_v25 = vshll.u32 %v3787_v23, 16 }
 0x2f8   : > { %6929 = vmatprep.mubr.bf16.mxu0 %v9221_v37  ;;  %v4835_v17 = vsel %vm10619_vm8, %v7838_v41, %v4834_v52  ;;  %v4844_v14 = vsel %vm10619_vm8, %v4836_v21, %v4843_v27  ;;  %v4015_v53 = vld [vmem:[#allocation2 + $0x54] sm:$0xf]  ;;  %v4016_v16 = vld [vmem:[#allocation2 + $0x58] sm:$0xf]  ;;  %v4802_v29 = vld [vmem:[#allocation2 + $0x30] sm:$0x8] }
 0x2f9   : > { %6930 = vmatmul.mubr.bf16.gmra.mxu0 %v9224_v31  ;;  %5015 = vst [vmem:[#allocation4 + $0x18] sm:$0xf] %v4835_v17  ;;  %5016 = vst [vmem:[#allocation4 + $0x3c] sm:$0xf] %v4844_v14  ;;  %v7827_v1 = vrot.slane %v3908_v43, 11  ;;  %v3915_v18 = vrot.slane %v3913_v36, 7 }
 0x2fa   : > { %4031 = vst [vmem:[#allocation4 + $0x16c] sm:$0xf] %v4015_v53  ;;  %v3924_v62 = vrot.slane %v3922_v19, 7  ;;  %4032 = vst [vmem:[#allocation4 + $0x190] sm:$0xf] %v4016_v16  ;;  %v4846_v3 = vshrl.u32 %v4802_v29, 16 }
 0x2fb   : > { %v4803_v2 = vld [vmem:[#allocation2 + $0x34] sm:$0xf]  ;;  %v4804_v49 = vld [vmem:[#allocation2 + $0x38] sm:$0xf]  ;;  %v3918_v45 = vor.u32 %v3916_v48, %v3915_v18  ;;  %v3920_v56 = vrot.slane %v3915_v18, 4 }
 0x2fc   : > { %v4851_v4 = vshrl.u32 %v4803_v2, 16  ;;  %v4854_v5 = vshll.u32 %v4803_v2, 16  ;;  %v4860_v11 = vshrl.u32 %v4804_v49, 16  ;;  %v5033_v22 = vld [vmem:[#allocation2 + $0x34] sm:$0xf]  ;;  %v3927_v9 = vor.u32 %v3925_v25, %v3924_v62  ;;  %v10772_v31 = vld [vmem:[#allocation10 + $0x228] sm:$0xff]  }
 0x2fd   : > { %v4863_v61 = vshll.u32 %v4804_v49, 16  ;;  %v5034_v51 = vld [vmem:[#allocation2 + $0x38] sm:$0xf]  ;;  %5049 = vst [vmem:[#allocation4 + $0x64] sm:$0xf] %v5033_v22  ;;  %v7839_v24 = vrot.slane %v4846_v3, 11  ;;  %v3919_v63 = vsel %vm10619_vm8, %v7827_v1, %v3918_v45 }
 0x2fe   : > { %v9231_v47 = vld [vmem:[#allocation4 + $0x124] ss:$36 sps:$4 sm:$0xff]   ;;  %5050 = vst [vmem:[#allocation4 + $0x88] sm:$0xf] %v5034_v51  ;;  %v3928_v39 = vsel %vm10619_vm8, %v3920_v56, %v3927_v9  ;;  %v4853_v28 = vrot.slane %v4851_v4, 7  ;;  %v4862_v44 = vrot.slane %v4860_v11, 7 }
 0x2ff   : > { %v9236_v10 = vld [vmem:[#allocation4 + $0x120] ss:$36 sps:$4 sm:$0xff]   ;;  %6808 = vmatprep.mubr.bf16.mxu1 %v9231_v47  ;;  %3999 = vst [vmem:[#allocation4 + $0x168] sm:$0xf] %v3919_v63  ;;  %4000 = vst [vmem:[#allocation4 + $0x18c] sm:$0xf] %v3928_v39 }
 0x300   : > { %v9233_v30 = vld [vmem:[#allocation4 + $0x18] ss:$36 sps:$4 sm:$0xff]   ;;  %6809 = vmatmul.mubr.bf16.gmra.mxu1 %v9236_v10  ;;  %v4856_v26 = vor.u32 %v4854_v5, %v4853_v28  ;;  %v4858_v6 = vrot.slane %v4853_v28, 4  ;;  %v4865_v7 = vor.u32 %v4863_v61, %v4862_v44  ;;  %v3788_v13 = vld [vmem:[#allocation2 + $0x60] sm:$0x8]  ;;  %v10782_v49 = vld [vmem:[#allocation10 + $0x220] sm:$0xff]  }
 0x301   : > { %v9235_v55 = vld [vmem:[#allocation4 + $0x1c] ss:$36 sps:$4 sm:$0xff]   ;;  %v3789_v59 = vld [vmem:[#allocation2 + $0x64] sm:$0xf]  ;;  %v3790_v60 = vld [vmem:[#allocation2 + $0x68] sm:$0xf] }
 0x302   : > { %7067 = vmatprep.mubr.bf16.mxu0 %v9235_v55  ;;  %v4857_v46 = vsel %vm10619_vm8, %v7839_v24, %v4856_v26  ;;  %v4866_v50 = vsel %vm10619_vm8, %v4858_v6, %v4865_v7  ;;  %v3930_v38 = vshrl.u32 %v3788_v13, 16  ;;  %v3935_v8 = vshrl.u32 %v3789_v59, 16  ;;  %v4017_v35 = vld [vmem:[#allocation2 + $0x64] sm:$0xf]  ;;  %v4018_v40 = vld [vmem:[#allocation2 + $0x68] sm:$0xf] }
 0x303   : > { %7068 = vmatmul.mubr.bf16.vlgmr.msra.gmra.mxu0 %v9233_v30  ;;  %5017 = vst [vmem:[#allocation4 + $0x60] sm:$0xf] %v4857_v46  ;;  %5018 = vst [vmem:[#allocation4 + $0x84] sm:$0xf] %v4866_v50  ;;  %v3938_v41 = vshll.u32 %v3789_v59, 16  ;;  %v3944_v0 = vshrl.u32 %v3790_v60, 16 }
 0x304   : > { %v3947_v54 = vshll.u32 %v3790_v60, 16  ;;  %4033 = vst [vmem:[#allocation4 + $0x1b4] sm:$0xf] %v4017_v35  ;;  %4034 = vst [vmem:[#allocation4 + $0x1d8] sm:$0xf] %v4018_v40  ;;  %v7828_v20 = vrot.slane %v3930_v38, 11  ;;  %8739 = vmatpush3.bf16.msra.mxu0 %v10726_v12 }
 0x305   : > { %v4805_v37 = vld [vmem:[#allocation2 + $0x40] sm:$0x8]  ;;  %v3937_v32 = vrot.slane %v3935_v8, 7  ;;  %v4806_v34 = vld [vmem:[#allocation2 + $0x44] sm:$0xf]  ;;  %v3946_v21 = vrot.slane %v3944_v0, 7  ;;  %8740 = vmatprep.subr.bf16.mxu0 %v10766_v33 }
 0x306   : > { %v4807_v52 = vld [vmem:[#allocation2 + $0x48] sm:$0xf]  ;;  %v4868_v27 = vshrl.u32 %v4805_v37, 16  ;;  %v4873_v57 = vshrl.u32 %v4806_v34, 16  ;;  %v4876_v17 = vshll.u32 %v4806_v34, 16  ;;  %v10793_v50 = vld [vmem:[#allocation10 + $0x210] sm:$0xff]  }
 0x307   : > { %v5035_v42 = vld [vmem:[#allocation2 + $0x44] sm:$0xf]  ;;  %v9239_v23 = vld [vmem:[#allocation4 + $0x16c] ss:$36 sps:$4 sm:$0xff]   ;;  %v3940_v43 = vor.u32 %v3938_v41, %v3937_v32  ;;  %v3942_v14 = vrot.slane %v3937_v32, 4  ;;  %v4882_v36 = vshrl.u32 %v4807_v52, 16  ;;  %v3949_v19 = vor.u32 %v3947_v54, %v3946_v21 }
 0x308   : > { %5051 = vst [vmem:[#allocation4 + $0xac] sm:$0xf] %v5035_v42  ;;  %v9243_v48 = vld [vmem:[#allocation4 + $0x168] ss:$36 sps:$4 sm:$0xff]   ;;  %v7840_v53 = vrot.slane %v4868_v27, 11  ;;  %v4875_v1 = vrot.slane %v4873_v57, 7  ;;  %6816 = vmatprep.mubr.bf16.mxu1 %v9239_v23  ;;  %8741 = vmatpush3.bf16.msra.mxu0 %v10766_v33 }
 0x309   : > { %v4885_v25 = vshll.u32 %v4807_v52, 16  ;;  %v3941_v12 = vsel %vm10619_vm8, %v7828_v20, %v3940_v43  ;;  %v4884_v16 = vrot.slane %v4882_v36, 7  ;;  %v5036_v29 = vld [vmem:[#allocation2 + $0x48] sm:$0xf]  ;;  %6817 = vmatmul.mubr.bf16.gmra.mxu1 %v9243_v48  ;;  %v3950_v18 = vsel %vm10619_vm8, %v3942_v14, %v3949_v19  ;;  %8742 = vmatprep.subr.bf16.mxu0 %v10772_v31  ;;  %v9241_v3 = vld [vmem:[#allocation4 + $0x64] ss:$36 sps:$4 sm:$0xff]  }
 0x30a   : > { %4001 = vst [vmem:[#allocation4 + $0x1b0] sm:$0xf] %v3941_v12  ;;  %v4878_v62 = vor.u32 %v4876_v17, %v4875_v1  ;;  %v4880_v2 = vrot.slane %v4875_v1, 4  ;;  %5052 = vst [vmem:[#allocation4 + $0xd0] sm:$0xf] %v5036_v29  ;;  %7075 = vmatprep.mubr.bf16.mxu0 %v9241_v3  ;;  %v10789_v51 = vld [vmem:[#allocation10 + $0x218] sm:$0xff]  }
 0x30b   : > { %4002 = vst [vmem:[#allocation4 + $0x1d4] sm:$0xf] %v3950_v18  ;;  %v4887_v4 = vor.u32 %v4885_v25, %v4884_v16  ;;  %v9245_v5 = vld [vmem:[#allocation4 + $0x60] ss:$36 sps:$4 sm:$0xff]   ;;  %v3793_v9 = vld [vmem:[#allocation2 + $0x78] sm:$0xf] }
 0x30c   : > { %v4879_v11 = vsel %vm10619_vm8, %v7840_v53, %v4878_v62  ;;  %v3791_v22 = vld [vmem:[#allocation2 + $0x70] sm:$0x8]  ;;  %v3792_v56 = vld [vmem:[#allocation2 + $0x74] sm:$0xf]  ;;  %8743 = vmatpush3.bf16.msra.mxu0 %v10772_v31  ;;  %v3966_v24 = vshrl.u32 %v3793_v9, 16  ;;  %v3969_v63 = vshll.u32 %v3793_v9, 16 }
 0x30d   : > { %v4888_v45 = vsel %vm10619_vm8, %v4880_v2, %v4887_v4  ;;  %5019 = vst [vmem:[#allocation4 + $0xa8] sm:$0xf] %v4879_v11  ;;  %v3952_v61 = vshrl.u32 %v3791_v22, 16  ;;  %7076 = vmatmul.mubr.bf16.gmra.mxu0 %v9245_v5  ;;  %v3957_v47 = vshrl.u32 %v3792_v56, 16  ;;  %v3960_v10 = vshll.u32 %v3792_v56, 16  ;;  %8744 = vmatprep.subr.bf16.mxu0 %v10782_v49  ;;  %v10800_v27 = vld [vmem:[#allocation10 + $0x208] sm:$0xff]  }
 0x30e   : > { %5020 = vst [vmem:[#allocation4 + $0xcc] sm:$0xf] %v4888_v45  ;;  %v4019_v39 = vld [vmem:[#allocation2 + $0x74] sm:$0xf]  ;;  %v4020_v44 = vld [vmem:[#allocation2 + $0x78] sm:$0xf] }
 0x30f   : > { %v7829_v28 = vrot.slane %v3952_v61, 11  ;;  %4035 = vst [vmem:[#allocation4 + $0x1fc] sm:$0xf] %v4019_v39  ;;  %v4808_v30 = vld [vmem:[#allocation2 + $0x50] sm:$0x8]  ;;  %v3959_v55 = vrot.slane %v3957_v47, 7 }
 0x310   : > { %v3968_v26 = vrot.slane %v3966_v24, 7  ;;  %4036 = vst [vmem:[#allocation4 + $0x220] sm:$0xf] %v4020_v44  ;;  %v4809_v6 = vld [vmem:[#allocation2 + $0x54] sm:$0xf]  ;;  %v4890_v13 = vshrl.u32 %v4808_v30, 16  ;;  %8745 = vmatpush3.bf16.msra.mxu0 %v10782_v49 }
 0x311   : > { %v4810_v7 = vld [vmem:[#allocation2 + $0x58] sm:$0xf]  ;;  %v4895_v59 = vshrl.u32 %v4809_v6, 16  ;;  %v4898_v60 = vshll.u32 %v4809_v6, 16  ;;  %v9247_v38 = vld [vmem:[#allocation4 + $0x1b4] ss:$36 sps:$4 sm:$0xff]   ;;  %v3962_v35 = vor.u32 %v3960_v10, %v3959_v55  ;;  %8746 = vmatprep.subr.bf16.mxu0 %v10789_v51 }
 0x312   : > { %v4904_v46 = vshrl.u32 %v4810_v7, 16  ;;  %v9251_v8 = vld [vmem:[#allocation4 + $0x1b0] ss:$36 sps:$4 sm:$0xff]   ;;  %v3964_v40 = vrot.slane %v3959_v55, 4  ;;  %v3971_v41 = vor.u32 %v3969_v63, %v3968_v26  ;;  %v7841_v0 = vrot.slane %v4890_v13, 11  ;;  %6824 = vmatprep.mubr.bf16.mxu1 %v9247_v38  ;;  %v10809_v3 = vld [vmem:[#allocation10 + $0x200] sm:$0xff]  }
 0x313   : > { %v4897_v54 = vrot.slane %v4895_v59, 7  ;;  %v4907_v20 = vshll.u32 %v4810_v7, 16  ;;  %v5037_v32 = vld [vmem:[#allocation2 + $0x54] sm:$0xf]  ;;  %v3963_v34 = vsel %vm10619_vm8, %v7829_v28, %v3962_v35  ;;  %v5038_v21 = vld [vmem:[#allocation2 + $0x58] sm:$0xf]  ;;  %6825 = vmatmul.mubr.bf16.gmra.mxu1 %v9251_v8 }
 0x314   : > { %v4906_v37 = vrot.slane %v4904_v46, 7  ;;  %v3972_v52 = vsel %vm10619_vm8, %v3964_v40, %v3971_v41  ;;  %5053 = vst [vmem:[#allocation4 + $0xf4] sm:$0xf] %v5037_v32  ;;  %v9249_v57 = vld [vmem:[#allocation4 + $0xac] ss:$36 sps:$4 sm:$0xff]   ;;  %8747 = vmatpush3.bf16.msra.mxu0 %v10789_v51 }
 0x315   : > { %v9253_v17 = vld [vmem:[#allocation4 + $0xa8] ss:$36 sps:$4 sm:$0xff]   ;;  %4003 = vst [vmem:[#allocation4 + $0x1f8] sm:$0xf] %v3963_v34  ;;  %4004 = vst [vmem:[#allocation4 + $0x21c] sm:$0xf] %v3972_v52  ;;  %v4900_v42 = vor.u32 %v4898_v60, %v4897_v54  ;;  %8748 = vmatprep.subr.bf16.mxu0 %v10793_v50  ;;  %7083 = vmatprep.mubr.bf16.mxu0 %v9249_v57 }
 0x316   : > { %v4902_v23 = vrot.slane %v4897_v54, 4  ;;  %v4909_v43 = vor.u32 %v4907_v20, %v4906_v37  ;;  %5054 = vst [vmem:[#allocation4 + $0x118] sm:$0xf] %v5038_v21  ;;  %v4518_v48 = vld [vmem:[#allocation2 + $0x14] sm:$0xf]  ;;  %7084 = vmatmul.mubr.bf16.gmra.mxu0 %v9253_v17 }
 0x317   : > { %v4901_v14 = vsel %vm10619_vm8, %v7841_v0, %v4900_v42  ;;  %v4519_v19 = vld [vmem:[#allocation2 + $0x18] sm:$0xf]  ;;  %v4550_v53 = vld [vmem:[#allocation2 + $0x14] sm:$0xf]  ;;  %4534 = vst [vmem:[#allocation4 + $0x10] sm:$0xf] %v4518_v48 }
 0x318   : > { %v4910_v36 = vsel %vm10619_vm8, %v4902_v23, %v4909_v43  ;;  %5021 = vst [vmem:[#allocation4 + $0xf0] sm:$0xf] %v4901_v14  ;;  %4535 = vst [vmem:[#allocation4 + $0x34] sm:$0xf] %v4519_v19  ;;  %v4551_v1 = vld [vmem:[#allocation2 + $0x18] sm:$0xf]  ;;  %8749 = vmatpush3.bf16.msra.mxu0 %v10793_v50 }
 0x319   : > { %5022 = vst [vmem:[#allocation4 + $0x114] sm:$0xf] %v4910_v36  ;;  %v4552_v25 = vld [vmem:[#allocation2 + $0x1c] sm:$0x1]  ;;  %v4575_v12 = vshrl.u32 %v4550_v53, 16  ;;  %v4578_v16 = vshll.u32 %v4550_v53, 16  ;;  %8750 = vmatprep.subr.bf16.mxu0 %v10800_v27 }
 0x31a   : > { %v4584_v29 = vshll.u32 %v4551_v1, 16  ;;  %v4588_v18 = vshrl.u32 %v4551_v1, 16  ;;  %v4594_v62 = vshll.u32 %v4552_v25, 16  ;;  %v4811_v2 = vld [vmem:[#allocation2 + $0x60] sm:$0x8] }
 0x31b   : > { %v4577_v4 = vrot.slane %v4575_v12, 4  ;;  %v4580_v5 = vrot.slane %v4578_v16, 5  ;;  %v4812_v11 = vld [vmem:[#allocation2 + $0x64] sm:$0xf]  ;;  %v4813_v22 = vld [vmem:[#allocation2 + $0x68] sm:$0xf] }
 0x31c   : > { %v4586_v45 = vrot.slane %v4584_v29, 5  ;;  %v4590_v56 = vrot.slane %v4588_v18, 4  ;;  %v4596_v9 = vrot.slane %v4594_v62, 5  ;;  %v4912_v61 = vshrl.u32 %v4811_v2, 16  ;;  %v5039_v47 = vld [vmem:[#allocation2 + $0x64] sm:$0xf]  ;;  %8751 = vmatpush3.bf16.msra.mxu0 %v10800_v27 }
 0x31d   : > { %v9255_v10 = vld [vmem:[#allocation4 + $0x1fc] ss:$36 sps:$4 sm:$0xff]   ;;  %v4581_v24 = vor.u32 %v4580_v5, %v4577_v4  ;;  %v4917_v63 = vshrl.u32 %v4812_v11, 16  ;;  %v4920_v39 = vshll.u32 %v4812_v11, 16  ;;  %5055 = vst [vmem:[#allocation4 + $0x13c] sm:$0xf] %v5039_v47  ;;  %8752 = vmatprep.subr.bf16.mxu0 %v10809_v3 }
 0x31e   : > { %v9259_v28 = vld [vmem:[#allocation4 + $0x1f8] ss:$36 sps:$4 sm:$0xff]   ;;  %v4591_v44 = vor.u32 %v4590_v56, %v4586_v45  ;;  %v7842_v30 = vrot.slane %v4912_v61, 11  ;;  %v4926_v55 = vshrl.u32 %v4813_v22, 16  ;;  %v4929_v26 = vshll.u32 %v4813_v22, 16  ;;  %6832 = vmatprep.mubr.bf16.mxu1 %v9255_v10 }
 0x31f   : > { %v4582_v6 = vrot.slane %v4581_v24, 4  ;;  %v4919_v7 = vrot.slane %v4917_v63, 7  ;;  %v5040_v13 = vld [vmem:[#allocation2 + $0x68] sm:$0xf]  ;;  %6833 = vmatmul.mubr.bf16.gmra.mxu1 %v9259_v28  ;;  %v4520_v54 = vld [vmem:[#allocation2 + $0x24] sm:$0xf] }
 0x320   : > { %v9257_v59 = vld [vmem:[#allocation4 + $0xf4] ss:$36 sps:$4 sm:$0xff]   ;;  %v4592_v60 = vrot.slane %v4591_v44, 4  ;;  %v4928_v46 = vrot.slane %v4926_v55, 7  ;;  %5056 = vst [vmem:[#allocation4 + $0x160] sm:$0xf] %v5040_v13  ;;  %8753 = vmatpush3.bf16.msra.mxu0 %v10809_v3 }
 0x321   : > { %v9261_v38 = vld [vmem:[#allocation4 + $0xf0] ss:$36 sps:$4 sm:$0xff]   ;;  %v4587_v8 = vsel %vm9820_vm5, %v4582_v6, %v4586_v45  ;;  %v4922_v35 = vor.u32 %v4920_v39, %v4919_v7  ;;  %v4924_v40 = vrot.slane %v4919_v7, 4  ;;  %7091 = vmatprep.mubr.bf16.mxu0 %v9257_v59  ;;  %v4521_v20 = vld [vmem:[#allocation2 + $0x28] sm:$0xf] }
 0x322   : > { %v4597_v41 = vsel %vm9820_vm5, %v4592_v60, %v4596_v9  ;;  %4782 = vst [vmem:[#allocation4 + $0x14] sm:$0xf] %v4587_v8  ;;  %v4931_v0 = vor.u32 %v4929_v26, %v4928_v46  ;;  %7092 = vmatmul.mubr.bf16.gmra.mxu0 %v9261_v38  ;;  %4536 = vst [vmem:[#allocation4 + $0x58] sm:$0xf] %v4520_v54  ;;  %v4553_v32 = vld [vmem:[#allocation2 + $0x24] sm:$0xf] }
 0x323   : > { %4783 = vst [vmem:[#allocation4 + $0x38] sm:$0xf] %v4597_v41  ;;  %v4923_v37 = vsel %vm10619_vm8, %v7842_v30, %v4922_v35  ;;  %v4554_v34 = vld [vmem:[#allocation2 + $0x28] sm:$0xf]  ;;  %4537 = vst [vmem:[#allocation4 + $0x7c] sm:$0xf] %v4521_v20 }
 0x324   : > { %v4932_v52 = vsel %vm10619_vm8, %v4924_v40, %v4931_v0  ;;  %5023 = vst [vmem:[#allocation4 + $0x138] sm:$0xf] %v4923_v37  ;;  %v4555_v21 = vld [vmem:[#allocation2 + $0x2c] sm:$0x1]  ;;  %v4599_v57 = vshrl.u32 %v4553_v32, 16  ;;  %v4602_v17 = vshll.u32 %v4553_v32, 16 }
 0x325   : > { %v4608_v42 = vshll.u32 %v4554_v34, 16  ;;  %5024 = vst [vmem:[#allocation4 + $0x15c] sm:$0xf] %v4932_v52  ;;  %v4612_v23 = vshrl.u32 %v4554_v34, 16  ;;  %v4618_v43 = vshll.u32 %v4555_v21, 16  ;;  %v9315_v59 = vld [vmem:[#allocation10 + $0x238] sm:$0xff]  }
 0x326   : > { %v4814_v14 = vld [vmem:[#allocation2 + $0x70] sm:$0x8]  ;;  %v4815_v36 = vld [vmem:[#allocation2 + $0x74] sm:$0xf]  ;;  %v4601_v48 = vrot.slane %v4599_v57, 4  ;;  %v4604_v19 = vrot.slane %v4602_v17, 5 }
 0x327   : > { %v4610_v53 = vrot.slane %v4608_v42, 5  ;;  %v4816_v1 = vld [vmem:[#allocation2 + $0x78] sm:$0xf]  ;;  %v4934_v25 = vshrl.u32 %v4814_v14, 16  ;;  %v4614_v12 = vrot.slane %v4612_v23, 4  ;;  %v4620_v16 = vrot.slane %v4618_v43, 5 }
 0x328   : > { %v4939_v29 = vshrl.u32 %v4815_v36, 16  ;;  %v4942_v18 = vshll.u32 %v4815_v36, 16  ;;  %v5041_v62 = vld [vmem:[#allocation2 + $0x74] sm:$0xf]  ;;  %v4605_v2 = vor.u32 %v4604_v19, %v4601_v48  ;;  %v4948_v5 = vshrl.u32 %v4816_v1, 16 }
 0x329   : > { %v7843_v4 = vrot.slane %v4934_v25, 11  ;;  %v4951_v11 = vshll.u32 %v4816_v1, 16  ;;  %v5042_v22 = vld [vmem:[#allocation2 + $0x78] sm:$0xf]  ;;  %5057 = vst [vmem:[#allocation4 + $0x184] sm:$0xf] %v5041_v62  ;;  %v4615_v45 = vor.u32 %v4614_v12, %v4610_v53 }
 0x32a   : > { %v4941_v56 = vrot.slane %v4939_v29, 7  ;;  %5058 = vst [vmem:[#allocation4 + $0x1a8] sm:$0xf] %v5042_v22  ;;  %v9263_v9 = vld [vmem:[#allocation4 + $0x10] ss:$36 sps:$4 sm:$0xff]   ;;  %v4606_v47 = vrot.slane %v4605_v2, 4 }
 0x32b   : > { %v9265_v61 = vld [vmem:[#allocation4 + $0x14] ss:$36 sps:$4 sm:$0xff]   ;;  %v4616_v10 = vrot.slane %v4615_v45, 4  ;;  %v4950_v39 = vrot.slane %v4948_v5, 7  ;;  %v9266_v28 = vld [vmem:[#allocation4 + $0x13c] ss:$36 sps:$4 sm:$0xff]  }
 0x32c   : > { %v4944_v24 = vor.u32 %v4942_v18, %v4941_v56  ;;  %v4946_v63 = vrot.slane %v4941_v56, 4  ;;  %6970 = vmatprep.mubr.bf16.mxu1 %v9265_v61  ;;  %v9268_v44 = vld [vmem:[#allocation4 + $0x138] ss:$36 sps:$4 sm:$0xff]   ;;  %v4611_v30 = vsel %vm9820_vm5, %v4606_v47, %v4610_v53  ;;  %v4522_v7 = vld [vmem:[#allocation2 + $0x34] sm:$0xf]  ;;  %7099 = vmatprep.mubr.bf16.mxu0 %v9266_v28 }
 0x32d   : > { %6971 = vmatmul.mubr.bf16.vlgmr.msra.gmra.mxu1 %v9263_v9  ;;  %v4621_v55 = vsel %vm9820_vm5, %v4616_v10, %v4620_v16  ;;  %4784 = vst [vmem:[#allocation4 + $0x5c] sm:$0xf] %v4611_v30  ;;  %v4953_v6 = vor.u32 %v4951_v11, %v4950_v39  ;;  %v4523_v13 = vld [vmem:[#allocation2 + $0x38] sm:$0xf]  ;;  %4538 = vst [vmem:[#allocation4 + $0xa0] sm:$0xf] %v4522_v7  ;;  %7100 = vmatmul.mubr.bf16.gmra.mxu0 %v9268_v44 }
 0x32e   : > { %v4945_v26 = vsel %vm10619_vm8, %v7843_v4, %v4944_v24  ;;  %8778 = vmatpush3.bf16.msra.mxu1 %v9315_v59  ;;  %4785 = vst [vmem:[#allocation4 + $0x80] sm:$0xf] %v4621_v55  ;;  %4539 = vst [vmem:[#allocation4 + $0xc4] sm:$0xf] %v4523_v13  ;;  %v4556_v60 = vld [vmem:[#allocation2 + $0x34] sm:$0xf] }
 0x32f   : > { %5025 = vst [vmem:[#allocation4 + $0x180] sm:$0xf] %v4945_v26  ;;  %v4557_v46 = vld [vmem:[#allocation2 + $0x38] sm:$0xf]  ;;  %v4558_v38 = vld [vmem:[#allocation2 + $0x3c] sm:$0x1]  ;;  %v4954_v8 = vsel %vm10619_vm8, %v4946_v63, %v4953_v6  ;;  %8771 = vmatprep.subr.bf16.mxu1 %v10766_v33 }
 0x330   : > { %v4623_v35 = vshrl.u32 %v4556_v60, 16  ;;  %v4626_v40 = vshll.u32 %v4556_v60, 16  ;;  %v4632_v41 = vshll.u32 %v4557_v46, 16  ;;  %v4817_v0 = vld [vmem:[#allocation2 + $0x80] sm:$0x8]  ;;  %v4636_v54 = vshrl.u32 %v4557_v46, 16 }
 0x331   : > { %5026 = vst [vmem:[#allocation4 + $0x1a4] sm:$0xf] %v4954_v8  ;;  %v4642_v37 = vshll.u32 %v4558_v38, 16  ;;  %v4818_v20 = vld [vmem:[#allocation2 + $0x84] sm:$0xf]  ;;  %v4956_v57 = vshrl.u32 %v4817_v0, 16 }
 0x332   : > { %v4819_v32 = vld [vmem:[#allocation2 + $0x88] sm:$0xf]  ;;  %v4625_v34 = vrot.slane %v4623_v35, 4  ;;  %v4628_v52 = vrot.slane %v4626_v40, 5  ;;  %v4634_v21 = vrot.slane %v4632_v41, 5  ;;  %8779 = vmatpush3.bf16.msra.mxu1 %v10766_v33  ;;  %v4638_v42 = vrot.slane %v4636_v54, 4 }
 0x333   : > { %v5043_v17 = vld [vmem:[#allocation2 + $0x84] sm:$0xf]  ;;  %v4644_v23 = vrot.slane %v4642_v37, 5  ;;  %v4961_v43 = vshrl.u32 %v4818_v20, 16  ;;  %v4964_v14 = vshll.u32 %v4818_v20, 16  ;;  %v7844_v19 = vrot.slane %v4956_v57, 11  ;;  %8772 = vmatprep.subr.bf16.mxu1 %v10772_v31 }
 0x334   : > { %v5044_v36 = vld [vmem:[#allocation2 + $0x88] sm:$0xf]  ;;  %5059 = vst [vmem:[#allocation4 + $0x1cc] sm:$0xf] %v5043_v17  ;;  %v4629_v48 = vor.u32 %v4628_v52, %v4625_v34  ;;  %v4970_v53 = vshrl.u32 %v4819_v32, 16  ;;  %v4973_v1 = vshll.u32 %v4819_v32, 16  ;;  %v4639_v25 = vor.u32 %v4638_v42, %v4634_v21 }
 0x335   : > { %5060 = vst [vmem:[#allocation4 + $0x1f0] sm:$0xf] %v5044_v36  ;;  %v4963_v12 = vrot.slane %v4961_v43, 7  ;;  %v9271_v16 = vld [vmem:[#allocation4 + $0x5c] ss:$36 sps:$4 sm:$0xff]  }
 0x336   : > { %v4630_v29 = vrot.slane %v4629_v48, 4  ;;  %v4972_v18 = vrot.slane %v4970_v53, 7  ;;  %v9275_v62 = vld [vmem:[#allocation4 + $0x58] ss:$36 sps:$4 sm:$0xff]   ;;  %v4640_v33 = vrot.slane %v4639_v25, 4  ;;  %8780 = vmatpush3.bf16.msra.mxu1 %v10772_v31  ;;  %6978 = vmatprep.mubr.bf16.mxu1 %v9271_v16 }
 0x337   : > { %v4966_v2 = vor.u32 %v4964_v14, %v4963_v12  ;;  %v4968_v4 = vrot.slane %v4963_v12, 4  ;;  %v9273_v5 = vld [vmem:[#allocation4 + $0x184] ss:$36 sps:$4 sm:$0xff]   ;;  %8773 = vmatprep.subr.bf16.mxu1 %v10782_v49  ;;  %6979 = vmatmul.mubr.bf16.gmra.mxu1 %v9275_v62  ;;  %v4524_v61 = vld [vmem:[#allocation2 + $0x44] sm:$0xf] }
 0x338   : > { %v9276_v11 = vld [vmem:[#allocation4 + $0x180] ss:$36 sps:$4 sm:$0xff]   ;;  %v4635_v22 = vsel %vm9820_vm5, %v4630_v29, %v4634_v21  ;;  %v4975_v45 = vor.u32 %v4973_v1, %v4972_v18  ;;  %v4645_v56 = vsel %vm9820_vm5, %v4640_v33, %v4644_v23  ;;  %v4525_v47 = vld [vmem:[#allocation2 + $0x48] sm:$0xf]  ;;  %v4559_v31 = vld [vmem:[#allocation2 + $0x44] sm:$0xf]  ;;  %7107 = vmatprep.mubr.bf16.mxu0 %v9273_v5 }
 0x339   : > { %4786 = vst [vmem:[#allocation4 + $0xa4] sm:$0xf] %v4635_v22  ;;  %v4967_v9 = vsel %vm10619_vm8, %v7844_v19, %v4966_v2  ;;  %4787 = vst [vmem:[#allocation4 + $0xc8] sm:$0xf] %v4645_v56  ;;  %v4560_v24 = vld [vmem:[#allocation2 + $0x48] sm:$0xf]  ;;  %7108 = vmatmul.mubr.bf16.gmra.mxu0 %v9276_v11 }
 0x33a   : > { %v4976_v10 = vsel %vm10619_vm8, %v4968_v4, %v4975_v45  ;;  %5027 = vst [vmem:[#allocation4 + $0x1c8] sm:$0xf] %v4967_v9  ;;  %4540 = vst [vmem:[#allocation4 + $0xe8] sm:$0xf] %v4524_v61  ;;  %v4561_v63 = vld [vmem:[#allocation2 + $0x4c] sm:$0x1]  ;;  %8781 = vmatpush3.bf16.msra.mxu1 %v10782_v49 }
 0x33b   : > { %4541 = vst [vmem:[#allocation4 + $0x10c] sm:$0xf] %v4525_v47  ;;  %v4647_v39 = vshrl.u32 %v4559_v31, 16  ;;  %v4650_v28 = vshll.u32 %v4559_v31, 16  ;;  %5028 = vst [vmem:[#allocation4 + $0x1ec] sm:$0xf] %v4976_v10  ;;  %8774 = vmatprep.subr.bf16.mxu1 %v10789_v51 }
 0x33c   : > { %v4656_v44 = vshll.u32 %v4560_v24, 16  ;;  %v4660_v30 = vshrl.u32 %v4560_v24, 16  ;;  %v4666_v55 = vshll.u32 %v4561_v63, 16  ;;  %v4820_v26 = vld [vmem:[#allocation2 + $0x90] sm:$0x8] }
 0x33d   : > { %v4649_v6 = vrot.slane %v4647_v39, 4  ;;  %v4652_v7 = vrot.slane %v4650_v28, 5  ;;  %v4821_v13 = vld [vmem:[#allocation2 + $0x94] sm:$0xf]  ;;  %v4822_v59 = vld [vmem:[#allocation2 + $0x98] sm:$0xf] }
 0x33e   : > { %v4658_v60 = vrot.slane %v4656_v44, 5  ;;  %v4662_v46 = vrot.slane %v4660_v30, 4  ;;  %v4668_v38 = vrot.slane %v4666_v55, 5  ;;  %v4978_v8 = vshrl.u32 %v4820_v26, 16  ;;  %v5045_v35 = vld [vmem:[#allocation2 + $0x94] sm:$0xf]  ;;  %8782 = vmatpush3.bf16.msra.mxu1 %v10789_v51 }
 0x33f   : > { %v4653_v40 = vor.u32 %v4652_v7, %v4649_v6  ;;  %v4983_v41 = vshrl.u32 %v4821_v13, 16  ;;  %v4986_v0 = vshll.u32 %v4821_v13, 16  ;;  %v4992_v54 = vshrl.u32 %v4822_v59, 16  ;;  %v5046_v37 = vld [vmem:[#allocation2 + $0x98] sm:$0xf]  ;;  %8775 = vmatprep.subr.bf16.mxu1 %v10793_v50 }
 0x340   : > { %5061 = vst [vmem:[#allocation4 + $0x214] sm:$0xf] %v5045_v35  ;;  %v4663_v20 = vor.u32 %v4662_v46, %v4658_v60  ;;  %v7845_v32 = vrot.slane %v4978_v8, 11  ;;  %v4995_v49 = vshll.u32 %v4822_v59, 16  ;;  %5062 = vst [vmem:[#allocation4 + $0x238] sm:$0xf] %v5046_v37 }
 0x341   : > { %v4654_v34 = vrot.slane %v4653_v40, 4  ;;  %v4985_v52 = vrot.slane %v4983_v41, 7  ;;  %v4994_v21 = vrot.slane %v4992_v54, 7  ;;  %v9279_v57 = vld [vmem:[#allocation4 + $0xa4] ss:$36 sps:$4 sm:$0xff]  }
 0x342   : > { %v4664_v17 = vrot.slane %v4663_v20, 4  ;;  %v9281_v42 = vld [vmem:[#allocation4 + $0x1cc] ss:$36 sps:$4 sm:$0xff]   ;;  %v9283_v23 = vld [vmem:[#allocation4 + $0xa0] ss:$36 sps:$4 sm:$0xff]   ;;  %6986 = vmatprep.mubr.bf16.mxu1 %v9279_v57  ;;  %8783 = vmatpush3.bf16.msra.mxu1 %v10793_v50 }
 0x343   : > { %v4659_v43 = vsel %vm9820_vm5, %v4654_v34, %v4658_v60  ;;  %v4988_v14 = vor.u32 %v4986_v0, %v4985_v52  ;;  %v4990_v36 = vrot.slane %v4985_v52, 4  ;;  %v4997_v48 = vor.u32 %v4995_v49, %v4994_v21  ;;  %v9284_v19 = vld [vmem:[#allocation4 + $0x1c8] ss:$36 sps:$4 sm:$0xff]   ;;  %v4526_v53 = vld [vmem:[#allocation2 + $0x54] sm:$0xf]  ;;  %7115 = vmatprep.mubr.bf16.mxu0 %v9281_v42  ;;  %6987 = vmatmul.mubr.bf16.gmra.mxu1 %v9283_v23 }
 0x344   : > { %v4669_v51 = vsel %vm9820_vm5, %v4664_v17, %v4668_v38  ;;  %4788 = vst [vmem:[#allocation4 + $0xec] sm:$0xf] %v4659_v43  ;;  %v4527_v12 = vld [vmem:[#allocation2 + $0x58] sm:$0xf]  ;;  %4542 = vst [vmem:[#allocation4 + $0x130] sm:$0xf] %v4526_v53  ;;  %7116 = vmatmul.mubr.bf16.gmra.mxu0 %v9284_v19  ;;  %8776 = vmatprep.subr.bf16.mxu1 %v10800_v27 }
 0x345   : > { %4789 = vst [vmem:[#allocation4 + $0x110] sm:$0xf] %v4669_v51  ;;  %v4989_v1 = vsel %vm10619_vm8, %v7845_v32, %v4988_v14  ;;  %v4998_v25 = vsel %vm10619_vm8, %v4990_v36, %v4997_v48  ;;  %v4562_v16 = vld [vmem:[#allocation2 + $0x54] sm:$0xf]  ;;  %v4563_v29 = vld [vmem:[#allocation2 + $0x58] sm:$0xf] }
 0x346   : > { %5029 = vst [vmem:[#allocation4 + $0x210] sm:$0xf] %v4989_v1  ;;  %5030 = vst [vmem:[#allocation4 + $0x234] sm:$0xf] %v4998_v25  ;;  %v4564_v18 = vld [vmem:[#allocation2 + $0x5c] sm:$0x1]  ;;  %8784 = vmatpush3.bf16.msra.mxu1 %v10800_v27 }
 0x347   : > { %4543 = vst [vmem:[#allocation4 + $0x154] sm:$0xf] %v4527_v12  ;;  %v4671_v62 = vshrl.u32 %v4562_v16, 16  ;;  %v4674_v50 = vshll.u32 %v4562_v16, 16  ;;  %v4680_v33 = vshll.u32 %v4563_v29, 16  ;;  %v4684_v2 = vshrl.u32 %v4563_v29, 16  ;;  %8777 = vmatprep.subr.bf16.mxu1 %v10809_v3 }
 0x348   : > { %v4690_v4 = vshll.u32 %v4564_v18, 16  ;;  %v5063_v5 = vld [vmem:[#allocation2 + $0x24] sm:$0xf]  ;;  %v5064_v11 = vld [vmem:[#allocation2 + $0x28] sm:$0xf] }
 0x349   : > { %v4673_v58 = vrot.slane %v4671_v62, 4  ;;  %v4676_v22 = vrot.slane %v4674_v50, 5  ;;  %v4682_v45 = vrot.slane %v4680_v33, 5  ;;  %v4686_v56 = vrot.slane %v4684_v2, 4  ;;  %v5065_v9 = vld [vmem:[#allocation2 + $0x2c] sm:$0x1] }
 0x34a   : > { %v4692_v61 = vrot.slane %v4690_v4, 5  ;;  %v5088_v47 = vshrl.u32 %v5063_v5, 16  ;;  %v5091_v31 = vshll.u32 %v5063_v5, 16  ;;  %v5097_v10 = vshll.u32 %v5064_v11, 16  ;;  %v5066_v24 = vld [vmem:[#allocation2 + $0x34] sm:$0xf]  ;;  %8785 = vmatpush3.bf16.msra.mxu1 %v10809_v3 }
 0x34b   : > { %v4677_v28 = vor.u32 %v4676_v22, %v4673_v58  ;;  %v4687_v44 = vor.u32 %v4686_v56, %v4682_v45  ;;  %v5101_v30 = vshrl.u32 %v5064_v11, 16  ;;  %v5107_v55 = vshll.u32 %v5065_v9, 16  ;;  %v5067_v26 = vld [vmem:[#allocation2 + $0x38] sm:$0xf]  ;;  %v5068_v59 = vld [vmem:[#allocation2 + $0x3c] sm:$0x1] }
 0x34c   : > { %v5090_v6 = vrot.slane %v5088_v47, 4  ;;  %v5093_v7 = vrot.slane %v5091_v31, 5  ;;  %v5099_v13 = vrot.slane %v5097_v10, 5  ;;  %v5112_v27 = vshrl.u32 %v5066_v24, 16  ;;  %v9287_v46 = vld [vmem:[#allocation4 + $0xec] ss:$36 sps:$4 sm:$0xff]  }
 0x34d   : > { %v9291_v38 = vld [vmem:[#allocation4 + $0xe8] ss:$36 sps:$4 sm:$0xff]   ;;  %v4678_v8 = vrot.slane %v4677_v28, 4  ;;  %v9289_v40 = vld [vmem:[#allocation4 + $0x214] ss:$36 sps:$4 sm:$0xff]   ;;  %v4688_v41 = vrot.slane %v4687_v44, 4  ;;  %6994 = vmatprep.mubr.bf16.mxu1 %v9287_v46 }
 0x34e   : > { %v5094_v0 = vor.u32 %v5093_v7, %v5090_v6  ;;  %v5103_v54 = vrot.slane %v5101_v30, 4  ;;  %v9292_v32 = vld [vmem:[#allocation4 + $0x210] ss:$36 sps:$4 sm:$0xff]   ;;  %v5109_v34 = vrot.slane %v5107_v55, 5  ;;  %v5114_v52 = vrot.slane %v5112_v27, 4  ;;  %7123 = vmatprep.mubr.bf16.mxu0 %v9289_v40  ;;  %6995 = vmatmul.mubr.bf16.gmra.mxu1 %v9291_v38 }
 0x34f   : > { %v4683_v49 = vsel %vm9820_vm5, %v4678_v8, %v4682_v45  ;;  %v5115_v21 = vshll.u32 %v5066_v24, 16  ;;  %v4693_v3 = vsel %vm9820_vm5, %v4688_v41, %v4692_v61  ;;  %v5121_v42 = vshll.u32 %v5067_v26, 16  ;;  %v4528_v23 = vld [vmem:[#allocation2 + $0x64] sm:$0xf]  ;;  %v4529_v43 = vld [vmem:[#allocation2 + $0x68] sm:$0xf]  ;;  %7124 = vmatmul.mubr.bf16.gmra.mxu0 %v9292_v32 }
 0x350   : > { %4790 = vst [vmem:[#allocation4 + $0x134] sm:$0xf] %v4683_v49  ;;  %v5095_v57 = vrot.slane %v5094_v0, 4  ;;  %v5104_v17 = vor.u32 %v5103_v54, %v5099_v13  ;;  %4791 = vst [vmem:[#allocation4 + $0x158] sm:$0xf] %v4693_v3  ;;  %v5125_v48 = vshrl.u32 %v5067_v26, 16 }
 0x351   : > { %v5117_v36 = vrot.slane %v5115_v21, 5  ;;  %v5131_v19 = vshll.u32 %v5068_v59, 16  ;;  %4544 = vst [vmem:[#allocation4 + $0x178] sm:$0xf] %v4528_v23  ;;  %4545 = vst [vmem:[#allocation4 + $0x19c] sm:$0xf] %v4529_v43 }
 0x352   : > { %v4565_v51 = vld [vmem:[#allocation2 + $0x64] sm:$0xf]  ;;  %v5100_v1 = vsel %vm9820_vm5, %v5095_v57, %v5099_v13  ;;  %v5105_v25 = vrot.slane %v5104_v17, 4  ;;  %v5123_v12 = vrot.slane %v5121_v42, 5  ;;  %v4566_v16 = vld [vmem:[#allocation2 + $0x68] sm:$0xf] }
 0x353   : > { %v4567_v29 = vld [vmem:[#allocation2 + $0x6c] sm:$0x1]  ;;  %5295 = vst [vmem:[#allocation4 + $0x20] sm:$0xf] %v5100_v1  ;;  %v5118_v62 = vor.u32 %v5117_v36, %v5114_v52  ;;  %v5127_v50 = vrot.slane %v5125_v48, 4  ;;  %v5133_v33 = vrot.slane %v5131_v19, 5 }
 0x354   : > { %v4695_v2 = vshrl.u32 %v4565_v51, 16  ;;  %v4530_v4 = vld [vmem:[#allocation2 + $0x74] sm:$0xf]  ;;  %v5110_v5 = vsel %vm9820_vm5, %v5105_v25, %v5109_v34  ;;  %v4698_v11 = vshll.u32 %v4565_v51, 16  ;;  %v4704_v58 = vshll.u32 %v4566_v16, 16 }
 0x355   : > { %v10860_v63 = vpop.f32.mrf.mxu1  ;;  %v4708_v22 = vshrl.u32 %v4566_v16, 16  ;;  %v4531_v45 = vld [vmem:[#allocation2 + $0x78] sm:$0xf]  ;;  %4546 = vst [vmem:[#allocation4 + $0x1c0] sm:$0xf] %v4530_v4  ;;  %v5119_v56 = vrot.slane %v5118_v62, 4  ;;  %v5128_v9 = vor.u32 %v5127_v50, %v5123_v12 }
 0x356   : > { %5296 = vst [vmem:[#allocation4 + $0x44] sm:$0xf] %v5110_v5  ;;  %v4697_v61 = vrot.slane %v4695_v2, 4  ;;  %v4714_v47 = vshll.u32 %v4567_v29, 16  ;;  %4547 = vst [vmem:[#allocation4 + $0x1e4] sm:$0xf] %v4531_v45 }
 0x357   : > { %v10865_v37 = vpop.f32.mrf.mxu1  ;;  %v4568_v31 = vld [vmem:[#allocation2 + $0x74] sm:$0xf]  ;;  %v4700_v10 = vrot.slane %v4698_v11, 5  ;;  %v4706_v24 = vrot.slane %v4704_v58, 5  ;;  %v4569_v28 = vld [vmem:[#allocation2 + $0x78] sm:$0xf]  ;;  %v5124_v55 = vsel %vm9820_vm5, %v5119_v56, %v5123_v12 }
 0x358   : > { %v8478_v39 = vpop.f32.mrf.mxu0  ;;  %v4719_v44 = vshrl.u32 %v4568_v31, 16  ;;  %v5129_v26 = vrot.slane %v5128_v9, 4  ;;  %v4716_v6 = vrot.slane %v4714_v47, 5  ;;  %v4570_v7 = vld [vmem:[#allocation2 + $0x7c] sm:$0x1]  ;;  %v4722_v13 = vshll.u32 %v4568_v31, 16 }
 0x359   : > { %v10875_v18 = vpop.f32.mrf.mxu1  ;;  %v9295_v59 = vld [vmem:[#allocation4 + $0x134] ss:$36 sps:$4 sm:$0xff]   ;;  %5297 = vst [vmem:[#allocation4 + $0x68] sm:$0xf] %v5124_v55  ;;  %v4728_v41 = vshll.u32 %v4569_v28, 16  ;;  %v4732_v0 = vshrl.u32 %v4569_v28, 16 }
 0x35a   : > { %v8479_v60 = vpop.f32.mrf.mxu0  ;;  %v9298_v27 = vld [vmem:[#allocation4 + $0x130] ss:$36 sps:$4 sm:$0xff]   ;;  %v4721_v38 = vrot.slane %v4719_v44, 4  ;;  %v5134_v8 = vsel %vm9820_vm5, %v5129_v26, %v5133_v33  ;;  %v4724_v40 = vrot.slane %v4722_v13, 5  ;;  %7002 = vmatprep.mubr.bf16.mxu1 %v9295_v59  ;;  %v4738_v49 = vshll.u32 %v4570_v7, 16 }
 0x35b   : > { %v10863_v35 = vadd.f32 %v8479_v60, %v8478_v39  ;;  %v4710_v39 = vrot.slane %v4708_v22, 4  ;;  %v10879_v30 = vpop.f32.mrf.mxu1  ;;  %v4701_v60 = vor.u32 %v4700_v10, %v4697_v61  ;;  %v4532_v54 = vld [vmem:[#allocation2 + $0x84] sm:$0xf]  ;;  %5298 = vst [vmem:[#allocation4 + $0x8c] sm:$0xf] %v5134_v8  ;;  %7003 = vmatmul.mubr.bf16.gmra.mxu1 %v9298_v27  ;;  %v4730_v21 = vrot.slane %v4728_v41, 5 }
 0x35c   : > { %v8481_v20 = vpop.f32.mrf.mxu0  ;;  %4548 = vst [vmem:[#allocation4 + $0x208] sm:$0xf] %v4532_v54  ;;  %v4725_v52 = vor.u32 %v4724_v40, %v4721_v38  ;;  %v4734_v3 = vrot.slane %v4732_v0, 4  ;;  %v4533_v57 = vld [vmem:[#allocation2 + $0x88] sm:$0xf] }
 0x35d   : > { %v4711_v46 = vor.u32 %v4710_v39, %v4706_v24  ;;  %v4571_v17 = vld [vmem:[#allocation2 + $0x84] sm:$0xf]  ;;  %v9297_v42 = vld [vmem:[#allocation4 + $0x20] ss:$36 sps:$4 sm:$0xff]   ;;  %4549 = vst [vmem:[#allocation4 + $0x22c] sm:$0xf] %v4533_v57 }
 0x35e   : > { %v8482_v14 = vpop.f32.mrf.mxu0  ;;  %v4743_v36 = vshrl.u32 %v4571_v17, 16  ;;  %v4726_v19 = vrot.slane %v4725_v52, 4  ;;  %v4735_v51 = vor.u32 %v4734_v3, %v4730_v21  ;;  %v4572_v1 = vld [vmem:[#allocation2 + $0x88] sm:$0xf]  ;;  %v4573_v25 = vld [vmem:[#allocation2 + $0x8c] sm:$0x1]  ;;  %8754 = vmatprep.mubr.bf16.mxu0 %v9297_v42 }
 0x35f   : > { %v10871_v53 = vadd.f32 %v8482_v14, %v8481_v20  ;;  %v4702_v20 = vrot.slane %v4701_v60, 4  ;;  %v4712_v32 = vrot.slane %v4711_v46, 4  ;;  %v4740_v14 = vrot.slane %v4738_v49, 5  ;;  %v5069_v33 = vld [vmem:[#allocation2 + $0x44] sm:$0xf] }
 0x360   : > { %v10885_v34 = vpop.f32.mrf.mxu1  ;;  %v4746_v12 = vshll.u32 %v4571_v17, 16  ;;  %v4745_v16 = vrot.slane %v4743_v36, 4  ;;  %v4752_v29 = vshll.u32 %v4572_v1, 16  ;;  %v4756_v62 = vshrl.u32 %v4572_v1, 16  ;;  %v5070_v22 = vld [vmem:[#allocation2 + $0x48] sm:$0xf] }
 0x361   : > { %v4707_v23 = vsel %vm9820_vm5, %v4702_v20, %v4706_v24  ;;  %v4717_v43 = vsel %vm9820_vm5, %v4712_v32, %v4716_v6  ;;  %v4762_v50 = vshll.u32 %v4573_v25, 16  ;;  %v4731_v5 = vsel %vm9820_vm5, %v4726_v19, %v4730_v21  ;;  %v5071_v47 = vld [vmem:[#allocation2 + $0x4c] sm:$0x1]  ;;  %v5072_v59 = vld [vmem:[#allocation2 + $0x54] sm:$0xf] }
 0x362   : > { %v8484_v48 = vpop.f32.mrf.mxu0  ;;  %4792 = vst [vmem:[#allocation4 + $0x17c] sm:$0xf] %v4707_v23  ;;  %4793 = vst [vmem:[#allocation4 + $0x1a0] sm:$0xf] %v4717_v43  ;;  %v10891_v2 = vpop.f32.mrf.mxu1  ;;  %v4736_v11 = vrot.slane %v4735_v51, 4  ;;  %v4748_v58 = vrot.slane %v4746_v12, 5 }
 0x363   : > { %4794 = vst [vmem:[#allocation4 + $0x1c4] sm:$0xf] %v4731_v5  ;;  %v4754_v56 = vrot.slane %v4752_v29, 5  ;;  %v4758_v9 = vrot.slane %v4756_v62, 4  ;;  %v4764_v61 = vrot.slane %v4762_v50, 5  ;;  %v5136_v31 = vshrl.u32 %v5069_v33, 16 }
 0x364   : > { %v8485_v4 = vpop.f32.mrf.mxu0  ;;  %v9299_v24 = vld [vmem:[#allocation4 + $0x68] ss:$36 sps:$4 sm:$0xff]   ;;  %v4741_v39 = vsel %vm9820_vm5, %v4736_v11, %v4740_v14  ;;  %v4749_v28 = vor.u32 %v4748_v58, %v4745_v16  ;;  %v5139_v44 = vshll.u32 %v5069_v33, 16  ;;  %v5145_v55 = vshll.u32 %v5070_v22, 16  ;;  %v10899_v27 = vpop.f32.mrf.mxu1  ;;  %v9302_v49 = vld [vmem:[#allocation4 + $0x178] ss:$36 sps:$4 sm:$0xff]  }
 0x365   : > { %v10895_v45 = vadd.f32 %v8485_v4, %v8484_v48  ;;  %4795 = vst [vmem:[#allocation4 + $0x1e8] sm:$0xf] %v4741_v39  ;;  %v4759_v26 = vor.u32 %v4758_v9, %v4754_v56  ;;  %v5138_v6 = vrot.slane %v5136_v31, 4  ;;  %v5149_v7 = vshrl.u32 %v5070_v22, 16  ;;  %8755 = vmatmul.mubr.bf16.vlgmr.msra.gmra.mxu0 %v9299_v24  ;;  %v5073_v8 = vld [vmem:[#allocation2 + $0x58] sm:$0xf] }
 0x366   : > { %v8487_v10 = vpop.f32.mrf.mxu0  ;;  %v5155_v13 = vshll.u32 %v5071_v47, 16  ;;  %v4750_v60 = vrot.slane %v4749_v28, 4  ;;  %v5141_v46 = vrot.slane %v5139_v44, 5  ;;  %v5147_v38 = vrot.slane %v5145_v55, 5  ;;  %v5074_v57 = vld [vmem:[#allocation2 + $0x5c] sm:$0x1]  ;;  %v10907_v48 = vpop.f32.mrf.mxu1 }
 0x367   : > { %v5160_v40 = vshrl.u32 %v5072_v59, 16  ;;  %v4760_v54 = vrot.slane %v4759_v26, 4  ;;  %v5151_v20 = vrot.slane %v5149_v7, 4  ;;  %v5163_v43 = vshll.u32 %v5072_v59, 16  ;;  %v5075_v36 = vld [vmem:[#allocation2 + $0x64] sm:$0xf] }
 0x368   : > { %v8488_v41 = vpop.f32.mrf.mxu0  ;;  %v4755_v52 = vsel %vm9820_vm5, %v4750_v60, %v4754_v56  ;;  %v5142_v21 = vor.u32 %v5141_v46, %v5138_v6  ;;  %v5157_v3 = vrot.slane %v5155_v13, 5  ;;  %v5169_v14 = vshll.u32 %v5073_v8, 16  ;;  %v5076_v25 = vld [vmem:[#allocation2 + $0x68] sm:$0xf]  ;;  %v5077_v62 = vld [vmem:[#allocation2 + $0x6c] sm:$0x1] }
 0x369   : > { %v9300_v0 = vld [vmem:[#allocation4 + $0x17c] ss:$36 sps:$4 sm:$0xff]   ;;  %v10901_v32 = vadd.f32 %v8488_v41, %v8487_v10  ;;  %v5162_v17 = vrot.slane %v5160_v40, 4  ;;  %v4765_v42 = vsel %vm9820_vm5, %v4760_v54, %v4764_v61  ;;  %4796 = vst [vmem:[#allocation4 + $0x20c] sm:$0xf] %v4755_v52  ;;  %v5152_v23 = vor.u32 %v5151_v20, %v5147_v38 }
 0x36a   : > { %7010 = vmatprep.mubr.bf16.mxu1 %v9300_v0  ;;  %4797 = vst [vmem:[#allocation4 + $0x230] sm:$0xf] %v4765_v42  ;;  %v5143_v19 = vrot.slane %v5142_v21, 4  ;;  %v5173_v51 = vshrl.u32 %v5073_v8, 16  ;;  %v5179_v1 = vshll.u32 %v5074_v57, 16  ;;  %v5165_v16 = vrot.slane %v5163_v43, 5 }
 0x36b   : > { %7011 = vmatmul.mubr.bf16.gmra.mxu1 %v9302_v49  ;;  %v5153_v12 = vrot.slane %v5152_v23, 4  ;;  %v5171_v29 = vrot.slane %v5169_v14, 5  ;;  %v5184_v50 = vshrl.u32 %v5075_v36, 16  ;;  %v5078_v11 = vld [vmem:[#allocation2 + $0x74] sm:$0xf]  ;;  %v5187_v10 = vshll.u32 %v5075_v36, 16 }
 0x36c   : > { %v9303_v33 = vld [vmem:[#allocation4 + $0x1c4] ss:$36 sps:$4 sm:$0xff]   ;;  %v5148_v4 = vsel %vm9820_vm5, %v5143_v19, %v5147_v38  ;;  %v5175_v5 = vrot.slane %v5173_v51, 4  ;;  %v5166_v56 = vor.u32 %v5165_v16, %v5162_v17  ;;  %v5181_v9 = vrot.slane %v5179_v1, 5  ;;  %v5080_v26 = vld [vmem:[#allocation2 + $0x7c] sm:$0x1] }
 0x36d   : > { %v9305_v58 = vld [vmem:[#allocation4 + $0x1c0] ss:$36 sps:$4 sm:$0xff]   ;;  %v5158_v22 = vsel %vm9820_vm5, %v5153_v12, %v5157_v3  ;;  %5299 = vst [vmem:[#allocation4 + $0xb0] sm:$0xf] %v5148_v4  ;;  %v5186_v61 = vrot.slane %v5184_v50, 4  ;;  %7018 = vmatprep.mubr.bf16.mxu1 %v9303_v33  ;;  %v5193_v24 = vshll.u32 %v5076_v25, 16 }
 0x36e   : > { %5300 = vst [vmem:[#allocation4 + $0xd4] sm:$0xf] %v5158_v22  ;;  %v5176_v31 = vor.u32 %v5175_v5, %v5171_v29  ;;  %v5197_v39 = vshrl.u32 %v5076_v25, 16  ;;  %v5079_v28 = vld [vmem:[#allocation2 + $0x78] sm:$0xf]  ;;  %v5167_v44 = vrot.slane %v5166_v56, 4 }
 0x36f   : > { %v10913_v47 = vpop.f32.mrf.mxu1  ;;  %v5203_v55 = vshll.u32 %v5077_v62, 16  ;;  %v5208_v6 = vshrl.u32 %v5078_v11, 16  ;;  %v5211_v7 = vshll.u32 %v5078_v11, 16  ;;  %v5189_v60 = vrot.slane %v5187_v10, 5  ;;  %v5081_v0 = vld [vmem:[#allocation2 + $0x84] sm:$0xf] }
 0x370   : > { %v5177_v59 = vrot.slane %v5176_v31, 4  ;;  %v5195_v46 = vrot.slane %v5193_v24, 5  ;;  %v5199_v38 = vrot.slane %v5197_v39, 4  ;;  %v5172_v40 = vsel %vm9820_vm5, %v5167_v44, %v5171_v29  ;;  %v5082_v57 = vld [vmem:[#allocation2 + $0x88] sm:$0xf] }
 0x371   : > { %v9306_v8 = vld [vmem:[#allocation4 + $0x20c] ss:$36 sps:$4 sm:$0xff]   ;;  %v5205_v41 = vrot.slane %v5203_v55, 5  ;;  %v10917_v54 = vpop.f32.mrf.mxu1  ;;  %5301 = vst [vmem:[#allocation4 + $0xf8] sm:$0xf] %v5172_v40  ;;  %v5190_v52 = vor.u32 %v5189_v60, %v5186_v61  ;;  %v5210_v3 = vrot.slane %v5208_v6, 4 }
 0x372   : > { %v8490_v13 = vpop.f32.mrf.mxu0  ;;  %v5182_v49 = vsel %vm9820_vm5, %v5177_v59, %v5181_v9  ;;  %v5200_v21 = vor.u32 %v5199_v38, %v5195_v46  ;;  %v5213_v17 = vrot.slane %v5211_v7, 5  ;;  %v5217_v42 = vshll.u32 %v5079_v28, 16  ;;  %v5083_v14 = vld [vmem:[#allocation2 + $0x8c] sm:$0x1]  ;;  %v5084_v29 = vld [vmem:[#allocation2 + $0x94] sm:$0xf] }
 0x373   : > { %7019 = vmatmul.mubr.bf16.gmra.mxu1 %v9305_v58  ;;  %5302 = vst [vmem:[#allocation4 + $0x11c] sm:$0xf] %v5182_v49  ;;  %v5221_v23 = vshrl.u32 %v5079_v28, 16  ;;  %v5227_v43 = vshll.u32 %v5080_v26, 16  ;;  %v5191_v36 = vrot.slane %v5190_v52, 4  ;;  %v5232_v51 = vshrl.u32 %v5081_v0, 16  ;;  %v10923_v50 = vpop.f32.mrf.mxu1 }
 0x374   : > { %v8491_v20 = vpop.f32.mrf.mxu0  ;;  %7026 = vmatprep.mubr.bf16.mxu1 %v9306_v8  ;;  %v5201_v19 = vrot.slane %v5200_v21, 4  ;;  %v5235_v1 = vshll.u32 %v5081_v0, 16  ;;  %v5214_v25 = vor.u32 %v5213_v17, %v5210_v3  ;;  %v5219_v12 = vrot.slane %v5217_v42, 5  ;;  %v9308_v4 = vld [vmem:[#allocation4 + $0x208] ss:$36 sps:$4 sm:$0xff]  }
 0x375   : > { %v5223_v16 = vrot.slane %v5221_v23, 4  ;;  %v10921_v62 = vadd.f32 %v8491_v20, %v8490_v13  ;;  %v5196_v5 = vsel %vm9820_vm5, %v5191_v36, %v5195_v46  ;;  %v5229_v58 = vrot.slane %v5227_v43, 5  ;;  %v9309_v56 = vld [vmem:[#allocation4 + $0xb0] ss:$36 sps:$4 sm:$0xff]   ;;  %v5085_v13 = vld [vmem:[#allocation2 + $0x98] sm:$0xf]  ;;  %v10931_v59 = vpop.f32.mrf.mxu1 }
 0x376   : > { %v8493_v33 = vpop.f32.mrf.mxu0  ;;  %v5206_v11 = vsel %vm9820_vm5, %v5201_v19, %v5205_v41  ;;  %v5234_v22 = vrot.slane %v5232_v51, 4  ;;  %5303 = vst [vmem:[#allocation4 + $0x140] sm:$0xf] %v5196_v5  ;;  %v5215_v9 = vrot.slane %v5214_v25, 4  ;;  %v5237_v31 = vrot.slane %v5235_v1, 5 }
 0x377   : > { %5304 = vst [vmem:[#allocation4 + $0x164] sm:$0xf] %v5206_v11  ;;  %v5224_v61 = vor.u32 %v5223_v16, %v5219_v12  ;;  %v5241_v10 = vshll.u32 %v5082_v57, 16  ;;  %v5245_v24 = vshrl.u32 %v5082_v57, 16  ;;  %v5251_v39 = vshll.u32 %v5083_v14, 16 }
 0x378   : > { %v5256_v28 = vshrl.u32 %v5084_v29, 16  ;;  %v5259_v44 = vshll.u32 %v5084_v29, 16  ;;  %v5220_v55 = vsel %vm9820_vm5, %v5215_v9, %v5219_v12  ;;  %v5238_v6 = vor.u32 %v5237_v31, %v5234_v22  ;;  %v8494_v60 = vpop.f32.mrf.mxu0  ;;  %v5086_v38 = vld [vmem:[#allocation2 + $0x9c] sm:$0x1] }
 0x379   : > { %v5225_v26 = vrot.slane %v5224_v61, 4  ;;  %v5243_v7 = vrot.slane %v5241_v10, 5  ;;  %5305 = vst [vmem:[#allocation4 + $0x188] sm:$0xf] %v5220_v55  ;;  %v5247_v46 = vrot.slane %v5245_v24, 4  ;;  %v10933_v8 = vadd.f32 %v8494_v60, %v8493_v33 }
 0x37a   : > { %v5239_v41 = vrot.slane %v5238_v6, 4  ;;  %v5258_v0 = vrot.slane %v5256_v28, 4  ;;  %v5261_v20 = vrot.slane %v5259_v44, 5  ;;  %v5265_v52 = vshll.u32 %v5085_v13, 16  ;;  %v9310_v43 = vld [vmem:[#allocation4 + $0xf8] ss:$36 sps:$4 sm:$0xff]  }
 0x37b   : > { %7027 = vmatmul.mubr.bf16.gmra.mxu1 %v9308_v4  ;;  %v5230_v40 = vsel %vm9820_vm5, %v5225_v26, %v5229_v58  ;;  %v5248_v49 = vor.u32 %v5247_v46, %v5243_v7  ;;  %v5269_v21 = vshrl.u32 %v5085_v13, 16  ;;  %v5253_v57 = vrot.slane %v5251_v39, 5 }
 0x37c   : > { %8758 = vmatprep.mubr.bf16.mxu1 %v9309_v56  ;;  %5306 = vst [vmem:[#allocation4 + $0x1ac] sm:$0xf] %v5230_v40  ;;  %v5244_v3 = vsel %vm9820_vm5, %v5239_v41, %v5243_v7  ;;  %v5262_v17 = vor.u32 %v5261_v20, %v5258_v0  ;;  %v5275_v42 = vshll.u32 %v5086_v38, 16  ;;  %v5267_v51 = vrot.slane %v5265_v52, 5 }
 0x37d   : > { %5307 = vst [vmem:[#allocation4 + $0x1d0] sm:$0xf] %v5244_v3  ;;  %v5249_v36 = vrot.slane %v5248_v49, 4  ;;  %v5271_v1 = vrot.slane %v5269_v21, 4 }
 0x37e   : > { %v9311_v14 = vld [vmem:[#allocation4 + $0x140] ss:$36 sps:$4 sm:$0xff]   ;;  %v5263_v19 = vrot.slane %v5262_v17, 4  ;;  %v5277_v4 = vrot.slane %v5275_v42, 5 }
 0x37f   : > { %v5254_v16 = vsel %vm9820_vm5, %v5249_v36, %v5253_v57  ;;  %v5272_v33 = vor.u32 %v5271_v1, %v5267_v51 }
 0x380   : > { %v10939_v23 = vpop.f32.mrf.mxu1  ;;  %v5268_v29 = vsel %vm9820_vm5, %v5263_v19, %v5267_v51  ;;  %5308 = vst [vmem:[#allocation4 + $0x1f4] sm:$0xf] %v5254_v16 }
 0x381   : > { %5309 = vst [vmem:[#allocation4 + $0x218] sm:$0xf] %v5268_v29  ;;  %v5273_v58 = vrot.slane %v5272_v33, 4 }
 0x382   : > { %v10941_v25 = vpop.f32.mrf.mxu1  ;;  %v8496_v12 = vpop.f32.mrf.mxu0 }
 0x383   : > { %8759 = vmatmul.mubr.bf16.vlgmr.msra.gmra.mxu1 %v9310_v43  ;;  %v5278_v61 = vsel %vm9820_vm5, %v5273_v58, %v5277_v4  ;;  %v9312_v31 = vld [vmem:[#allocation4 + $0x188] ss:$36 sps:$4 sm:$0xff]  }
 0x384   : > { %v10947_v5 = vpop.f32.mrf.mxu1  ;;  %v8497_v11 = vpop.f32.mrf.mxu0  ;;  %8762 = vmatprep.mubr.bf16.mxu1 %v9311_v14  ;;  %5310 = vst [vmem:[#allocation4 + $0x23c] sm:$0xf] %v5278_v61 }
 0x385   : > { %v10949_v22 = vadd.f32 %v8497_v11, %v8496_v12 }
 0x386   : > { %v10951_v56 = vpop.f32.mrf.mxu1  ;;  %v8499_v9 = vpop.f32.mrf.mxu0 }
 0x387   : > { %v9313_v28 = vld [vmem:[#allocation4 + $0x1d0] ss:$36 sps:$4 sm:$0xff]  }
 0x388   : > { %v8500_v10 = vpop.f32.mrf.mxu0  ;;  %v8414_v39 = vpop.f32.mrf.mxu1 }
 0x389   : > { %v10955_v24 = vadd.f32 %v8500_v10, %v8499_v9 }
 0x38a   : > { %v8415_v44 = vpop.f32.mrf.mxu1 }
 0x38b   : > { %8763 = vmatmul.mubr.bf16.gmra.mxu1 %v9312_v31  ;;  %v8416_v55 = vadd.f32 %v8415_v44, %v8414_v39  ;;  %v9314_v13 = vld [vmem:[#allocation4 + $0x218] ss:$36 sps:$4 sm:$0xff]  }
 0x38c   : > { %8766 = vmatprep.mubr.bf16.mxu1 %v9313_v28  ;;  %v8417_v26 = vpop.f32.mrf.mxu1 }
 0x38d   : > { %v6779_v6 = vadd.f32 %v8416_v55, %v10865_v37 }
 0x38e   : > { %v8418_v7 = vpop.f32.mrf.mxu1 }
 0x38f   : > { %v8419_v60 = vadd.f32 %v8418_v7, %v8417_v26  ;;  %v10959_v15 = vadd.f32 %v10863_v35, %v6779_v6 }
 0x390   : > { %v8502_v46 = vpop.f32.mrf.mxu0 }
 0x391   : > { %v6782_v38 = vadd.f32 %v8419_v60, %v10879_v30 }
 0x392   : > { %v8503_v40 = vpop.f32.mrf.mxu0 }
 0x393   : > { %8767 = vmatmul.mubr.bf16.gmra.mxu1 %v9314_v13  ;;  %v10963_v41 = vadd.f32 %v10871_v53, %v6782_v38  ;;  %v8504_v0 = vadd.f32 %v8503_v40, %v8502_v46 }
 0x394   : > { %v8505_v20 = vpop.f32.mrf.mxu0 }
 0x396   : > { %v8506_v49 = vpop.f32.mrf.mxu0  ;;  %v8420_v37 = vpop.f32.mrf.mxu1 }
 0x397   : > { %v10965_v52 = vadd.f32 %v8506_v49, %v8505_v20 }
 0x398   : > { %v8421_v21 = vpop.f32.mrf.mxu1 }
 0x399   : > { %v8422_v3 = vadd.f32 %v8421_v21, %v8420_v37 }
 0x39a   : > { %v8423_v57 = vpop.f32.mrf.mxu1 }
 0x39b   : > { %v6787_v35 = vadd.f32 %v10860_v63, %v8422_v3 }
 0x39c   : > { %v8424_v17 = vpop.f32.mrf.mxu1 }
 0x39d   : > { %v8508_v42 = vpop.f32.mrf.mxu0  ;;  %v8425_v43 = vadd.f32 %v8424_v17, %v8423_v57  ;;  %v10969_v30 = vadd.f32 %v10895_v45, %v6787_v35 }
 0x39f   : > { %v8509_v14 = vpop.f32.mrf.mxu0  ;;  %v6790_v53 = vadd.f32 %v10875_v18, %v8425_v43 }
 0x3a0   : > { %v8510_v36 = vadd.f32 %v8509_v14, %v8508_v42 }
 0x3a1   : > { %v8511_v19 = vpop.f32.mrf.mxu0  ;;  %v10973_v51 = vadd.f32 %v10901_v32, %v6790_v53 }
 0x3a3   : > { %v8512_v1 = vpop.f32.mrf.mxu0  ;;  %v8426_v16 = vpop.f32.mrf.mxu1 }
 0x3a4   : > { %v8513_v12 = vadd.f32 %v8512_v1, %v8511_v19 }
 0x3a5   : > { %v8427_v29 = vpop.f32.mrf.mxu1 }
 0x3a6   : > { %v8428_v33 = vadd.f32 %v8427_v29, %v8426_v16 }
 0x3a7   : > { %v8429_v63 = vpop.f32.mrf.mxu1 }
 0x3a8   : > { %v6795_v4 = vadd.f32 %v8428_v33, %v10891_v2 }
 0x3a9   : > { %v8430_v11 = vpop.f32.mrf.mxu1 }
 0x3aa   : > { %v8431_v45 = vadd.f32 %v8430_v11, %v8429_v63  ;;  %v10977_v9 = vadd.f32 %v10921_v62, %v6795_v4 }
 0x3ac   : > { %v8514_v58 = vpop.f32.mrf.mxu0  ;;  %v6798_v61 = vadd.f32 %v8431_v45, %v10907_v48 }
 0x3ae   : > { %v8515_v18 = vpop.f32.mrf.mxu0  ;;  %v10981_v10 = vadd.f32 %v10933_v8, %v6798_v61 }
 0x3af   : > { %v8516_v31 = vadd.f32 %v8515_v18, %v8514_v58 }
 0x3b0   : > { %v8517_v32 = vpop.f32.mrf.mxu0 }
 0x3b1   : > { %v8432_v44 = vpop.f32.mrf.mxu1 }
 0x3b2   : > { %v8518_v39 = vpop.f32.mrf.mxu0 }
 0x3b3   : > { %v8519_v28 = vadd.f32 %v8518_v39, %v8517_v32  ;;  %v8433_v55 = vpop.f32.mrf.mxu1 }
 0x3b4   : > { %v8434_v26 = vadd.f32 %v8433_v55, %v8432_v44 }
 0x3b5   : > { %v8435_v2 = vpop.f32.mrf.mxu1 }
 0x3b6   : > { %v6803_v6 = vadd.f32 %v10885_v34, %v8434_v26 }
 0x3b7   : > { %v8436_v7 = vpop.f32.mrf.mxu1 }
 0x3b8   : > { %v8437_v62 = vadd.f32 %v8436_v7, %v8435_v2  ;;  %v10985_v60 = vadd.f32 %v10949_v22, %v6803_v6 }
 0x3b9   : > { %v8520_v13 = vpop.f32.mrf.mxu0 }
 0x3ba   : > { %v6806_v46 = vadd.f32 %v10899_v27, %v8437_v62 }
 0x3bb   : > { %v8521_v48 = vpop.f32.mrf.mxu0 }
 0x3bc   : > { %v8522_v38 = vadd.f32 %v8521_v48, %v8520_v13  ;;  %v10989_v40 = vadd.f32 %v10955_v24, %v6806_v46 }
 0x3bd   : > { %v8523_v8 = vpop.f32.mrf.mxu0 }
 0x3bf   : > { %v8524_v20 = vpop.f32.mrf.mxu0 }
 0x3c0   : > { %v8525_v49 = vadd.f32 %v8524_v20, %v8523_v8  ;;  %v8438_v37 = vpop.f32.mrf.mxu1 }
 0x3c2   : > { %v8439_v21 = vpop.f32.mrf.mxu1 }
 0x3c3   : > { %v10991_v3 = vpop.f32.mrf.mxu0  ;;  %v8440_v34 = vadd.f32 %v8439_v21, %v8438_v37 }
 0x3c4   : > { %v8441_v57 = vpop.f32.mrf.mxu1 }
 0x3c5   : > { %v6811_v35 = vadd.f32 %v8440_v34, %v10917_v54  ;;  %v10994_v22 = vpop.f32.mrf.mxu0 }
 0x3c6   : > { %v8442_v17 = vpop.f32.mrf.mxu1 }
 0x3c7   : > { %v10996_v42 = vpop.f32.mrf.mxu0  ;;  %v8443_v27 = vadd.f32 %v8442_v17, %v8441_v57  ;;  %v10998_v43 = vadd.f32 %v8504_v0, %v6811_v35 }
 0x3c9   : > { %v6814_v24 = vadd.f32 %v8443_v27, %v10931_v59  ;;  %v11001_v14 = vpop.f32.mrf.mxu0  ;;  %v8444_v53 = vpop.f32.mrf.mxu1 }
 0x3cb   : > { %v8445_v19 = vpop.f32.mrf.mxu1  ;;  %v11004_v1 = vadd.f32 %v10965_v52, %v6814_v24 }
 0x3cc   : > { %v8446_v16 = vadd.f32 %v8445_v19, %v8444_v53 }
 0x3cd   : > { %v11006_v29 = vpop.f32.mrf.mxu0  ;;  %v8447_v54 = vpop.f32.mrf.mxu1 }
 0x3ce   : > { %v6819_v33 = vadd.f32 %v10913_v47, %v8446_v16 }
 0x3cf   : > { %v11009_v63 = vpop.f32.mrf.mxu0  ;;  %v8448_v4 = vpop.f32.mrf.mxu1 }
 0x3d0   : > { %v8449_v0 = vadd.f32 %v8448_v4, %v8447_v54  ;;  %v11011_v11 = vadd.f32 %v8510_v36, %v6819_v33 }
 0x3d1   : > { %v11013_v59 = vpop.f32.mrf.mxu0 }
 0x3d2   : > { %v6822_v58 = vadd.f32 %v10923_v50, %v8449_v0 }
 0x3d3   : > { %v11016_v45 = vpop.f32.mrf.mxu0  ;;  %v8450_v52 = vpop.f32.mrf.mxu1 }
 0x3d4   : > { %v11018_v18 = vadd.f32 %v8513_v12, %v6822_v58 }
 0x3d5   : > { %v8451_v61 = vpop.f32.mrf.mxu1 }
 0x3d6   : > { %v8618_v32 = vpop.f32.mrf.mxu0  ;;  %v8452_v39 = vadd.f32 %v8451_v61, %v8450_v52 }
 0x3d7   : > { %v8453_v44 = vpop.f32.mrf.mxu1 }
 0x3d8   : > { %v6827_v47 = vadd.f32 %v8452_v39, %v10941_v25  ;;  %v8619_v55 = vpop.f32.mrf.mxu0 }
 0x3d9   : > { %v8620_v26 = vadd.f32 %v8619_v55, %v8618_v32  ;;  %v8454_v2 = vpop.f32.mrf.mxu1 }
 0x3da   : > { %v8621_v36 = vpop.f32.mrf.mxu0  ;;  %v8455_v6 = vadd.f32 %v8454_v2, %v8453_v44  ;;  %v11021_v7 = vadd.f32 %v8516_v31, %v6827_v47 }
 0x3dc   : > { %v6830_v50 = vadd.f32 %v8455_v6, %v10951_v56  ;;  %v8622_v13 = vpop.f32.mrf.mxu0 }
 0x3dd   : > { %v8623_v62 = vadd.f32 %v8622_v13, %v8621_v36 }
 0x3de   : > { %v11024_v12 = vadd.f32 %v8519_v28, %v6830_v50 }
 0x3df   : > { %v8456_v48 = vpop.f32.mrf.mxu1 }
 0x3e1   : > { %v8457_v46 = vpop.f32.mrf.mxu1 }
 0x3e2   : > { %v8624_v8 = vpop.f32.mrf.mxu0  ;;  %v8458_v20 = vadd.f32 %v8457_v46, %v8456_v48 }
 0x3e3   : > { %v8459_v37 = vpop.f32.mrf.mxu1 }
 0x3e4   : > { %v6835_v25 = vadd.f32 %v10939_v23, %v8458_v20  ;;  %v8625_v21 = vpop.f32.mrf.mxu0 }
 0x3e5   : > { %v8460_v34 = vpop.f32.mrf.mxu1 }
 0x3e6   : > { %v8627_v57 = vpop.f32.mrf.mxu0  ;;  %v8461_v35 = vadd.f32 %v8460_v34, %v8459_v37  ;;  %v11027_v17 = vadd.f32 %v8522_v38, %v6835_v25 }
 0x3e8   : > { %v6838_v31 = vadd.f32 %v10947_v5, %v8461_v35  ;;  %v8628_v56 = vpop.f32.mrf.mxu0 }
 0x3ea   : > { %v11030_v27 = vadd.f32 %v8525_v49, %v6838_v31 }
 0x3ed   : > { %v8542_v24 = vpop.f32.mrf.mxu1  ;;  %v8630_v28 = vpop.f32.mrf.mxu0 }
 0x3ef   : > { %v8543_v53 = vpop.f32.mrf.mxu1  ;;  %v8631_v19 = vpop.f32.mrf.mxu0 }
 0x3f0   : > { %v8632_v54 = vadd.f32 %v8631_v19, %v8630_v28  ;;  %v8626_v28 = vadd.f32 %v8625_v21, %v8624_v8  ;;  %v8544_v21 = vadd.f32 %v8543_v53, %v8542_v24  ;;  %v8617_v24 = vadd.f32 %v11016_v45, %v11013_v59 }
 0x3f1   : > { %v8545_v16 = vpop.f32.mrf.mxu1  ;;  %v8633_v33 = vpop.f32.mrf.mxu0 }
 0x3f3   : > { %v8546_v4 = vpop.f32.mrf.mxu1  ;;  %v8634_v23 = vpop.f32.mrf.mxu0 }
 0x3f4   : > { %v11032_v0 = vadd.f32 %v8634_v23, %v8633_v33 }
 0x3f7   : > { %v8548_v58 = vpop.f32.mrf.mxu1 }
 0x3f9   : > { %v11034_v52 = vpop.f32.mrf.mxu0  ;;  %v8549_v38 = vpop.f32.mrf.mxu1 }
 0x3fb   : > { %v11036_v61 = vpop.f32.mrf.mxu0  ;;  %v8551_v5 = vpop.f32.mrf.mxu1 }
 0x3fd   : > { %v11038_v49 = vpop.f32.mrf.mxu0  ;;  %v8552_v32 = vpop.f32.mrf.mxu1 }
 0x3ff   : > { %v11040_v39 = vpop.f32.mrf.mxu0 }
 0x403   : > { %v8554_v44 = vpop.f32.mrf.mxu1 }
 0x404   : > { %v11042_v47 = vpop.f32.mrf.mxu0 }
 0x405   : > { %v8555_v55 = vpop.f32.mrf.mxu1 }
 0x406   : > { %v8556_v2 = vadd.f32 %v8555_v55, %v8554_v44  ;;  %v11044_v36 = vpop.f32.mrf.mxu0  ;;  %v8629_v55 = vadd.f32 %v8628_v56, %v8627_v57  ;;  %v8553_v56 = vadd.f32 %v8552_v32, %v8551_v5  ;;  %v8611_v32 = vadd.f32 %v11001_v14, %v10996_v42 }
 0x407   : > { %v8557_v6 = vpop.f32.mrf.mxu1 }
 0x408   : > { %v6989_v50 = vadd.f32 %v8556_v2, %v10977_v9  ;;  %v11047_v13 = vpop.f32.mrf.mxu0 }
 0x409   : > { %v8558_v48 = vpop.f32.mrf.mxu1 }
 0x40a   : > { %v8559_v46 = vadd.f32 %v8558_v48, %v8557_v6  ;;  %v11049_v20 = vadd.f32 %v8620_v26, %v6989_v50  ;;  %v11052_v25 = vpop.f32.mrf.mxu0  ;;  %v8550_v50 = vadd.f32 %v8549_v38, %v8548_v58  ;;  %v6973_v58 = vadd.f32 %v8544_v21, %v10959_v15  ;;  %v11087_v15 = vld [vmem:[%s11226_s4] ss:$0 sm:$0xff] }
 0x40b   : > { %v8547_v38 = vadd.f32 %v8546_v4, %v8545_v16 }
 0x40c   : > { %v6992_v37 = vadd.f32 %v8559_v46, %v10981_v10  ;;  %v6981_v57 = vadd.f32 %v8550_v50, %v10969_v30 }
 0x40e   : > { %v8560_v34 = vpop.f32.mrf.mxu1  ;;  %v11054_v35 = vadd.f32 %v8623_v62, %v6992_v37 }
 0x40f   : > { %v11056_v19 = vpop.f32.mrf.mxu0 }
 0x410   : > { %v8561_v31 = vpop.f32.mrf.mxu1 }
 0x411   : > { %v8562_v33 = vadd.f32 %v8561_v31, %v8560_v34  ;;  %v11059_v2 = vpop.f32.mrf.mxu0 }
 0x412   : > { %v8563_v23 = vpop.f32.mrf.mxu1 }
 0x413   : > { %v6997_v9 = vadd.f32 %v8562_v33, %v10985_v60  ;;  %v11064_v62 = vpop.f32.mrf.mxu0  ;;  %v8614_v60 = vadd.f32 %v11009_v63, %v11006_v29  ;;  %v6984_v29 = vadd.f32 %v8553_v56, %v10973_v51 }
 0x414   : > { %v8564_v44 = vpop.f32.mrf.mxu1 }
 0x415   : > { %v8565_v26 = vadd.f32 %v8564_v44, %v8563_v23  ;;  %v11061_v6 = vadd.f32 %v8626_v28, %v6997_v9  ;;  %v11071_v34 = vpop.f32.mrf.mxu0  ;;  %v7078_v30 = vadd.f32 %v8614_v60, %v6981_v57 }
 0x417   : > { %v7000_v10 = vadd.f32 %v8565_v26, %v10989_v40  ;;  %v8608_v40 = vadd.f32 %v10994_v22, %v10991_v3  ;;  %v6976_v3 = vadd.f32 %v8547_v38, %v10963_v41 }
 0x419   : > { %v11066_v8 = vadd.f32 %v8629_v55, %v7000_v10  ;;  %v7073_v44 = vadd.f32 %v8611_v32, %v6976_v3  ;;  %v8638_v32 = vadd.f32 %v11036_v61, %v11034_v52 }
 0x41b   : > { %v8566_v48 = vpop.f32.mrf.mxu1 }
 0x41d   : > { %v8567_v46 = vpop.f32.mrf.mxu1 }
 0x41e   : > { %v8568_v37 = vadd.f32 %v8567_v46, %v8566_v48 }
 0x41f   : > { %v8569_v31 = vpop.f32.mrf.mxu1 }
 0x420   : > { %v7005_v28 = vadd.f32 %v8568_v37, %v10998_v43  ;;  %v7070_v43 = vadd.f32 %v8608_v40, %v6973_v58 }
 0x421   : > { %v8570_v53 = vpop.f32.mrf.mxu1 }
 0x422   : > { %v8571_v63 = vadd.f32 %v8570_v53, %v8569_v31  ;;  %v11080_v5 = vadd.f32 %v8632_v54, %v7005_v28  ;;  %v7081_v54 = vadd.f32 %v8617_v24, %v6984_v29 }
 0x424   : > { %v7008_v51 = vadd.f32 %v8571_v63, %v11004_v1 }
 0x425   : > { %v8756_v33 = vpop.f32.mrf.mxu0 }
 0x426   : > { %v7175_v22 = vadd.f32 %v8756_v33, %v7078_v30  ;;  %v11093_v42 = vadd.f32 %v11032_v0, %v7008_v51 }
 0x427   : > { %v7166_v59 = vpop.f32.mrf.mxu0 }
 0x428   : > { %v7238_v45 = vadd.f32 %v11087_v15, %v7175_v22  ;;  %v7167_v16 = vadd.f32 %v7166_v59, %v7070_v43 }
 0x429   : > { %v8757_v14 = vpop.f32.mrf.mxu0 }
 0x42a   : > { %v7254_v23 = vmax.f32 %v7238_v45, 0.0  ;;  %v7236_v41 = vadd.f32 %v11087_v15, %v7167_v16  ;;  %v7178_v9 = vadd.f32 %v8757_v14, %v7081_v54 }
 0x42b   : > { %v8572_v4 = vpop.f32.mrf.mxu1  ;;  %v7169_v55 = vpop.f32.mrf.mxu0 }
 0x42c   : > { %7270 = vst [vmem:[%s10602_s16 + $0x10] sm:$0xff] %v7254_v23  ;;  %v7252_v26 = vmax.f32 %v7236_v41, 0.0  ;;  %v7239_v10 = vadd.f32 %v11087_v15, %v7178_v9  ;;  %v7170_v50 = vadd.f32 %v7169_v55, %v7073_v44 }
 0x42d   : > { %v8573_v1 = vpop.f32.mrf.mxu1 }
 0x42e   : > { %7268 = vst [vmem:[%s10602_s16] sm:$0xff] %v7252_v26  ;;  %v7255_v0 = vmax.f32 %v7239_v10, 0.0  ;;  %v7237_v21 = vadd.f32 %v11087_v15, %v7170_v50  ;;  %v8574_v24 = vadd.f32 %v8573_v1, %v8572_v4  ;;  %v8644_v10 = vadd.f32 %v11044_v36, %v11042_v47 }
 0x42f   : > { %v8575_v48 = vpop.f32.mrf.mxu1 }
 0x430   : > { %7271 = vst [vmem:[%s10602_s16 + $0x18] sm:$0xff] %v7255_v0  ;;  %v7253_v60 = vmax.f32 %v7237_v21, 0.0  ;;  %v7013_v33 = vadd.f32 %v8574_v24, %v11011_v11  ;;  %v8653_v21 = vadd.f32 %v11071_v34, %v11064_v62 }
 0x431   : > { %v8576_v46 = vpop.f32.mrf.mxu1 }
 0x432   : > { %7269 = vst [vmem:[%s10602_s16 + $0x8] sm:$0xff] %v7253_v60  ;;  %v8577_v30 = vadd.f32 %v8576_v46, %v8575_v48  ;;  %v7110_v14 = vadd.f32 %v8638_v32, %v7013_v33 }
 0x433   : > { %v8578_v57 = vpop.f32.mrf.mxu1 }
 0x434   : > { %v7016_v16 = vadd.f32 %v8577_v30, %v11018_v18  ;;  %v8650_v18 = vadd.f32 %v11059_v2, %v11056_v19 }
 0x435   : > { %v8579_v56 = vpop.f32.mrf.mxu1 }
 0x436   : > { %v8580_v4 = vadd.f32 %v8579_v56, %v8578_v57  ;;  %v8647_v57 = vadd.f32 %v11052_v25, %v11047_v13 }
 0x437   : > { %v8581_v37 = vpop.f32.mrf.mxu1 }
 0x438   : > { %v7021_v50 = vadd.f32 %v8580_v4, %v11021_v7 }
 0x439   : > { %v8582_v31 = vpop.f32.mrf.mxu1 }
 0x43a   : > { %v8583_v0 = vadd.f32 %v8582_v31, %v8581_v37  ;;  %v7118_v37 = vadd.f32 %v8644_v10, %v7021_v50 }
 0x43b   : > { %v8584_v40 = vpop.f32.mrf.mxu1 }
 0x43c   : > { %v7024_v62 = vadd.f32 %v8583_v0, %v11024_v12 }
 0x43d   : > { %v8585_v58 = vpop.f32.mrf.mxu1 }
 0x43e   : > { %v8586_v54 = vadd.f32 %v8585_v58, %v8584_v40 }
 0x43f   : > { %v8587_v38 = vpop.f32.mrf.mxu1 }
 0x441   : > { %v8588_v28 = vpop.f32.mrf.mxu1 }
 0x442   : > { %v8589_v55 = vadd.f32 %v8588_v28, %v8587_v38 }
 0x443   : > { %v8760_v53 = vpop.f32.mrf.mxu1 }
 0x444   : > { %v7191_v29 = vadd.f32 %v8760_v53, %v11061_v6  ;;  %v8641_v6 = vadd.f32 %v11040_v39, %v11038_v49  ;;  %v7029_v39 = vadd.f32 %v8586_v54, %v11027_v17  ;;  %v7121_v53 = vadd.f32 %v8647_v57, %v7024_v62 }
 0x445   : > { %v7182_v63 = vpop.f32.mrf.mxu1 }
 0x446   : > { %v7242_v3 = vadd.f32 %v11087_v15, %v7191_v29  ;;  %v7183_v22 = vadd.f32 %v7182_v63, %v11049_v20  ;;  %v7113_v44 = vadd.f32 %v8641_v6, %v7016_v16  ;;  %v7126_v60 = vadd.f32 %v8650_v18, %v7029_v39 }
 0x447   : > { %v8761_v43 = vpop.f32.mrf.mxu1 }
 0x448   : > { %v7258_v51 = vmax.f32 %v7242_v3, 0.0  ;;  %v7240_v59 = vadd.f32 %v11087_v15, %v7183_v22  ;;  %v7194_v45 = vadd.f32 %v8761_v43, %v11066_v8 }
 0x449   : > { %v7185_v52 = vpop.f32.mrf.mxu1 }
 0x44a   : > { %7274 = vst [vmem:[%s10602_s16 + $0x30] sm:$0xff] %v7258_v51  ;;  %v7256_v11 = vmax.f32 %v7240_v59, 0.0  ;;  %v7243_v61 = vadd.f32 %v11087_v15, %v7194_v45  ;;  %v7186_v20 = vadd.f32 %v7185_v52, %v11054_v35 }
 0x44b   : > { %v8764_v23 = vpop.f32.mrf.mxu1 }
 0x44c   : > { %7272 = vst [vmem:[%s10602_s16 + $0x20] sm:$0xff] %v7256_v11  ;;  %v7259_v41 = vmax.f32 %v7243_v61, 0.0  ;;  %v7241_v8 = vadd.f32 %v11087_v15, %v7186_v20  ;;  %v7207_v49 = vadd.f32 %v8764_v23, %v7110_v14 }
 0x44d   : > { %v7198_v9 = vpop.f32.mrf.mxu1 }
 0x44e   : > { %7275 = vst [vmem:[%s10602_s16 + $0x38] sm:$0xff] %v7259_v41  ;;  %v7257_v35 = vmax.f32 %v7241_v8, 0.0  ;;  %v7246_v1 = vadd.f32 %v11087_v15, %v7207_v49  ;;  %v7199_v26 = vadd.f32 %v7198_v9, %v11080_v5  ;;  %v7032_v5 = vadd.f32 %v8589_v55, %v11030_v27 }
 0x44f   : > { %v8765_v48 = vpop.f32.mrf.mxu1 }
 0x450   : > { %7273 = vst [vmem:[%s10602_s16 + $0x28] sm:$0xff] %v7257_v35  ;;  %v7262_v17 = vmax.f32 %v7246_v1, 0.0  ;;  %v7244_v19 = vadd.f32 %v11087_v15, %v7199_v26  ;;  %v7210_v2 = vadd.f32 %v8765_v48, %v7113_v44  ;;  %v7129_v25 = vadd.f32 %v8653_v21, %v7032_v5 }
 0x451   : > { %v7201_v46 = vpop.f32.mrf.mxu1 }
 0x452   : > { %7278 = vst [vmem:[%s10602_s16 + $0x50] sm:$0xff] %v7262_v17  ;;  %v7260_v7 = vmax.f32 %v7244_v19, 0.0  ;;  %v7247_v47 = vadd.f32 %v11087_v15, %v7210_v2  ;;  %v7202_v36 = vadd.f32 %v7201_v46, %v11093_v42 }
 0x453   : > { %v8768_v56 = vpop.f32.mrf.mxu1 }
 0x454   : > { %7276 = vst [vmem:[%s10602_s16 + $0x40] sm:$0xff] %v7260_v7  ;;  %v7263_v34 = vmax.f32 %v7247_v47, 0.0  ;;  %v7245_v31 = vadd.f32 %v11087_v15, %v7202_v36  ;;  %v7223_v27 = vadd.f32 %v8768_v56, %v7126_v60 }
 0x455   : > { %v7214_v40 = vpop.f32.mrf.mxu1 }
 0x456   : > { %7279 = vst [vmem:[%s10602_s16 + $0x58] sm:$0xff] %v7263_v34  ;;  %v7261_v58 = vmax.f32 %v7245_v31, 0.0  ;;  %v7250_v42 = vadd.f32 %v11087_v15, %v7223_v27  ;;  %v7215_v13 = vadd.f32 %v7214_v40, %v7118_v37 }
 0x457   : > { %v8769_v38 = vpop.f32.mrf.mxu1 }
 0x458   : > { %7277 = vst [vmem:[%s10602_s16 + $0x48] sm:$0xff] %v7261_v58  ;;  %v7266_v12 = vmax.f32 %v7250_v42, 0.0  ;;  %v7248_v28 = vadd.f32 %v11087_v15, %v7215_v13  ;;  %v7226_v24 = vadd.f32 %v8769_v38, %v7129_v25 }
 0x459   : > { %v7217_v29 = vpop.f32.mrf.mxu1 }
 0x45a   : > { %7282 = vst [vmem:[%s10602_s16 + $0x70] sm:$0xff] %v7266_v12  ;;  %v7264_v30 = vmax.f32 %v7248_v28, 0.0  ;;  %v7251_v63 = vadd.f32 %v11087_v15, %v7226_v24  ;;  %v7218_v32 = vadd.f32 %v7217_v29, %v7121_v53 }
 0x45c   : > { %7280 = vst [vmem:[%s10602_s16 + $0x60] sm:$0xff] %v7264_v30  ;;  %v7267_v33 = vmax.f32 %v7251_v63, 0.0  ;;  %v7249_v3 = vadd.f32 %v11087_v15, %v7218_v32 }
 0x45e   : > { %7283 = vst [vmem:[%s10602_s16 + $0x78] sm:$0xff] %v7267_v33  ;;  %v7265_v22 = vmax.f32 %v7249_v3, 0.0 }
 0x460   : > { %7281 = vst [vmem:[%s10602_s16 + $0x68] sm:$0xff] %v7265_v22 }
 0x461   : > { %9435 = shalt.err (!%p9432_p0)
}
 0x462   : > { %s9436_s29 = scalar_lea.hbm %s11157_s10, 2048  ;;  %s9440_s5 = scalar_lea.hbm %s11330_s13, 8192 }
 0x463   : > { %p9437_p12 = scmp.ne.s32.totalorder %s11157_s10, %s9436_s29  ;;  %p9441_p6 = scmp.lt.s32.totalorder %s11157_s10, %s11330_s13 }
 0x464   : > { %p9442_p1 = scmp.lt.s32.totalorder %s9440_s5, %s9436_s29 }
 0x465   : > { %p9438_p2 = pnand %p9437_p12, %p11331_p11 }
 0x466   : > { %p9443_p3 = por %p9442_p1, %p9441_p6 }
 0x467   : > { %p9439_p5 = pneg %p9438_p2 }
 0x469   : > { %p9444_p7 = pnand %p9443_p3, %p9439_p5 }
 0x46b   : > { %9447 = shalt.err (!%p9444_p7)
}
 0x46c   : > { %s9562_s24 = smov 128   ;;  %s9563_s8 = smov 8  }
 0x46d   : > { %8803 = dma.vmem_to_hbm [thread:$0]  (%p11331_p11), %s11151_s28, 2048, %s11157_s10, %s11162_s12, %s9562_s24, %s9562_s24, %s9563_s8  }
 0x46e PF: > { %s11332_s9 = sld [smem:[#allocation18_spill]]  ;;  %p8830_p4 = scmp.ge.s32.totalorder %s9550_s7, 2 }
 0x46f   : > { %s11333_s11 = sld [smem:[#allocation21_spill]] }
 0x474   : > { %s7316_s21 = sand.u32 1, %s11332_s9  }
 0x475   : > { %p11334_p13 = scmp.ne.s32.totalorder %s11333_s11, 0  ;;  %s7317_s15 = scalar_lea.sflag [#allocation7], %s7316_s21 }
 0x477   : > { %p8820_p8 = pnand %p8830_p4, %p11334_p13 }
 0x479   : > { %p8821_p10 = pneg %p8820_p8 }
 0x47b   : > { %9505 = dma.done.wait (%p8821_p10), %s7317_s15, 2048  }
 0x47c   : > { %9507 = vsyncadd (%p8821_p10), %s7317_s15, 4294965248  ;;  %s24_s7 = sadd.s32 1, %s9550_s7   ;;  %s11335_s27 = sld [smem:[#allocation19_spill]] }
 0x47d   : > { %p21_p9 = scmp.ge.s32.totalorder %s24_s7, 6   ;;  %s11336_s29 = sld [smem:[#allocation22_spill]] }
 0x47e   : > { %s11337_s10 = sld [smem:[#allocation23_spill]]  ;;  %s11338_s21 = smov %s9514_s22 }
 0x47f   : > { %s11339_s22 = smov %s9518_s23  ;;  %s11340_s23 = smov %s9755_s3 }
 0x480   : > { %s11341_s24 = smov %s9526_s25  ;;  %s11342_s25 = smov %s9530_s26 }
 0x481   : > { %s11343_s26 = smov %s9750_s19  ;;  %s11344_s28 = smov %s9546_s30 }
 0x482   :  { %23 = sbr.rel (!%p21_p9) target bundleno = 16 (0x10), region = 115 }
 0x484   : > { %s11345_s30 = smov %s11337_s10 }
 0x487   :  { %7322 = vsyncpa [#allocation6], 1 }
 0x488   :  { %7324 = vsyncpa [#allocation6 + $0x1], 1 }
 0x489   :  { %7325 = vsyncpa [#allocation9], 1 }
 0x48a   :  { %7326 = vsyncpa [#allocation12], 1 }
 0x48b   :  { %7327 = vsyncpa [#allocation7], 1 }
 0x48c   :  { %7329 = vsyncpa [#allocation7 + $0x1], 1 }

</bundles_post_ra>
